<compile_context>
chip_gen: v5e
topology: v5e:2x2
jax: 0.10.0
libtpu: 0.0.40
codegen_flags: <defaults>
</compile_context>

<pallas_src>
import functools
import math

import jax
import jax.numpy as jnp
from jax import lax
from jax.experimental import pallas as pl
from jax.experimental.pallas import tpu as pltpu


def _round_up(x, m):
    return ((x + m - 1) // m) * m


# ----------------------------------------------------------------------------
# Pallas kernels
# ----------------------------------------------------------------------------
def _conv_in_lrelu_kernel(x_ref, w_ref, b_ref, mask_ref, o_ref, *,
                          offsets, inv_count, eps, slope):
    """Fused stride-2 3x3 conv + InstanceNorm + LeakyReLU for one sample.

    x_ref    : (1, R, 4*Cin)      bf16  pair-grouped, zero-padded input
    w_ref    : (4, 4*Cin, Coutp)  bf16  per-(oy,ox) grouped conv weights
    b_ref    : (1, Coutp)         f32   conv bias (cancelled by IN, kept for fidelity)
    mask_ref : (M, 1)             f32   1.0 on valid rows (j < Wo), 0.0 on pad rows
    o_ref    : (1, M, Coutp)      bf16  M = Ho*(Wo+1); pad rows stored as zero
    """
    M = o_ref.shape[1]
    coutp = o_ref.shape[2]

    acc = jnp.zeros((M, coutp), jnp.float32)
    for g, off in enumerate(offsets):                      # 4 shifted GEMMs
        acc = acc + jnp.dot(x_ref[0, off:off + M, :], w_ref[g],
                            preferred_element_type=jnp.float32)
    acc = acc + b_ref[...]

    mask = mask_ref[...]                                   # (M, 1)
    xm = acc * mask                                        # zero garbage rows
    # One-pass stats: E[x], E[x^2] over the Ho*Wo valid positions.
    s1 = jnp.sum(xm, axis=0, keepdims=True)                # (1, Coutp)
    s2 = jnp.sum(xm * xm, axis=0, keepdims=True)
    mean = s1 * inv_count
    var = jnp.maximum(s2 * inv_count - mean * mean, 0.0)   # biased var (PyTorch)
    y = (xm - mean) * lax.rsqrt(var + eps)
    y = jnp.maximum(y, slope * y)                          # LeakyReLU(0.2)
    o_ref[0] = (y * mask).astype(o_ref.dtype)


def _gap_linear_kernel(x_ref, w_ref, b_ref, o_ref, *, inv_count):
    """Global average pool + 1-wide linear head for all samples (single step).

    x_ref : (N, M4, Cp) bf16 (pad rows are zero) ; w_ref : (1, Cp) f32
    b_ref : (1, 1) f32 ; o_ref : (N, 1) f32
    """
    x = x_ref[...].astype(jnp.float32)                     # (N, M4, Cp)
    pooled = jnp.sum(x, axis=1) * inv_count                # (N, Cp)
    w = w_ref[...]                                         # (1, Cp)
    o_ref[...] = jnp.sum(pooled * w, axis=1, keepdims=True) + b_ref[...]


# ----------------------------------------------------------------------------
# Wrapper glue: pad + space-to-depth pair grouping (pure layout, XLA side)
# ----------------------------------------------------------------------------
def _pack_for_conv(x, *, right_padded):
    """x: (N, H, W[, +1], C).  Returns (Bf, Ho, Wo) with
    Bf: (N, (Ho+2)*(Wo+1), 4*C), Bf[n, u*(Wo+1)+g, (2v+c)*C:+C] = xpad[n,2u+v,2g+c,:].
    If right_padded, the last input column is already the zero right pad."""
    N, H, Wdim, C = x.shape
    W = Wdim - 1 if right_padded else Wdim
    assert H % 2 == 0 and W % 2 == 0, "even spatial dims required"
    if right_padded:
        xp = jnp.pad(x, ((0, 0), (1, 1), (1, 0), (0, 0)))
    else:
        xp = jnp.pad(x, ((0, 0), (1, 1), (1, 1), (0, 0)))
    Ho1, Wo1 = (H + 2) // 2, (W + 2) // 2                  # Ho+1, Wo+1
    b = xp.reshape(N, Ho1, 2, Wo1, 2, C)
    b = jnp.transpose(b, (0, 1, 3, 2, 4, 5)).reshape(N, Ho1 * Wo1, 4 * C)
    b = jnp.pad(b, ((0, 0), (0, Wo1), (0, 0)))             # extra zero row group
    return b, Ho1 - 1, Wo1 - 1


def _conv_layer(bf, layer, Ho, Wo, *, eps=1e-5, slope=0.2):
    """bf: (N, R, 4*Cin) bf16 -> (N, Ho*(Wo+1), Coutp) bf16."""
    N, R, Kc = bf.shape
    Coutp = layer["w"].shape[-1]
    M = Ho * (Wo + 1)
    offsets = (0, 1, Wo + 1, Wo + 2)                       # (oy,ox) row shifts
    mask = (jnp.arange(M) % (Wo + 1) < Wo).astype(jnp.float32).reshape(M, 1)

    kernel = functools.partial(_conv_in_lrelu_kernel, offsets=offsets,
                               inv_count=1.0 / float(Ho * Wo),
                               eps=eps, slope=slope)
    out = pl.pallas_call(
        kernel,
        out_shape=jax.ShapeDtypeStruct((N, M, Coutp), jnp.bfloat16),
        grid_spec=pltpu.PrefetchScalarGridSpec(
            num_scalar_prefetch=0,
            grid=(N,),
            in_specs=[
                pl.BlockSpec((1, R, Kc), lambda n: (n, 0, 0)),
                pl.BlockSpec((4, Kc, Coutp), lambda n: (0, 0, 0)),
                pl.BlockSpec((1, Coutp), lambda n: (0, 0)),
                pl.BlockSpec((M, 1), lambda n: (0, 0)),
            ],
            out_specs=pl.BlockSpec((1, M, Coutp), lambda n: (n, 0, 0)),
        ),
        compiler_params=pltpu.CompilerParams(
            dimension_semantics=("parallel",),
            vmem_limit_bytes=32 * 1024 * 1024),
    )(bf, layer["w"], layer["b"], mask)
    # Dropout(0.3) is identity at inference.
    return out


def _gap_linear(feats, w_row, b, spatial_count):
    """feats: (N, M4, Cp) bf16 -> (N, 1) f32."""
    N, M4, Cp = feats.shape
    kernel = functools.partial(_gap_linear_kernel,
                               inv_count=1.0 / float(spatial_count))
    return pl.pallas_call(
        kernel,
        out_shape=jax.ShapeDtypeStruct((N, 1), jnp.float32),
        grid_spec=pltpu.PrefetchScalarGridSpec(
            num_scalar_prefetch=0,
            grid=(1,),
            in_specs=[
                pl.BlockSpec((N, M4, Cp), lambda i: (0, 0, 0)),
                pl.BlockSpec((1, Cp), lambda i: (0, 0)),
                pl.BlockSpec((1, 1), lambda i: (0, 0)),
            ],
            out_specs=pl.BlockSpec((N, 1), lambda i: (0, 0)),
        ),
    )(feats, w_row, b)


# ----------------------------------------------------------------------------
# Parameters (synthetic, deterministic) + spectral_norm weight preprocessing
# ----------------------------------------------------------------------------
def _spectral_normalize(w, iters=15):
    """Divide conv weight by its top singular value (spectral_norm forward)."""
    cout = w.shape[-1]
    mat = w.reshape(-1, cout)
    v = jnp.full((cout,), 1.0 / math.sqrt(cout), jnp.float32)
    u = mat @ v
    for _ in range(iters):
        u = mat @ v
        u = u / (jnp.linalg.norm(u) + 1e-12)
        v = mat.T @ u
        v = v / (jnp.linalg.norm(v) + 1e-12)
    sigma = u @ (mat @ v)
    return w / sigma


def init_discriminator(key, dim=64):
    channels = [3, dim, 2 * dim, 4 * dim, 8 * dim]
    keys = jax.random.split(key, 2 * 4 + 2)

    convs = []
    cin_pad = 3                                     # image channels stay unpadded
    for l in range(4):
        cin, cout = channels[l], channels[l + 1]
        std = 1.0 / math.sqrt(9 * cin)
        w = jax.random.normal(keys[2 * l], (3, 3, cin, cout), jnp.float32) * std
        bias = jax.random.uniform(keys[2 * l + 1], (cout,), jnp.float32, -std, std)
        w = _spectral_normalize(w)

        cout_pad = _round_up(cout, 128)             # lane-dense output channels
        Kc = 4 * cin_pad
        # Grouped weights: W[g=(oy,ox)][(2v+c)*Cin_pad:+Cin, :] = w[2oy+v, 2ox+c].
        wg = jnp.zeros((4, Kc, cout_pad), jnp.float32)
        for gi, (oy, ox) in enumerate(((0, 0), (0, 1), (1, 0), (1, 1))):
            for v in range(2):
                for c in range(2):
                    dy, dx = 2 * oy + v, 2 * ox + c
                    if dy < 3 and dx < 3:
                        blk = (2 * v + c) * cin_pad
                        wg = wg.at[gi, blk:blk + cin, :cout].set(w[dy, dx])
        bp = jnp.zeros((1, cout_pad), jnp.float32).at[0, :cout].set(bias)

        convs.append({"w": wg.astype(jnp.bfloat16), "b": bp})
        cin_pad = cout_pad

    fin = 8 * dim
    std = 1.0 / math.sqrt(fin)
    wl = jax.random.normal(keys[8], (fin,), jnp.float32) * std
    bl = jax.random.uniform(keys[9], (1,), jnp.float32, -std, std)
    w_row = jnp.zeros((1, cin_pad), jnp.float32).at[0, :fin].set(wl)

    return {"convs": convs, "lin_w": w_row, "lin_b": bl.reshape(1, 1)}


# ----------------------------------------------------------------------------
# Forward pass (mirrors Discriminator_WGAN_Two.forward, inference mode)
# ----------------------------------------------------------------------------
def discriminator_forward(params, x_nchw):
    act = jnp.transpose(x_nchw, (0, 2, 3, 1)).astype(jnp.bfloat16)   # NHWC
    right_padded = False
    Ho = Wo = None
    for layer in params["convs"]:
        bf, Ho, Wo = _pack_for_conv(act, right_padded=right_padded)
        out = _conv_layer(bf, layer, Ho, Wo)            # (N, Ho*(Wo+1), Cp) bf16
        Cp = layer["w"].shape[-1]
        act = out.reshape(out.shape[0], Ho, Wo + 1, Cp)
        right_padded = True                             # last column is the zero pad

    N = act.shape[0]
    feats = act.reshape(N, Ho * (Wo + 1), act.shape[-1])
    return _gap_linear(feats, params["lin_w"], params["lin_b"], Ho * Wo)   # (N, 1)


# ----------------------------------------------------------------------------
if __name__ == "__main__":
    key = jax.random.PRNGKey(0)
    k_param, k_x = jax.random.split(key)

    DIM = 32                                      # small config for the demo
    params = init_discriminator(k_param, dim=DIM)

    # NCHW input image, small spatial size (32 -> 16 -> 8 -> 4 -> 2).
    x = jax.random.normal(k_x, (2, 3, 32, 32), jnp.float32)

    fwd = jax.jit(discriminator_forward)
    out = jax.block_until_ready(fwd(params, x))

    assert out.shape == (2, 1), out.shape
    assert bool(jnp.all(jnp.isfinite(out)))
    print("KERNEL_OK")
</pallas_src>

<mosaic_0001>
module attributes {stable_mosaic.version = 11 : i64} {
  func.func @_conv_in_lrelu_kernel(%arg0: i32, %arg1: memref<1x306x12xbf16, #tpu.memory_space<vmem>>, %arg2: memref<4x12x128xbf16, #tpu.memory_space<vmem>>, %arg3: memref<1x128xf32, #tpu.memory_space<vmem>>, %arg4: memref<272x1xf32, #tpu.memory_space<vmem>>, %arg5: memref<1x272x128xbf16, #tpu.memory_space<vmem>>) attributes {dimension_semantics = [#tpu.dimension_semantics<parallel>], iteration_bounds = array<i64: 2>, scalar_prefetch = 0 : i64, scratch_operands = 0 : i64, tpu.core_type = #tpu.core_type<tc>, window_params = [{transform_indices = @transform_0, window_bounds = array<i64: 1, 306, 12>}, {pipeline_mode = #tpu.pipeline_mode<synchronous>, transform_indices = @transform_1, window_bounds = array<i64: 4, 12, 128>}, {pipeline_mode = #tpu.pipeline_mode<synchronous>, transform_indices = @transform_2, window_bounds = array<i64: 1, 128>}, {pipeline_mode = #tpu.pipeline_mode<synchronous>, transform_indices = @transform_3, window_bounds = array<i64: 272, 1>}, {transform_indices = @transform_4, window_bounds = array<i64: 1, 272, 128>}]} {
    %cst = arith.constant 0.000000e+00 : f32
    %0 = vector.broadcast %cst : f32 to vector<272x128xf32>
    %c0 = arith.constant 0 : index
    %c0_0 = arith.constant 0 : index
    %c0_1 = arith.constant 0 : index
    %1 = vector.load %arg1[%c0, %c0_0, %c0_1] : memref<1x306x12xbf16, #tpu.memory_space<vmem>>, vector<1x272x12xbf16>
    %2 = vector.shape_cast %1 : vector<1x272x12xbf16> to vector<272x12xbf16>
    %c0_2 = arith.constant 0 : index
    %c0_3 = arith.constant 0 : index
    %c0_4 = arith.constant 0 : index
    %3 = vector.load %arg2[%c0_2, %c0_3, %c0_4] : memref<4x12x128xbf16, #tpu.memory_space<vmem>>, vector<1x12x128xbf16>
    %4 = vector.shape_cast %3 : vector<1x12x128xbf16> to vector<12x128xbf16>
    %cst_5 = arith.constant dense<0.000000e+00> : vector<272x128xf32>
    %5 = tpu.matmul %2, %4, %cst_5 {dimension_numbers = #tpu.dot_dimension_numbers<[1], [0], [0], [1], [0, 0, 1, 1], [], []>} : vector<272x12xbf16>, vector<12x128xbf16>, vector<272x128xf32> -> vector<272x128xf32>
    %6 = arith.addf %0, %5 : vector<272x128xf32>
    %c0_6 = arith.constant 0 : index
    %c1 = arith.constant 1 : index
    %c0_7 = arith.constant 0 : index
    %7 = vector.load %arg1[%c0_6, %c1, %c0_7] : memref<1x306x12xbf16, #tpu.memory_space<vmem>>, vector<1x272x12xbf16>
    %8 = vector.shape_cast %7 : vector<1x272x12xbf16> to vector<272x12xbf16>
    %c1_8 = arith.constant 1 : index
    %c0_9 = arith.constant 0 : index
    %c0_10 = arith.constant 0 : index
    %9 = vector.load %arg2[%c1_8, %c0_9, %c0_10] : memref<4x12x128xbf16, #tpu.memory_space<vmem>>, vector<1x12x128xbf16>
    %10 = vector.shape_cast %9 : vector<1x12x128xbf16> to vector<12x128xbf16>
    %cst_11 = arith.constant dense<0.000000e+00> : vector<272x128xf32>
    %11 = tpu.matmul %8, %10, %cst_11 {dimension_numbers = #tpu.dot_dimension_numbers<[1], [0], [0], [1], [0, 0, 1, 1], [], []>} : vector<272x12xbf16>, vector<12x128xbf16>, vector<272x128xf32> -> vector<272x128xf32>
    %12 = arith.addf %6, %11 : vector<272x128xf32>
    %c0_12 = arith.constant 0 : index
    %c17 = arith.constant 17 : index
    %c0_13 = arith.constant 0 : index
    %13 = vector.load %arg1[%c0_12, %c17, %c0_13] : memref<1x306x12xbf16, #tpu.memory_space<vmem>>, vector<1x272x12xbf16>
    %14 = vector.shape_cast %13 : vector<1x272x12xbf16> to vector<272x12xbf16>
    %c2 = arith.constant 2 : index
    %c0_14 = arith.constant 0 : index
    %c0_15 = arith.constant 0 : index
    %15 = vector.load %arg2[%c2, %c0_14, %c0_15] : memref<4x12x128xbf16, #tpu.memory_space<vmem>>, vector<1x12x128xbf16>
    %16 = vector.shape_cast %15 : vector<1x12x128xbf16> to vector<12x128xbf16>
    %cst_16 = arith.constant dense<0.000000e+00> : vector<272x128xf32>
    %17 = tpu.matmul %14, %16, %cst_16 {dimension_numbers = #tpu.dot_dimension_numbers<[1], [0], [0], [1], [0, 0, 1, 1], [], []>} : vector<272x12xbf16>, vector<12x128xbf16>, vector<272x128xf32> -> vector<272x128xf32>
    %18 = arith.addf %12, %17 : vector<272x128xf32>
    %c0_17 = arith.constant 0 : index
    %c18 = arith.constant 18 : index
    %c0_18 = arith.constant 0 : index
    %19 = vector.load %arg1[%c0_17, %c18, %c0_18] : memref<1x306x12xbf16, #tpu.memory_space<vmem>>, vector<1x272x12xbf16>
    %20 = vector.shape_cast %19 : vector<1x272x12xbf16> to vector<272x12xbf16>
    %c3 = arith.constant 3 : index
    %c0_19 = arith.constant 0 : index
    %c0_20 = arith.constant 0 : index
    %21 = vector.load %arg2[%c3, %c0_19, %c0_20] : memref<4x12x128xbf16, #tpu.memory_space<vmem>>, vector<1x12x128xbf16>
    %22 = vector.shape_cast %21 : vector<1x12x128xbf16> to vector<12x128xbf16>
    %cst_21 = arith.constant dense<0.000000e+00> : vector<272x128xf32>
    %23 = tpu.matmul %20, %22, %cst_21 {dimension_numbers = #tpu.dot_dimension_numbers<[1], [0], [0], [1], [0, 0, 1, 1], [], []>} : vector<272x12xbf16>, vector<12x128xbf16>, vector<272x128xf32> -> vector<272x128xf32>
    %24 = arith.addf %18, %23 : vector<272x128xf32>
    %c0_22 = arith.constant 0 : index
    %c0_23 = arith.constant 0 : index
    %25 = vector.load %arg3[%c0_22, %c0_23] : memref<1x128xf32, #tpu.memory_space<vmem>>, vector<1x128xf32>
    %26 = vector.broadcast %25 : vector<1x128xf32> to vector<272x128xf32>
    %27 = arith.addf %24, %26 : vector<272x128xf32>
    %c0_24 = arith.constant 0 : index
    %c0_25 = arith.constant 0 : index
    %28 = vector.load %arg4[%c0_24, %c0_25] : memref<272x1xf32, #tpu.memory_space<vmem>>, vector<272x1xf32>
    %29 = vector.broadcast %28 : vector<272x1xf32> to vector<272x128xf32>
    %30 = arith.mulf %27, %29 : vector<272x128xf32>
    %cst_26 = arith.constant dense<0.000000e+00> : vector<128xf32>
    %31 = vector.multi_reduction <add>, %30, %cst_26 [0] : vector<272x128xf32> to vector<128xf32>
    %32 = vector.shape_cast %31 : vector<128xf32> to vector<1x128xf32>
    %33 = arith.mulf %30, %30 : vector<272x128xf32>
    %cst_27 = arith.constant dense<0.000000e+00> : vector<128xf32>
    %34 = vector.multi_reduction <add>, %33, %cst_27 [0] : vector<272x128xf32> to vector<128xf32>
    %35 = vector.shape_cast %34 : vector<128xf32> to vector<1x128xf32>
    %cst_28 = arith.constant 3.906250e-03 : f32
    %36 = vector.broadcast %cst_28 : f32 to vector<1x128xf32>
    %37 = arith.mulf %32, %36 : vector<1x128xf32>
    %cst_29 = arith.constant 3.906250e-03 : f32
    %38 = vector.broadcast %cst_29 : f32 to vector<1x128xf32>
    %39 = arith.mulf %35, %38 : vector<1x128xf32>
    %40 = arith.mulf %37, %37 : vector<1x128xf32>
    %41 = arith.subf %39, %40 : vector<1x128xf32>
    %cst_30 = arith.constant 0.000000e+00 : f32
    %42 = vector.broadcast %cst_30 : f32 to vector<1x128xf32>
    %43 = arith.maximumf %41, %42 : vector<1x128xf32>
    %44 = vector.broadcast %37 : vector<1x128xf32> to vector<272x128xf32>
    %45 = arith.subf %30, %44 : vector<272x128xf32>
    %cst_31 = arith.constant 9.99999974E-6 : f32
    %46 = vector.broadcast %cst_31 : f32 to vector<1x128xf32>
    %47 = arith.addf %43, %46 : vector<1x128xf32>
    %48 = math.rsqrt %47 : vector<1x128xf32>
    %49 = vector.broadcast %48 : vector<1x128xf32> to vector<272x128xf32>
    %50 = arith.mulf %45, %49 : vector<272x128xf32>
    %cst_32 = arith.constant 2.000000e-01 : f32
    %51 = vector.broadcast %cst_32 : f32 to vector<272x128xf32>
    %52 = arith.mulf %51, %50 : vector<272x128xf32>
    %53 = arith.maximumf %50, %52 : vector<272x128xf32>
    %54 = vector.broadcast %28 : vector<272x1xf32> to vector<272x128xf32>
    %55 = arith.mulf %53, %54 : vector<272x128xf32>
    %56 = arith.truncf %55 : vector<272x128xf32> to vector<272x128xbf16>
    %c0_33 = arith.constant 0 : index
    %c0_34 = arith.constant 0 : index
    %c0_35 = arith.constant 0 : index
    %57 = vector.load %arg5[%c0_33, %c0_34, %c0_35] : memref<1x272x128xbf16, #tpu.memory_space<vmem>>, vector<1x272x128xbf16>
    %58 = vector.shape_cast %57 : vector<1x272x128xbf16> to vector<272x128xbf16>
    %59 = vector.shape_cast %56 : vector<272x128xbf16> to vector<1x272x128xbf16>
    tpu.vector_store %arg5[%c0_33, %c0_34, %c0_35], %59 {strides = array<i32>} : memref<1x272x128xbf16, #tpu.memory_space<vmem>>, vector<1x272x128xbf16>,
    return
  }
  func.func @transform_0(%arg0: i32) -> (i32, i32, i32) {
    %c0_i32 = arith.constant 0 : i32
    %c0_i32_0 = arith.constant 0 : i32
    %c0_i32_1 = arith.constant 0 : i32
    return %arg0, %c0_i32, %c0_i32_0 : i32, i32, i32
  }
  func.func @transform_1(%arg0: i32) -> (i32, i32, i32) {
    %c0_i32 = arith.constant 0 : i32
    %c0_i32_0 = arith.constant 0 : i32
    %c0_i32_1 = arith.constant 0 : i32
    %c0_i32_2 = arith.constant 0 : i32
    return %c0_i32, %c0_i32_0, %c0_i32_1 : i32, i32, i32
  }
  func.func @transform_2(%arg0: i32) -> (i32, i32) {
    %c0_i32 = arith.constant 0 : i32
    %c0_i32_0 = arith.constant 0 : i32
    %c0_i32_1 = arith.constant 0 : i32
    return %c0_i32, %c0_i32_0 : i32, i32
  }
  func.func @transform_3(%arg0: i32) -> (i32, i32) {
    %c0_i32 = arith.constant 0 : i32
    %c0_i32_0 = arith.constant 0 : i32
    %c0_i32_1 = arith.constant 0 : i32
    return %c0_i32, %c0_i32_0 : i32, i32
  }
  func.func @transform_4(%arg0: i32) -> (i32, i32, i32) {
    %c0_i32 = arith.constant 0 : i32
    %c0_i32_0 = arith.constant 0 : i32
    %c0_i32_1 = arith.constant 0 : i32
    return %arg0, %c0_i32, %c0_i32_0 : i32, i32, i32
  }
}

module attributes {stable_mosaic.version = 11 : i64} {
  func.func @_conv_in_lrelu_kernel(%arg0: i32, %arg1: memref<1x90x512xbf16, #tpu.memory_space<vmem>>, %arg2: memref<4x512x128xbf16, #tpu.memory_space<vmem>>, %arg3: memref<1x128xf32, #tpu.memory_space<vmem>>, %arg4: memref<72x1xf32, #tpu.memory_space<vmem>>, %arg5: memref<1x72x128xbf16, #tpu.memory_space<vmem>>) attributes {dimension_semantics = [#tpu.dimension_semantics<parallel>], iteration_bounds = array<i64: 2>, scalar_prefetch = 0 : i64, scratch_operands = 0 : i64, tpu.core_type = #tpu.core_type<tc>, window_params = [{transform_indices = @transform_0, window_bounds = array<i64: 1, 90, 512>}, {pipeline_mode = #tpu.pipeline_mode<synchronous>, transform_indices = @transform_1, window_bounds = array<i64: 4, 512, 128>}, {pipeline_mode = #tpu.pipeline_mode<synchronous>, transform_indices = @transform_2, window_bounds = array<i64: 1, 128>}, {pipeline_mode = #tpu.pipeline_mode<synchronous>, transform_indices = @transform_3, window_bounds = array<i64: 72, 1>}, {transform_indices = @transform_4, window_bounds = array<i64: 1, 72, 128>}]} {
    %cst = arith.constant 0.000000e+00 : f32
    %0 = vector.broadcast %cst : f32 to vector<72x128xf32>
    %c0 = arith.constant 0 : index
    %c0_0 = arith.constant 0 : index
    %c0_1 = arith.constant 0 : index
    %1 = vector.load %arg1[%c0, %c0_0, %c0_1] : memref<1x90x512xbf16, #tpu.memory_space<vmem>>, vector<1x72x512xbf16>
    %2 = vector.shape_cast %1 : vector<1x72x512xbf16> to vector<72x512xbf16>
    %c0_2 = arith.constant 0 : index
    %c0_3 = arith.constant 0 : index
    %c0_4 = arith.constant 0 : index
    %3 = vector.load %arg2[%c0_2, %c0_3, %c0_4] : memref<4x512x128xbf16, #tpu.memory_space<vmem>>, vector<1x512x128xbf16>
    %4 = vector.shape_cast %3 : vector<1x512x128xbf16> to vector<512x128xbf16>
    %cst_5 = arith.constant dense<0.000000e+00> : vector<72x128xf32>
    %5 = tpu.matmul %2, %4, %cst_5 {dimension_numbers = #tpu.dot_dimension_numbers<[1], [0], [0], [1], [0, 0, 1, 1], [], []>} : vector<72x512xbf16>, vector<512x128xbf16>, vector<72x128xf32> -> vector<72x128xf32>
    %6 = arith.addf %0, %5 : vector<72x128xf32>
    %c0_6 = arith.constant 0 : index
    %c1 = arith.constant 1 : index
    %c0_7 = arith.constant 0 : index
    %7 = vector.load %arg1[%c0_6, %c1, %c0_7] : memref<1x90x512xbf16, #tpu.memory_space<vmem>>, vector<1x72x512xbf16>
    %8 = vector.shape_cast %7 : vector<1x72x512xbf16> to vector<72x512xbf16>
    %c1_8 = arith.constant 1 : index
    %c0_9 = arith.constant 0 : index
    %c0_10 = arith.constant 0 : index
    %9 = vector.load %arg2[%c1_8, %c0_9, %c0_10] : memref<4x512x128xbf16, #tpu.memory_space<vmem>>, vector<1x512x128xbf16>
    %10 = vector.shape_cast %9 : vector<1x512x128xbf16> to vector<512x128xbf16>
    %cst_11 = arith.constant dense<0.000000e+00> : vector<72x128xf32>
    %11 = tpu.matmul %8, %10, %cst_11 {dimension_numbers = #tpu.dot_dimension_numbers<[1], [0], [0], [1], [0, 0, 1, 1], [], []>} : vector<72x512xbf16>, vector<512x128xbf16>, vector<72x128xf32> -> vector<72x128xf32>
    %12 = arith.addf %6, %11 : vector<72x128xf32>
    %c0_12 = arith.constant 0 : index
    %c9 = arith.constant 9 : index
    %c0_13 = arith.constant 0 : index
    %13 = vector.load %arg1[%c0_12, %c9, %c0_13] : memref<1x90x512xbf16, #tpu.memory_space<vmem>>, vector<1x72x512xbf16>
    %14 = vector.shape_cast %13 : vector<1x72x512xbf16> to vector<72x512xbf16>
    %c2 = arith.constant 2 : index
    %c0_14 = arith.constant 0 : index
    %c0_15 = arith.constant 0 : index
    %15 = vector.load %arg2[%c2, %c0_14, %c0_15] : memref<4x512x128xbf16, #tpu.memory_space<vmem>>, vector<1x512x128xbf16>
    %16 = vector.shape_cast %15 : vector<1x512x128xbf16> to vector<512x128xbf16>
    %cst_16 = arith.constant dense<0.000000e+00> : vector<72x128xf32>
    %17 = tpu.matmul %14, %16, %cst_16 {dimension_numbers = #tpu.dot_dimension_numbers<[1], [0], [0], [1], [0, 0, 1, 1], [], []>} : vector<72x512xbf16>, vector<512x128xbf16>, vector<72x128xf32> -> vector<72x128xf32>
    %18 = arith.addf %12, %17 : vector<72x128xf32>
    %c0_17 = arith.constant 0 : index
    %c10 = arith.constant 10 : index
    %c0_18 = arith.constant 0 : index
    %19 = vector.load %arg1[%c0_17, %c10, %c0_18] : memref<1x90x512xbf16, #tpu.memory_space<vmem>>, vector<1x72x512xbf16>
    %20 = vector.shape_cast %19 : vector<1x72x512xbf16> to vector<72x512xbf16>
    %c3 = arith.constant 3 : index
    %c0_19 = arith.constant 0 : index
    %c0_20 = arith.constant 0 : index
    %21 = vector.load %arg2[%c3, %c0_19, %c0_20] : memref<4x512x128xbf16, #tpu.memory_space<vmem>>, vector<1x512x128xbf16>
    %22 = vector.shape_cast %21 : vector<1x512x128xbf16> to vector<512x128xbf16>
    %cst_21 = arith.constant dense<0.000000e+00> : vector<72x128xf32>
    %23 = tpu.matmul %20, %22, %cst_21 {dimension_numbers = #tpu.dot_dimension_numbers<[1], [0], [0], [1], [0, 0, 1, 1], [], []>} : vector<72x512xbf16>, vector<512x128xbf16>, vector<72x128xf32> -> vector<72x128xf32>
    %24 = arith.addf %18, %23 : vector<72x128xf32>
    %c0_22 = arith.constant 0 : index
    %c0_23 = arith.constant 0 : index
    %25 = vector.load %arg3[%c0_22, %c0_23] : memref<1x128xf32, #tpu.memory_space<vmem>>, vector<1x128xf32>
    %26 = vector.broadcast %25 : vector<1x128xf32> to vector<72x128xf32>
    %27 = arith.addf %24, %26 : vector<72x128xf32>
    %c0_24 = arith.constant 0 : index
    %c0_25 = arith.constant 0 : index
    %28 = vector.load %arg4[%c0_24, %c0_25] : memref<72x1xf32, #tpu.memory_space<vmem>>, vector<72x1xf32>
    %29 = vector.broadcast %28 : vector<72x1xf32> to vector<72x128xf32>
    %30 = arith.mulf %27, %29 : vector<72x128xf32>
    %cst_26 = arith.constant dense<0.000000e+00> : vector<128xf32>
    %31 = vector.multi_reduction <add>, %30, %cst_26 [0] : vector<72x128xf32> to vector<128xf32>
    %32 = vector.shape_cast %31 : vector<128xf32> to vector<1x128xf32>
    %33 = arith.mulf %30, %30 : vector<72x128xf32>
    %cst_27 = arith.constant dense<0.000000e+00> : vector<128xf32>
    %34 = vector.multi_reduction <add>, %33, %cst_27 [0] : vector<72x128xf32> to vector<128xf32>
    %35 = vector.shape_cast %34 : vector<128xf32> to vector<1x128xf32>
    %cst_28 = arith.constant 1.562500e-02 : f32
    %36 = vector.broadcast %cst_28 : f32 to vector<1x128xf32>
    %37 = arith.mulf %32, %36 : vector<1x128xf32>
    %cst_29 = arith.constant 1.562500e-02 : f32
    %38 = vector.broadcast %cst_29 : f32 to vector<1x128xf32>
    %39 = arith.mulf %35, %38 : vector<1x128xf32>
    %40 = arith.mulf %37, %37 : vector<1x128xf32>
    %41 = arith.subf %39, %40 : vector<1x128xf32>
    %cst_30 = arith.constant 0.000000e+00 : f32
    %42 = vector.broadcast %cst_30 : f32 to vector<1x128xf32>
    %43 = arith.maximumf %41, %42 : vector<1x128xf32>
    %44 = vector.broadcast %37 : vector<1x128xf32> to vector<72x128xf32>
    %45 = arith.subf %30, %44 : vector<72x128xf32>
    %cst_31 = arith.constant 9.99999974E-6 : f32
    %46 = vector.broadcast %cst_31 : f32 to vector<1x128xf32>
    %47 = arith.addf %43, %46 : vector<1x128xf32>
    %48 = math.rsqrt %47 : vector<1x128xf32>
    %49 = vector.broadcast %48 : vector<1x128xf32> to vector<72x128xf32>
    %50 = arith.mulf %45, %49 : vector<72x128xf32>
    %cst_32 = arith.constant 2.000000e-01 : f32
    %51 = vector.broadcast %cst_32 : f32 to vector<72x128xf32>
    %52 = arith.mulf %51, %50 : vector<72x128xf32>
    %53 = arith.maximumf %50, %52 : vector<72x128xf32>
    %54 = vector.broadcast %28 : vector<72x1xf32> to vector<72x128xf32>
    %55 = arith.mulf %53, %54 : vector<72x128xf32>
    %56 = arith.truncf %55 : vector<72x128xf32> to vector<72x128xbf16>
    %c0_33 = arith.constant 0 : index
    %c0_34 = arith.constant 0 : index
    %c0_35 = arith.constant 0 : index
    %57 = vector.load %arg5[%c0_33, %c0_34, %c0_35] : memref<1x72x128xbf16, #tpu.memory_space<vmem>>, vector<1x72x128xbf16>
    %58 = vector.shape_cast %57 : vector<1x72x128xbf16> to vector<72x128xbf16>
    %59 = vector.shape_cast %56 : vector<72x128xbf16> to vector<1x72x128xbf16>
    tpu.vector_store %arg5[%c0_33, %c0_34, %c0_35], %59 {strides = array<i32>} : memref<1x72x128xbf16, #tpu.memory_space<vmem>>, vector<1x72x128xbf16>,
    return
  }
  func.func @transform_0(%arg0: i32) -> (i32, i32, i32) {
    %c0_i32 = arith.constant 0 : i32
    %c0_i32_0 = arith.constant 0 : i32
    %c0_i32_1 = arith.constant 0 : i32
    return %arg0, %c0_i32, %c0_i32_0 : i32, i32, i32
  }
  func.func @transform_1(%arg0: i32) -> (i32, i32, i32) {
    %c0_i32 = arith.constant 0 : i32
    %c0_i32_0 = arith.constant 0 : i32
    %c0_i32_1 = arith.constant 0 : i32
    %c0_i32_2 = arith.constant 0 : i32
    return %c0_i32, %c0_i32_0, %c0_i32_1 : i32, i32, i32
  }
  func.func @transform_2(%arg0: i32) -> (i32, i32) {
    %c0_i32 = arith.constant 0 : i32
    %c0_i32_0 = arith.constant 0 : i32
    %c0_i32_1 = arith.constant 0 : i32
    return %c0_i32, %c0_i32_0 : i32, i32
  }
  func.func @transform_3(%arg0: i32) -> (i32, i32) {
    %c0_i32 = arith.constant 0 : i32
    %c0_i32_0 = arith.constant 0 : i32
    %c0_i32_1 = arith.constant 0 : i32
    return %c0_i32, %c0_i32_0 : i32, i32
  }
  func.func @transform_4(%arg0: i32) -> (i32, i32, i32) {
    %c0_i32 = arith.constant 0 : i32
    %c0_i32_0 = arith.constant 0 : i32
    %c0_i32_1 = arith.constant 0 : i32
    return %arg0, %c0_i32, %c0_i32_0 : i32, i32, i32
  }
}

module attributes {stable_mosaic.version = 11 : i64} {
  func.func @_conv_in_lrelu_kernel(%arg0: i32, %arg1: memref<1x30x512xbf16, #tpu.memory_space<vmem>>, %arg2: memref<4x512x128xbf16, #tpu.memory_space<vmem>>, %arg3: memref<1x128xf32, #tpu.memory_space<vmem>>, %arg4: memref<20x1xf32, #tpu.memory_space<vmem>>, %arg5: memref<1x20x128xbf16, #tpu.memory_space<vmem>>) attributes {dimension_semantics = [#tpu.dimension_semantics<parallel>], iteration_bounds = array<i64: 2>, scalar_prefetch = 0 : i64, scratch_operands = 0 : i64, tpu.core_type = #tpu.core_type<tc>, window_params = [{transform_indices = @transform_0, window_bounds = array<i64: 1, 30, 512>}, {pipeline_mode = #tpu.pipeline_mode<synchronous>, transform_indices = @transform_1, window_bounds = array<i64: 4, 512, 128>}, {pipeline_mode = #tpu.pipeline_mode<synchronous>, transform_indices = @transform_2, window_bounds = array<i64: 1, 128>}, {pipeline_mode = #tpu.pipeline_mode<synchronous>, transform_indices = @transform_3, window_bounds = array<i64: 20, 1>}, {transform_indices = @transform_4, window_bounds = array<i64: 1, 20, 128>}]} {
    %cst = arith.constant 0.000000e+00 : f32
    %0 = vector.broadcast %cst : f32 to vector<20x128xf32>
    %c0 = arith.constant 0 : index
    %c0_0 = arith.constant 0 : index
    %c0_1 = arith.constant 0 : index
    %1 = vector.load %arg1[%c0, %c0_0, %c0_1] : memref<1x30x512xbf16, #tpu.memory_space<vmem>>, vector<1x20x512xbf16>
    %2 = vector.shape_cast %1 : vector<1x20x512xbf16> to vector<20x512xbf16>
    %c0_2 = arith.constant 0 : index
    %c0_3 = arith.constant 0 : index
    %c0_4 = arith.constant 0 : index
    %3 = vector.load %arg2[%c0_2, %c0_3, %c0_4] : memref<4x512x128xbf16, #tpu.memory_space<vmem>>, vector<1x512x128xbf16>
    %4 = vector.shape_cast %3 : vector<1x512x128xbf16> to vector<512x128xbf16>
    %cst_5 = arith.constant dense<0.000000e+00> : vector<20x128xf32>
    %5 = tpu.matmul %2, %4, %cst_5 {dimension_numbers = #tpu.dot_dimension_numbers<[1], [0], [0], [1], [0, 0, 1, 1], [], []>} : vector<20x512xbf16>, vector<512x128xbf16>, vector<20x128xf32> -> vector<20x128xf32>
    %6 = arith.addf %0, %5 : vector<20x128xf32>
    %c0_6 = arith.constant 0 : index
    %c1 = arith.constant 1 : index
    %c0_7 = arith.constant 0 : index
    %7 = vector.load %arg1[%c0_6, %c1, %c0_7] : memref<1x30x512xbf16, #tpu.memory_space<vmem>>, vector<1x20x512xbf16>
    %8 = vector.shape_cast %7 : vector<1x20x512xbf16> to vector<20x512xbf16>
    %c1_8 = arith.constant 1 : index
    %c0_9 = arith.constant 0 : index
    %c0_10 = arith.constant 0 : index
    %9 = vector.load %arg2[%c1_8, %c0_9, %c0_10] : memref<4x512x128xbf16, #tpu.memory_space<vmem>>, vector<1x512x128xbf16>
    %10 = vector.shape_cast %9 : vector<1x512x128xbf16> to vector<512x128xbf16>
    %cst_11 = arith.constant dense<0.000000e+00> : vector<20x128xf32>
    %11 = tpu.matmul %8, %10, %cst_11 {dimension_numbers = #tpu.dot_dimension_numbers<[1], [0], [0], [1], [0, 0, 1, 1], [], []>} : vector<20x512xbf16>, vector<512x128xbf16>, vector<20x128xf32> -> vector<20x128xf32>
    %12 = arith.addf %6, %11 : vector<20x128xf32>
    %c0_12 = arith.constant 0 : index
    %c5 = arith.constant 5 : index
    %c0_13 = arith.constant 0 : index
    %13 = vector.load %arg1[%c0_12, %c5, %c0_13] : memref<1x30x512xbf16, #tpu.memory_space<vmem>>, vector<1x20x512xbf16>
    %14 = vector.shape_cast %13 : vector<1x20x512xbf16> to vector<20x512xbf16>
    %c2 = arith.constant 2 : index
    %c0_14 = arith.constant 0 : index
    %c0_15 = arith.constant 0 : index
    %15 = vector.load %arg2[%c2, %c0_14, %c0_15] : memref<4x512x128xbf16, #tpu.memory_space<vmem>>, vector<1x512x128xbf16>
    %16 = vector.shape_cast %15 : vector<1x512x128xbf16> to vector<512x128xbf16>
    %cst_16 = arith.constant dense<0.000000e+00> : vector<20x128xf32>
    %17 = tpu.matmul %14, %16, %cst_16 {dimension_numbers = #tpu.dot_dimension_numbers<[1], [0], [0], [1], [0, 0, 1, 1], [], []>} : vector<20x512xbf16>, vector<512x128xbf16>, vector<20x128xf32> -> vector<20x128xf32>
    %18 = arith.addf %12, %17 : vector<20x128xf32>
    %c0_17 = arith.constant 0 : index
    %c6 = arith.constant 6 : index
    %c0_18 = arith.constant 0 : index
    %19 = vector.load %arg1[%c0_17, %c6, %c0_18] : memref<1x30x512xbf16, #tpu.memory_space<vmem>>, vector<1x20x512xbf16>
    %20 = vector.shape_cast %19 : vector<1x20x512xbf16> to vector<20x512xbf16>
    %c3 = arith.constant 3 : index
    %c0_19 = arith.constant 0 : index
    %c0_20 = arith.constant 0 : index
    %21 = vector.load %arg2[%c3, %c0_19, %c0_20] : memref<4x512x128xbf16, #tpu.memory_space<vmem>>, vector<1x512x128xbf16>
    %22 = vector.shape_cast %21 : vector<1x512x128xbf16> to vector<512x128xbf16>
    %cst_21 = arith.constant dense<0.000000e+00> : vector<20x128xf32>
    %23 = tpu.matmul %20, %22, %cst_21 {dimension_numbers = #tpu.dot_dimension_numbers<[1], [0], [0], [1], [0, 0, 1, 1], [], []>} : vector<20x512xbf16>, vector<512x128xbf16>, vector<20x128xf32> -> vector<20x128xf32>
    %24 = arith.addf %18, %23 : vector<20x128xf32>
    %c0_22 = arith.constant 0 : index
    %c0_23 = arith.constant 0 : index
    %25 = vector.load %arg3[%c0_22, %c0_23] : memref<1x128xf32, #tpu.memory_space<vmem>>, vector<1x128xf32>
    %26 = vector.broadcast %25 : vector<1x128xf32> to vector<20x128xf32>
    %27 = arith.addf %24, %26 : vector<20x128xf32>
    %c0_24 = arith.constant 0 : index
    %c0_25 = arith.constant 0 : index
    %28 = vector.load %arg4[%c0_24, %c0_25] : memref<20x1xf32, #tpu.memory_space<vmem>>, vector<20x1xf32>
    %29 = vector.broadcast %28 : vector<20x1xf32> to vector<20x128xf32>
    %30 = arith.mulf %27, %29 : vector<20x128xf32>
    %cst_26 = arith.constant dense<0.000000e+00> : vector<128xf32>
    %31 = vector.multi_reduction <add>, %30, %cst_26 [0] : vector<20x128xf32> to vector<128xf32>
    %32 = vector.shape_cast %31 : vector<128xf32> to vector<1x128xf32>
    %33 = arith.mulf %30, %30 : vector<20x128xf32>
    %cst_27 = arith.constant dense<0.000000e+00> : vector<128xf32>
    %34 = vector.multi_reduction <add>, %33, %cst_27 [0] : vector<20x128xf32> to vector<128xf32>
    %35 = vector.shape_cast %34 : vector<128xf32> to vector<1x128xf32>
    %cst_28 = arith.constant 6.250000e-02 : f32
    %36 = vector.broadcast %cst_28 : f32 to vector<1x128xf32>
    %37 = arith.mulf %32, %36 : vector<1x128xf32>
    %cst_29 = arith.constant 6.250000e-02 : f32
    %38 = vector.broadcast %cst_29 : f32 to vector<1x128xf32>
    %39 = arith.mulf %35, %38 : vector<1x128xf32>
    %40 = arith.mulf %37, %37 : vector<1x128xf32>
    %41 = arith.subf %39, %40 : vector<1x128xf32>
    %cst_30 = arith.constant 0.000000e+00 : f32
    %42 = vector.broadcast %cst_30 : f32 to vector<1x128xf32>
    %43 = arith.maximumf %41, %42 : vector<1x128xf32>
    %44 = vector.broadcast %37 : vector<1x128xf32> to vector<20x128xf32>
    %45 = arith.subf %30, %44 : vector<20x128xf32>
    %cst_31 = arith.constant 9.99999974E-6 : f32
    %46 = vector.broadcast %cst_31 : f32 to vector<1x128xf32>
    %47 = arith.addf %43, %46 : vector<1x128xf32>
    %48 = math.rsqrt %47 : vector<1x128xf32>
    %49 = vector.broadcast %48 : vector<1x128xf32> to vector<20x128xf32>
    %50 = arith.mulf %45, %49 : vector<20x128xf32>
    %cst_32 = arith.constant 2.000000e-01 : f32
    %51 = vector.broadcast %cst_32 : f32 to vector<20x128xf32>
    %52 = arith.mulf %51, %50 : vector<20x128xf32>
    %53 = arith.maximumf %50, %52 : vector<20x128xf32>
    %54 = vector.broadcast %28 : vector<20x1xf32> to vector<20x128xf32>
    %55 = arith.mulf %53, %54 : vector<20x128xf32>
    %56 = arith.truncf %55 : vector<20x128xf32> to vector<20x128xbf16>
    %c0_33 = arith.constant 0 : index
    %c0_34 = arith.constant 0 : index
    %c0_35 = arith.constant 0 : index
    %57 = vector.load %arg5[%c0_33, %c0_34, %c0_35] : memref<1x20x128xbf16, #tpu.memory_space<vmem>>, vector<1x20x128xbf16>
    %58 = vector.shape_cast %57 : vector<1x20x128xbf16> to vector<20x128xbf16>
    %59 = vector.shape_cast %56 : vector<20x128xbf16> to vector<1x20x128xbf16>
    tpu.vector_store %arg5[%c0_33, %c0_34, %c0_35], %59 {strides = array<i32>} : memref<1x20x128xbf16, #tpu.memory_space<vmem>>, vector<1x20x128xbf16>,
    return
  }
  func.func @transform_0(%arg0: i32) -> (i32, i32, i32) {
    %c0_i32 = arith.constant 0 : i32
    %c0_i32_0 = arith.constant 0 : i32
    %c0_i32_1 = arith.constant 0 : i32
    return %arg0, %c0_i32, %c0_i32_0 : i32, i32, i32
  }
  func.func @transform_1(%arg0: i32) -> (i32, i32, i32) {
    %c0_i32 = arith.constant 0 : i32
    %c0_i32_0 = arith.constant 0 : i32
    %c0_i32_1 = arith.constant 0 : i32
    %c0_i32_2 = arith.constant 0 : i32
    return %c0_i32, %c0_i32_0, %c0_i32_1 : i32, i32, i32
  }
  func.func @transform_2(%arg0: i32) -> (i32, i32) {
    %c0_i32 = arith.constant 0 : i32
    %c0_i32_0 = arith.constant 0 : i32
    %c0_i32_1 = arith.constant 0 : i32
    return %c0_i32, %c0_i32_0 : i32, i32
  }
  func.func @transform_3(%arg0: i32) -> (i32, i32) {
    %c0_i32 = arith.constant 0 : i32
    %c0_i32_0 = arith.constant 0 : i32
    %c0_i32_1 = arith.constant 0 : i32
    return %c0_i32, %c0_i32_0 : i32, i32
  }
  func.func @transform_4(%arg0: i32) -> (i32, i32, i32) {
    %c0_i32 = arith.constant 0 : i32
    %c0_i32_0 = arith.constant 0 : i32
    %c0_i32_1 = arith.constant 0 : i32
    return %arg0, %c0_i32, %c0_i32_0 : i32, i32, i32
  }
}

module attributes {stable_mosaic.version = 11 : i64} {
  func.func @_gap_linear_kernel(%arg0: i32, %arg1: memref<2x6x256xbf16, #tpu.memory_space<vmem>>, %arg2: memref<1x256xf32, #tpu.memory_space<vmem>>, %arg3: memref<1x1xf32, #tpu.memory_space<vmem>>, %arg4: memref<2x1xf32, #tpu.memory_space<vmem>>) attributes {dimension_semantics = [#tpu.dimension_semantics<arbitrary>], iteration_bounds = array<i64: 1>, scalar_prefetch = 0 : i64, scratch_operands = 0 : i64, tpu.core_type = #tpu.core_type<tc>, window_params = [{pipeline_mode = #tpu.pipeline_mode<synchronous>, transform_indices = @transform_0, window_bounds = array<i64: 2, 6, 256>}, {pipeline_mode = #tpu.pipeline_mode<synchronous>, transform_indices = @transform_1, window_bounds = array<i64: 1, 256>}, {pipeline_mode = #tpu.pipeline_mode<synchronous>, transform_indices = @transform_2, window_bounds = array<i64: 1, 1>}, {pipeline_mode = #tpu.pipeline_mode<synchronous>, transform_indices = @transform_3, window_bounds = array<i64: 2, 1>}]} {
    %c0 = arith.constant 0 : index
    %c0_0 = arith.constant 0 : index
    %c0_1 = arith.constant 0 : index
    %0 = vector.load %arg1[%c0, %c0_0, %c0_1] : memref<2x6x256xbf16, #tpu.memory_space<vmem>>, vector<2x6x256xbf16>
    %1 = arith.extf %0 : vector<2x6x256xbf16> to vector<2x6x256xf32>
    %cst = arith.constant dense<0.000000e+00> : vector<2x256xf32>
    %2 = vector.multi_reduction <add>, %1, %cst [1] : vector<2x6x256xf32> to vector<2x256xf32>
    %cst_2 = arith.constant 2.500000e-01 : f32
    %3 = vector.broadcast %cst_2 : f32 to vector<2x256xf32>
    %4 = arith.mulf %2, %3 : vector<2x256xf32>
    %c0_3 = arith.constant 0 : index
    %c0_4 = arith.constant 0 : index
    %5 = vector.load %arg2[%c0_3, %c0_4] : memref<1x256xf32, #tpu.memory_space<vmem>>, vector<1x256xf32>
    %6 = vector.broadcast %5 : vector<1x256xf32> to vector<2x256xf32>
    %7 = arith.mulf %4, %6 : vector<2x256xf32>
    %cst_5 = arith.constant dense<0.000000e+00> : vector<2xf32>
    %8 = vector.multi_reduction <add>, %7, %cst_5 [1] : vector<2x256xf32> to vector<2xf32>
    %9 = vector.shape_cast %8 : vector<2xf32> to vector<2x1xf32>
    %c0_6 = arith.constant 0 : index
    %c0_7 = arith.constant 0 : index
    %10 = vector.load %arg3[%c0_6, %c0_7] : memref<1x1xf32, #tpu.memory_space<vmem>>, vector<1x1xf32>
    %11 = vector.broadcast %10 : vector<1x1xf32> to vector<2x1xf32>
    %12 = arith.addf %9, %11 : vector<2x1xf32>
    %c0_8 = arith.constant 0 : index
    %c0_9 = arith.constant 0 : index
    %13 = vector.load %arg4[%c0_8, %c0_9] : memref<2x1xf32, #tpu.memory_space<vmem>>, vector<2x1xf32>
    tpu.vector_store %arg4[%c0_8, %c0_9], %12 {strides = array<i32>} : memref<2x1xf32, #tpu.memory_space<vmem>>, vector<2x1xf32>,
    return
  }
  func.func @transform_0(%arg0: i32) -> (i32, i32, i32) {
    %c0_i32 = arith.constant 0 : i32
    %c0_i32_0 = arith.constant 0 : i32
    %c0_i32_1 = arith.constant 0 : i32
    %c0_i32_2 = arith.constant 0 : i32
    return %c0_i32, %c0_i32_0, %c0_i32_1 : i32, i32, i32
  }
  func.func @transform_1(%arg0: i32) -> (i32, i32) {
    %c0_i32 = arith.constant 0 : i32
    %c0_i32_0 = arith.constant 0 : i32
    %c0_i32_1 = arith.constant 0 : i32
    return %c0_i32, %c0_i32_0 : i32, i32
  }
  func.func @transform_2(%arg0: i32) -> (i32, i32) {
    %c0_i32 = arith.constant 0 : i32
    %c0_i32_0 = arith.constant 0 : i32
    %c0_i32_1 = arith.constant 0 : i32
    return %c0_i32, %c0_i32_0 : i32, i32
  }
  func.func @transform_3(%arg0: i32) -> (i32, i32) {
    %c0_i32 = arith.constant 0 : i32
    %c0_i32_0 = arith.constant 0 : i32
    %c0_i32_1 = arith.constant 0 : i32
    return %c0_i32, %c0_i32_0 : i32, i32
  }
}

module attributes {stable_mosaic.version = 11 : i64} {
  func.func @_conv_in_lrelu_kernel(%arg0: i32, %arg1: memref<1x12x512xbf16, #tpu.memory_space<vmem>>, %arg2: memref<4x512x256xbf16, #tpu.memory_space<vmem>>, %arg3: memref<1x256xf32, #tpu.memory_space<vmem>>, %arg4: memref<6x1xf32, #tpu.memory_space<vmem>>, %arg5: memref<1x6x256xbf16, #tpu.memory_space<vmem>>) attributes {dimension_semantics = [#tpu.dimension_semantics<parallel>], iteration_bounds = array<i64: 2>, scalar_prefetch = 0 : i64, scratch_operands = 0 : i64, tpu.core_type = #tpu.core_type<tc>, window_params = [{transform_indices = @transform_0, window_bounds = array<i64: 1, 12, 512>}, {pipeline_mode = #tpu.pipeline_mode<synchronous>, transform_indices = @transform_1, window_bounds = array<i64: 4, 512, 256>}, {pipeline_mode = #tpu.pipeline_mode<synchronous>, transform_indices = @transform_2, window_bounds = array<i64: 1, 256>}, {pipeline_mode = #tpu.pipeline_mode<synchronous>, transform_indices = @transform_3, window_bounds = array<i64: 6, 1>}, {transform_indices = @transform_4, window_bounds = array<i64: 1, 6, 256>}]} {
    %cst = arith.constant 0.000000e+00 : f32
    %0 = vector.broadcast %cst : f32 to vector<6x256xf32>
    %c0 = arith.constant 0 : index
    %c0_0 = arith.constant 0 : index
    %c0_1 = arith.constant 0 : index
    %1 = vector.load %arg1[%c0, %c0_0, %c0_1] : memref<1x12x512xbf16, #tpu.memory_space<vmem>>, vector<1x6x512xbf16>
    %2 = vector.shape_cast %1 : vector<1x6x512xbf16> to vector<6x512xbf16>
    %c0_2 = arith.constant 0 : index
    %c0_3 = arith.constant 0 : index
    %c0_4 = arith.constant 0 : index
    %3 = vector.load %arg2[%c0_2, %c0_3, %c0_4] : memref<4x512x256xbf16, #tpu.memory_space<vmem>>, vector<1x512x256xbf16>
    %4 = vector.shape_cast %3 : vector<1x512x256xbf16> to vector<512x256xbf16>
    %cst_5 = arith.constant dense<0.000000e+00> : vector<6x256xf32>
    %5 = tpu.matmul %2, %4, %cst_5 {dimension_numbers = #tpu.dot_dimension_numbers<[1], [0], [0], [1], [0, 0, 1, 1], [], []>} : vector<6x512xbf16>, vector<512x256xbf16>, vector<6x256xf32> -> vector<6x256xf32>
    %6 = arith.addf %0, %5 : vector<6x256xf32>
    %c0_6 = arith.constant 0 : index
    %c1 = arith.constant 1 : index
    %c0_7 = arith.constant 0 : index
    %7 = vector.load %arg1[%c0_6, %c1, %c0_7] : memref<1x12x512xbf16, #tpu.memory_space<vmem>>, vector<1x6x512xbf16>
    %8 = vector.shape_cast %7 : vector<1x6x512xbf16> to vector<6x512xbf16>
    %c1_8 = arith.constant 1 : index
    %c0_9 = arith.constant 0 : index
    %c0_10 = arith.constant 0 : index
    %9 = vector.load %arg2[%c1_8, %c0_9, %c0_10] : memref<4x512x256xbf16, #tpu.memory_space<vmem>>, vector<1x512x256xbf16>
    %10 = vector.shape_cast %9 : vector<1x512x256xbf16> to vector<512x256xbf16>
    %cst_11 = arith.constant dense<0.000000e+00> : vector<6x256xf32>
    %11 = tpu.matmul %8, %10, %cst_11 {dimension_numbers = #tpu.dot_dimension_numbers<[1], [0], [0], [1], [0, 0, 1, 1], [], []>} : vector<6x512xbf16>, vector<512x256xbf16>, vector<6x256xf32> -> vector<6x256xf32>
    %12 = arith.addf %6, %11 : vector<6x256xf32>
    %c0_12 = arith.constant 0 : index
    %c3 = arith.constant 3 : index
    %c0_13 = arith.constant 0 : index
    %13 = vector.load %arg1[%c0_12, %c3, %c0_13] : memref<1x12x512xbf16, #tpu.memory_space<vmem>>, vector<1x6x512xbf16>
    %14 = vector.shape_cast %13 : vector<1x6x512xbf16> to vector<6x512xbf16>
    %c2 = arith.constant 2 : index
    %c0_14 = arith.constant 0 : index
    %c0_15 = arith.constant 0 : index
    %15 = vector.load %arg2[%c2, %c0_14, %c0_15] : memref<4x512x256xbf16, #tpu.memory_space<vmem>>, vector<1x512x256xbf16>
    %16 = vector.shape_cast %15 : vector<1x512x256xbf16> to vector<512x256xbf16>
    %cst_16 = arith.constant dense<0.000000e+00> : vector<6x256xf32>
    %17 = tpu.matmul %14, %16, %cst_16 {dimension_numbers = #tpu.dot_dimension_numbers<[1], [0], [0], [1], [0, 0, 1, 1], [], []>} : vector<6x512xbf16>, vector<512x256xbf16>, vector<6x256xf32> -> vector<6x256xf32>
    %18 = arith.addf %12, %17 : vector<6x256xf32>
    %c0_17 = arith.constant 0 : index
    %c4 = arith.constant 4 : index
    %c0_18 = arith.constant 0 : index
    %19 = vector.load %arg1[%c0_17, %c4, %c0_18] : memref<1x12x512xbf16, #tpu.memory_space<vmem>>, vector<1x6x512xbf16>
    %20 = vector.shape_cast %19 : vector<1x6x512xbf16> to vector<6x512xbf16>
    %c3_19 = arith.constant 3 : index
    %c0_20 = arith.constant 0 : index
    %c0_21 = arith.constant 0 : index
    %21 = vector.load %arg2[%c3_19, %c0_20, %c0_21] : memref<4x512x256xbf16, #tpu.memory_space<vmem>>, vector<1x512x256xbf16>
    %22 = vector.shape_cast %21 : vector<1x512x256xbf16> to vector<512x256xbf16>
    %cst_22 = arith.constant dense<0.000000e+00> : vector<6x256xf32>
    %23 = tpu.matmul %20, %22, %cst_22 {dimension_numbers = #tpu.dot_dimension_numbers<[1], [0], [0], [1], [0, 0, 1, 1], [], []>} : vector<6x512xbf16>, vector<512x256xbf16>, vector<6x256xf32> -> vector<6x256xf32>
    %24 = arith.addf %18, %23 : vector<6x256xf32>
    %c0_23 = arith.constant 0 : index
    %c0_24 = arith.constant 0 : index
    %25 = vector.load %arg3[%c0_23, %c0_24] : memref<1x256xf32, #tpu.memory_space<vmem>>, vector<1x256xf32>
    %26 = vector.broadcast %25 : vector<1x256xf32> to vector<6x256xf32>
    %27 = arith.addf %24, %26 : vector<6x256xf32>
    %c0_25 = arith.constant 0 : index
    %c0_26 = arith.constant 0 : index
    %28 = vector.load %arg4[%c0_25, %c0_26] : memref<6x1xf32, #tpu.memory_space<vmem>>, vector<6x1xf32>
    %29 = vector.broadcast %28 : vector<6x1xf32> to vector<6x256xf32>
    %30 = arith.mulf %27, %29 : vector<6x256xf32>
    %cst_27 = arith.constant dense<0.000000e+00> : vector<256xf32>
    %31 = vector.multi_reduction <add>, %30, %cst_27 [0] : vector<6x256xf32> to vector<256xf32>
    %32 = vector.shape_cast %31 : vector<256xf32> to vector<1x256xf32>
    %33 = arith.mulf %30, %30 : vector<6x256xf32>
    %cst_28 = arith.constant dense<0.000000e+00> : vector<256xf32>
    %34 = vector.multi_reduction <add>, %33, %cst_28 [0] : vector<6x256xf32> to vector<256xf32>
    %35 = vector.shape_cast %34 : vector<256xf32> to vector<1x256xf32>
    %cst_29 = arith.constant 2.500000e-01 : f32
    %36 = vector.broadcast %cst_29 : f32 to vector<1x256xf32>
    %37 = arith.mulf %32, %36 : vector<1x256xf32>
    %cst_30 = arith.constant 2.500000e-01 : f32
    %38 = vector.broadcast %cst_30 : f32 to vector<1x256xf32>
    %39 = arith.mulf %35, %38 : vector<1x256xf32>
    %40 = arith.mulf %37, %37 : vector<1x256xf32>
    %41 = arith.subf %39, %40 : vector<1x256xf32>
    %cst_31 = arith.constant 0.000000e+00 : f32
    %42 = vector.broadcast %cst_31 : f32 to vector<1x256xf32>
    %43 = arith.maximumf %41, %42 : vector<1x256xf32>
    %44 = vector.broadcast %37 : vector<1x256xf32> to vector<6x256xf32>
    %45 = arith.subf %30, %44 : vector<6x256xf32>
    %cst_32 = arith.constant 9.99999974E-6 : f32
    %46 = vector.broadcast %cst_32 : f32 to vector<1x256xf32>
    %47 = arith.addf %43, %46 : vector<1x256xf32>
    %48 = math.rsqrt %47 : vector<1x256xf32>
    %49 = vector.broadcast %48 : vector<1x256xf32> to vector<6x256xf32>
    %50 = arith.mulf %45, %49 : vector<6x256xf32>
    %cst_33 = arith.constant 2.000000e-01 : f32
    %51 = vector.broadcast %cst_33 : f32 to vector<6x256xf32>
    %52 = arith.mulf %51, %50 : vector<6x256xf32>
    %53 = arith.maximumf %50, %52 : vector<6x256xf32>
    %54 = vector.broadcast %28 : vector<6x1xf32> to vector<6x256xf32>
    %55 = arith.mulf %53, %54 : vector<6x256xf32>
    %56 = arith.truncf %55 : vector<6x256xf32> to vector<6x256xbf16>
    %c0_34 = arith.constant 0 : index
    %c0_35 = arith.constant 0 : index
    %c0_36 = arith.constant 0 : index
    %57 = vector.load %arg5[%c0_34, %c0_35, %c0_36] : memref<1x6x256xbf16, #tpu.memory_space<vmem>>, vector<1x6x256xbf16>
    %58 = vector.shape_cast %57 : vector<1x6x256xbf16> to vector<6x256xbf16>
    %59 = vector.shape_cast %56 : vector<6x256xbf16> to vector<1x6x256xbf16>
    tpu.vector_store %arg5[%c0_34, %c0_35, %c0_36], %59 {strides = array<i32>} : memref<1x6x256xbf16, #tpu.memory_space<vmem>>, vector<1x6x256xbf16>,
    return
  }
  func.func @transform_0(%arg0: i32) -> (i32, i32, i32) {
    %c0_i32 = arith.constant 0 : i32
    %c0_i32_0 = arith.constant 0 : i32
    %c0_i32_1 = arith.constant 0 : i32
    return %arg0, %c0_i32, %c0_i32_0 : i32, i32, i32
  }
  func.func @transform_1(%arg0: i32) -> (i32, i32, i32) {
    %c0_i32 = arith.constant 0 : i32
    %c0_i32_0 = arith.constant 0 : i32
    %c0_i32_1 = arith.constant 0 : i32
    %c0_i32_2 = arith.constant 0 : i32
    return %c0_i32, %c0_i32_0, %c0_i32_1 : i32, i32, i32
  }
  func.func @transform_2(%arg0: i32) -> (i32, i32) {
    %c0_i32 = arith.constant 0 : i32
    %c0_i32_0 = arith.constant 0 : i32
    %c0_i32_1 = arith.constant 0 : i32
    return %c0_i32, %c0_i32_0 : i32, i32
  }
  func.func @transform_3(%arg0: i32) -> (i32, i32) {
    %c0_i32 = arith.constant 0 : i32
    %c0_i32_0 = arith.constant 0 : i32
    %c0_i32_1 = arith.constant 0 : i32
    return %c0_i32, %c0_i32_0 : i32, i32
  }
  func.func @transform_4(%arg0: i32) -> (i32, i32, i32) {
    %c0_i32 = arith.constant 0 : i32
    %c0_i32_0 = arith.constant 0 : i32
    %c0_i32_1 = arith.constant 0 : i32
    return %arg0, %c0_i32, %c0_i32_0 : i32, i32, i32
  }
}

</mosaic_0001>

<bundles_post_ra>
// kernel: discriminator_forward.5
= control target key start
LH: loop header
LB: loop body
LE: loop exit
PB: predicated region body
PF: predicated region fallthrough
CT: control target
= control target key end

     0   :  { %s2567_s15 = smov 0   ;;  %s3712_s0 = inlined_call_operand.vmem [shape: bf16[2,306,12], index: 0, kind: input, shape index: {}]   ;;  %s3713_s1 = inlined_call_operand.vmem [shape: bf16[4,12,128], index: 1, kind: input, shape index: {}]   ;;  %s3714_s2 = inlined_call_operand.vmem [shape: f32[1,128], index: 2, kind: input, shape index: {}]   ;;  %s3715_s3 = inlined_call_operand.vmem [shape: f32[272,1], index: 3, kind: input, shape index: {}]   ;;  %s3716_s4 = inlined_call_operand.vmem [shape: bf16[2,272,128], index: 4, kind: output, shape index: {}]  }
   0x1 LB: > { %s2139_s16 = sadd.s32 4294967295, %s2539_s15   ;;  %p2143_p0 = scmp.ge.s32.totalorder %s2539_s15, 1  ;;  %s2539_s15 = sphi %s2567_s15, %s14_s15  }
   0x2   : > { %p162_p1 = scmp.lt.s32.totalorder %s2539_s15, 3 }
   0x4   : > { %p163_p2 = pnand %p2143_p0, %p162_p1 }
   0x6   : > { %166 = sbr.rel (%p163_p2) target bundleno = 520 (0x208), region = 36 }
   0xb   : > { %v2239_v0 = vld [vmem:[%s3713_s1] sm:$0xf]  ;;  %v2387_v1 = vld [vmem:[%s3713_s1] sm:$0x30]  ;;  %vm525_vm0 = vcmask 1045504   ;;  %p188_p3 = scmp.lt.s32.totalorder %s2139_s16, 1 }
   0xc   : > { %v2240_v2 = vor.u32 %v2387_v1, %v2239_v0  ;;  %v2349_v3 = vld [vmem:[%s3713_s1 + $0x18] sm:$0xf]  ;;  %v2406_v4 = vld [vmem:[%s3713_s1 + $0x18] sm:$0x30]  ;;  %v2326_v6 = vld [vmem:[%s3713_s1 + $0x10] sm:$0xf] }
   0xd   : > { %v2350_v5 = vor.u32 %v2406_v4, %v2349_v3  ;;  %s3846_s16 = smov (!%p188_p3, %s2139_s16), 1  ;;  %v2405_v7 = vld [vmem:[%s3713_s1 + $0x10] sm:$0x30]  ;;  %v2218_v10 = vld [vmem:[%s3713_s1 + $0x8] sm:$0xf]  ;;  %v2541_v12 = vmov 0  }
   0xe   : > { %v663_v8 = vsel %vm525_vm0, %v2240_v2, 0  ;;  %v2327_v9 = vor.u32 %v2405_v7, %v2326_v6  ;;  %v2388_v11 = vld [vmem:[%s3713_s1 + $0x8] sm:$0x30]  ;;  %2527 = vset.pattern.permute.xlu0 %v2541_v12  ;;  %v1480_v13 = vld [vmem:[%s3715_s3] sm:$0xff]  ;;  %2528 = vset.pattern.permute.xlu1 %v2541_v12  ;;  %s2516_s9 = smul.u32 156, %s3846_s16  ;;  %vm473_vm1 = vcmask 97280  }
   0xf   : > { %672 = vmatpush.bf16.msra.mxu1 %v663_v8  ;;  %v1312_v14 = vsel %vm525_vm0, %v2350_v5, 0  ;;  %v2219_v15 = vor.u32 %v2388_v11, %v2218_v10  ;;  %1516 = vperm.xlu0 %2527, %v1480_v13   ;;  %vm1219_vm2 = vcmask 1046528   ;;  %vm327_vm3 = vsmask.f32 7424  ;;  %v1481_v40 = vld [vmem:[%s3715_s3 + $0x8] sm:$0xff]  ;;  %v1482_v44 = vld [vmem:[%s3715_s3 + $0x10] sm:$0xff] }
  0x10   : > { %1321 = vmatpush.bf16.msra.mxu3 %v1312_v14  ;;  %v1082_v16 = vsel %vm525_vm0, %v2327_v9, 0  ;;  %2529 = vset.pattern.permute.xlu2 %v2541_v12  ;;  %s2611_s12 = scalar_lea.vmem %s3712_s0, %s2516_s9  ;;  %v1483_v58 = vld [vmem:[%s3715_s3 + $0x18] sm:$0xff]  ;;  %v1486_v10 = vld [vmem:[%s3715_s3 + $0x30] sm:$0xff]  ;;  %s2517_s10 = smul.u32 136, %s3846_s16 }
  0x11   : > { %1091 = vmatpush.bf16.msra.mxu2 %v1082_v16  ;;  %v527_v17 = vsel %vm525_vm0, %v2219_v15, 0  ;;  %v2370_v18 = vld [vmem:[%s2611_s12] sm:$0xff]  ;;  %v2497_v19 = vld [vmem:[%s2611_s12 + $0x8] sm:$0xf0]  ;;  %v2389_v20 = vld [vmem:[%s2611_s12 + $0x10] sm:$0xff]  ;;  %1526 = vperm.xlu1 %2528, %v1482_v44  }
  0x12   : > { %536 = vmatpush.bf16.msra.mxu0 %v527_v17  ;;  %v2498_v21 = vld [vmem:[%s2611_s12 + $0x8] sm:$0xe]  ;;  %v331_v24 = vshll.u32 %v2370_v18, 16  ;;  %2241 = vmatmul.msk.bf16.vlgmr.msra.gmra.mxu1 %vm473_vm1, %v2370_v18  ;;  %v1221_v26 = vrot.slane %v2389_v20, 1  ;;  %v893_v29 = vshll.u32 %v2389_v20, 16  ;;  %v329_v30 = vshrl.u32 %v2370_v18, 16  ;;  %s3657_s13 = scalar_lea.vmem %s3716_s4, %s2517_s10 }
  0x13   : > { %v2496_v22 = vld [vmem:[%s2611_s12 + $0x8] sm:$0xff]   ;;  %v2499_v25 = vor.u32 %v2498_v21, %v2497_v19  ;;  %v2372_v43 = vld [vmem:[%s2611_s12 + $0x10] sm:$0xff]  ;;  %v2390_v45 = vld [vmem:[%s2611_s12 + $0x18] sm:$0xff]  ;;  %v897_v48 = vshrl.u32 %v2389_v20, 16 }
  0x14   : > { %v2371_v23 = vld [vmem:[%s2611_s12 + $0x8] sm:$0xff]  ;;  %v886_v27 = vshrl.u32 %v2496_v22, 16  ;;  %v888_v28 = vshll.u32 %v2496_v22, 16  ;;  %v333_v33 = vrot.slane %v331_v24, 1  ;;  %v895_v35 = vrot.slane %v893_v29, 1  ;;  %v2373_v59 = vld [vmem:[%s2611_s12 + $0x18] sm:$0xff] }
  0x15   : > { %v336_v31 = vshll.u32 %v2371_v23, 16  ;;  %v1220_v32 = vrot.slane %v2499_v25, 1  ;;  %v340_v46 = vshrl.u32 %v2371_v23, 16  ;;  %v344_v47 = vshll.u32 %v2372_v43, 16  ;;  %v2391_v60 = vld [vmem:[%s2611_s12 + $0x20] sm:$0xff]  ;;  %v2392_v11 = vld [vmem:[%s2611_s12 + $0x28] sm:$0xff] }
  0x16   : > { %v890_v34 = vrot.slane %v888_v28, 1  ;;  %v334_v38 = vor.u32 %v333_v33, %v329_v30  ;;  %v901_v49 = vshll.u32 %v2390_v45, 16  ;;  %v1223_v50 = vrot.slane %v2390_v45, 1  ;;  %v2374_v9 = vld [vmem:[%s2611_s12 + $0x20] sm:$0xff]  ;;  %v1487_v25 = vld [vmem:[%s3715_s3 + $0x38] sm:$0xff]  ;;  %v1485_v28 = vld [vmem:[%s3715_s3 + $0x28] sm:$0xff] }
  0x17   : > { %v338_v36 = vrot.slane %v336_v31, 1  ;;  %v1222_v37 = vsel %vm1219_vm2, %v1220_v32, %v1221_v26  ;;  %1521 = vperm.xlu0 %2527, %v1481_v40   ;;  %v346_v52 = vrot.slane %v344_v47, 1  ;;  %v899_v53 = vor.u32 %v897_v48, %v895_v35  ;;  %v1484_v24 = vld [vmem:[%s3715_s3 + $0x20] sm:$0xff]  ;;  %v2394_v44 = vld [vmem:[%s2611_s12 + $0x38] sm:$0xff] }
  0x18   : > { %2351 = vmatmul.msk.bf16.vlgmr.msra.gmra.mxu3 %vm473_vm1, %v1222_v37  ;;  %v891_v39 = vor.u32 %v890_v34, %v886_v27  ;;  %v903_v54 = vrot.slane %v901_v49, 1  ;;  %v1224_v55 = vsel %vm1219_vm2, %v1221_v26, %v1223_v50  ;;  %v348_v61 = vshrl.u32 %v2372_v43, 16  ;;  %1536 = vperm.xlu2 %2529, %v1484_v24   ;;  %v2375_v26 = vld [vmem:[%s2611_s12 + $0x28] sm:$0xff]  ;;  %v2393_v27 = vld [vmem:[%s2611_s12 + $0x30] sm:$0xff] }
  0x19   : > { %v339_v41 = vsel %vm327_vm3, %v334_v38, %v338_v36  ;;  %v342_v51 = vor.u32 %v340_v46, %v338_v36  ;;  %1531 = vperm.xlu1 %2528, %v1483_v58   ;;  %v352_v62 = vshll.u32 %v2373_v59, 16  ;;  %v905_v63 = vshrl.u32 %v2390_v45, 16  ;;  %v2377_v58 = vld [vmem:[%s2611_s12 + $0x38] sm:$0xff] }
  0x1a   : > { %v896_v42 = vsel %vm327_vm3, %v891_v39, %v895_v35  ;;  %2220 = vmatmul.msk.bf16.vlgmr.msra.gmra.mxu0 %vm473_vm1, %v339_v41  ;;  %v904_v57 = vsel %vm327_vm3, %v899_v53, %v903_v54  ;;  %v909_v0 = vshll.u32 %v2391_v60, 16  ;;  %v1225_v1 = vrot.slane %v2391_v60, 1  ;;  %v1489_v41 = vld [vmem:[%s3715_s3 + $0x48] sm:$0xff] }
  0x1b   : > { %2328 = vmatmul.msk.bf16.vlgmr.msra.gmra.mxu2 %vm473_vm1, %v896_v42  ;;  %v347_v56 = vsel %vm327_vm3, %v342_v51, %v346_v52  ;;  %v350_v2 = vor.u32 %v348_v61, %v346_v52  ;;  %v354_v3 = vrot.slane %v352_v62, 1  ;;  %v907_v4 = vor.u32 %v905_v63, %v903_v54  ;;  %v2376_v42 = vld [vmem:[%s2611_s12 + $0x30] sm:$0xff] }
  0x1c   : > { %v911_v5 = vrot.slane %v909_v0, 1  ;;  %v1226_v6 = vsel %vm1219_vm2, %v1223_v50, %v1225_v1  ;;  %v356_v12 = vshrl.u32 %v2373_v59, 16  ;;  %v360_v13 = vshll.u32 %v2374_v9, 16 }
  0x1d   : > { %v355_v7 = vsel %vm327_vm3, %v350_v2, %v354_v3  ;;  %v913_v14 = vshrl.u32 %v2391_v60, 16  ;;  %v917_v15 = vshll.u32 %v2392_v11, 16  ;;  %v1227_v16 = vrot.slane %v2392_v11, 1  ;;  %v2395_v60 = vld [vmem:[%s2611_s12 + $0x40] sm:$0xff] }
  0x1e   : > { %v912_v8 = vsel %vm327_vm3, %v907_v4, %v911_v5  ;;  %v358_v17 = vor.u32 %v356_v12, %v354_v3  ;;  %v362_v18 = vrot.slane %v360_v13, 1  ;;  %v364_v29 = vshrl.u32 %v2374_v9, 16 }
  0x1f   : > { %1546 = vperm.xlu0 %2527, %v1486_v10   ;;  %v915_v19 = vor.u32 %v913_v14, %v911_v5  ;;  %v919_v20 = vrot.slane %v917_v15, 1  ;;  %v1228_v21 = vsel %vm1219_vm2, %v1225_v1, %v1227_v16  ;;  %v368_v30 = vshll.u32 %v2375_v26, 16  ;;  %v2378_v10 = vld [vmem:[%s2611_s12 + $0x40] sm:$0xff] }
  0x20   : > { %v363_v22 = vsel %vm327_vm3, %v358_v17, %v362_v18  ;;  %v921_v31 = vshrl.u32 %v2392_v11, 16  ;;  %v925_v32 = vshll.u32 %v2393_v27, 16  ;;  %v1229_v33 = vrot.slane %v2393_v27, 1  ;;  %1541 = vperm.xlu2 %2529, %v1485_v28   ;;  %v2396_v11 = vld [vmem:[%s2611_s12 + $0x48] sm:$0xff]  ;;  %v1491_v17 = vld [vmem:[%s3715_s3 + $0x58] sm:$0xff] }
  0x21   : > { %1551 = vperm.xlu1 %2528, %v1487_v25   ;;  %v366_v34 = vor.u32 %v364_v29, %v362_v18  ;;  %v370_v35 = vrot.slane %v368_v30, 1  ;;  %v372_v45 = vshrl.u32 %v2375_v26, 16  ;;  %v376_v46 = vshll.u32 %v2376_v42, 16  ;;  %v1495_v25 = vld [vmem:[%s3715_s3 + $0x78] sm:$0xff] }
  0x22   : > { %2242 = vmatmul.msk.bf16.gmra.mxu1 %vm473_vm1, %v2371_v23  ;;  %v920_v23 = vsel %vm327_vm3, %v915_v19, %v919_v20  ;;  %v923_v36 = vor.u32 %v921_v31, %v919_v20  ;;  %v927_v37 = vrot.slane %v925_v32, 1  ;;  %v1230_v38 = vsel %vm1219_vm2, %v1227_v16, %v1229_v33 }
  0x23   : > { %v371_v39 = vsel %vm327_vm3, %v366_v34, %v370_v35  ;;  %v929_v47 = vshrl.u32 %v2393_v27, 16  ;;  %v933_v48 = vshll.u32 %v2394_v44, 16  ;;  %v1231_v49 = vrot.slane %v2394_v44, 1  ;;  %v2397_v27 = vld [vmem:[%s2611_s12 + $0x50] sm:$0xff]  ;;  %v1496_v34 = vld [vmem:[%s3715_s3 + $0x80] sm:$0xff] }
  0x24   : > { %v928_v40 = vsel %vm327_vm3, %v923_v36, %v927_v37  ;;  %v374_v50 = vor.u32 %v372_v45, %v370_v35  ;;  %v378_v51 = vrot.slane %v376_v46, 1  ;;  %v380_v61 = vshrl.u32 %v2376_v42, 16  ;;  %v1494_v45 = vld [vmem:[%s3715_s3 + $0x70] sm:$0xff] }
  0x25   : > { %v931_v52 = vor.u32 %v929_v47, %v927_v37  ;;  %v935_v53 = vrot.slane %v933_v48, 1  ;;  %v1232_v54 = vsel %vm1219_vm2, %v1229_v33, %v1231_v49  ;;  %v384_v62 = vshll.u32 %v2377_v58, 16  ;;  %v1498_v46 = vld [vmem:[%s3715_s3 + $0x90] sm:$0xff] }
  0x26   : > { %v937_v63 = vshrl.u32 %v2394_v44, 16  ;;  %v941_v0 = vshll.u32 %v2395_v60, 16  ;;  %v1233_v1 = vrot.slane %v2395_v60, 1  ;;  %v382_v2 = vor.u32 %v380_v61, %v378_v51  ;;  %v2380_v48 = vld [vmem:[%s2611_s12 + $0x50] sm:$0xff]  ;;  %v1501_v61 = vld [vmem:[%s3715_s3 + $0xa8] sm:$0xff] }
  0x27   : > { %1561 = vperm.xlu0 %2527, %v1489_v41   ;;  %v386_v3 = vrot.slane %v384_v62, 1  ;;  %v388_v12 = vshrl.u32 %v2377_v58, 16  ;;  %v392_v13 = vshll.u32 %v2378_v10, 16  ;;  %v945_v14 = vshrl.u32 %v2395_v60, 16 }
  0x28   : > { %2352 = vmatmul.msk.bf16.gmra.mxu3 %vm473_vm1, %v1224_v55  ;;  %v379_v55 = vsel %vm327_vm3, %v374_v50, %v378_v51  ;;  %v939_v4 = vor.u32 %v937_v63, %v935_v53  ;;  %v943_v5 = vrot.slane %v941_v0, 1  ;;  %v949_v15 = vshll.u32 %v2396_v11, 16 }
  0x29   : > { %v1235_v16 = vrot.slane %v2396_v11, 1  ;;  %v390_v18 = vor.u32 %v388_v12, %v386_v3  ;;  %v394_v19 = vrot.slane %v392_v13, 1  ;;  %v396_v28 = vshrl.u32 %v2378_v10, 16  ;;  %v1504_v13 = vld [vmem:[%s3715_s3 + $0xc0] sm:$0xff] }
  0x2a   : > { %2221 = vmatmul.msk.bf16.gmra.mxu0 %vm473_vm1, %v347_v56  ;;  %v936_v56 = vsel %vm327_vm3, %v931_v52, %v935_v53  ;;  %v947_v20 = vor.u32 %v945_v14, %v943_v5  ;;  %v953_v31 = vshrl.u32 %v2396_v11, 16  ;;  %v957_v32 = vshll.u32 %v2397_v27, 16 }
  0x2b   : > { %2329 = vmatmul.msk.bf16.gmra.mxu2 %vm473_vm1, %v904_v57  ;;  %v1488_v57 = vld [vmem:[%s3715_s3 + $0x40] sm:$0xff]  ;;  %v1237_v33 = vrot.slane %v2397_v27, 1  ;;  %v398_v35 = vor.u32 %v396_v28, %v394_v19 }
  0x2c   : > { %1556 = vperm.xlu2 %2529, %v1488_v57   ;;  %v961_v57 = vshrl.u32 %v2397_v27, 16 }
  0x32   : > { %2243 = vmatmul.msk.bf16.gmra.mxu1 %vm473_vm1, %v2372_v43  ;;  %v1490_v43 = vld [vmem:[%s3715_s3 + $0x50] sm:$0xff] }
  0x33   : > { %1566 = vperm.xlu1 %2528, %v1490_v43  }
  0x34   : > { %1571 = vperm.xlu2 %2529, %v1491_v17   ;;  %v1502_v17 = vld [vmem:[%s3715_s3 + $0xb0] sm:$0xff] }
  0x38   : > { %2353 = vmatmul.msk.bf16.gmra.mxu3 %vm473_vm1, %v1226_v6  ;;  %v1234_v6 = vsel %vm1219_vm2, %v1231_v49, %v1233_v1  ;;  %v2752_v49 = vld [vmem:[%s2611_s12 + $0x58] sm:$0xff] }
  0x39   : > { %v1239_v60 = vrot.slane %v2752_v49, 1 }
  0x3a   : > { %2222 = vmatmul.msk.bf16.gmra.mxu0 %vm473_vm1, %v355_v7  ;;  %v387_v7 = vsel %vm327_vm3, %v382_v2, %v386_v3 }
  0x3b   : > { %2330 = vmatmul.msk.bf16.gmra.mxu2 %vm473_vm1, %v912_v8  ;;  %v944_v8 = vsel %vm327_vm3, %v939_v4, %v943_v5  ;;  %v1240_v3 = vsel %vm1219_vm2, %v1237_v33, %v1239_v60  ;;  %v1499_v4 = vld [vmem:[%s3715_s3 + $0x98] sm:$0xff] }
  0x3c   : > { %1586 = vperm.xlu2 %2529, %v1494_v45  }
  0x42   : > { %2244 = vmatmul.msk.bf16.gmra.mxu1 %vm473_vm1, %v2373_v59  ;;  %v1492_v59 = vld [vmem:[%s3715_s3 + $0x60] sm:$0xff] }
  0x43   : > { %1576 = vperm.xlu0 %2527, %v1492_v59  }
  0x48   : > { %2354 = vmatmul.msk.bf16.gmra.mxu3 %vm473_vm1, %v1228_v21  ;;  %v951_v21 = vrot.slane %v949_v15, 1  ;;  %v2777_v15 = vld [vmem:[%s2611_s12 + $0x58] sm:$0xff] }
  0x4a   : > { %2223 = vmatmul.msk.bf16.gmra.mxu0 %vm473_vm1, %v363_v22  ;;  %v1236_v22 = vsel %vm1219_vm2, %v1233_v1, %v1235_v16  ;;  %v952_v24 = vsel %vm327_vm3, %v947_v20, %v951_v21  ;;  %v955_v37 = vor.u32 %v953_v31, %v951_v21  ;;  %v412_v21 = vshrl.u32 %v2380_v48, 16 }
  0x4b   : > { %2331 = vmatmul.msk.bf16.gmra.mxu2 %vm473_vm1, %v920_v23  ;;  %v395_v23 = vsel %vm327_vm3, %v390_v18, %v394_v19  ;;  %1591 = vperm.xlu0 %2527, %v1495_v25   ;;  %v969_v25 = vshrl.u32 %v2752_v49, 16 }
  0x52   : > { %2245 = vmatmul.msk.bf16.gmra.mxu1 %vm473_vm1, %v2374_v9  ;;  %v1493_v9 = vld [vmem:[%s3715_s3 + $0x68] sm:$0xff] }
  0x53   : > { %1581 = vperm.xlu1 %2528, %v1493_v9   ;;  %1606 = vperm.xlu0 %2527, %v1498_v46   ;;  %v1510_v46 = vld [vmem:[%s3715_s3 + $0xf0] sm:$0xff] }
  0x58   : > { %2355 = vmatmul.msk.bf16.gmra.mxu3 %vm473_vm1, %v1230_v38  ;;  %v959_v38 = vrot.slane %v957_v32, 1 }
  0x5a   : > { %2224 = vmatmul.msk.bf16.gmra.mxu0 %vm473_vm1, %v371_v39  ;;  %v1238_v39 = vsel %vm1219_vm2, %v1235_v16, %v1237_v33  ;;  %v960_v43 = vsel %vm327_vm3, %v955_v37, %v959_v38  ;;  %v963_v1 = vor.u32 %v961_v57, %v959_v38  ;;  %v2780_v16 = vld [vmem:[%s2611_s12 + $0x60] sm:$0xff]  ;;  %v1505_v37 = vld [vmem:[%s3715_s3 + $0xc8] sm:$0xff] }
  0x5b   : > { %2332 = vmatmul.msk.bf16.gmra.mxu2 %vm473_vm1, %v928_v40  ;;  %1596 = vperm.xlu1 %2528, %v1496_v34   ;;  %v1241_v28 = vrot.slane %v2780_v16, 1 }
  0x5c   : > { %1621 = vperm.xlu0 %2527, %v1501_v61  }
  0x62   : > { %2246 = vmatmul.msk.bf16.gmra.mxu1 %vm473_vm1, %v2375_v26  ;;  %v2379_v26 = vld [vmem:[%s2611_s12 + $0x48] sm:$0xff] }
  0x63   : > { %v400_v29 = vshll.u32 %v2379_v26, 16  ;;  %v404_v53 = vshrl.u32 %v2379_v26, 16  ;;  %1611 = vperm.xlu1 %2528, %v1499_v4  }
  0x64   : > { %1636 = vperm.xlu0 %2527, %v1504_v13   ;;  %v1503_v13 = vld [vmem:[%s3715_s3 + $0xb8] sm:$0xff] }
  0x65   : > { %v402_v36 = vrot.slane %v400_v29, 1  ;;  %v1497_v29 = vld [vmem:[%s3715_s3 + $0x88] sm:$0xff] }
  0x66   : > { %1601 = vperm.xlu2 %2529, %v1497_v29  }
  0x67   : > { %v403_v41 = vsel %vm327_vm3, %v398_v35, %v402_v36  ;;  %v406_v63 = vor.u32 %v404_v53, %v402_v36  ;;  %v1242_v36 = vsel %vm1219_vm2, %v1239_v60, %v1241_v28  ;;  %v977_v60 = vshrl.u32 %v2780_v16, 16 }
  0x68   : > { %2356 = vmatmul.msk.bf16.gmra.mxu3 %vm473_vm1, %v1232_v54  ;;  %v408_v54 = vshll.u32 %v2380_v48, 16 }
  0x6a   : > { %2225 = vmatmul.msk.bf16.gmra.mxu0 %vm473_vm1, %v379_v55  ;;  %v410_v0 = vrot.slane %v408_v54, 1  ;;  %v420_v54 = vshrl.u32 %v2777_v15, 16 }
  0x6b   : > { %2333 = vmatmul.msk.bf16.gmra.mxu2 %vm473_vm1, %v936_v56  ;;  %1626 = vperm.xlu1 %2528, %v1502_v17  }
  0x6c   : > { %v414_v32 = vor.u32 %v412_v21, %v410_v0 }
  0x72   : > { %2247 = vmatmul.msk.bf16.gmra.mxu1 %vm473_vm1, %v2376_v42 }
  0x73   : > { %1641 = vperm.xlu1 %2528, %v1505_v37  }
  0x78   : > { %2357 = vmatmul.msk.bf16.gmra.mxu3 %vm473_vm1, %v1234_v6 }
  0x7a   : > { %2226 = vmatmul.msk.bf16.gmra.mxu0 %vm473_vm1, %v387_v7 }
  0x7b   : > { %2334 = vmatmul.msk.bf16.gmra.mxu2 %vm473_vm1, %v944_v8  ;;  %v411_v8 = vsel %vm327_vm3, %v406_v63, %v410_v0  ;;  %v1513_v0 = vld [vmem:[%s3715_s3 + $0x108] sm:$0xff] }
  0x82   : > { %2248 = vmatmul.msk.bf16.gmra.mxu1 %vm473_vm1, %v2377_v58  ;;  %v965_v58 = vshll.u32 %v2752_v49, 16  ;;  %v2814_v49 = vld [vmem:[%s2611_s12 + $0x68] sm:$0xff] }
  0x83   : > { %v981_v61 = vshll.u32 %v2814_v49, 16  ;;  %v1243_v63 = vrot.slane %v2814_v49, 1 }
  0x84   : > { %v967_v2 = vrot.slane %v965_v58, 1 }
  0x86   : > { %v971_v34 = vor.u32 %v969_v25, %v967_v2 }
  0x88   : > { %2358 = vmatmul.msk.bf16.gmra.mxu3 %vm473_vm1, %v1236_v22  ;;  %v416_v22 = vshll.u32 %v2777_v15, 16 }
  0x8a   : > { %2227 = vmatmul.msk.bf16.gmra.mxu0 %vm473_vm1, %v395_v23  ;;  %v418_v33 = vrot.slane %v416_v22, 1 }
  0x8b   : > { %2335 = vmatmul.msk.bf16.gmra.mxu2 %vm473_vm1, %v952_v24 }
  0x8f   : > { %v674_v30 = vpop.f32.mrf.mxu1 }
  0x92   : > { %2249 = vmatmul.msk.bf16.gmra.mxu1 %vm473_vm1, %v2378_v10  ;;  %v968_v10 = vsel %vm327_vm3, %v963_v1, %v967_v2  ;;  %v422_v2 = vor.u32 %v420_v54, %v418_v33 }
  0x97   : > { %v538_v40 = vpop.f32.mrf.mxu0  ;;  %v676_v44 = vpop.f32.mrf.mxu1 }
  0x98   : > { %2359 = vmatmul.msk.bf16.gmra.mxu3 %vm473_vm1, %v1238_v39  ;;  %v675_v42 = vadd.f32 %v674_v30, %v538_v40  ;;  %v1507_v30 = vld [vmem:[%s3715_s3 + $0xd8] sm:$0xff] }
  0x99   : > { %1651 = vperm.xlu0 %2527, %v1507_v30   ;;  %v985_v30 = vshrl.u32 %v2814_v49, 16 }
  0x9a   : > { %2228 = vmatmul.msk.bf16.gmra.mxu0 %vm473_vm1, %v403_v41  ;;  %v419_v41 = vsel %vm327_vm3, %v414_v32, %v418_v33 }
  0x9b   : > { %2336 = vmatmul.msk.bf16.gmra.mxu2 %vm473_vm1, %v960_v43  ;;  %v1323_v47 = vpop.f32.mrf.mxu3 }
  0x9e   : > { %v1093_v50 = vpop.f32.mrf.mxu2 }
  0x9f   : > { %v1178_v51 = vadd.f32 %v1093_v50, %v675_v42  ;;  %v540_v52 = vpop.f32.mrf.mxu0  ;;  %v679_v56 = vpop.f32.mrf.mxu1  ;;  %v1508_v50 = vld [vmem:[%s3715_s3 + $0xe0] sm:$0xff] }
  0xa0   : > { %v677_v55 = vadd.f32 %v676_v44, %v540_v52  ;;  %1656 = vperm.xlu1 %2528, %v1508_v50  }
  0xa1   : > { %v2755_v59 = vadd.f32 %v1323_v47, %v1178_v51  ;;  %1666 = vperm.xlu0 %2527, %v1510_v46  }
  0xa2   : > { %2250 = vmatmul.msk.bf16.gmra.mxu1 %vm473_vm1, %v2379_v26  ;;  %v973_v26 = vshll.u32 %v2780_v16, 16 }
  0xa3   : > { %v1325_v62 = vpop.f32.mrf.mxu3 }
  0xa4   : > { %v975_v35 = vrot.slane %v973_v26, 1  ;;  %v1506_v26 = vld [vmem:[%s3715_s3 + $0xd0] sm:$0xff] }
  0xa6   : > { %v1095_v5 = vpop.f32.mrf.mxu2  ;;  %v976_v43 = vsel %vm327_vm3, %v971_v34, %v975_v35  ;;  %v979_v4 = vor.u32 %v977_v60, %v975_v35 }
  0xa7   : > { %v1179_v6 = vadd.f32 %v1095_v5, %v677_v55  ;;  %v543_v7 = vpop.f32.mrf.mxu0  ;;  %v681_v11 = vpop.f32.mrf.mxu1  ;;  %v983_v5 = vrot.slane %v981_v61, 1 }
  0xa8   : > { %2360 = vmatmul.msk.bf16.gmra.mxu3 %vm473_vm1, %v1240_v3  ;;  %v680_v9 = vadd.f32 %v679_v56, %v543_v7  ;;  %v1500_v56 = vld [vmem:[%s3715_s3 + $0xa0] sm:$0xff]  ;;  %v1511_v7 = vld [vmem:[%s3715_s3 + $0xf8] sm:$0xff] }
  0xa9   : > { %v2769_v12 = vadd.f32 %v1325_v62, %v1179_v6  ;;  %1616 = vperm.xlu2 %2529, %v1500_v56   ;;  %1681 = vperm.xlu0 %2527, %v1513_v0   ;;  %v1244_v6 = vsel %vm1219_vm2, %v1241_v28, %v1243_v63  ;;  %v987_v37 = vor.u32 %v985_v30, %v983_v5 }
  0xaa   : > { %2229 = vmatmul.msk.bf16.gmra.mxu0 %vm473_vm1, %v411_v8  ;;  %1671 = vperm.xlu1 %2528, %v1511_v7  }
  0xab   : > { %2337 = vmatmul.msk.bf16.gmra.mxu2 %vm473_vm1, %v968_v10  ;;  %v1328_v14 = vpop.f32.mrf.mxu3 }
  0xae   : > { %v1098_v18 = vpop.f32.mrf.mxu2 }
  0xaf   : > { %v1180_v19 = vadd.f32 %v1098_v18, %v680_v9  ;;  %v545_v20 = vpop.f32.mrf.mxu0  ;;  %v684_v24 = vpop.f32.mrf.mxu1 }
  0xb0   : > { %v682_v23 = vadd.f32 %v681_v11, %v545_v20  ;;  %v2401_v20 = vld [vmem:[%s2611_s12 + $0x70] sm:$0xff] }
  0xb1   : > { %v2788_v27 = vadd.f32 %v1328_v14, %v1180_v19  ;;  %1631 = vperm.xlu2 %2529, %v1503_v13   ;;  %v2383_v19 = vld [vmem:[%s2611_s12 + $0x68] sm:$0xff]  ;;  %v1245_v33 = vrot.slane %v2401_v20, 1 }
  0xb2   : > { %2251 = vmatmul.msk.bf16.gmra.mxu1 %vm473_vm1, %v2380_v48  ;;  %v2382_v48 = vld [vmem:[%s2611_s12 + $0x60] sm:$0xff]  ;;  %v432_v25 = vshll.u32 %v2383_v19, 16  ;;  %v436_v56 = vshrl.u32 %v2383_v19, 16 }
  0xb3   : > { %v1330_v31 = vpop.f32.mrf.mxu3  ;;  %v424_v55 = vshll.u32 %v2382_v48, 16 }
  0xb5   : > { %v426_v3 = vrot.slane %v424_v55, 1 }
  0xb6   : > { %v1100_v38 = vpop.f32.mrf.mxu2 }
  0xb7   : > { %v1181_v39 = vadd.f32 %v1100_v38, %v682_v23  ;;  %v548_v40 = vpop.f32.mrf.mxu0  ;;  %v686_v44 = vpop.f32.mrf.mxu1  ;;  %v427_v11 = vsel %vm327_vm3, %v422_v2, %v426_v3 }
  0xb8   : > { %2361 = vmatmul.msk.bf16.gmra.mxu3 %vm473_vm1, %v1242_v36  ;;  %v685_v42 = vadd.f32 %v684_v24, %v548_v40  ;;  %v428_v24 = vshrl.u32 %v2382_v48, 16  ;;  %v434_v36 = vrot.slane %v432_v25, 1 }
  0xb9   : > { %v2805_v45 = vadd.f32 %v1330_v31, %v1181_v39  ;;  %v989_v31 = vshll.u32 %v2401_v20, 16  ;;  %1646 = vperm.xlu2 %2529, %v1506_v26   ;;  %v1246_v39 = vsel %vm1219_vm2, %v1243_v63, %v1245_v33  ;;  %v993_v63 = vshrl.u32 %v2401_v20, 16  ;;  %v2385_v20 = vld [vmem:[%s2611_s12 + $0x78] sm:$0xff] }
  0xba   : > { %2230 = vmatmul.msk.bf16.gmra.mxu0 %vm473_vm1, %v419_v41  ;;  %v430_v35 = vor.u32 %v428_v24, %v426_v3  ;;  %v448_v26 = vshll.u32 %v2385_v20, 16 }
  0xbb   : > { %2338 = vmatmul.msk.bf16.gmra.mxu2 %vm473_vm1, %v976_v43  ;;  %v1333_v47 = vpop.f32.mrf.mxu3  ;;  %v991_v38 = vrot.slane %v989_v31, 1 }
  0xbc   : > { %v435_v43 = vsel %vm327_vm3, %v430_v35, %v434_v36 }
  0xbe   : > { %v1103_v51 = vpop.f32.mrf.mxu2 }
  0xbf   : > { %v1182_v52 = vadd.f32 %v1103_v51, %v685_v42  ;;  %v550_v53 = vpop.f32.mrf.mxu0  ;;  %v689_v58 = vpop.f32.mrf.mxu1  ;;  %v2384_v51 = vld [vmem:[%s2611_s12 + $0x70] sm:$0xff] }
  0xc0   : > { %v687_v57 = vadd.f32 %v686_v44, %v550_v53  ;;  %v1509_v44 = vld [vmem:[%s3715_s3 + $0xe8] sm:$0xff]  ;;  %v444_v25 = vshrl.u32 %v2384_v51, 16 }
  0xc1   : > { %v2825_v62 = vadd.f32 %v1333_v47, %v1182_v52  ;;  %v992_v47 = vsel %vm327_vm3, %v987_v37, %v991_v38  ;;  %1661 = vperm.xlu2 %2529, %v1509_v44   ;;  %v2402_v52 = vld [vmem:[%s2611_s12 + $0x78] sm:$0xff]  ;;  %v450_v37 = vrot.slane %v448_v26, 1 }
  0xc2   : > { %2252 = vmatmul.msk.bf16.gmra.mxu1 %vm473_vm1, %v2777_v15  ;;  %v984_v15 = vsel %vm327_vm3, %v979_v4, %v983_v5  ;;  %v997_v0 = vshll.u32 %v2402_v52, 16  ;;  %v1247_v2 = vrot.slane %v2402_v52, 1  ;;  %v438_v4 = vor.u32 %v436_v56, %v434_v36 }
  0xc3   : > { %v1335_v1 = vpop.f32.mrf.mxu3  ;;  %v1001_v30 = vshrl.u32 %v2402_v52, 16  ;;  %v2386_v52 = vld [vmem:[%s2611_s12 + $0x80] sm:$0xff] }
  0xc4   : > { %v999_v7 = vrot.slane %v997_v0, 1 }
  0xc6   : > { %v1105_v8 = vpop.f32.mrf.mxu2 }
  0xc7   : > { %v1183_v9 = vadd.f32 %v1105_v8, %v687_v57  ;;  %v553_v10 = vpop.f32.mrf.mxu0  ;;  %v691_v16 = vpop.f32.mrf.mxu1  ;;  %v440_v57 = vshll.u32 %v2384_v51, 16  ;;  %v1248_v8 = vsel %vm1219_vm2, %v1245_v33, %v1247_v2 }
  0xc8   : > { %2362 = vmatmul.msk.bf16.gmra.mxu3 %vm473_vm1, %v1244_v6  ;;  %v690_v14 = vadd.f32 %v689_v58, %v553_v10  ;;  %v1512_v58 = vld [vmem:[%s3715_s3 + $0x100] sm:$0xff]  ;;  %v995_v6 = vor.u32 %v993_v63, %v991_v38  ;;  %v1003_v38 = vor.u32 %v1001_v30, %v999_v7 }
  0xc9   : > { %v2843_v17 = vadd.f32 %v1335_v1, %v1183_v9  ;;  %1676 = vperm.xlu2 %2529, %v1512_v58   ;;  %v442_v5 = vrot.slane %v440_v57, 1  ;;  %v452_v57 = vshrl.u32 %v2385_v20, 16  ;;  %v456_v58 = vshll.u32 %v2386_v52, 16 }
  0xca   : > { %2231 = vmatmul.msk.bf16.gmra.mxu0 %vm473_vm1, %v427_v11 }
  0xcb   : > { %2339 = vmatmul.msk.bf16.gmra.mxu2 %vm473_vm1, %v984_v15  ;;  %v1338_v18 = vpop.f32.mrf.mxu3  ;;  %v443_v13 = vsel %vm327_vm3, %v438_v4, %v442_v5  ;;  %v1000_v15 = vsel %vm327_vm3, %v995_v6, %v999_v7  ;;  %v446_v36 = vor.u32 %v444_v25, %v442_v5  ;;  %v454_v5 = vor.u32 %v452_v57, %v450_v37 }
  0xcc   : > { %v458_v6 = vrot.slane %v456_v58, 1 }
  0xcd   : > { %v451_v44 = vsel %vm327_vm3, %v446_v36, %v450_v37 }
  0xce   : > { %v1108_v21 = vpop.f32.mrf.mxu2 }
  0xcf   : > { %v1184_v22 = vadd.f32 %v1108_v21, %v690_v14  ;;  %v555_v23 = vpop.f32.mrf.mxu0  ;;  %v694_v29 = vpop.f32.mrf.mxu1  ;;  %v2403_v21 = vld [vmem:[%s2611_s12 + $0x80] sm:$0xff] }
  0xd0   : > { %v692_v28 = vadd.f32 %v691_v16, %v555_v23  ;;  %v1005_v31 = vshll.u32 %v2403_v21, 16  ;;  %v1009_v63 = vshrl.u32 %v2403_v21, 16 }
  0xd1   : > { %v2853_v32 = vadd.f32 %v1338_v18, %v1184_v22 }
  0xd2   : > { %2253 = vmatmul.msk.bf16.gmra.mxu1 %vm473_vm1, %v2382_v48 }
  0xd3   : > { %v1340_v34 = vpop.f32.mrf.mxu3 }
  0xd6   : > { %v1110_v40 = vpop.f32.mrf.mxu2 }
  0xd7   : > { %v1185_v41 = vadd.f32 %v1110_v40, %v692_v28  ;;  %v558_v42 = vpop.f32.mrf.mxu0  ;;  %v696_v48 = vpop.f32.mrf.mxu1 }
  0xd8   : > { %2363 = vmatmul.msk.bf16.gmra.mxu3 %vm473_vm1, %v1246_v39  ;;  %v695_v46 = vadd.f32 %v694_v29, %v558_v42  ;;  %v1007_v39 = vrot.slane %v1005_v31, 1 }
  0xd9   : > { %v2863_v49 = vadd.f32 %v1340_v34, %v1185_v41  ;;  %v1249_v34 = vrot.slane %v2403_v21, 1 }
  0xda   : > { %2232 = vmatmul.msk.bf16.gmra.mxu0 %vm473_vm1, %v435_v43  ;;  %v1011_v7 = vor.u32 %v1009_v63, %v1007_v39 }
  0xdb   : > { %2340 = vmatmul.msk.bf16.gmra.mxu2 %vm473_vm1, %v992_v47  ;;  %v1343_v50 = vpop.f32.mrf.mxu3  ;;  %v1250_v40 = vsel %vm1219_vm2, %v1247_v2, %v1249_v34  ;;  %v1008_v47 = vsel %vm327_vm3, %v1003_v38, %v1007_v39 }
  0xde   : > { %v1113_v53 = vpop.f32.mrf.mxu2 }
  0xdf   : > { %v1186_v54 = vadd.f32 %v1113_v53, %v695_v46  ;;  %v560_v55 = vpop.f32.mrf.mxu0  ;;  %v699_v61 = vpop.f32.mrf.mxu1  ;;  %v2404_v53 = vld [vmem:[%s2611_s12 + $0x88] sm:$0xff] }
  0xe0   : > { %v697_v60 = vadd.f32 %v696_v48, %v560_v55  ;;  %v1013_v0 = vshll.u32 %v2404_v53, 16  ;;  %v1017_v38 = vshrl.u32 %v2404_v53, 16 }
  0xe1   : > { %v2872_v1 = vadd.f32 %v1343_v50, %v1186_v54 }
  0xe2   : > { %2254 = vmatmul.msk.bf16.gmra.mxu1 %vm473_vm1, %v2383_v19 }
  0xe3   : > { %v1345_v3 = vpop.f32.mrf.mxu3 }
  0xe6   : > { %v1115_v9 = vpop.f32.mrf.mxu2 }
  0xe7   : > { %v1187_v10 = vadd.f32 %v1115_v9, %v697_v60  ;;  %v563_v11 = vpop.f32.mrf.mxu0  ;;  %v701_v16 = vpop.f32.mrf.mxu1  ;;  %v235_v9 = vld [vmem:[%s2611_s12 + $0x88] sm:$0x1] }
  0xe8   : > { %2364 = vmatmul.msk.bf16.gmra.mxu3 %vm473_vm1, %v1248_v8  ;;  %v700_v14 = vadd.f32 %v699_v61, %v563_v11  ;;  %v1015_v8 = vrot.slane %v1013_v0, 1  ;;  %v793_v11 = vld [vmem:[%s2611_s12 + $0x90] sm:$0x1] }
  0xe9   : > { %v2879_v18 = vadd.f32 %v1345_v3, %v1187_v10  ;;  %v1251_v3 = vrot.slane %v2404_v53, 1 }
  0xea   : > { %2233 = vmatmul.msk.bf16.gmra.mxu0 %vm473_vm1, %v443_v13 }
  0xeb   : > { %2341 = vmatmul.msk.bf16.gmra.mxu2 %vm473_vm1, %v1000_v15  ;;  %v1348_v19 = vpop.f32.mrf.mxu3  ;;  %v1252_v10 = vsel %vm1219_vm2, %v1249_v34, %v1251_v3  ;;  %v460_v34 = vshrl.u32 %v2386_v52, 16 }
  0xee   : > { %v1118_v22 = vpop.f32.mrf.mxu2 }
  0xef   : > { %v1188_v23 = vadd.f32 %v1118_v22, %v700_v14  ;;  %v565_v24 = vpop.f32.mrf.mxu0  ;;  %v704_v29 = vpop.f32.mrf.mxu1  ;;  %v1016_v22 = vsel %vm327_vm3, %v1011_v7, %v1015_v8 }
  0xf0   : > { %v702_v28 = vadd.f32 %v701_v16, %v565_v24  ;;  %v459_v16 = vsel %vm327_vm3, %v454_v5, %v458_v6 }
  0xf1   : > { %v2885_v33 = vadd.f32 %v1348_v19, %v1188_v23  ;;  %v308_v19 = vunpack.c.l.b16 %v235_v9  ;;  %v866_v23 = vunpack.c.l.b16 %v793_v11 }
  0xf2   : > { %2255 = vmatmul.msk.bf16.gmra.mxu1 %vm473_vm1, %v2384_v51 }
  0xf3   : > { %v1350_v35 = vpop.f32.mrf.mxu3  ;;  %v326_v26 = vpack.c.b16 %v308_v19, %v308_v19 }
  0xf6   : > { %v1120_v41 = vpop.f32.mrf.mxu2 }
  0xf7   : > { %v1189_v42 = vadd.f32 %v1120_v41, %v702_v28  ;;  %v568_v43 = vpop.f32.mrf.mxu0  ;;  %v706_v48 = vpop.f32.mrf.mxu1  ;;  %v884_v28 = vpack.c.b16 %v866_v23, %v866_v23 }
  0xf8   : > { %2365 = vmatmul.msk.bf16.gmra.mxu3 %vm473_vm1, %v1250_v40  ;;  %v705_v46 = vadd.f32 %v704_v29, %v568_v43  ;;  %v462_v43 = vor.u32 %v460_v34, %v458_v6 }
  0xf9   : > { %v2892_v50 = vadd.f32 %v1350_v35, %v1189_v42  ;;  %v464_v35 = vshll.u32 %v326_v26, 16  ;;  %v1021_v39 = vshll.u32 %v884_v28, 16  ;;  %v1253_v41 = vrot.slane %v884_v28, 1 }
  0xfa   : > { %2234 = vmatmul.msk.bf16.gmra.mxu0 %vm473_vm1, %v451_v44 }
  0xfb   : > { %2342 = vmatmul.msk.bf16.gmra.mxu2 %vm473_vm1, %v1008_v47  ;;  %v1353_v51 = vpop.f32.mrf.mxu3  ;;  %v466_v44 = vrot.slane %v464_v35, 1  ;;  %v1023_v47 = vrot.slane %v1021_v39, 1 }
  0xfe   : > { %v1123_v54 = vpop.f32.mrf.mxu2 }
  0xff   : > { %v1190_v55 = vadd.f32 %v1123_v54, %v705_v46  ;;  %v570_v56 = vpop.f32.mrf.mxu0  ;;  %v709_v61 = vpop.f32.mrf.mxu1  ;;  %v1019_v46 = vor.u32 %v1017_v38, %v1015_v8 }
 0x100   : > { %v707_v60 = vadd.f32 %v706_v48, %v570_v56  ;;  %v1254_v48 = vsel %vm1219_vm2, %v1251_v3, %v1253_v41  ;;  %v467_v56 = vsel %vm327_vm3, %v462_v43, %v466_v44 }
 0x101   : > { %v2898_v2 = vadd.f32 %v1353_v51, %v1190_v55  ;;  %v1024_v57 = vsel %vm327_vm3, %v1019_v46, %v1023_v47  ;;  %v2932_v47 = vpop.permute.xlu0 %1516 }
 0x102   : > { %2256 = vmatmul.msk.bf16.gmra.mxu1 %vm473_vm1, %v2385_v20  ;;  %3759 = vst [vmem:[#allocation2_spill] sm:$0xff] %v2932_v47 }
 0x103   : > { %v1355_v4 = vpop.f32.mrf.mxu3 }
 0x106   : > { %v1125_v13 = vpop.f32.mrf.mxu2 }
 0x107   : > { %v1191_v14 = vadd.f32 %v1125_v13, %v707_v60  ;;  %v573_v15 = vpop.f32.mrf.mxu0  ;;  %v711_v20 = vpop.f32.mrf.mxu1 }
 0x108   : > { %2366 = vmatmul.msk.bf16.gmra.mxu3 %vm473_vm1, %v1252_v10  ;;  %v710_v21 = vadd.f32 %v709_v61, %v573_v15 }
 0x109   : > { %v2907_v24 = vadd.f32 %v1355_v4, %v1191_v14 }
 0x10a   : > { %2235 = vmatmul.msk.bf16.gmra.mxu0 %vm473_vm1, %v459_v16 }
 0x10b   : > { %2343 = vmatmul.msk.bf16.gmra.mxu2 %vm473_vm1, %v1016_v22  ;;  %v1358_v25 = vpop.f32.mrf.mxu3 }
 0x10e   : > { %v1128_v29 = vpop.f32.mrf.mxu2 }
 0x10f   : > { %v1192_v30 = vadd.f32 %v1128_v29, %v710_v21  ;;  %v575_v31 = vpop.f32.mrf.mxu0  ;;  %v714_v37 = vpop.f32.mrf.mxu1 }
 0x110   : > { %v712_v36 = vadd.f32 %v711_v20, %v575_v31 }
 0x111   : > { %v2911_v40 = vadd.f32 %v1358_v25, %v1192_v30 }
 0x112   : > { %2257 = vmatmul.msk.bf16.gmra.mxu1 %vm473_vm1, %v2386_v52 }
 0x113   : > { %v1360_v42 = vpop.f32.mrf.mxu3 }
 0x116   : > { %v1130_v51 = vpop.f32.mrf.mxu2 }
 0x117   : > { %v1193_v54 = vadd.f32 %v1130_v51, %v712_v36  ;;  %v578_v55 = vpop.f32.mrf.mxu0  ;;  %v716_v58 = vpop.f32.mrf.mxu1 }
 0x118   : > { %2367 = vmatmul.msk.bf16.gmra.mxu3 %vm473_vm1, %v1254_v48  ;;  %v715_v53 = vadd.f32 %v714_v37, %v578_v55 }
 0x119   : > { %v2918_v60 = vadd.f32 %v1360_v42, %v1193_v54  ;;  %v2936_v54 = vpop.permute.xlu1 %1526 }
 0x11a   : > { %2236 = vmatmul.msk.bf16.gmra.mxu0 %vm473_vm1, %v467_v56  ;;  %3760 = vst [vmem:[#allocation3_spill] sm:$0xff] %v2936_v54 }
 0x11b   : > { %2344 = vmatmul.msk.bf16.gmra.mxu2 %vm473_vm1, %v1024_v57  ;;  %v1363_v52 = vpop.f32.mrf.mxu3 }
 0x11e   : > { %v1133_v61 = vpop.f32.mrf.mxu2 }
 0x11f   : > { %v1194_v63 = vadd.f32 %v1133_v61, %v715_v53  ;;  %v580_v0 = vpop.f32.mrf.mxu0  ;;  %v719_v4 = vpop.f32.mrf.mxu1 }
 0x120   : > { %v717_v3 = vadd.f32 %v716_v58, %v580_v0  ;;  %v2940_v53 = vpop.permute.xlu2 %1536  ;;  %v2948_v0 = vpop.permute.xlu0 %1521 }
 0x121   : > { %v2922_v5 = vadd.f32 %v1363_v52, %v1194_v63  ;;  %3761 = vst [vmem:[#allocation4_spill] sm:$0xff] %v2940_v53 }
 0x122   : > { %3762 = vst [vmem:[#allocation5_spill] sm:$0xff] %v2948_v0 }
 0x123   : > { %v1365_v6 = vpop.f32.mrf.mxu3 }
 0x126   : > { %v1135_v7 = vpop.f32.mrf.mxu2 }
 0x127   : > { %v1195_v8 = vadd.f32 %v1135_v7, %v717_v3  ;;  %v583_v9 = vpop.f32.mrf.mxu0  ;;  %v721_v11 = vpop.f32.mrf.mxu1 }
 0x128   : > { %v720_v10 = vadd.f32 %v719_v4, %v583_v9  ;;  %v2950_v3 = vpop.permute.xlu1 %1531 }
 0x129   : > { %v2924_v13 = vadd.f32 %v1365_v6, %v1195_v8  ;;  %3763 = vst [vmem:[#allocation6_spill] sm:$0xff] %v2950_v3  ;;  %v2954_v6 = vpop.permute.xlu2 %1541 }
 0x12a   : > { %3764 = vst [vmem:[#allocation7_spill] sm:$0xff] %v2954_v6 }
 0x12b   : > { %v1368_v14 = vpop.f32.mrf.mxu3 }
 0x12e   : > { %v1138_v15 = vpop.f32.mrf.mxu2 }
 0x12f   : > { %v1196_v16 = vadd.f32 %v1138_v15, %v720_v10  ;;  %v585_v19 = vpop.f32.mrf.mxu0  ;;  %v724_v22 = vpop.f32.mrf.mxu1 }
 0x130   : > { %v722_v21 = vadd.f32 %v721_v11, %v585_v19  ;;  %v2962_v10 = vpop.permute.xlu0 %1546  ;;  %v2964_v11 = vpop.permute.xlu1 %1551 }
 0x131   : > { %v2926_v20 = vadd.f32 %v1368_v14, %v1196_v16  ;;  %3765 = vst [vmem:[#allocation8_spill] sm:$0xff] %v2962_v10  ;;  %v2968_v15 = vpop.permute.xlu2 %1556 }
 0x132   : > { %3766 = vst [vmem:[#allocation9_spill] sm:$0xff] %v2964_v11 }
 0x133   : > { %v1370_v23 = vpop.f32.mrf.mxu3  ;;  %3767 = vst [vmem:[#allocation10_spill] sm:$0xff] %v2968_v15 }
 0x136   : > { %v1140_v25 = vpop.f32.mrf.mxu2 }
 0x137   : > { %v1197_v26 = vadd.f32 %v1140_v25, %v722_v21  ;;  %v588_v28 = vpop.f32.mrf.mxu0  ;;  %v726_v30 = vpop.f32.mrf.mxu1 }
 0x138   : > { %v725_v29 = vadd.f32 %v724_v22, %v588_v28  ;;  %v2979_v22 = vld [vmem:[%s3714_s2] ss:$0 sm:$0xff] }
 0x139   : > { %v2928_v31 = vadd.f32 %v1370_v23, %v1197_v26  ;;  %v2981_v23 = vpop.permute.xlu0 %1561  ;;  %v1447_v25 = vadd.f32 %v2979_v22, %v2769_v12  ;;  %v2985_v26 = vpop.permute.xlu1 %1566  ;;  %v1449_v12 = vadd.f32 %v2979_v22, %v2805_v45 }
 0x13a   : > { %3768 = vst [vmem:[#allocation11_spill] sm:$0xff] %v2981_v23 }
 0x13b   : > { %v1373_v34 = vpop.f32.mrf.mxu3  ;;  %3769 = vst [vmem:[#allocation12_spill] sm:$0xff] %v2985_v26  ;;  %v3019_v45 = vmul.f32 %v2950_v3, %v1449_v12 }
 0x13d   : > { %3773 = vst [vmem:[#allocation16_spill] sm:$0xff] %v3019_v45  ;;  %v1760_v12 = vmul.f32 %v3019_v45, %v3019_v45 }
 0x13e   : > { %v1143_v35 = vpop.f32.mrf.mxu2 }
 0x13f   : > { %v1198_v36 = vadd.f32 %v1143_v35, %v725_v29  ;;  %v590_v37 = vpop.f32.mrf.mxu0  ;;  %v729_v39 = vpop.f32.mrf.mxu1  ;;  %v1446_v29 = vadd.f32 %v2979_v22, %v2755_v59 }
 0x140   : > { %v727_v38 = vadd.f32 %v726_v30, %v590_v37  ;;  %v1448_v30 = vadd.f32 %v2979_v22, %v2788_v27  ;;  %v1450_v27 = vadd.f32 %v2979_v22, %v2825_v62 }
 0x141   : > { %v2930_v41 = vadd.f32 %v1373_v34, %v1198_v36  ;;  %v2993_v34 = vpop.permute.xlu2 %1571  ;;  %v2998_v36 = vmul.f32 %v2948_v0, %v1447_v25 }
 0x142   : > { %3770 = vst [vmem:[#allocation13_spill] sm:$0xff] %v2993_v34  ;;  %v3010_v59 = vmul.f32 %v2936_v54, %v1448_v30 }
 0x143   : > { %v1375_v42 = vpop.f32.mrf.mxu3 }
 0x144   : > { %3771 = vst [vmem:[#allocation14_spill] sm:$0xff] %v3010_v59  ;;  %v1759_v62 = vmul.f32 %v3010_v59, %v3010_v59 }
 0x146   : > { %v1145_v43 = vpop.f32.mrf.mxu2 }
 0x147   : > { %v1199_v44 = vadd.f32 %v1145_v43, %v727_v38  ;;  %v593_v46 = vpop.f32.mrf.mxu0  ;;  %v2934_v51 = vpop.f32.mrf.mxu1  ;;  %v1758_v43 = vmul.f32 %v2998_v36, %v2998_v36 }
 0x148   : > { %v730_v48 = vadd.f32 %v729_v39, %v593_v46  ;;  %v3007_v39 = vmul.f32 %v2932_v47, %v1446_v29  ;;  %v3023_v46 = vpop.permute.xlu1 %1581 }
 0x149   : > { %v2938_v55 = vadd.f32 %v1375_v42, %v1199_v44  ;;  %v3014_v42 = vpop.permute.xlu0 %1576  ;;  %v1451_v44 = vadd.f32 %v2979_v22, %v2843_v17  ;;  %3774 = vst [vmem:[#allocation17_spill] sm:$0xff] %v3023_v46  ;;  %v3038_v17 = vpop.permute.xlu2 %1586 }
 0x14a   : > { %3772 = vst [vmem:[#allocation15_spill] sm:$0xff] %v3014_v42  ;;  %v1718_v25 = vadd.f32 %v2998_v36, %v3007_v39 }
 0x14b   : > { %v1378_v56 = vpop.f32.mrf.mxu3  ;;  %3775 = vst [vmem:[#allocation18_spill] sm:$0xff] %v3038_v17  ;;  %v3045_v3 = vmul.f32 %v2954_v6, %v1451_v44 }
 0x14d   : > { %3776 = vst [vmem:[#allocation19_spill] sm:$0xff] %v3045_v3 }
 0x14e   : > { %v1148_v57 = vpop.f32.mrf.mxu2 }
 0x14f   : > { %v1200_v58 = vadd.f32 %v1148_v57, %v730_v48  ;;  %v2942_v52 = vpop.f32.mrf.mxu0  ;;  %v2944_v61 = vpop.f32.mrf.mxu1  ;;  %v3032_v57 = vmul.f32 %v2940_v53, %v1450_v27  ;;  %v1453_v27 = vadd.f32 %v2979_v22, %v2863_v49 }
 0x151   : > { %v2946_v63 = vadd.f32 %v1378_v56, %v1200_v58  ;;  %v1757_v56 = vmul.f32 %v3007_v39, %v3007_v39  ;;  %v1452_v58 = vadd.f32 %v2979_v22, %v2853_v32  ;;  %v1719_v32 = vadd.f32 %v1718_v25, %v3010_v59 }
 0x152   : > { %v1761_v0 = vmul.f32 %v3032_v57, %v3032_v57  ;;  %v1762_v25 = vmul.f32 %v3045_v3, %v3045_v3 }
 0x153   : > { %v2952_v4 = vpop.f32.mrf.mxu3  ;;  %v1791_v30 = vadd.f32 %v1758_v43, %v1757_v56  ;;  %v3055_v47 = vmul.f32 %v2962_v10, %v1452_v58  ;;  %v1454_v43 = vadd.f32 %v2979_v22, %v2872_v1  ;;  %v1720_v44 = vadd.f32 %v1719_v32, %v3019_v45  ;;  %v3060_v56 = vpop.permute.xlu0 %1591 }
 0x154   : > { %3778 = vst [vmem:[#allocation21_spill] sm:$0xff] %v3060_v56  ;;  %v1455_v58 = vadd.f32 %v2979_v22, %v2879_v18 }
 0x155   : > { %v1792_v54 = vadd.f32 %v1791_v30, %v1759_v62  ;;  %3777 = vst [vmem:[#allocation20_spill] sm:$0xff] %v3055_v47  ;;  %v3067_v62 = vmul.f32 %v2964_v11, %v1453_v27  ;;  %v3071_v30 = vpop.permute.xlu1 %1596  ;;  %v1721_v1 = vadd.f32 %v1720_v44, %v3032_v57  ;;  %v1763_v45 = vmul.f32 %v3055_v47, %v3055_v47  ;;  %v3084_v11 = vpop.permute.xlu2 %1601 }
 0x156   : > { %v2956_v7 = vpop.f32.mrf.mxu2  ;;  %3780 = vst [vmem:[#allocation23_spill] sm:$0xff] %v3071_v30 }
 0x157   : > { %v2958_v8 = vpop.f32.mrf.mxu0  ;;  %v2960_v9 = vpop.f32.mrf.mxu1  ;;  %v1793_v49 = vadd.f32 %v1792_v54, %v1760_v12  ;;  %3779 = vst [vmem:[#allocation22_spill] sm:$0xff] %v3067_v62  ;;  %v3079_v54 = vmul.f32 %v2968_v15, %v1454_v43  ;;  %v1456_v12 = vadd.f32 %v2979_v22, %v2885_v33  ;;  %v1722_v27 = vadd.f32 %v1721_v1, %v3045_v3 }
 0x158   : > { %3781 = vst [vmem:[#allocation24_spill] sm:$0xff] %v3084_v11  ;;  %v1764_v44 = vmul.f32 %v3067_v62, %v3067_v62  ;;  %v1457_v43 = vadd.f32 %v2979_v22, %v2892_v50 }
 0x159   : > { %v1794_v32 = vadd.f32 %v1793_v49, %v1761_v0  ;;  %v3091_v0 = vmul.f32 %v2981_v23, %v1455_v58  ;;  %v1723_v33 = vadd.f32 %v1722_v27, %v3055_v47  ;;  %v1765_v1 = vmul.f32 %v3079_v54, %v3079_v54 }
 0x15a   : > { %v3101_v3 = vmul.f32 %v2985_v26, %v1456_v12  ;;  %v3111_v27 = vmul.f32 %v2993_v34, %v1457_v43  ;;  %v1460_v43 = vadd.f32 %v2979_v22, %v2911_v40 }
 0x15b   : > { %v2966_v14 = vpop.f32.mrf.mxu3  ;;  %v1795_v59 = vadd.f32 %v1794_v32, %v1762_v25  ;;  %3782 = vst [vmem:[#allocation25_spill] sm:$0xff] %v3091_v0  ;;  %v1458_v25 = vadd.f32 %v2979_v22, %v2898_v2  ;;  %v1724_v58 = vadd.f32 %v1723_v33, %v3067_v62  ;;  %v3106_v32 = vpop.permute.xlu0 %1606  ;;  %v1766_v50 = vmul.f32 %v3091_v0, %v3091_v0 }
 0x15c   : > { %3783 = vst [vmem:[#allocation26_spill] sm:$0xff] %v3106_v32 }
 0x15d   : > { %v1796_v15 = vadd.f32 %v1795_v59, %v1763_v45  ;;  %v1459_v59 = vadd.f32 %v2979_v22, %v2907_v24  ;;  %v3115_v45 = vpop.permute.xlu1 %1611  ;;  %v1725_v2 = vadd.f32 %v1724_v58, %v3079_v54  ;;  %v3130_v34 = vpop.permute.xlu2 %1616  ;;  %v1768_v58 = vmul.f32 %v3111_v27, %v3111_v27 }
 0x15e   : > { %v2970_v16 = vpop.f32.mrf.mxu2  ;;  %3784 = vst [vmem:[#allocation27_spill] sm:$0xff] %v3115_v45 }
 0x15f   : > { %v2972_v19 = vpop.f32.mrf.mxu0  ;;  %v2974_v21 = vpop.f32.mrf.mxu1  ;;  %v1797_v23 = vadd.f32 %v1796_v15, %v1764_v44  ;;  %v1767_v15 = vmul.f32 %v3101_v3, %v3101_v3  ;;  %v3125_v44 = vmul.f32 %v3014_v42, %v1458_v25  ;;  %v1726_v24 = vadd.f32 %v1725_v2, %v3091_v0  ;;  %3785 = vst [vmem:[#allocation28_spill] sm:$0xff] %v3130_v34 }
 0x160   : > { %v3147_v0 = vmul.f32 %v3038_v17, %v1460_v43 }
 0x161   : > { %v1798_v33 = vadd.f32 %v1797_v23, %v1765_v1  ;;  %v3137_v23 = vmul.f32 %v3023_v46, %v1459_v59  ;;  %v1461_v1 = vadd.f32 %v2979_v22, %v2918_v60  ;;  %v1727_v40 = vadd.f32 %v1726_v24, %v3101_v3 }
 0x162   : > { %v1769_v2 = vmul.f32 %v3125_v44, %v3125_v44 }
 0x163   : > { %v2987_v28 = vpop.f32.mrf.mxu3  ;;  %v1799_v47 = vadd.f32 %v1798_v33, %v1766_v50  ;;  %3786 = vst [vmem:[#allocation29_spill] sm:$0xff] %v3137_v23  ;;  %v1462_v50 = vadd.f32 %v2979_v22, %v2922_v5  ;;  %v1728_v59 = vadd.f32 %v1727_v40, %v3111_v27  ;;  %v1770_v60 = vmul.f32 %v3137_v23, %v3137_v23  ;;  %v3162_v24 = vpop.permute.xlu0 %1621 }
 0x164   : > { %v3155_v46 = vmul.f32 %v3060_v56, %v1461_v1  ;;  %3787 = vst [vmem:[#allocation30_spill] sm:$0xff] %v3162_v24  ;;  %v1771_v5 = vmul.f32 %v3147_v0, %v3147_v0  ;;  %v732_v40 = vadd.f32 %v2934_v51, %v2942_v52 }
 0x165   : > { %v1800_v42 = vadd.f32 %v1799_v47, %v1767_v15  ;;  %v1463_v47 = vadd.f32 %v2979_v22, %v2924_v13  ;;  %v1729_v43 = vadd.f32 %v1728_v59, %v3125_v44  ;;  %v3171_v1 = vpop.permute.xlu1 %1626  ;;  %v735_v59 = vadd.f32 %v2944_v61, %v2958_v8  ;;  %v3188_v51 = vpop.permute.xlu2 %1631 }
 0x166   : > { %v2995_v35 = vpop.f32.mrf.mxu2  ;;  %3788 = vst [vmem:[#allocation31_spill] sm:$0xff] %v3171_v1  ;;  %v1201_v52 = vadd.f32 %v2956_v7, %v732_v40 }
 0x167   : > { %v3002_v37 = vpop.f32.mrf.mxu0  ;;  %v3004_v38 = vpop.f32.mrf.mxu1  ;;  %v1801_v33 = vadd.f32 %v1800_v42, %v1768_v58  ;;  %v3167_v42 = vmul.f32 %v3071_v30, %v1462_v50  ;;  %v1464_v58 = vadd.f32 %v2979_v22, %v2926_v20  ;;  %v1730_v13 = vadd.f32 %v1729_v43, %v3137_v23  ;;  %3789 = vst [vmem:[#allocation32_spill] sm:$0xff] %v3188_v51 }
 0x168   : > { %v1772_v50 = vmul.f32 %v3155_v46, %v3155_v46  ;;  %v3183_v30 = vmul.f32 %v3084_v11, %v1463_v47  ;;  %v1465_v20 = vadd.f32 %v2979_v22, %v2928_v31  ;;  %v1202_v31 = vadd.f32 %v2970_v16, %v735_v59 }
 0x169   : > { %v1802_v17 = vadd.f32 %v1801_v33, %v1769_v2  ;;  %v1731_v23 = vadd.f32 %v1730_v13, %v3147_v0  ;;  %v1773_v8 = vmul.f32 %v3167_v42, %v3167_v42  ;;  %v737_v13 = vadd.f32 %v2960_v9, %v2972_v19 }
 0x16a   : > { %v740_v7 = vadd.f32 %v2974_v21, %v3002_v37  ;;  %v1467_v16 = vadd.f32 %v2979_v22, %v2938_v55  ;;  %v1468_v59 = vadd.f32 %v2979_v22, %v2946_v63 }
 0x16b   : > { %v3025_v48 = vpop.f32.mrf.mxu3  ;;  %v1803_v56 = vadd.f32 %v1802_v17, %v1770_v60  ;;  %v3194_v17 = vmul.f32 %v3106_v32, %v1464_v58  ;;  %v1466_v60 = vadd.f32 %v2979_v22, %v2930_v41  ;;  %v1732_v47 = vadd.f32 %v1731_v23, %v3155_v46 }
 0x16c   : > { %v3207_v58 = vmul.f32 %v3115_v45, %v1465_v20  ;;  %v1431_v23 = vadd.f32 %v2952_v4, %v1201_v52  ;;  %v1203_v9 = vadd.f32 %v2995_v35, %v737_v13  ;;  %v1432_v20 = vadd.f32 %v2966_v14, %v1202_v31 }
 0x16d   : > { %v1804_v61 = vadd.f32 %v1803_v56, %v1771_v5  ;;  %v1774_v5 = vmul.f32 %v3183_v30, %v3183_v30  ;;  %v1733_v41 = vadd.f32 %v1732_v47, %v3167_v42  ;;  %v1775_v21 = vmul.f32 %v3194_v17, %v3194_v17  ;;  %v3237_v14 = vpop.permute.xlu1 %1641 }
 0x16e   : > { %v3040_v29 = vpop.f32.mrf.mxu2  ;;  %v3219_v37 = vmul.f32 %v3130_v34, %v1466_v60  ;;  %v1776_v60 = vmul.f32 %v3207_v58, %v3207_v58  ;;  %v3235_v47 = vmul.f32 %v3162_v24, %v1467_v16  ;;  %3791 = vst [vmem:[#allocation34_spill] sm:$0xff] %v3237_v14 }
 0x16f   : > { %v3049_v53 = vpop.f32.mrf.mxu0  ;;  %v3062_v6 = vpop.f32.mrf.mxu1  ;;  %v1805_v56 = vadd.f32 %v1804_v61, %v1772_v50  ;;  %v1204_v55 = vadd.f32 %v3040_v29, %v740_v7  ;;  %v1734_v61 = vadd.f32 %v1733_v41, %v3183_v30  ;;  %v1469_v29 = vadd.f32 %v2979_v22, %v1431_v23 }
 0x170   : > { %v3223_v50 = vpop.permute.xlu0 %1636  ;;  %v742_v4 = vadd.f32 %v3004_v38, %v3049_v53  ;;  %v1433_v53 = vadd.f32 %v2987_v28, %v1203_v9  ;;  %v1777_v13 = vmul.f32 %v3219_v37, %v3219_v37  ;;  %v3245_v7 = vpop.permute.xlu2 %1646 }
 0x171   : > { %v1806_v19 = vadd.f32 %v1805_v56, %v1773_v8  ;;  %3790 = vst [vmem:[#allocation33_spill] sm:$0xff] %v3223_v50  ;;  %v3248_v56 = vmul.f32 %v3171_v1, %v1468_v59  ;;  %v1434_v41 = vadd.f32 %v3025_v48, %v1204_v55 }
 0x172   : > { %3792 = vst [vmem:[#allocation35_spill] sm:$0xff] %v3245_v7  ;;  %v1471_v59 = vadd.f32 %v2979_v22, %v1433_v53 }
 0x173   : > { %v3073_v10 = vpop.f32.mrf.mxu3  ;;  %v1807_v8 = vadd.f32 %v1806_v19, %v1774_v5  ;;  %v1470_v5 = vadd.f32 %v2979_v22, %v1432_v20  ;;  %v1778_v19 = vmul.f32 %v3235_v47, %v3235_v47 }
 0x174   : > { %v3278_v53 = vmul.f32 %v3237_v14, %v1471_v59 }
 0x175   : > { %v1808_v31 = vadd.f32 %v1807_v8, %v1775_v21  ;;  %v3259_v21 = vmul.f32 %v3188_v51, %v1469_v29 }
 0x176   : > { %v3086_v18 = vpop.f32.mrf.mxu2 }
 0x177   : > { %v3095_v49 = vpop.f32.mrf.mxu0  ;;  %v3120_v26 = vpop.f32.mrf.mxu1  ;;  %v1205_v38 = vadd.f32 %v3086_v18, %v742_v4  ;;  %v1809_v16 = vadd.f32 %v1808_v31, %v1776_v60 }
 0x178   : > { %v745_v35 = vadd.f32 %v3062_v6, %v3095_v49  ;;  %v1735_v49 = vadd.f32 %v1734_v61, %v3194_v17  ;;  %v3273_v60 = vpop.permute.xlu0 %1651 }
 0x179   : > { %v1435_v20 = vadd.f32 %v3073_v10, %v1205_v38  ;;  %v1810_v55 = vadd.f32 %v1809_v16, %v1777_v13  ;;  %3793 = vst [vmem:[#allocation36_spill] sm:$0xff] %v3273_v60 }
 0x17a   : > { %v1736_v18 = vadd.f32 %v1735_v49, %v3207_v58 }
 0x17b   : > { %v3117_v12 = vpop.f32.mrf.mxu3  ;;  %v1811_v29 = vadd.f32 %v1810_v55, %v1778_v19  ;;  %v1473_v38 = vadd.f32 %v2979_v22, %v1435_v20  ;;  %v1782_v19 = vmul.f32 %v3278_v53, %v3278_v53 }
 0x17d   : > { %v3298_v59 = vmul.f32 %v3273_v60, %v1473_v38 }
 0x17e   : > { %v3132_v62 = vpop.f32.mrf.mxu2 }
 0x17f   : > { %v3141_v25 = vpop.f32.mrf.mxu0  ;;  %v749_v2 = vpop.f32.mrf.mxu1  ;;  %v1206_v28 = vadd.f32 %v3132_v62, %v745_v35  ;;  %v1737_v62 = vadd.f32 %v1736_v18, %v3219_v37 }
 0x180   : > { %v747_v23 = vadd.f32 %v3120_v26, %v3141_v25  ;;  %v1779_v26 = vmul.f32 %v3248_v56, %v3248_v56  ;;  %v3268_v25 = vmul.f32 %v3223_v50, %v1470_v5 }
 0x181   : > { %v1738_v61 = vadd.f32 %v1737_v62, %v3235_v47 }
 0x182   : > { %v1812_v5 = vadd.f32 %v1811_v29, %v1779_v26  ;;  %v1784_v29 = vmul.f32 %v3298_v59, %v3298_v59 }
 0x183   : > { %v3159_v15 = vpop.f32.mrf.mxu3  ;;  %v1739_v31 = vadd.f32 %v1738_v61, %v3248_v56 }
 0x185   : > { %v1740_v18 = vadd.f32 %v1739_v31, %v3259_v21  ;;  %v3316_v31 = vpop.permute.xlu0 %1666 }
 0x186   : > { %v3178_v33 = vpop.f32.mrf.mxu2  ;;  %3795 = vst [vmem:[#allocation38_spill] sm:$0xff] %v3316_v31 }
 0x187   : > { %v613_v43 = vpop.f32.mrf.mxu0  ;;  %v751_v6 = vpop.f32.mrf.mxu1  ;;  %v1207_v4 = vadd.f32 %v3178_v33, %v747_v23  ;;  %v1780_v33 = vmul.f32 %v3259_v21, %v3259_v21  ;;  %v1741_v20 = vadd.f32 %v1740_v18, %v3268_v25 }
 0x188   : > { %v750_v9 = vadd.f32 %v749_v2, %v613_v43  ;;  %v1472_v2 = vadd.f32 %v2979_v22, %v1434_v41  ;;  %v1436_v43 = vadd.f32 %v3117_v12, %v1206_v28 }
 0x189   : > { %v1437_v12 = vadd.f32 %v3159_v15, %v1207_v4  ;;  %v1813_v15 = vadd.f32 %v1812_v5, %v1780_v33 }
 0x18a   : > { %v1474_v41 = vadd.f32 %v2979_v22, %v1436_v43 }
 0x18b   : > { %v3209_v40 = vpop.f32.mrf.mxu3  ;;  %v1475_v62 = vadd.f32 %v2979_v22, %v1437_v12 }
 0x18e   : > { %v1168_v52 = vpop.f32.mrf.mxu2 }
 0x18f   : > { %v615_v63 = vpop.f32.mrf.mxu0  ;;  %v1208_v10 = vadd.f32 %v1168_v52, %v750_v9  ;;  %v3283_v52 = vpop.permute.xlu1 %1656 }
 0x190   : > { %v752_v8 = vadd.f32 %v751_v6, %v615_v63  ;;  %v1781_v63 = vmul.f32 %v3268_v25, %v3268_v25  ;;  %v3288_v6 = vmul.f32 %v3245_v7, %v1472_v2  ;;  %v754_v28 = vpop.f32.mrf.mxu1  ;;  %v3293_v9 = vpop.permute.xlu2 %1661 }
 0x191   : > { %v1438_v16 = vadd.f32 %v3209_v40, %v1208_v10  ;;  %3794 = vst [vmem:[#allocation37_spill] sm:$0xff] %v3293_v9  ;;  %v3305_v40 = vmul.f32 %v3283_v52, %v1474_v41  ;;  %v3313_v33 = vmul.f32 %v3293_v9, %v1475_v62 }
 0x192   : > { %v1814_v4 = vadd.f32 %v1813_v15, %v1781_v63  ;;  %v1783_v26 = vmul.f32 %v3288_v6, %v3288_v6 }
 0x193   : > { %v1400_v48 = vpop.f32.mrf.mxu3  ;;  %v1476_v61 = vadd.f32 %v2979_v22, %v1438_v16 }
 0x195   : > { %v3322_v41 = vmul.f32 %v3316_v31, %v1476_v61 }
 0x196   : > { %v1170_v35 = vpop.f32.mrf.mxu2 }
 0x197   : > { %v618_v49 = vpop.f32.mrf.mxu0  ;;  %v1209_v13 = vadd.f32 %v1170_v35, %v752_v8  ;;  %v1742_v35 = vadd.f32 %v1741_v20, %v3278_v53  ;;  %v1815_v8 = vadd.f32 %v1814_v4, %v1782_v19  ;;  %v3325_v18 = vpop.permute.xlu1 %1671  ;;  %v1786_v19 = vmul.f32 %v3313_v33, %v3313_v33 }
 0x198   : > { %v755_v23 = vadd.f32 %v754_v28, %v618_v49  ;;  %3796 = vst [vmem:[#allocation39_spill] sm:$0xff] %v3325_v18 }
 0x199   : > { %v1439_v55 = vadd.f32 %v1400_v48, %v1209_v13  ;;  %v1743_v48 = vadd.f32 %v1742_v35, %v3288_v6  ;;  %v1816_v12 = vadd.f32 %v1815_v8, %v1783_v26  ;;  %v1785_v13 = vmul.f32 %v3305_v40, %v3305_v40 }
 0x19b   : > { %v1403_v2 = vpop.f32.mrf.mxu3  ;;  %v1477_v38 = vadd.f32 %v2979_v22, %v1439_v55  ;;  %v1744_v63 = vadd.f32 %v1743_v48, %v3298_v59  ;;  %v1817_v16 = vadd.f32 %v1816_v12, %v1784_v29  ;;  %v3333_v55 = vpop.permute.xlu2 %1676 }
 0x19c   : > { %3797 = vst [vmem:[#allocation40_spill] sm:$0xff] %v3333_v55 }
 0x19d   : > { %v1745_v15 = vadd.f32 %v1744_v63, %v3305_v40  ;;  %v3331_v20 = vmul.f32 %v3325_v18, %v1477_v38  ;;  %v1818_v4 = vadd.f32 %v1817_v16, %v1785_v13  ;;  %v3348_v63 = vpop.permute.xlu0 %1681 }
 0x19e   : > { %v1173_v43 = vpop.f32.mrf.mxu2  ;;  %3798 = vst [vmem:[#allocation41_spill] sm:$0xff] %v3348_v63 }
 0x19f   : > { %v1210_v10 = vadd.f32 %v1173_v43, %v755_v23  ;;  %v620_v5 = vpop.f32.mrf.mxu0  ;;  %v756_v23 = vpop.f32.mrf.mxu1  ;;  %v1787_v43 = vmul.f32 %v3322_v41, %v3322_v41  ;;  %v1819_v8 = vadd.f32 %v1818_v4, %v1786_v19  ;;  %v1788_v48 = vmul.f32 %v3331_v20, %v3331_v20 }
 0x1a0   : > { %v757_v62 = vadd.f32 %v756_v23, %v620_v5 }
 0x1a1   : > { %v1440_v49 = vadd.f32 %v1403_v2, %v1210_v10  ;;  %v1746_v2 = vadd.f32 %v1745_v15, %v3313_v33 }
 0x1a3   : > { %v1478_v28 = vadd.f32 %v2979_v22, %v1440_v49  ;;  %v1405_v10 = vpop.f32.mrf.mxu3  ;;  %v1747_v29 = vadd.f32 %v1746_v2, %v3322_v41  ;;  %v1820_v49 = vadd.f32 %v1819_v8, %v1787_v43 }
 0x1a5   : > { %v3339_v35 = vmul.f32 %v3333_v55, %v1478_v28  ;;  %v1748_v12 = vadd.f32 %v1747_v29, %v3331_v20  ;;  %v1821_v28 = vadd.f32 %v1820_v49, %v1788_v48 }
 0x1a6   : > { %v1175_v26 = vpop.f32.mrf.mxu2 }
 0x1a7   : > { %v1211_v61 = vadd.f32 %v1175_v26, %v757_v62  ;;  %v1789_v13 = vmul.f32 %v3339_v35, %v3339_v35  ;;  %v1749_v16 = vadd.f32 %v1748_v12, %v3339_v35 }
 0x1a9   : > { %v1441_v38 = vadd.f32 %v1405_v10, %v1211_v61  ;;  %v1822_v15 = vadd.f32 %v1821_v28, %v1789_v13 }
 0x1ab   : > { %v1479_v5 = vadd.f32 %v2979_v22, %v1441_v38 }
 0x1ad   : > { %v3352_v23 = vmul.f32 %v3348_v63, %v1479_v5 }
 0x1af   : > { %v1750_v19 = vadd.f32 %v1749_v16, %v3352_v23  ;;  %v1790_v62 = vmul.f32 %v3352_v23, %v3352_v23 }
 0x1b1   : > { %v1751_v4 = vrot.slane %v1750_v19, 4  ;;  %v1823_v26 = vadd.f32 %v1822_v15, %v1790_v62 }
 0x1b3   : > { %v1752_v2 = vadd.f32 %v1751_v4, %v1750_v19  ;;  %v1824_v43 = vrot.slane %v1823_v26, 4 }
 0x1b5   : > { %v1753_v61 = vrot.slane %v1752_v2, 2  ;;  %v1825_v22 = vadd.f32 %v1824_v43, %v1823_v26 }
 0x1b7   : > { %v1754_v10 = vadd.f32 %v1753_v61, %v1752_v2  ;;  %v1826_v8 = vrot.slane %v1825_v22, 2 }
 0x1b9   : > { %v1755_v29 = vrot.slane %v1754_v10, 1  ;;  %v1827_v48 = vadd.f32 %v1826_v8, %v1825_v22 }
 0x1bb   : > { %v1756_v38 = vadd.f32 %v1755_v29, %v1754_v10  ;;  %v1828_v49 = vrot.slane %v1827_v48, 1  ;;  %v3799_v10 = vld [vmem:[#allocation14_spill] sm:$0xff]  ;;  %v3800_v29 = vld [vmem:[#allocation16_spill] sm:$0xff] }
 0x1bd   : > { %v1829_v12 = vadd.f32 %v1828_v49, %v1827_v48  ;;  %v3357_v5 = vmul.f32 0.00390625, %v1756_v38  ;;  %v3802_v49 = vld [vmem:[#allocation20_spill] sm:$0xff] }
 0x1bf   : > { %v1831_v13 = vmul.f32 0.00390625, %v1829_v12  ;;  %v1832_v28 = vmul.f32 %v3357_v5, %v3357_v5  ;;  %v1863_v15 = vsub.f32 %v3305_v40, %v3357_v5  ;;  %v1835_v61 = vsub.f32 %v3007_v39, %v3357_v5  ;;  %v3803_v39 = vld [vmem:[#allocation22_spill] sm:$0xff] }
 0x1c0   : > { %v1836_v22 = vsub.f32 %v2998_v36, %v3357_v5  ;;  %v1837_v8 = vsub.f32 %v3799_v10, %v3357_v5  ;;  %v1838_v48 = vsub.f32 %v3800_v29, %v3357_v5  ;;  %v1839_v40 = vsub.f32 %v3032_v57, %v3357_v5  ;;  %v3805_v10 = vld [vmem:[#allocation29_spill] sm:$0xff] }
 0x1c1   : > { %v1833_v16 = vsub.f32 %v1831_v13, %v1832_v28  ;;  %v1841_v12 = vsub.f32 %v3802_v49, %v3357_v5  ;;  %v1842_v13 = vsub.f32 %v3803_v39, %v3357_v5  ;;  %v1843_v36 = vsub.f32 %v3079_v54, %v3357_v5  ;;  %v3804_v28 = vld [vmem:[#allocation25_spill] sm:$0xff] }
 0x1c2   : > { %v1846_v57 = vsub.f32 %v3111_v27, %v3357_v5  ;;  %v1848_v29 = vsub.f32 %v3805_v10, %v3357_v5  ;;  %v1849_v54 = vsub.f32 %v3147_v0, %v3357_v5  ;;  %v1853_v27 = vsub.f32 %v3194_v17, %v3357_v5 }
 0x1c3   : > { %v1834_v63 = vmax.f32 %v1833_v16, 0.0  ;;  %v1844_v16 = vsub.f32 %v3804_v28, %v3357_v5  ;;  %v1855_v49 = vsub.f32 %v3219_v37, %v3357_v5  ;;  %v1856_v0 = vsub.f32 %v3235_v47, %v3357_v5 }
 0x1c4   : > { %v1861_v37 = vsub.f32 %v3288_v6, %v3357_v5  ;;  %v1862_v47 = vsub.f32 %v3298_v59, %v3357_v5 }
 0x1c5   : > { %v1869_v19 = vadd.f32 1e-05, %v1834_v63  ;;  %v3801_v63 = vld [vmem:[#allocation19_spill] sm:$0xff] }
 0x1c6   : > { %v1840_v38 = vsub.f32 %v3801_v63, %v3357_v5  ;;  %v1850_v63 = vsub.f32 %v3155_v46, %v3357_v5  ;;  %v1857_v46 = vsub.f32 %v3248_v56, %v3357_v5  ;;  %v1865_v56 = vsub.f32 %v3322_v41, %v3357_v5 }
 0x1c7   : > { %2531 = vrsqrt.f32 %v1869_v19  ;;  %vm1876_vm5 = vweird.f32 %v1869_v19 }
 0x1cd   : > { %v2532_v62 = vpop.eup %2531 }
 0x1ce   : > { %v1871_v4 = vmul.f32 %v2532_v62, %v1869_v19  ;;  %vm1877_vm4 = vweird.f32 %v2532_v62  ;;  %v1864_v19 = vsub.f32 %v3313_v33, %v3357_v5 }
 0x1cf   : > { %vm1878_vm6 = vmor %vm1876_vm5, %vm1877_vm4 }
 0x1d0   : > { %v1872_v26 = vmul.f32 %v2532_v62, %v1871_v4  ;;  %v1845_v4 = vsub.f32 %v3101_v3, %v3357_v5  ;;  %v1851_v3 = vsub.f32 %v3167_v42, %v3357_v5  ;;  %v1859_v42 = vsub.f32 %v3268_v25, %v3357_v5 }
 0x1d1   : > { %v1867_v25 = vsub.f32 %v3339_v35, %v3357_v5 }
 0x1d2   : > { %v1873_v2 = vmul.f32 0.5, %v1872_v26 }
 0x1d4   : > { %v1874_v43 = vsub.f32 1.5, %v1873_v2  ;;  %v1847_v2 = vsub.f32 %v3125_v44, %v3357_v5  ;;  %v1854_v44 = vsub.f32 %v3207_v58, %v3357_v5  ;;  %v1860_v58 = vsub.f32 %v3278_v53, %v3357_v5 }
 0x1d5   : > { %v1868_v53 = vsub.f32 %v3352_v23, %v3357_v5 }
 0x1d6   : > { %v1875_v26 = vmul.f32 %v2532_v62, %v1874_v43  ;;  %v1852_v43 = vsub.f32 %v3183_v30, %v3357_v5  ;;  %v1858_v30 = vsub.f32 %v3259_v21, %v3357_v5  ;;  %v1866_v21 = vsub.f32 %v3331_v20, %v3357_v5 }
 0x1d8   : > { %v1879_v17 = vsel %vm1878_vm6, %v2532_v62, %v1875_v26 }
 0x1d9   : > { %v3429_v62 = vmul.f32 %v1879_v17, %v1835_v61  ;;  %v3431_v6 = vmul.f32 %v1879_v17, %v1836_v22  ;;  %v3433_v59 = vmul.f32 %v1879_v17, %v1837_v8  ;;  %v3435_v39 = vmul.f32 %v1879_v17, %v1838_v48 }
 0x1da   : > { %v3437_v33 = vmul.f32 %v1879_v17, %v1839_v40  ;;  %v3439_v41 = vmul.f32 %v1879_v17, %v1840_v38  ;;  %v3441_v28 = vmul.f32 %v1879_v17, %v1841_v12  ;;  %v3443_v20 = vmul.f32 %v1879_v17, %v1863_v15 }
 0x1db   : > { %v3445_v35 = vmul.f32 %v1879_v17, %v1842_v13  ;;  %v3447_v26 = vmul.f32 %v1879_v17, %v1843_v36  ;;  %v3449_v23 = vmul.f32 %v1879_v17, %v1844_v16  ;;  %v3451_v5 = vmul.f32 %v1879_v17, %v1845_v4 }
 0x1dc   : > { %v3453_v61 = vmul.f32 %v1879_v17, %v1846_v57  ;;  %v3455_v22 = vmul.f32 %v1879_v17, %v1847_v2  ;;  %v3457_v8 = vmul.f32 %v1879_v17, %v1848_v29  ;;  %v3459_v48 = vmul.f32 %v1879_v17, %v1849_v54 }
 0x1dd   : > { %v3461_v40 = vmul.f32 %v1879_v17, %v1850_v63  ;;  %v3463_v15 = vmul.f32 %v1879_v17, %v1851_v3  ;;  %v3465_v38 = vmul.f32 %v1879_v17, %v1852_v43  ;;  %v3467_v12 = vmul.f32 %v1879_v17, %v1853_v27 }
 0x1de   : > { %v3469_v13 = vmul.f32 %v1879_v17, %v1854_v44  ;;  %v3471_v36 = vmul.f32 %v1879_v17, %v1855_v49  ;;  %v3473_v16 = vmul.f32 %v1879_v17, %v1856_v0  ;;  %v3475_v4 = vmul.f32 %v1879_v17, %v1857_v46 }
 0x1df   : > { %v3477_v57 = vmul.f32 %v1879_v17, %v1858_v30  ;;  %v3479_v2 = vmul.f32 %v1879_v17, %v1859_v42  ;;  %v3481_v10 = vmul.f32 %v1879_v17, %v1860_v58  ;;  %v3484_v29 = vmul.f32 0.2, %v3429_v62 }
 0x1e0   : > { %v3486_v54 = vmul.f32 %v1879_v17, %v1861_v37  ;;  %v3488_v63 = vmul.f32 %v1879_v17, %v1862_v47  ;;  %v3490_v3 = vmul.f32 %v1879_v17, %v1864_v19  ;;  %v3493_v43 = vmul.f32 0.2, %v3431_v6 }
 0x1e1   : > { %v3495_v27 = vmul.f32 %v1879_v17, %v1865_v56  ;;  %v3497_v44 = vmul.f32 %v1879_v17, %v1866_v21  ;;  %v3499_v49 = vmul.f32 %v1879_v17, %v1867_v25  ;;  %v3502_v0 = vmul.f32 0.2, %v3433_v59 }
 0x1e2   : > { %3806 = vst [vmem:[#allocation14_spill] sm:$0xff] %v3488_v63  ;;  %v3504_v46 = vmul.f32 %v1879_v17, %v1868_v53  ;;  %v1917_v30 = vmul.f32 0.2, %v3435_v39  ;;  %v1918_v42 = vmul.f32 0.2, %v3437_v33  ;;  %v1948_v56 = vmax.f32 %v3429_v62, %v3484_v29 }
 0x1e3   : > { %3807 = vst [vmem:[#allocation16_spill] sm:$0xff] %v3499_v49  ;;  %v1919_v58 = vmul.f32 0.2, %v3439_v41  ;;  %v3510_v37 = vmul.f32 0.2, %v3441_v28  ;;  %v1949_v53 = vmax.f32 %v3431_v6, %v3493_v43  ;;  %v1950_v29 = vmax.f32 %v3433_v59, %v3502_v0 }
 0x1e4   : > { %v3513_v47 = vmul.f32 0.2, %v3445_v35  ;;  %v3516_v19 = vmul.f32 0.2, %v3447_v26  ;;  %v3521_v17 = vmul.f32 0.2, %v3449_v23  ;;  %v1951_v43 = vmax.f32 %v3435_v39, %v1917_v30 }
 0x1e5   : > { %v3524_v21 = vmul.f32 0.2, %v3451_v5  ;;  %v3527_v25 = vmul.f32 0.2, %v3453_v61  ;;  %v3532_v55 = vmul.f32 0.2, %v3455_v22  ;;  %v1952_v59 = vmax.f32 %v3437_v33, %v1918_v42 }
 0x1e6   : > { %v3535_v18 = vmul.f32 0.2, %v3457_v8  ;;  %v3538_v62 = vmul.f32 0.2, %v3459_v48  ;;  %v3543_v31 = vmul.f32 0.2, %v3461_v40  ;;  %v1953_v39 = vmax.f32 %v3439_v41, %v1919_v58 }
 0x1e7   : > { %v3546_v60 = vmul.f32 0.2, %v3463_v15  ;;  %v3549_v6 = vmul.f32 0.2, %v3465_v38  ;;  %v3553_v7 = vmul.f32 0.2, %v3467_v12  ;;  %v1954_v33 = vmax.f32 %v3441_v28, %v3510_v37 }
 0x1e8   : > { %v3556_v14 = vmul.f32 0.2, %v3469_v13  ;;  %v3559_v50 = vmul.f32 0.2, %v3471_v36  ;;  %v3563_v0 = vmul.f32 0.2, %v3473_v16  ;;  %v1955_v41 = vmax.f32 %v3445_v35, %v3513_v47 }
 0x1e9   : > { %v3566_v51 = vmul.f32 0.2, %v3475_v4  ;;  %v3569_v1 = vmul.f32 0.2, %v3477_v57  ;;  %v3573_v30 = vmul.f32 0.2, %v3479_v2  ;;  %v1956_v28 = vmax.f32 %v3447_v26, %v3516_v19 }
 0x1ea   : > { %v3576_v24 = vmul.f32 0.2, %v3481_v10  ;;  %v3579_v34 = vmul.f32 0.2, %v3486_v54  ;;  %v3584_v42 = vmul.f32 0.2, %v3488_v63  ;;  %v1957_v63 = vmax.f32 %v3449_v23, %v3521_v17 }
 0x1eb   : > { %v1942_v45 = vmul.f32 0.2, %v3443_v20  ;;  %v1943_v32 = vmul.f32 0.2, %v3490_v3  ;;  %v3591_v58 = vmul.f32 0.2, %v3495_v27  ;;  %v1958_v35 = vmax.f32 %v3451_v5, %v3524_v21 }
 0x1ec   : > { %v3594_v11 = vmul.f32 0.2, %v3497_v44  ;;  %v3597_v9 = vmul.f32 0.2, %v3499_v49  ;;  %v3602_v37 = vmul.f32 0.2, %v3504_v46  ;;  %v1959_v47 = vmax.f32 %v3453_v61, %v3527_v25 }
 0x1ed   : > { %v1960_v49 = vmax.f32 %v3455_v22, %v3532_v55  ;;  %v1962_v26 = vmax.f32 %v3459_v48, %v3538_v62  ;;  %v1963_v19 = vmax.f32 %v3461_v40, %v3543_v31  ;;  %v1964_v23 = vmax.f32 %v3463_v15, %v3546_v60  ;;  %v3809_v48 = vld [vmem:[#allocation2_spill] sm:$0xff]  ;;  %v3814_v17 = vld [vmem:[#allocation7_spill] sm:$0xff]  ;;  %v3819_v62 = vld [vmem:[#allocation12_spill] sm:$0xff] }
 0x1ee   : > { %3808 = vst [vmem:[#allocation19_spill] sm:$0xff] %v3597_v9  ;;  %v1961_v9 = vmax.f32 %v3457_v8, %v3535_v18  ;;  %v1965_v5 = vmax.f32 %v3465_v38, %v3549_v6  ;;  %v1966_v61 = vmax.f32 %v3467_v12, %v3553_v7  ;;  %v1967_v55 = vmax.f32 %v3469_v13, %v3556_v14  ;;  %v3810_v14 = vld [vmem:[#allocation5_spill] sm:$0xff]  ;;  %v3811_v38 = vld [vmem:[#allocation3_spill] sm:$0xff]  ;;  %v3812_v12 = vld [vmem:[#allocation6_spill] sm:$0xff] }
 0x1ef   : > { %v1968_v18 = vmax.f32 %v3471_v36, %v3559_v50  ;;  %v1969_v22 = vmax.f32 %v3473_v16, %v3563_v0  ;;  %v1970_v31 = vmax.f32 %v3475_v4, %v3566_v51  ;;  %v1971_v60 = vmax.f32 %v3477_v57, %v3569_v1  ;;  %v3813_v36 = vld [vmem:[#allocation4_spill] sm:$0xff]  ;;  %v3816_v4 = vld [vmem:[#allocation9_spill] sm:$0xff]  ;;  %v3818_v25 = vld [vmem:[#allocation11_spill] sm:$0xff] }
 0x1f0   : > { %v1976_v8 = vmax.f32 %v3443_v20, %v1942_v45  ;;  %v1977_v7 = vmax.f32 %v3490_v3, %v1943_v32  ;;  %v1982_v40 = vmul.f32 %v1948_v56, %v3809_v48  ;;  %v1983_v15 = vmul.f32 %v1949_v53, %v3810_v14  ;;  %v3815_v20 = vld [vmem:[#allocation8_spill] sm:$0xff]  ;;  %v3817_v56 = vld [vmem:[#allocation10_spill] sm:$0xff]  ;;  %v3826_v48 = vld [vmem:[#allocation21_spill] sm:$0xff] }
 0x1f1   : > { %v1984_v50 = vmul.f32 %v1950_v29, %v3811_v38  ;;  %v1985_v13 = vmul.f32 %v1951_v43, %v3812_v12  ;;  %v1986_v16 = vmul.f32 %v1952_v59, %v3813_v36  ;;  %v1987_v51 = vmul.f32 %v1953_v39, %v3814_v17  ;;  %v3822_v59 = vld [vmem:[#allocation37_spill] sm:$0xff]  ;;  %v3835_v17 = vld [vmem:[#allocation31_spill] sm:$0xff] }
 0x1f2   : > { %v1972_v1 = vmax.f32 %v3479_v2, %v3573_v30  ;;  %v1973_v45 = vmax.f32 %v3481_v10, %v3576_v24  ;;  %v1988_v32 = vmul.f32 %v1954_v33, %v3815_v20  ;;  %v1989_v57 = vmul.f32 %v1955_v41, %v3816_v4  ;;  %v3820_v2 = vld [vmem:[#allocation13_spill] sm:$0xff]  ;;  %v3821_v10 = vld [vmem:[#allocation15_spill] sm:$0xff]  ;;  %v3824_v33 = vld [vmem:[#allocation14_spill] sm:$0xff] }
 0x1f3   : > { %v1974_v3 = vmax.f32 %v3486_v54, %v3579_v34  ;;  %v1990_v21 = vmul.f32 %v1956_v28, %v3817_v56  ;;  %v1991_v53 = vmul.f32 %v1957_v63, %v3818_v25  ;;  %v1992_v29 = vmul.f32 %v1958_v35, %v3819_v62  ;;  %v3823_v54 = vld [vmem:[#allocation17_spill] sm:$0xff]  ;;  %v3825_v28 = vld [vmem:[#allocation18_spill] sm:$0xff]  ;;  %v3839_v56 = vld [vmem:[#allocation35_spill] sm:$0xff] }
 0x1f4   : > { %v1993_v24 = vmul.f32 %v1959_v47, %v3820_v2  ;;  %v1994_v6 = vmul.f32 %v1960_v49, %v3821_v10  ;;  %v2010_v43 = vmul.f32 %v1976_v8, %v3283_v52  ;;  %v2011_v34 = vmul.f32 %v1977_v7, %v3822_v59  ;;  %v3827_v49 = vld [vmem:[#allocation23_spill] sm:$0xff]  ;;  %v3828_v7 = vld [vmem:[#allocation24_spill] sm:$0xff]  ;;  %v3838_v4 = vld [vmem:[#allocation34_spill] sm:$0xff] }
 0x1f5   : > { %v1995_v0 = vmul.f32 %v1961_v9, %v3823_v54  ;;  %v2414_v63 = vpack.c.bf16 %v1983_v15, %v1982_v40  ;;  %v2419_v39 = vpack.c.bf16 %v1985_v13, %v1984_v50  ;;  %v2424_v30 = vpack.c.bf16 %v1987_v51, %v1986_v16  ;;  %v3829_v40 = vld [vmem:[#allocation26_spill] sm:$0xff]  ;;  %v3830_v50 = vld [vmem:[#allocation27_spill] sm:$0xff]  ;;  %v3831_v13 = vld [vmem:[#allocation28_spill] sm:$0xff] }
 0x1f6   : > { %v1975_v41 = vmax.f32 %v3824_v33, %v3584_v42  ;;  %v1996_v35 = vmul.f32 %v1962_v26, %v3825_v28  ;;  %v1997_v47 = vmul.f32 %v1963_v19, %v3826_v48  ;;  %v2429_v14 = vpack.c.bf16 %v1989_v57, %v1988_v32  ;;  %v3833_v36 = vld [vmem:[#allocation19_spill] sm:$0xff]  ;;  %v3834_v16 = vld [vmem:[#allocation16_spill] sm:$0xff]  ;;  %v3844_v2 = vld [vmem:[#allocation41_spill] sm:$0xff] }
 0x1f7   : > { %v1978_v52 = vmax.f32 %v3495_v27, %v3591_v58  ;;  %v1998_v8 = vmul.f32 %v1964_v23, %v3827_v49  ;;  %v1999_v38 = vmul.f32 %v1965_v5, %v3828_v7  ;;  %2415 = vst [vmem:[%s3657_s13] sm:$0xff] %v2414_v63   ;;  %v2434_v9 = vpack.c.bf16 %v1991_v53, %v1990_v21  ;;  %v3832_v58 = vld [vmem:[#allocation30_spill] sm:$0xff]  ;;  %v3836_v51 = vld [vmem:[#allocation32_spill] sm:$0xff] }
 0x1f8   : > { %v2000_v15 = vmul.f32 %v1966_v61, %v3829_v40  ;;  %v2001_v42 = vmul.f32 %v1967_v55, %v3830_v50  ;;  %2500 = vst [vmem:[%s3657_s13 + $0x8] sm:$0xff] %v2419_v39   ;;  %v2439_v26 = vpack.c.bf16 %v1993_v24, %v1992_v29  ;;  %v2484_v12 = vpack.c.bf16 %v2011_v34, %v2010_v43  ;;  %v3840_v25 = vld [vmem:[#allocation36_spill] sm:$0xff] }
 0x1f9   : > { %v1979_v19 = vmax.f32 %v3497_v44, %v3594_v11  ;;  %v2002_v27 = vmul.f32 %v1968_v18, %v3831_v13  ;;  %v2003_v23 = vmul.f32 %v1969_v22, %v3832_v58  ;;  %2501 = vst [vmem:[%s3657_s13 + $0x10] sm:$0xff] %v2424_v30   ;;  %v2444_v5 = vpack.c.bf16 %v1995_v0, %v1994_v6  ;;  %v3837_v44 = vld [vmem:[#allocation33_spill] sm:$0xff] }
 0x1fa   : > { %v1980_v61 = vmax.f32 %v3834_v16, %v3833_v36  ;;  %v2004_v55 = vmul.f32 %v1970_v31, %v3835_v17  ;;  %v2005_v20 = vmul.f32 %v1971_v60, %v3836_v51  ;;  %2502 = vst [vmem:[%s3657_s13 + $0x18] sm:$0xff] %v2429_v14   ;;  %v2449_v32 = vpack.c.bf16 %v1997_v47, %v1996_v35 }
 0x1fb   : > { %v1981_v11 = vmax.f32 %v3504_v46, %v3602_v37  ;;  %v2006_v18 = vmul.f32 %v1972_v1, %v3837_v44  ;;  %v2007_v22 = vmul.f32 %v1973_v45, %v3838_v4  ;;  %2503 = vst [vmem:[%s3657_s13 + $0x20] sm:$0xff] %v2434_v9   ;;  %v2454_v57 = vpack.c.bf16 %v1999_v38, %v1998_v8  ;;  %v3841_v46 = vld [vmem:[#allocation38_spill] sm:$0xff]  ;;  %v3842_v1 = vld [vmem:[#allocation39_spill] sm:$0xff] }
 0x1fc   : > { %v2008_v21 = vmul.f32 %v1974_v3, %v3839_v56  ;;  %v2009_v31 = vmul.f32 %v1975_v41, %v3840_v25  ;;  %2504 = vst [vmem:[%s3657_s13 + $0x28] sm:$0xff] %v2439_v26   ;;  %v2459_v60 = vpack.c.bf16 %v2001_v42, %v2000_v15  ;;  %v2464_v53 = vpack.c.bf16 %v2003_v23, %v2002_v27  ;;  %v3843_v3 = vld [vmem:[#allocation40_spill] sm:$0xff] }
 0x1fd   : > { %2505 = vst [vmem:[%s3657_s13 + $0x30] sm:$0xff] %v2444_v5   ;;  %v2012_v37 = vmul.f32 %v1978_v52, %v3841_v46  ;;  %v2013_v45 = vmul.f32 %v1979_v19, %v3842_v1  ;;  %v2469_v62 = vpack.c.bf16 %v2005_v20, %v2004_v55  ;;  %v2014_v29 = vmul.f32 %v1980_v61, %v3843_v3 }
 0x1fe   : > { %2506 = vst [vmem:[%s3657_s13 + $0x38] sm:$0xff] %v2449_v32   ;;  %v2015_v24 = vmul.f32 %v1981_v11, %v3844_v2  ;;  %v2474_v10 = vpack.c.bf16 %v2007_v22, %v2006_v18  ;;  %v2479_v6 = vpack.c.bf16 %v2009_v31, %v2008_v21 }
 0x1ff   : > { %2507 = vst [vmem:[%s3657_s13 + $0x40] sm:$0xff] %v2454_v57   ;;  %v2489_v43 = vpack.c.bf16 %v2013_v45, %v2012_v37 }
 0x200   : > { %2508 = vst [vmem:[%s3657_s13 + $0x48] sm:$0xff] %v2459_v60   ;;  %v2494_v59 = vpack.c.bf16 %v2015_v24, %v2014_v29 }
 0x201   : > { %2509 = vst [vmem:[%s3657_s13 + $0x50] sm:$0xff] %v2464_v53  }
 0x202   : > { %2510 = vst [vmem:[%s3657_s13 + $0x58] sm:$0xff] %v2469_v62  }
 0x203   : > { %2511 = vst [vmem:[%s3657_s13 + $0x60] sm:$0xff] %v2474_v10  }
 0x204   : > { %2512 = vst [vmem:[%s3657_s13 + $0x68] sm:$0xff] %v2479_v6  }
 0x205   : > { %2513 = vst [vmem:[%s3657_s13 + $0x70] sm:$0xff] %v2484_v12  }
 0x206   : > { %2514 = vst [vmem:[%s3657_s13 + $0x78] sm:$0xff] %v2489_v43  }
 0x207   : > { %2515 = vst [vmem:[%s3657_s13 + $0x80] sm:$0xff] %v2494_v59  }
 0x208 PF: > { %s14_s15 = sadd.s32 1, %s2539_s15  }
 0x209   : > { %p11_p4 = scmp.ge.s32.totalorder %s14_s15, 4  }
 0x20b   :  { %13 = sbr.rel (!%p11_p4) target bundleno = 1 (0x1), region = 69 }

// kernel: discriminator_forward.6
= control target key start
LH: loop header
LB: loop body
LE: loop exit
PB: predicated region body
PF: predicated region fallthrough
CT: control target
= control target key end

     0   :  { %s3739_s15 = smov 0   ;;  %s4726_s0 = inlined_call_operand.vmem [shape: bf16[2,90,512], index: 0, kind: input, shape index: {}]   ;;  %s4727_s1 = inlined_call_operand.vmem [shape: bf16[4,512,128], index: 1, kind: input, shape index: {}]   ;;  %s4728_s2 = inlined_call_operand.vmem [shape: f32[1,128], index: 2, kind: input, shape index: {}]   ;;  %s4729_s3 = inlined_call_operand.vmem [shape: f32[72,1], index: 3, kind: input, shape index: {}]   ;;  %s4730_s4 = inlined_call_operand.vmem [shape: bf16[2,72,128], index: 4, kind: output, shape index: {}]  }
   0x1 LB: > { %s2664_s16 = sadd.s32 4294967295, %s3711_s15   ;;  %p2668_p0 = scmp.ge.s32.totalorder %s3711_s15, 1  ;;  %s3711_s15 = sphi %s3739_s15, %s14_s15  }
   0x2   : > { %p162_p1 = scmp.lt.s32.totalorder %s3711_s15, 3 }
   0x4   : > { %p163_p2 = pnand %p2668_p0, %p162_p1 }
   0x5   : > { %p188_p3 = scmp.lt.s32.totalorder (!%p163_p2), %s2664_s16, 1 }
   0x6   : > { %166 = sbr.rel (%p163_p2) target bundleno = 549 (0x225), region = 36 }
   0xb   : > { %v3560_v0 = vld [vmem:[%s4727_s1 + $0x138] sm:$0xff]  ;;  %v3559_v4 = vld [vmem:[%s4727_s1 + $0x130] sm:$0xff]  ;;  %s4732_s16 = smov (!%p188_p3, %s2664_s16), 1  ;;  %v3558_v8 = vld [vmem:[%s4727_s1 + $0x128] sm:$0xff]  ;;  %vm427_vm0 = vsmask.f32 7424 }
   0xc   : > { %v3568_v1 = vld [vmem:[%s4727_s1 + $0x178] sm:$0xff]  ;;  %796 = vmatpush.bf16.msra.mxu0 %v3560_v0  ;;  %v3567_v5 = vld [vmem:[%s4727_s1 + $0x170] sm:$0xff]  ;;  %s3688_s7 = smul.u32 192, %s4732_s16  ;;  %v3566_v9 = vld [vmem:[%s4727_s1 + $0x168] sm:$0xff]  ;;  %vm2027_vm1 = vcmask 1046528  }
   0xd   : > { %v3576_v2 = vld [vmem:[%s4727_s1 + $0x1b8] sm:$0xff]  ;;  %829 = vmatpush.bf16.msra.mxu1 %v3568_v1  ;;  %v3575_v6 = vld [vmem:[%s4727_s1 + $0x1b0] sm:$0xff]  ;;  %v3574_v10 = vld [vmem:[%s4727_s1 + $0x1a8] sm:$0xff]  ;;  %s3689_s18 = smul.u32 36, %s4732_s16 }
   0xe   : > { %v3584_v3 = vld [vmem:[%s4727_s1 + $0x1f8] sm:$0xff]  ;;  %862 = vmatpush.bf16.msra.mxu2 %v3576_v2  ;;  %v3583_v7 = vld [vmem:[%s4727_s1 + $0x1f0] sm:$0xff]  ;;  %v3582_v11 = vld [vmem:[%s4727_s1 + $0x1e8] sm:$0xff]  ;;  %s3789_s20 = scalar_lea.vmem %s4726_s0, %s3688_s7 }
   0xf   : > { %895 = vmatpush.bf16.msra.mxu3 %v3584_v3  ;;  %v3557_v12 = vld [vmem:[%s4727_s1 + $0x120] sm:$0xff]  ;;  %v3507_v17 = vld [vmem:[%s3789_s20 + $0xc] sm:$0xf0]  ;;  %v3556_v18 = vld [vmem:[%s4727_s1 + $0x118] sm:$0xff]  ;;  %s197_s21 = scalar_lea.vmem %s4730_s4, %s3689_s18 }
  0x10   : > { %797 = vmatpush.bf16.msra.mxu0 %v3559_v4  ;;  %v3565_v13 = vld [vmem:[%s4727_s1 + $0x160] sm:$0xff]  ;;  %v3564_v19 = vld [vmem:[%s4727_s1 + $0x158] sm:$0xff]  ;;  %v2739_v21 = vld [vmem:[%s3789_s20 + $0x10] sm:$0xf0] }
  0x11   : > { %830 = vmatpush.bf16.msra.mxu1 %v3567_v5  ;;  %v2737_v14 = vld [vmem:[%s3789_s20] sm:$0xf]  ;;  %v3505_v20 = vld [vmem:[%s3789_s20 + $0x4] sm:$0xf]  ;;  %v3572_v22 = vld [vmem:[%s4727_s1 + $0x198] sm:$0xff] }
  0x12   : > { %863 = vmatpush.bf16.msra.mxu2 %v3575_v6  ;;  %v3573_v15 = vld [vmem:[%s4727_s1 + $0x1a0] sm:$0xff]  ;;  %v3580_v23 = vld [vmem:[%s4727_s1 + $0x1d8] sm:$0xff]  ;;  %v3820_v25 = vor.u32 %v3507_v17, %v2737_v14  ;;  %v2745_v26 = vld [vmem:[%s3789_s20 + $0x8] sm:$0xf]  ;;  %v3827_v31 = vor.u32 %v3505_v20, %v2739_v21 }
  0x13   : > { %896 = vmatpush.bf16.msra.mxu3 %v3583_v7  ;;  %v3581_v16 = vld [vmem:[%s4727_s1 + $0x1e0] sm:$0xff]  ;;  %v3508_v27 = vld [vmem:[%s3789_s20 + $0x14] sm:$0xf0]  ;;  %v3511_v28 = vld [vmem:[%s3789_s20 + $0x2c] sm:$0xf0] }
  0x14   : > { %798 = vmatpush.bf16.msra.mxu0 %v3558_v8  ;;  %v2753_v24 = vld [vmem:[%s3789_s20 + $0x20] sm:$0xf]  ;;  %v3509_v29 = vld [vmem:[%s3789_s20 + $0x24] sm:$0xf]  ;;  %v2755_v30 = vld [vmem:[%s3789_s20 + $0x30] sm:$0xf0]  ;;  %v3831_v34 = vor.u32 %v3508_v27, %v2745_v26 }
  0x15   : > { %831 = vmatpush.bf16.msra.mxu1 %v3566_v9  ;;  %v2761_v32 = vld [vmem:[%s3789_s20 + $0x28] sm:$0xf]  ;;  %v3512_v33 = vld [vmem:[%s3789_s20 + $0x34] sm:$0xf0]  ;;  %v3506_v35 = vld [vmem:[%s3789_s20 + $0xc] sm:$0xf]  ;;  %v3835_v37 = vor.u32 %v3511_v28, %v2753_v24  ;;  %v3847_v43 = vor.u32 %v3509_v29, %v2755_v30 }
  0x16   : > { %864 = vmatpush.bf16.msra.mxu2 %v3574_v10  ;;  %v2747_v36 = vld [vmem:[%s3789_s20 + $0x18] sm:$0xf0]  ;;  %v431_v38 = vshll.u32 %v3820_v25, 16  ;;  %v3510_v39 = vld [vmem:[%s3789_s20 + $0x2c] sm:$0xf]  ;;  %v3555_v41 = vld [vmem:[%s4727_s1 + $0x110] sm:$0xff]  ;;  %v3850_v45 = vor.u32 %v3512_v33, %v2761_v32 }
  0x17   : > { %897 = vmatpush.bf16.msra.mxu3 %v3582_v11  ;;  %v3839_v40 = vor.u32 %v3506_v35, %v2747_v36  ;;  %v3563_v42 = vld [vmem:[%s4727_s1 + $0x150] sm:$0xff]  ;;  %v443_v44 = vshll.u32 %v3827_v31, 16  ;;  %v2763_v46 = vld [vmem:[%s3789_s20 + $0x38] sm:$0xf0]  ;;  %v455_v49 = vshll.u32 %v3831_v34, 16  ;;  %v429_v52 = vshrl.u32 %v3820_v25, 16 }
  0x18   : > { %799 = vmatpush.bf16.msra.mxu0 %v3557_v12  ;;  %v3571_v47 = vld [vmem:[%s4727_s1 + $0x190] sm:$0xff]  ;;  %v3860_v50 = vor.u32 %v3510_v39, %v2763_v46  ;;  %v433_v53 = vrot.slane %v431_v38, 1  ;;  %v436_v54 = vshll.u32 %v3835_v37, 16  ;;  %v441_v55 = vshrl.u32 %v3827_v31, 16  ;;  %v3554_v56 = vld [vmem:[%s4727_s1 + $0x108] sm:$0xff]  ;;  %v3553_v4 = vld [vmem:[%s4727_s1 + $0x100] sm:$0xff] }
  0x19   : > { %832 = vmatpush.bf16.msra.mxu1 %v3565_v13  ;;  %v3579_v48 = vld [vmem:[%s4727_s1 + $0x1d0] sm:$0xff]  ;;  %v467_v51 = vshll.u32 %v3839_v40, 16  ;;  %v3562_v57 = vld [vmem:[%s4727_s1 + $0x148] sm:$0xff]  ;;  %v445_v58 = vrot.slane %v443_v44, 1  ;;  %v448_v59 = vshll.u32 %v3847_v43, 16  ;;  %v453_v60 = vshrl.u32 %v3831_v34, 16 }
  0x1a   : > { %865 = vmatpush.bf16.msra.mxu2 %v3573_v15  ;;  %v460_v61 = vshll.u32 %v3850_v45, 16  ;;  %v3570_v62 = vld [vmem:[%s4727_s1 + $0x188] sm:$0xff]  ;;  %v457_v0 = vrot.slane %v455_v49, 1  ;;  %v465_v1 = vshrl.u32 %v3839_v40, 16  ;;  %v472_v3 = vshll.u32 %v3860_v50, 16  ;;  %v3561_v5 = vld [vmem:[%s4727_s1 + $0x140] sm:$0xff] }
  0x1b   : > { %898 = vmatpush.bf16.msra.mxu3 %v3581_v16  ;;  %v3578_v63 = vld [vmem:[%s4727_s1 + $0x1c8] sm:$0xff]  ;;  %v469_v2 = vrot.slane %v467_v51, 1  ;;  %v434_v6 = vor.u32 %v433_v53, %v429_v52  ;;  %v3889_v7 = vrot.slane %v436_v54, 1  ;;  %v446_v8 = vor.u32 %v445_v58, %v441_v55  ;;  %v3569_v10 = vld [vmem:[%s4727_s1 + $0x180] sm:$0xff]  ;;  %v3544_v16 = vld [vmem:[%s4727_s1 + $0xb8] sm:$0xff] }
  0x1c   : > { %800 = vmatpush.bf16.msra.mxu0 %v3556_v18  ;;  %v3891_v9 = vrot.slane %v448_v59, 1  ;;  %v3577_v11 = vld [vmem:[%s4727_s1 + $0x1c0] sm:$0xff]  ;;  %v458_v12 = vor.u32 %v457_v0, %v453_v60  ;;  %v3899_v13 = vrot.slane %v460_v61, 1  ;;  %v3901_v15 = vrot.slane %v472_v3, 1  ;;  %v3552_v17 = vld [vmem:[%s4727_s1 + $0xf8] sm:$0xff]  ;;  %v3526_v58 = vld [vmem:[%s4727_s1 + $0x28] sm:$0xff] }
  0x1d   : > { %833 = vmatpush.bf16.msra.mxu1 %v3564_v19  ;;  %v470_v14 = vor.u32 %v469_v2, %v465_v1  ;;  %v3528_v18 = vld [vmem:[%s4727_s1 + $0x38] sm:$0xff]  ;;  %v439_v20 = vsel %vm427_vm0, %v434_v6, %v3889_v7  ;;  %v2769_v24 = vld [vmem:[%s3789_s20 + $0x40] sm:$0xf]  ;;  %v3515_v26 = vld [vmem:[%s3789_s20 + $0x4c] sm:$0xf0]  ;;  %v476_v49 = vshrl.u32 %v3835_v37, 16 }
  0x1e   : > { %866 = vmatpush.bf16.msra.mxu2 %v3572_v22  ;;  %v3536_v19 = vld [vmem:[%s4727_s1 + $0x78] sm:$0xff]  ;;  %v451_v21 = vsel %vm427_vm0, %v446_v8, %v3891_v9  ;;  %v3543_v22 = vld [vmem:[%s4727_s1 + $0xb0] sm:$0xff]  ;;  %v463_v27 = vsel %vm427_vm0, %v458_v12, %v3899_v13  ;;  %v3513_v29 = vld [vmem:[%s3789_s20 + $0x44] sm:$0xf]  ;;  %v3937_v38 = vor.u32 %v3515_v26, %v2769_v24  ;;  %v484_v52 = vshrl.u32 %v3847_v43, 16 }
  0x1f   : > { %899 = vmatpush.bf16.msra.mxu3 %v3580_v23  ;;  %v3551_v23 = vld [vmem:[%s4727_s1 + $0xf0] sm:$0xff]  ;;  %v475_v28 = vsel %vm427_vm0, %v470_v14, %v3901_v15  ;;  %v2777_v32 = vld [vmem:[%s3789_s20 + $0x48] sm:$0xf]  ;;  %v3516_v33 = vld [vmem:[%s3789_s20 + $0x54] sm:$0xf0]  ;;  %v492_v54 = vshrl.u32 %v3850_v45, 16 }
  0x20   : > { %801 = vmatpush.bf16.msra.mxu0 %v3555_v41  ;;  %v2771_v30 = vld [vmem:[%s3789_s20 + $0x50] sm:$0xf0]  ;;  %v3514_v35 = vld [vmem:[%s3789_s20 + $0x4c] sm:$0xf]  ;;  %v2779_v36 = vld [vmem:[%s3789_s20 + $0x58] sm:$0xf0]  ;;  %v3947_v44 = vor.u32 %v3516_v33, %v2777_v32  ;;  %v486_v0 = vor.u32 %v484_v52, %v3891_v9 }
  0x21   : > { %834 = vmatpush.bf16.msra.mxu1 %v3563_v42  ;;  %v3939_v39 = vor.u32 %v3513_v29, %v2771_v30  ;;  %v3527_v41 = vld [vmem:[%s4727_s1 + $0x30] sm:$0xff]  ;;  %v3949_v46 = vor.u32 %v3514_v35, %v2779_v36  ;;  %v480_v51 = vshll.u32 %v3937_v38, 16  ;;  %v3534_v59 = vld [vmem:[%s4727_s1 + $0x68] sm:$0xff]  ;;  %v3541_v60 = vld [vmem:[%s4727_s1 + $0xa0] sm:$0xff]  ;;  %v494_v2 = vor.u32 %v492_v54, %v3899_v13 }
  0x22   : > { %867 = vmatpush.bf16.msra.mxu2 %v3571_v47  ;;  %v3535_v42 = vld [vmem:[%s4727_s1 + $0x70] sm:$0xff]  ;;  %v3542_v47 = vld [vmem:[%s4727_s1 + $0xa8] sm:$0xff]  ;;  %v496_v55 = vshll.u32 %v3947_v44, 16  ;;  %v3549_v61 = vld [vmem:[%s4727_s1 + $0xe0] sm:$0xff]  ;;  %v508_v35 = vshrl.u32 %v3937_v38, 16 }
  0x23   : > { %900 = vmatpush.bf16.msra.mxu3 %v3579_v48  ;;  %v3550_v48 = vld [vmem:[%s4727_s1 + $0xe8] sm:$0xff]  ;;  %v488_v53 = vshll.u32 %v3939_v39, 16  ;;  %v3525_v6 = vld [vmem:[%s4727_s1 + $0x20] sm:$0xff]  ;;  %v3540_v9 = vld [vmem:[%s4727_s1 + $0x98] sm:$0xff]  ;;  %v532_v52 = vshrl.u32 %v3949_v46, 16 }
  0x24   : > { %802 = vmatpush.bf16.msra.mxu0 %v3554_v56  ;;  %v500_v56 = vshrl.u32 %v3860_v50, 16  ;;  %v3982_v3 = vrot.slane %v496_v55, 1  ;;  %v2785_v8 = vld [vmem:[%s3789_s20 + $0x60] sm:$0xf]  ;;  %v3517_v12 = vld [vmem:[%s3789_s20 + $0x64] sm:$0xf] }
  0x25   : > { %835 = vmatpush.bf16.msra.mxu1 %v3562_v57  ;;  %v504_v57 = vshll.u32 %v3949_v46, 16  ;;  %v3979_v1 = vrot.slane %v488_v53, 1  ;;  %v2787_v13 = vld [vmem:[%s3789_s20 + $0x70] sm:$0xf0] }
  0x26   : > { %868 = vmatpush.bf16.msra.mxu2 %v3570_v62  ;;  %v478_v62 = vor.u32 %v476_v49, %v3889_v7  ;;  %v3533_v7 = vld [vmem:[%s4727_s1 + $0x60] sm:$0xff]  ;;  %v4022_v26 = vor.u32 %v3517_v12, %v2787_v13  ;;  %v3539_v29 = vld [vmem:[%s4727_s1 + $0x90] sm:$0xff]  ;;  %v524_v49 = vshrl.u32 %v3947_v44, 16 }
  0x27   : > { %901 = vmatpush.bf16.msra.mxu3 %v3578_v63  ;;  %v482_v63 = vrot.slane %v480_v51, 1  ;;  %v3547_v30 = vld [vmem:[%s4727_s1 + $0xd0] sm:$0xff] }
  0x28   : > { %803 = vmatpush.bf16.msra.mxu0 %v3553_v4  ;;  %v502_v4 = vor.u32 %v500_v56, %v3901_v15  ;;  %v491_v15 = vsel %vm427_vm0, %v486_v0, %v3979_v1  ;;  %v3523_v32 = vld [vmem:[%s4727_s1 + $0x10] sm:$0xff] }
  0x29   : > { %836 = vmatpush.bf16.msra.mxu1 %v3561_v5  ;;  %v3985_v5 = vrot.slane %v504_v57, 1  ;;  %v483_v14 = vsel %vm427_vm0, %v478_v62, %v482_v63  ;;  %v3531_v33 = vld [vmem:[%s4727_s1 + $0x50] sm:$0xff]  ;;  %v510_v54 = vor.u32 %v508_v35, %v482_v63  ;;  %v214_v62 = vld [vmem:[%s3789_s20 + $0x80] sm:$0xff] }
  0x2a   : > { %869 = vmatpush.bf16.msra.mxu2 %v3569_v10  ;;  %v3548_v10 = vld [vmem:[%s4727_s1 + $0xd8] sm:$0xff]  ;;  %v280_v0 = vld [vmem:[%s3789_s20 + $0x90] sm:$0x11] }
  0x2b   : > { %902 = vmatpush.bf16.msra.mxu3 %v3577_v11  ;;  %804 = vmatmul.bf16.vlgmr.msra.gmra.mxu0 %v439_v20  ;;  %v3519_v11 = vld [vmem:[%s3789_s20 + $0x6c] sm:$0xf0]  ;;  %v507_v20 = vsel %vm427_vm0, %v502_v4, %v3985_v5  ;;  %v281_v4 = vld [vmem:[%s3789_s20 + $0x98] sm:$0x11] }
  0x2c   : > { %837 = vmatmul.bf16.vlgmr.msra.gmra.mxu1 %v451_v21  ;;  %1144 = vmatpush.bf16.msrb.mxu0 %v3528_v18  ;;  %v3518_v18 = vld [vmem:[%s3789_s20 + $0x6c] sm:$0xf]  ;;  %v2795_v21 = vld [vmem:[%s3789_s20 + $0x78] sm:$0xf0]  ;;  %v4020_v24 = vor.u32 %v3519_v11, %v2785_v8  ;;  %v4064_v8 = vunpack.c.l.b16 %v214_v62  ;;  %v405_v11 = vunpack.c.l.b16 %v281_v4  ;;  %v406_v13 = vunpack.c.h.b16 %v281_v4  ;;  %v3631_v4 = vld [vmem:[%s4727_s1 + $0x2f0] sm:$0xff] }
  0x2d   : > { %870 = vmatmul.bf16.vlgmr.msra.gmra.mxu2 %v463_v27  ;;  %1177 = vmatpush.bf16.msrb.mxu1 %v3536_v19  ;;  %v499_v19 = vsel %vm427_vm0, %v494_v2, %v3982_v3  ;;  %v215_v2 = vld [vmem:[%s3789_s20 + $0x88] sm:$0xff] }
  0x2e   : > { %1210 = vmatpush.bf16.msrb.mxu2 %v3544_v16  ;;  %903 = vmatmul.bf16.vlgmr.msra.gmra.mxu3 %v475_v28  ;;  %v2793_v16 = vld [vmem:[%s3789_s20 + $0x68] sm:$0xf]  ;;  %v4026_v28 = vor.u32 %v3518_v18, %v2795_v21  ;;  %v512_v36 = vshll.u32 %v4020_v24, 16  ;;  %v4071_v12 = vunpack.c.h.b16 %v215_v2  ;;  %v3537_v18 = vld [vmem:[%s4727_s1 + $0x80] sm:$0xff] }
  0x2f   : > { %1243 = vmatpush.bf16.msrb.mxu3 %v3552_v17  ;;  %v3520_v17 = vld [vmem:[%s3789_s20 + $0x74] sm:$0xf0]  ;;  %v3545_v21 = vld [vmem:[%s4727_s1 + $0xc0] sm:$0xff] }
  0x30   : > { %1145 = vmatpush.bf16.msrb.mxu0 %v3527_v41  ;;  %v4024_v27 = vor.u32 %v3520_v17, %v2793_v16  ;;  %v3538_v41 = vld [vmem:[%s4727_s1 + $0x88] sm:$0xff]  ;;  %v536_v53 = vshll.u32 %v4026_v28, 16  ;;  %v514_v55 = vrot.slane %v512_v36, 1 }
  0x31   : > { %1178 = vmatpush.bf16.msrb.mxu1 %v3535_v42  ;;  %v3546_v42 = vld [vmem:[%s4727_s1 + $0xc8] sm:$0xff] }
  0x32   : > { %1211 = vmatpush.bf16.msrb.mxu2 %v3543_v22  ;;  %v3524_v22 = vld [vmem:[%s4727_s1 + $0x18] sm:$0xff]  ;;  %v528_v51 = vshll.u32 %v4024_v27, 16  ;;  %v3522_v16 = vld [vmem:[%s4727_s1 + $0x8] sm:$0xff]  ;;  %v556_v35 = vshrl.u32 %v4024_v27, 16 }
  0x33   : > { %1244 = vmatpush.bf16.msrb.mxu3 %v3551_v23  ;;  %v3532_v23 = vld [vmem:[%s4727_s1 + $0x58] sm:$0xff]  ;;  %v3530_v17 = vld [vmem:[%s4727_s1 + $0x48] sm:$0xff] }
  0x34   : > { %1146 = vmatpush.bf16.msrb.mxu0 %v3526_v58  ;;  %v526_v58 = vor.u32 %v524_v49, %v3982_v3  ;;  %v4067_v3 = vunpack.c.h.b16 %v214_v62 }
  0x35   : > { %1179 = vmatpush.bf16.msrb.mxu1 %v3534_v59  ;;  %v530_v59 = vrot.slane %v528_v51, 1 }
  0x36   : > { %1212 = vmatpush.bf16.msrb.mxu2 %v3542_v47  ;;  %v516_v47 = vshrl.u32 %v3939_v39, 16 }
  0x37   : > { %1245 = vmatpush.bf16.msrb.mxu3 %v3550_v48  ;;  %v520_v48 = vshll.u32 %v4022_v26, 16 }
  0x38   : > { %1147 = vmatpush.bf16.msrb.mxu0 %v3525_v6  ;;  %v518_v56 = vor.u32 %v516_v47, %v3979_v1  ;;  %v515_v6 = vsel %vm427_vm0, %v510_v54, %v514_v55 }
  0x39   : > { %1180 = vmatpush.bf16.msrb.mxu1 %v3533_v7  ;;  %v522_v57 = vrot.slane %v520_v48, 1  ;;  %v531_v7 = vsel %vm427_vm0, %v526_v58, %v530_v59 }
  0x3a   : > { %1213 = vmatpush.bf16.msrb.mxu2 %v3541_v60  ;;  %v534_v60 = vor.u32 %v532_v52, %v3985_v5  ;;  %v4069_v5 = vunpack.c.l.b16 %v215_v2  ;;  %v558_v52 = vor.u32 %v556_v35, %v530_v59  ;;  %v3608_v59 = vld [vmem:[%s4727_s1 + $0x238] sm:$0xff]  ;;  %v3623_v2 = vld [vmem:[%s4727_s1 + $0x2b0] sm:$0xff] }
  0x3b   : > { %1246 = vmatpush.bf16.msrb.mxu3 %v3549_v61  ;;  %809 = vmatmul.bf16.gmra.mxu0 %v483_v14  ;;  %v538_v61 = vrot.slane %v536_v53, 1  ;;  %v523_v63 = vsel %vm427_vm0, %v518_v56, %v522_v57 }
  0x3c   : > { %842 = vmatmul.bf16.gmra.mxu1 %v491_v15  ;;  %1148 = vmatpush.bf16.msrb.mxu0 %v3524_v22  ;;  %v3521_v22 = vld [vmem:[%s4727_s1] sm:$0xff] }
  0x3d   : > { %875 = vmatmul.bf16.gmra.mxu2 %v499_v19  ;;  %1181 = vmatpush.bf16.msrb.mxu1 %v3532_v23  ;;  %v539_v1 = vsel %vm427_vm0, %v534_v60, %v538_v61  ;;  %v425_v19 = vpack.c.b16 %v405_v11, %v4069_v5  ;;  %v3529_v23 = vld [vmem:[%s4727_s1 + $0x40] sm:$0xff] }
  0x3e   : > { %1214 = vmatpush.bf16.msrb.mxu2 %v3540_v9  ;;  %908 = vmatmul.bf16.gmra.mxu3 %v507_v20  ;;  %v403_v9 = vunpack.c.l.b16 %v280_v0  ;;  %v426_v20 = vpack.c.b16 %v406_v13, %v4071_v12 }
  0x3f   : > { %1247 = vmatpush.bf16.msrb.mxu3 %v3548_v10  ;;  %v404_v10 = vunpack.c.h.b16 %v280_v0  ;;  %v560_v36 = vshll.u32 %v425_v19, 16 }
  0x40   : > { %1149 = vmatpush.bf16.msrb.mxu0 %v3523_v32  ;;  %v423_v14 = vpack.c.b16 %v403_v9, %v4064_v8  ;;  %v548_v32 = vshrl.u32 %v4022_v26, 16  ;;  %v578_v9 = vshrl.u32 %v425_v19, 16  ;;  %v3614_v19 = vld [vmem:[%s4727_s1 + $0x268] sm:$0xff] }
  0x41   : > { %1182 = vmatpush.bf16.msrb.mxu1 %v3531_v33  ;;  %v424_v15 = vpack.c.b16 %v404_v10, %v4067_v3  ;;  %v562_v53 = vrot.slane %v560_v36, 1  ;;  %v581_v10 = vshrl.u32 %v426_v20, 16 }
  0x42   : > { %1215 = vmatpush.bf16.msrb.mxu2 %v3539_v29  ;;  %v540_v29 = vshrl.u32 %v4020_v24, 16  ;;  %v550_v49 = vor.u32 %v548_v32, %v522_v57  ;;  %v3632_v57 = vld [vmem:[%s4727_s1 + $0x2f8] sm:$0xff]  ;;  %v3603_v32 = vld [vmem:[%s4727_s1 + $0x210] sm:$0xff] }
  0x43   : > { %1248 = vmatpush.bf16.msrb.mxu3 %v3547_v30  ;;  %v544_v30 = vshll.u32 %v423_v14, 16  ;;  %v552_v33 = vshll.u32 %v424_v15, 16  ;;  %v563_v62 = vsel %vm427_vm0, %v558_v52, %v562_v53 }
  0x44   : > { %1150 = vmatpush.bf16.msrb.mxu0 %v3522_v16  ;;  %v542_v47 = vor.u32 %v540_v29, %v514_v55  ;;  %v3624_v55 = vld [vmem:[%s4727_s1 + $0x2b8] sm:$0xff]  ;;  %v580_v16 = vor.u32 %v578_v9, %v562_v53  ;;  %v3619_v29 = vld [vmem:[%s4727_s1 + $0x290] sm:$0xff]  ;;  %v928_v9 = vpack.c.b16 %v4064_v8, %v4064_v8 }
  0x45   : > { %1183 = vmatpush.bf16.msrb.mxu1 %v3530_v17  ;;  %v546_v48 = vrot.slane %v544_v30, 1  ;;  %v554_v51 = vrot.slane %v552_v33, 1  ;;  %v3627_v30 = vld [vmem:[%s4727_s1 + $0x2d0] sm:$0xff]  ;;  %v3610_v33 = vld [vmem:[%s4727_s1 + $0x248] sm:$0xff] }
  0x46   : > { %1216 = vmatpush.bf16.msrb.mxu2 %v3538_v41  ;;  %v564_v41 = vshrl.u32 %v4026_v28, 16  ;;  %v3585_v8 = vld [vmem:[%s3789_s20 + $0x34] sm:$0xf] }
  0x47   : > { %1249 = vmatpush.bf16.msrb.mxu3 %v3546_v42  ;;  %v568_v42 = vshll.u32 %v426_v20, 16  ;;  %v547_v58 = vsel %vm427_vm0, %v542_v47, %v546_v48  ;;  %v555_v60 = vsel %vm427_vm0, %v550_v49, %v554_v51  ;;  %v3621_v20 = vld [vmem:[%s4727_s1 + $0x2a0] sm:$0xff]  ;;  %v3664_v47 = vld [vmem:[%s4727_s1 + $0x3f8] sm:$0xff]  ;;  %v1276_v49 = vld [vmem:[%s3789_s20 + $0x10] sm:$0xff] }
  0x48   : > { %1151 = vmatpush.bf16.msrb.mxu0 %v3521_v22  ;;  %v566_v54 = vor.u32 %v564_v41, %v538_v61  ;;  %v3616_v61 = vld [vmem:[%s4727_s1 + $0x278] sm:$0xff]  ;;  %v3605_v22 = vld [vmem:[%s4727_s1 + $0x220] sm:$0xff] }
  0x49   : > { %1184 = vmatpush.bf16.msrb.mxu1 %v3529_v23  ;;  %v570_v56 = vrot.slane %v568_v42, 1  ;;  %v3613_v23 = vld [vmem:[%s4727_s1 + $0x260] sm:$0xff]  ;;  %v3656_v42 = vld [vmem:[%s4727_s1 + $0x3b8] sm:$0xff] }
  0x4a   : > { %1217 = vmatpush.bf16.msrb.mxu2 %v3537_v18  ;;  %v3622_v18 = vld [vmem:[%s4727_s1 + $0x2a8] sm:$0xff] }
  0x4b   : > { %814 = vmatmul.bf16.gmra.mxu0 %v515_v6  ;;  %1250 = vmatpush.bf16.msrb.mxu3 %v3545_v21  ;;  %v571_v0 = vsel %vm427_vm0, %v566_v54, %v570_v56  ;;  %v3607_v6 = vld [vmem:[%s4727_s1 + $0x230] sm:$0xff]  ;;  %v583_v17 = vor.u32 %v581_v10, %v570_v56  ;;  %v3629_v21 = vld [vmem:[%s4727_s1 + $0x2e0] sm:$0xff]  ;;  %v4227_v54 = vld [vmem:[%s3789_s20 + $0x28] sm:$0xff]  ;;  %v929_v10 = vpack.c.b16 %v4067_v3, %v4067_v3 }
  0x4c   : > { %847 = vmatmul.bf16.gmra.mxu1 %v523_v63  ;;  %1809 = vmatpush.bf16.msra.mxu0 %v3608_v59  ;;  %v3615_v63 = vld [vmem:[%s4727_s1 + $0x270] sm:$0xff] }
  0x4d   : > { %880 = vmatmul.bf16.gmra.mxu2 %v531_v7  ;;  %1842 = vmatpush.bf16.msra.mxu1 %v3616_v61  ;;  %v572_v7 = vshrl.u32 %v423_v14, 16  ;;  %v3630_v14 = vld [vmem:[%s4727_s1 + $0x2e8] sm:$0xff] }
  0x4e   : > { %913 = vmatmul.bf16.gmra.mxu3 %v539_v1  ;;  %1875 = vmatpush.bf16.msra.mxu2 %v3624_v55  ;;  %v575_v1 = vshrl.u32 %v424_v15, 16  ;;  %v3606_v15 = vld [vmem:[%s4727_s1 + $0x228] sm:$0xff]  ;;  %v3655_v55 = vld [vmem:[%s4727_s1 + $0x3b0] sm:$0xff] }
  0x4f   : > { %1908 = vmatpush.bf16.msra.mxu3 %v3632_v57  ;;  %v574_v11 = vor.u32 %v572_v7, %v546_v48  ;;  %v1382_v57 = vunpack.c.h.b16 %v1276_v49 }
  0x50   : > { %1810 = vmatpush.bf16.msra.mxu0 %v3607_v6  ;;  %v577_v13 = vor.u32 %v575_v1, %v554_v51  ;;  %v4223_v51 = vld [vmem:[%s3789_s20 + $0x20] sm:$0xff]  ;;  %v1388_v6 = vunpack.c.h.b16 %v4227_v54 }
  0x51   : > { %1843 = vmatpush.bf16.msra.mxu1 %v3615_v63  ;;  %v1386_v59 = vunpack.c.h.b16 %v4223_v51 }
  0x52   : > { %1876 = vmatpush.bf16.msra.mxu2 %v3623_v2  ;;  %v1387_v2 = vunpack.c.l.b16 %v4227_v54 }
  0x53   : > { %1909 = vmatpush.bf16.msra.mxu3 %v3631_v4 }
  0x54   : > { %1811 = vmatpush.bf16.msra.mxu0 %v3606_v15  ;;  %v930_v15 = vpack.c.b16 %v4069_v5, %v4069_v5 }
  0x55   : > { %1844 = vmatpush.bf16.msra.mxu1 %v3614_v19  ;;  %v931_v19 = vpack.c.b16 %v4071_v12, %v4071_v12  ;;  %v3663_v12 = vld [vmem:[%s4727_s1 + $0x3f0] sm:$0xff] }
  0x56   : > { %1877 = vmatpush.bf16.msra.mxu2 %v3622_v18 }
  0x57   : > { %1910 = vmatpush.bf16.msra.mxu3 %v3630_v14 }
  0x58   : > { %1812 = vmatpush.bf16.msra.mxu0 %v3605_v22 }
  0x59   : > { %1845 = vmatpush.bf16.msra.mxu1 %v3613_v23  ;;  %v3588_v23 = vld [vmem:[%s3789_s20 + $0x44] sm:$0xf0] }
  0x5a   : > { %1878 = vmatpush.bf16.msra.mxu2 %v3621_v20  ;;  %v3123_v20 = vld [vmem:[%s3789_s20 + $0x40] sm:$0xf0] }
  0x5b   : > { %819 = vmatmul.bf16.gmra.mxu0 %v547_v58  ;;  %1911 = vmatpush.bf16.msra.mxu3 %v3629_v21  ;;  %v1381_v58 = vunpack.c.l.b16 %v1276_v49  ;;  %v3129_v21 = vld [vmem:[%s3789_s20 + $0x38] sm:$0xf] }
  0x5c   : > { %852 = vmatmul.bf16.gmra.mxu1 %v555_v60  ;;  %v1385_v60 = vunpack.c.l.b16 %v4223_v51 }
  0x5d   : > { %885 = vmatmul.bf16.gmra.mxu2 %v563_v62  ;;  %v3640_v62 = vld [vmem:[%s4727_s1 + $0x338] sm:$0xff] }
  0x5e   : > { %918 = vmatmul.bf16.gmra.mxu3 %v571_v0  ;;  %v3648_v0 = vld [vmem:[%s4727_s1 + $0x378] sm:$0xff]  ;;  %v4246_v63 = vpack.c.b16 %v1385_v60, %v1381_v58 }
  0x60   : > { %v1444_v5 = vshll.u32 %v4246_v63, 16 }
  0x6b   : > { %824 = vmatmul.bf16.gmra.mxu0 %v574_v11  ;;  %v3121_v11 = vld [vmem:[%s3789_s20 + $0x30] sm:$0xf] }
  0x6c   : > { %857 = vmatmul.bf16.gmra.mxu1 %v577_v13  ;;  %v3587_v13 = vld [vmem:[%s3789_s20 + $0x3c] sm:$0xf0] }
  0x6d   : > { %890 = vmatmul.bf16.gmra.mxu2 %v580_v16  ;;  %v1422_v16 = vpack.c.b16 %v1386_v59, %v1382_v57  ;;  %v3662_v57 = vld [vmem:[%s4727_s1 + $0x3e8] sm:$0xff] }
  0x6e   : > { %923 = vmatmul.bf16.gmra.mxu3 %v583_v17 }
  0x7b   : > { %1152 = vmatmul.bf16.vlgmr.msrb.gmra.mxu0 %v3820_v25  ;;  %v3620_v25 = vld [vmem:[%s4727_s1 + $0x298] sm:$0xff] }
  0x7c   : > { %1185 = vmatmul.bf16.vlgmr.msrb.gmra.mxu1 %v3827_v31  ;;  %v3628_v31 = vld [vmem:[%s4727_s1 + $0x2d8] sm:$0xff]  ;;  %1879 = vmatpush.bf16.msra.mxu2 %v3620_v25 }
  0x7d   : > { %1218 = vmatmul.bf16.vlgmr.msrb.gmra.mxu2 %v3831_v34  ;;  %v3604_v34 = vld [vmem:[%s4727_s1 + $0x218] sm:$0xff]  ;;  %1912 = vmatpush.bf16.msra.mxu3 %v3628_v31  ;;  %v3131_v31 = vld [vmem:[%s3789_s20 + $0x48] sm:$0xf0] }
  0x7e   : > { %1251 = vmatmul.bf16.vlgmr.msrb.gmra.mxu3 %v3839_v40  ;;  %v3612_v40 = vld [vmem:[%s4727_s1 + $0x258] sm:$0xff]  ;;  %1813 = vmatpush.bf16.msra.mxu0 %v3604_v34 }
  0x7f   : > { %1846 = vmatpush.bf16.msra.mxu1 %v3612_v40  ;;  %v3586_v25 = vld [vmem:[%s3789_s20 + $0x3c] sm:$0xf] }
  0x80   : > { %1880 = vmatpush.bf16.msra.mxu2 %v3619_v29  ;;  %v3639_v29 = vld [vmem:[%s4727_s1 + $0x330] sm:$0xff] }
  0x81   : > { %1913 = vmatpush.bf16.msra.mxu3 %v3627_v30  ;;  %v3647_v30 = vld [vmem:[%s4727_s1 + $0x370] sm:$0xff] }
  0x82   : > { %1814 = vmatpush.bf16.msra.mxu0 %v3603_v32  ;;  %v4282_v32 = vor.u32 %v3587_v13, %v3121_v11 }
  0x84   : > { %v2029_v51 = vrot.slane %v4282_v32, 1 }
  0x8b   : > { %1157 = vmatmul.bf16.gmra.mxu0 %v3835_v37  ;;  %v3611_v37 = vld [vmem:[%s4727_s1 + $0x250] sm:$0xff] }
  0x8c   : > { %1190 = vmatmul.bf16.gmra.mxu1 %v3847_v43  ;;  %v3618_v43 = vld [vmem:[%s4727_s1 + $0x288] sm:$0xff] }
  0x8d   : > { %1223 = vmatmul.bf16.gmra.mxu2 %v3850_v45  ;;  %1847 = vmatpush.bf16.msra.mxu1 %v3611_v37  ;;  %v3626_v45 = vld [vmem:[%s4727_s1 + $0x2c8] sm:$0xff]  ;;  %v4284_v37 = vor.u32 %v3585_v8, %v3123_v20 }
  0x8e   : > { %1256 = vmatmul.bf16.gmra.mxu3 %v3860_v50  ;;  %v3602_v50 = vld [vmem:[%s4727_s1 + $0x208] sm:$0xff]  ;;  %1881 = vmatpush.bf16.msra.mxu2 %v3618_v43  ;;  %v1456_v43 = vshll.u32 %v1422_v16, 16 }
  0x8f   : > { %1914 = vmatpush.bf16.msra.mxu3 %v3626_v45  ;;  %1815 = vmatpush.bf16.msra.mxu0 %v3602_v50  ;;  %v4286_v45 = vor.u32 %v3588_v23, %v3129_v21  ;;  %v3137_v21 = vld [vmem:[%s3789_s20 + $0x50] sm:$0xf] }
  0x91   : > { %1848 = vmatpush.bf16.msra.mxu1 %v3610_v33  ;;  %v4288_v33 = vor.u32 %v3586_v25, %v3131_v31  ;;  %v2035_v54 = vrot.slane %v4286_v45, 1 }
  0x9b   : > { %1162 = vmatmul.bf16.gmra.mxu0 %v3937_v38  ;;  %v3617_v38 = vld [vmem:[%s4727_s1 + $0x280] sm:$0xff] }
  0x9c   : > { %1195 = vmatmul.bf16.gmra.mxu1 %v3939_v39  ;;  %v3625_v39 = vld [vmem:[%s4727_s1 + $0x2c0] sm:$0xff]  ;;  %1882 = vmatpush.bf16.msra.mxu2 %v3617_v38 }
  0x9d   : > { %1228 = vmatmul.bf16.gmra.mxu2 %v3947_v44  ;;  %v3601_v44 = vld [vmem:[%s4727_s1 + $0x200] sm:$0xff]  ;;  %1915 = vmatpush.bf16.msra.mxu3 %v3625_v39  ;;  %v1442_v39 = vshrl.u32 %v4246_v63, 16 }
  0x9e   : > { %1261 = vmatmul.bf16.gmra.mxu3 %v3949_v46  ;;  %v3609_v46 = vld [vmem:[%s4727_s1 + $0x240] sm:$0xff]  ;;  %1816 = vmatpush.bf16.msra.mxu0 %v3601_v44  ;;  %v1446_v44 = vrot.slane %v1444_v5, 1  ;;  %v3145_v5 = vld [vmem:[%s3789_s20 + $0x58] sm:$0xf] }
  0x9f   : > { %1849 = vmatpush.bf16.msra.mxu1 %v3609_v46 }
  0xa0   : > { %2342 = vmatpush.bf16.msrb.mxu2 %v3656_v42  ;;  %v1458_v42 = vrot.slane %v1456_v43, 1  ;;  %v1447_v63 = vor.u32 %v1446_v44, %v1442_v39  ;;  %v3147_v43 = vld [vmem:[%s3789_s20 + $0x68] sm:$0xf0]  ;;  %v3661_v44 = vld [vmem:[%s4727_s1 + $0x3e0] sm:$0xff] }
  0xa1   : > { %2375 = vmatpush.bf16.msrb.mxu3 %v3664_v47  ;;  %v1461_v47 = vshll.u32 %v4284_v37, 16 }
  0xa2   : > { %2276 = vmatpush.bf16.msrb.mxu0 %v3640_v62  ;;  %v1485_v62 = vshll.u32 %v4288_v33, 16 }
  0xa3   : > { %2309 = vmatpush.bf16.msrb.mxu1 %v3648_v0 }
  0xa4   : > { %2343 = vmatpush.bf16.msrb.mxu2 %v3655_v55  ;;  %v3654_v55 = vld [vmem:[%s4727_s1 + $0x3a8] sm:$0xff] }
  0xa5   : > { %2376 = vmatpush.bf16.msrb.mxu3 %v3663_v12  ;;  %v3592_v12 = vld [vmem:[%s3789_s20 + $0x64] sm:$0xf0] }
  0xa6   : > { %2277 = vmatpush.bf16.msrb.mxu0 %v3639_v29 }
  0xa7   : > { %2310 = vmatpush.bf16.msrb.mxu1 %v3647_v30  ;;  %v3590_v30 = vld [vmem:[%s3789_s20 + $0x5c] sm:$0xf] }
  0xa8   : > { %v805_v35 = vpop.f32.mrf.mxu0  ;;  %2344 = vmatpush.bf16.msrb.mxu2 %v3654_v55  ;;  %v1513_v55 = vshrl.u32 %v4288_v33, 16 }
  0xa9   : > { %v838_v36 = vpop.f32.mrf.mxu1  ;;  %2377 = vmatpush.bf16.msrb.mxu3 %v3662_v57 }
  0xaa   : > { %v839_v41 = vadd.f32 %v838_v36, %v805_v35  ;;  %v1449_v36 = vshll.u32 %v4282_v32, 16 }
  0xab   : > { %1167 = vmatmul.bf16.gmra.mxu0 %v4020_v24 }
  0xac   : > { %1200 = vmatmul.bf16.gmra.mxu1 %v4022_v26 }
  0xad   : > { %1233 = vmatmul.bf16.gmra.mxu2 %v4024_v27  ;;  %2378 = vmatpush.bf16.msrb.mxu3 %v3661_v44  ;;  %v3596_v44 = vld [vmem:[%s3789_s20 + $0x84] sm:$0xf0] }
  0xae   : > { %1266 = vmatmul.bf16.gmra.mxu3 %v4026_v28  ;;  %v1277_v28 = vld [vmem:[%s3789_s20 + $0x18] sm:$0xff] }
  0xaf   : > { %v1383_v61 = vunpack.c.l.b16 %v1277_v28  ;;  %v1384_v4 = vunpack.c.h.b16 %v1277_v28 }
  0xb0   : > { %v871_v48 = vpop.f32.mrf.mxu2  ;;  %v807_v52 = vpop.f32.mrf.mxu0 }
  0xb1   : > { %v904_v24 = vpop.f32.mrf.mxu3  ;;  %v872_v26 = vadd.f32 %v871_v48, %v839_v41  ;;  %v840_v27 = vpop.f32.mrf.mxu1  ;;  %v1423_v3 = vpack.c.b16 %v1387_v2, %v1383_v61  ;;  %v1424_v34 = vpack.c.b16 %v1388_v6, %v1384_v4  ;;  %v1454_v41 = vshrl.u32 %v1422_v16, 16  ;;  %v3638_v61 = vld [vmem:[%s4727_s1 + $0x328] sm:$0xff] }
  0xb2   : > { %v841_v53 = vadd.f32 %v840_v27, %v807_v52  ;;  %v1473_v27 = vshll.u32 %v4286_v45, 16  ;;  %v3646_v4 = vld [vmem:[%s4727_s1 + $0x368] sm:$0xff]  ;;  %v4315_v16 = vrot.slane %v1485_v62, 1  ;;  %2278 = vmatpush.bf16.msrb.mxu0 %v3638_v61 }
  0xb3   : > { %v4229_v56 = vadd.f32 %v904_v24, %v872_v26  ;;  %v1468_v50 = vshll.u32 %v1423_v3, 16  ;;  %v1480_v38 = vshll.u32 %v1424_v34, 16  ;;  %v1466_v26 = vshrl.u32 %v1423_v3, 16  ;;  %2311 = vmatpush.bf16.msrb.mxu1 %v3646_v4  ;;  %v3591_v3 = vld [vmem:[%s3789_s20 + $0x5c] sm:$0xf0]  ;;  %v3652_v4 = vld [vmem:[%s4727_s1 + $0x398] sm:$0xff] }
  0xb4   : > { %v1478_v28 = vshrl.u32 %v1424_v34, 16  ;;  %v4313_v11 = vrot.slane %v1473_v27, 1  ;;  %v3139_v34 = vld [vmem:[%s3789_s20 + $0x60] sm:$0xf0]  ;;  %v1497_v27 = vshrl.u32 %v4284_v37, 16 }
  0xb5   : > { %v1470_v52 = vrot.slane %v1468_v50, 1  ;;  %v1482_v58 = vrot.slane %v1480_v38, 1  ;;  %v3653_v50 = vld [vmem:[%s4727_s1 + $0x3a0] sm:$0xff]  ;;  %v4338_v38 = vor.u32 %v3591_v3, %v3137_v21 }
  0xb6   : > { %2345 = vmatpush.bf16.msrb.mxu2 %v3653_v50 }
  0xb7   : > { %v1483_v13 = vor.u32 %v1482_v58, %v1478_v28  ;;  %v1505_v28 = vshrl.u32 %v4286_v45, 16 }
  0xb8   : > { %v873_v7 = vpop.f32.mrf.mxu2  ;;  %v810_v18 = vpop.f32.mrf.mxu0 }
  0xb9   : > { %v906_v1 = vpop.f32.mrf.mxu3  ;;  %v874_v17 = vadd.f32 %v873_v7, %v841_v53  ;;  %v843_v14 = vpop.f32.mrf.mxu1  ;;  %v4309_v7 = vrot.slane %v1449_v36, 1  ;;  %v1488_v31 = vsel %vm427_vm0, %v1483_v13, %v4315_v16  ;;  %v4351_v36 = vor.u32 %v3592_v12, %v3145_v5  ;;  %v3593_v12 = vld [vmem:[%s3789_s20 + $0x74] sm:$0xf] }
  0xba   : > { %v844_v22 = vadd.f32 %v843_v14, %v810_v18  ;;  %2346 = vmatpush.bf16.msrb.mxu2 %v3652_v4 }
  0xbb   : > { %v4270_v40 = vadd.f32 %v906_v1, %v874_v17  ;;  %1172 = vmatmul.bf16.gmra.mxu0 %v928_v9  ;;  %v1459_v1 = vor.u32 %v1458_v42, %v1454_v41  ;;  %v4311_v9 = vrot.slane %v1461_v47, 1  ;;  %v1452_v8 = vsel %vm427_vm0, %v1447_v63, %v4309_v7  ;;  %v3660_v63 = vld [vmem:[%s4727_s1 + $0x3d8] sm:$0xff] }
  0xbc   : > { %1205 = vmatmul.bf16.gmra.mxu1 %v929_v10  ;;  %v1471_v10 = vor.u32 %v1470_v52, %v1466_v26  ;;  %v4353_v41 = vor.u32 %v3590_v30, %v3147_v43  ;;  %v1509_v62 = vshll.u32 %v4351_v36, 16  ;;  %2379 = vmatpush.bf16.msrb.mxu3 %v3660_v63  ;;  %v3155_v30 = vld [vmem:[%s3789_s20 + $0x80] sm:$0xf0]  ;;  %v3161_v43 = vld [vmem:[%s3789_s20 + $0x78] sm:$0xf]  ;;  %v1537_v4 = vshrl.u32 %v4351_v36, 16 }
  0xbd   : > { %1238 = vmatmul.bf16.gmra.mxu2 %v930_v15  ;;  %v1464_v20 = vsel %vm427_vm0, %v1459_v1, %v4311_v9  ;;  %v1499_v13 = vor.u32 %v1497_v27, %v4311_v9  ;;  %v3644_v9 = vld [vmem:[%s4727_s1 + $0x358] sm:$0xff]  ;;  %v1521_v27 = vshrl.u32 %v4338_v38, 16 }
  0xbe   : > { %1271 = vmatmul.bf16.gmra.mxu3 %v931_v19  ;;  %v1476_v25 = vsel %vm427_vm0, %v1471_v10, %v4313_v11  ;;  %v1517_v57 = vshll.u32 %v4353_v41, 16 }
  0xc0   : > { %v876_v46 = vpop.f32.mrf.mxu2  ;;  %v812_v24 = vpop.f32.mrf.mxu0 }
  0xc1   : > { %v909_v35 = vpop.f32.mrf.mxu3  ;;  %v877_v48 = vadd.f32 %v876_v46, %v844_v22  ;;  %v845_v49 = vpop.f32.mrf.mxu1  ;;  %v3589_v22 = vld [vmem:[%s3789_s20 + $0x54] sm:$0xf]  ;;  %v3637_v46 = vld [vmem:[%s4727_s1 + $0x320] sm:$0xff] }
  0xc2   : > { %v846_v53 = vadd.f32 %v845_v49, %v812_v24  ;;  %v4340_v39 = vor.u32 %v3589_v22, %v3139_v34  ;;  %2279 = vmatpush.bf16.msrb.mxu0 %v3637_v46  ;;  %v1493_v24 = vshll.u32 %v4338_v38, 16  ;;  %v3594_v46 = vld [vmem:[%s3789_s20 + $0x7c] sm:$0xf] }
  0xc3   : > { %v4295_v0 = vadd.f32 %v909_v35, %v877_v48  ;;  %v3645_v35 = vld [vmem:[%s4727_s1 + $0x360] sm:$0xff]  ;;  %v1489_v48 = vshrl.u32 %v4282_v32, 16 }
  0xc4   : > { %2312 = vmatpush.bf16.msrb.mxu1 %v3645_v35  ;;  %v1495_v10 = vrot.slane %v1493_v24, 1  ;;  %v3163_v35 = vld [vmem:[%s3789_s20 + $0x88] sm:$0xf0]  ;;  %v4402_v24 = vor.u32 %v3596_v44, %v3161_v43  ;;  %v3599_v43 = vld [vmem:[%s3789_s20 + $0x9c] sm:$0x10] }
  0xc5   : > { %v1491_v1 = vor.u32 %v1489_v48, %v4309_v7  ;;  %v3636_v7 = vld [vmem:[%s4727_s1 + $0x318] sm:$0xff]  ;;  %v3651_v48 = vld [vmem:[%s4727_s1 + $0x390] sm:$0xff] }
  0xc6   : > { %2280 = vmatpush.bf16.msrb.mxu0 %v3636_v7  ;;  %2347 = vmatpush.bf16.msrb.mxu2 %v3651_v48  ;;  %v3643_v7 = vld [vmem:[%s4727_s1 + $0x350] sm:$0xff]  ;;  %v3171_v48 = vld [vmem:[%s3789_s20 + $0xa0] sm:$0x10] }
  0xc8   : > { %v878_v17 = vpop.f32.mrf.mxu2  ;;  %v815_v15 = vpop.f32.mrf.mxu0  ;;  %2313 = vmatpush.bf16.msrb.mxu1 %v3644_v9  ;;  %v1523_v9 = vor.u32 %v1521_v27, %v1495_v10 }
  0xc9   : > { %v911_v18 = vpop.f32.mrf.mxu3  ;;  %v879_v14 = vadd.f32 %v878_v17, %v846_v53  ;;  %v848_v19 = vpop.f32.mrf.mxu1  ;;  %v1501_v53 = vshll.u32 %v4340_v39, 16 }
  0xca   : > { %v849_v23 = vadd.f32 %v848_v19, %v815_v15  ;;  %v1515_v15 = vor.u32 %v1513_v55, %v4315_v16  ;;  %v1519_v19 = vrot.slane %v1517_v57, 1  ;;  %v1496_v16 = vsel %vm427_vm0, %v1491_v1, %v1495_v10 }
  0xcb   : > { %v4331_v29 = vadd.f32 %v911_v18, %v879_v14  ;;  %1817 = vmatmul.bf16.vlgmr.msra.gmra.mxu0 %v1452_v8  ;;  %v1503_v17 = vrot.slane %v1501_v53, 1  ;;  %v1507_v18 = vor.u32 %v1505_v28, %v4313_v11  ;;  %v1511_v14 = vrot.slane %v1509_v62, 1 }
  0xcc   : > { %1850 = vmatmul.bf16.vlgmr.msra.gmra.mxu1 %v1464_v20  ;;  %v1520_v5 = vsel %vm427_vm0, %v1515_v15, %v1519_v19  ;;  %v1529_v55 = vshrl.u32 %v4340_v39, 16  ;;  %v1541_v1 = vshll.u32 %v4402_v24, 16 }
  0xcd   : > { %1883 = vmatmul.bf16.vlgmr.msra.gmra.mxu2 %v1476_v25  ;;  %v1504_v22 = vsel %vm427_vm0, %v1499_v13, %v1503_v17  ;;  %v3595_v25 = vld [vmem:[%s3789_s20 + $0x7c] sm:$0xf0]  ;;  %v1512_v34 = vsel %vm427_vm0, %v1507_v18, %v1511_v14  ;;  %v1545_v13 = vshrl.u32 %v4353_v41, 16  ;;  %2314 = vmatpush.bf16.msrb.mxu1 %v3643_v7 }
  0xce   : > { %1916 = vmatmul.bf16.vlgmr.msra.gmra.mxu3 %v1488_v31 }
  0xd0   : > { %v881_v42 = vpop.f32.mrf.mxu2  ;;  %v817_v26 = vpop.f32.mrf.mxu0 }
  0xd1   : > { %v914_v47 = vpop.f32.mrf.mxu3  ;;  %v882_v49 = vadd.f32 %v881_v42, %v849_v23  ;;  %v850_v52 = vpop.f32.mrf.mxu1  ;;  %v3153_v23 = vld [vmem:[%s3789_s20 + $0x70] sm:$0xf] }
  0xd2   : > { %v851_v58 = vadd.f32 %v850_v52, %v817_v26  ;;  %v4395_v42 = vor.u32 %v3595_v25, %v3153_v23  ;;  %v1547_v23 = vor.u32 %v1545_v13, %v1519_v19  ;;  %v3597_v19 = vld [vmem:[%s3789_s20 + $0x94] sm:$0xf] }
  0xd3   : > { %v4363_v61 = vadd.f32 %v914_v47, %v882_v49  ;;  %v4397_v47 = vor.u32 %v3593_v12, %v3155_v30  ;;  %v4404_v49 = vor.u32 %v3594_v46, %v3163_v35 }
  0xd4   : > { %v1525_v53 = vshll.u32 %v4395_v42, 16 }
  0xd5   : > { %v1533_v57 = vshll.u32 %v4397_v47, 16  ;;  %v1549_v18 = vshll.u32 %v4404_v49, 16 }
  0xd7   : > { %v1551_v25 = vrot.slane %v1549_v18, 1 }
  0xd8   : > { %v883_v8 = vpop.f32.mrf.mxu2  ;;  %v820_v11 = vpop.f32.mrf.mxu0 }
  0xd9   : > { %v916_v20 = vpop.f32.mrf.mxu3  ;;  %v884_v21 = vadd.f32 %v883_v8, %v851_v58  ;;  %v853_v3 = vpop.f32.mrf.mxu1  ;;  %v3659_v8 = vld [vmem:[%s4727_s1 + $0x3d0] sm:$0xff]  ;;  %v1552_v35 = vsel %vm427_vm0, %v1547_v23, %v1551_v25  ;;  %v1561_v23 = vshrl.u32 %v4397_v47, 16 }
  0xda   : > { %v854_v31 = vadd.f32 %v853_v3, %v820_v11  ;;  %v1531_v11 = vor.u32 %v1529_v55, %v1503_v17  ;;  %v1535_v3 = vrot.slane %v1533_v57, 1  ;;  %2380 = vmatpush.bf16.msrb.mxu3 %v3659_v8  ;;  %v4447_v57 = vor.u32 %v3597_v19, %v3171_v48  ;;  %v3641_v48 = vld [vmem:[%s4727_s1 + $0x340] sm:$0xff] }
  0xdb   : > { %v4390_v50 = vadd.f32 %v916_v20, %v884_v21  ;;  %1822 = vmatmul.bf16.gmra.mxu0 %v1496_v16  ;;  %v3635_v20 = vld [vmem:[%s4727_s1 + $0x310] sm:$0xff]  ;;  %v1527_v21 = vrot.slane %v1525_v53, 1  ;;  %v1539_v16 = vor.u32 %v1537_v4, %v1511_v14  ;;  %v3598_v53 = vld [vmem:[%s3789_s20 + $0x9c] sm:$0xf]  ;;  %v3634_v4 = vld [vmem:[%s4727_s1 + $0x308] sm:$0xff] }
  0xdc   : > { %1855 = vmatmul.bf16.gmra.mxu1 %v1504_v22  ;;  %v1543_v22 = vrot.slane %v1541_v1, 1  ;;  %2281 = vmatpush.bf16.msrb.mxu0 %v3635_v20  ;;  %v1536_v30 = vsel %vm427_vm0, %v1531_v11, %v1535_v3  ;;  %v3169_v14 = vld [vmem:[%s3789_s20 + $0x90] sm:$0xf]  ;;  %v1553_v20 = vshrl.u32 %v4395_v42, 16 }
  0xdd   : > { %1888 = vmatmul.bf16.gmra.mxu2 %v1512_v34  ;;  %v1528_v12 = vsel %vm427_vm0, %v1523_v9, %v1527_v21  ;;  %v4445_v55 = vor.u32 %v3599_v43, %v3169_v14  ;;  %v3657_v14 = vld [vmem:[%s4727_s1 + $0x3c0] sm:$0xff] }
  0xde   : > { %1921 = vmatmul.bf16.gmra.mxu3 %v1520_v5  ;;  %v1544_v46 = vsel %vm427_vm0, %v1539_v16, %v1543_v22  ;;  %v3633_v43 = vld [vmem:[%s4727_s1 + $0x300] sm:$0xff]  ;;  %v1555_v19 = vor.u32 %v1553_v20, %v1527_v21 }
  0xdf   : > { %v1557_v16 = vshll.u32 %v4445_v55, 16 }
  0xe0   : > { %v886_v26 = vpop.f32.mrf.mxu2  ;;  %v822_v58 = vpop.f32.mrf.mxu0  ;;  %2282 = vmatpush.bf16.msrb.mxu0 %v3634_v4 }
  0xe1   : > { %v919_v52 = vpop.f32.mrf.mxu3  ;;  %v887_v28 = vadd.f32 %v886_v26, %v854_v31  ;;  %v855_v62 = vpop.f32.mrf.mxu1  ;;  %v3177_v26 = vld [vmem:[%s3789_s20 + $0x98] sm:$0xf] }
  0xe2   : > { %v856_v63 = vadd.f32 %v855_v62, %v822_v58  ;;  %v3650_v58 = vld [vmem:[%s4727_s1 + $0x388] sm:$0xff] }
  0xe3   : > { %v4414_v15 = vadd.f32 %v919_v52, %v887_v28  ;;  %v3600_v52 = vld [vmem:[%s3789_s20 + $0xa4] sm:$0x10]  ;;  %v3179_v28 = vld [vmem:[%s3789_s20 + $0xa8] sm:$0x10]  ;;  %2348 = vmatpush.bf16.msrb.mxu2 %v3650_v58 }
  0xe4   : > { %v3658_v62 = vld [vmem:[%s4727_s1 + $0x3c8] sm:$0xff]  ;;  %v4455_v1 = vor.u32 %v3600_v52, %v3177_v26  ;;  %v4457_v13 = vor.u32 %v3598_v53, %v3179_v28  ;;  %2283 = vmatpush.bf16.msrb.mxu0 %v3633_v43 }
  0xe5   : > { %2381 = vmatpush.bf16.msrb.mxu3 %v3658_v62 }
  0xe8   : > { %v888_v31 = vpop.f32.mrf.mxu2  ;;  %v825_v17 = vpop.f32.mrf.mxu0 }
  0xe9   : > { %v921_v34 = vpop.f32.mrf.mxu3  ;;  %v889_v10 = vadd.f32 %v888_v31, %v856_v63  ;;  %v858_v5 = vpop.f32.mrf.mxu1  ;;  %v3642_v63 = vld [vmem:[%s4727_s1 + $0x348] sm:$0xff]  ;;  %v1565_v31 = vshll.u32 %v4447_v57, 16  ;;  %2382 = vmatpush.bf16.msrb.mxu3 %v3657_v14 }
  0xea   : > { %v859_v44 = vadd.f32 %v858_v5, %v825_v17  ;;  %2315 = vmatpush.bf16.msrb.mxu1 %v3642_v63  ;;  %v1577_v17 = vshrl.u32 %v4404_v49, 16  ;;  %v1581_v5 = vshll.u32 %v4457_v13, 16 }
  0xeb   : > { %v4435_v27 = vadd.f32 %v921_v34, %v889_v10  ;;  %1827 = vmatmul.bf16.gmra.mxu0 %v1528_v12  ;;  %v1569_v34 = vshrl.u32 %v4402_v24, 16  ;;  %v1573_v10 = vshll.u32 %v4455_v1, 16 }
  0xec   : > { %1860 = vmatmul.bf16.gmra.mxu1 %v1536_v30  ;;  %v3649_v30 = vld [vmem:[%s4727_s1 + $0x380] sm:$0xff]  ;;  %v1579_v53 = vor.u32 %v1577_v17, %v1551_v25  ;;  %v1583_v28 = vrot.slane %v1581_v5, 1  ;;  %v1591_v17 = vshrl.u32 %v4455_v1, 16  ;;  %v1594_v5 = vshrl.u32 %v4457_v13, 16 }
  0xed   : > { %1893 = vmatmul.bf16.gmra.mxu2 %v1544_v46  ;;  %v1563_v46 = vor.u32 %v1561_v23, %v1535_v3  ;;  %v1571_v26 = vor.u32 %v1569_v34, %v1543_v22  ;;  %v1575_v52 = vrot.slane %v1573_v10, 1  ;;  %v1585_v34 = vshrl.u32 %v4445_v55, 16 }
  0xee   : > { %1926 = vmatmul.bf16.gmra.mxu3 %v1552_v35  ;;  %v1567_v35 = vrot.slane %v1565_v31, 1  ;;  %2349 = vmatpush.bf16.msrb.mxu2 %v3649_v30  ;;  %v1584_v22 = vsel %vm427_vm0, %v1579_v53, %v1583_v28  ;;  %v1588_v10 = vshrl.u32 %v4447_v57, 16  ;;  %v1596_v53 = vor.u32 %v1594_v5, %v1583_v28 }
  0xef   : > { %2316 = vmatpush.bf16.msrb.mxu1 %v3641_v48 }
  0xf0   : > { %v891_v18 = vpop.f32.mrf.mxu2  ;;  %v827_v9 = vpop.f32.mrf.mxu0  ;;  %v1568_v3 = vsel %vm427_vm0, %v1563_v46, %v1567_v35 }
  0xf1   : > { %v924_v8 = vpop.f32.mrf.mxu3  ;;  %v892_v7 = vadd.f32 %v891_v18, %v859_v44  ;;  %v860_v11 = vpop.f32.mrf.mxu1  ;;  %v1559_v44 = vrot.slane %v1557_v16, 1 }
  0xf3   : > { %v4467_v12 = vadd.f32 %v924_v8, %v892_v7  ;;  %v1560_v21 = vsel %vm427_vm0, %v1555_v19, %v1559_v44  ;;  %v1576_v8 = vsel %vm427_vm0, %v1571_v26, %v1575_v52  ;;  %v1587_v43 = vor.u32 %v1585_v34, %v1559_v44 }
  0xf4   : > { %v1590_v19 = vor.u32 %v1588_v10, %v1567_v35  ;;  %v1593_v26 = vor.u32 %v1591_v17, %v1575_v52  ;;  %v3713_v34 = vmov 0   ;;  %v2038_v10 = vrot.slane %v4288_v33, 1 }
  0xf5   : > { %3699 = vset.pattern.permute.xlu0 %v3713_v34  ;;  %3700 = vset.pattern.permute.xlu1 %v3713_v34 }
  0xf6   : > { %3701 = vset.pattern.permute.xlu2 %v3713_v34 }
  0xf8   : > { %v893_v58 = vpop.f32.mrf.mxu2  ;;  %v1153_v4 = vpop.f32.mrf.mxu0 }
  0xf9   : > { %v926_v62 = vpop.f32.mrf.mxu3  ;;  %v1186_v63 = vpop.f32.mrf.mxu1  ;;  %v1154_v18 = vadd.f32 %v1153_v4, %v4229_v56  ;;  %v1950_v58 = vld [vmem:[%s3789_s20 + $0x10] sm:$0xee] }
  0xfb   : > { %v1187_v25 = vadd.f32 %v1186_v63, %v1154_v18  ;;  %1832 = vmatmul.bf16.gmra.mxu0 %v1560_v21  ;;  %v1951_v63 = vld [vmem:[%s3789_s20 + $0x18] sm:$0xee]  ;;  %v2020_v18 = vunpack.c.h.b16 %v1950_v58 }
  0xfc   : > { %1865 = vmatmul.bf16.gmra.mxu1 %v1568_v3  ;;  %v2019_v3 = vunpack.c.l.b16 %v1950_v58  ;;  %v2021_v44 = vunpack.c.l.b16 %v1951_v63  ;;  %v2022_v35 = vunpack.c.h.b16 %v1951_v63 }
  0xfd   : > { %1898 = vmatmul.bf16.gmra.mxu2 %v1576_v8 }
  0xfe   : > { %1931 = vmatmul.bf16.gmra.mxu3 %v1584_v22  ;;  %v2023_v52 = vpack.c.b16 %v1385_v60, %v2019_v3  ;;  %v2430_v60 = vld [vmem:[%s4729_s3] sm:$0xff]  ;;  %v2432_v3 = vld [vmem:[%s4729_s3 + $0x10] sm:$0xff] }
  0xff   : > { %2441 = vperm.xlu0 %3699, %v2430_v60   ;;  %2451 = vperm.xlu1 %3700, %v2432_v3  }
 0x100   : > { %v1219_v20 = vpop.f32.mrf.mxu2  ;;  %v1155_v11 = vpop.f32.mrf.mxu0 }
 0x101   : > { %v1252_v7 = vpop.f32.mrf.mxu3  ;;  %v1220_v9 = vadd.f32 %v1219_v20, %v1187_v25  ;;  %v1188_v16 = vpop.f32.mrf.mxu1  ;;  %v1156_v23 = vadd.f32 %v1155_v11, %v4270_v40  ;;  %v2024_v20 = vpack.c.b16 %v1386_v59, %v2020_v18  ;;  %v2026_v11 = vpack.c.b16 %v1388_v6, %v2022_v35 }
 0x102   : > { %v2042_v35 = vrot.slane %v4340_v39, 1 }
 0x103   : > { %v4487_v31 = vadd.f32 %v1252_v7, %v1220_v9  ;;  %v1189_v56 = vadd.f32 %v1188_v16, %v1156_v23  ;;  %v2025_v9 = vpack.c.b16 %v1387_v2, %v2021_v44  ;;  %v2031_v59 = vrot.slane %v2024_v20, 1 }
 0x104   : > { %v2037_v6 = vrot.slane %v2026_v11, 1  ;;  %v2040_v44 = vrot.slane %v4338_v38, 1 }
 0x105   : > { %v2034_v2 = vrot.slane %v2025_v9, 1 }
 0x106   : > { %v2039_v45 = vsel %vm2027_vm1, %v2037_v6, %v2038_v10  ;;  %v2041_v20 = vsel %vm2027_vm1, %v2029_v51, %v2040_v44  ;;  %v2052_v6 = vrot.slane %v4402_v24, 1 }
 0x108   : > { %v1221_v30 = vpop.f32.mrf.mxu2  ;;  %v1158_v48 = vpop.f32.mrf.mxu0 }
 0x109   : > { %v1254_v14 = vpop.f32.mrf.mxu3  ;;  %v1222_v46 = vadd.f32 %v1221_v30, %v1189_v56  ;;  %v1191_v40 = vpop.f32.mrf.mxu1  ;;  %v1159_v62 = vadd.f32 %v1158_v48, %v4295_v0  ;;  %v2028_v56 = vrot.slane %v2023_v52, 1 }
 0x10b   : > { %v4495_v4 = vadd.f32 %v1254_v14, %v1222_v46  ;;  %v1192_v21 = vadd.f32 %v1191_v40, %v1159_v62  ;;  %1837 = vmatmul.bf16.gmra.mxu0 %v1587_v43  ;;  %v2030_v32 = vsel %vm2027_vm1, %v2028_v56, %v2029_v51  ;;  %v2036_v46 = vsel %vm2027_vm1, %v2034_v2, %v2035_v54  ;;  %v2431_v40 = vld [vmem:[%s4729_s3 + $0x8] sm:$0xff] }
 0x10c   : > { %1870 = vmatmul.bf16.gmra.mxu1 %v1590_v19  ;;  %2446 = vperm.xlu0 %3699, %v2431_v40   ;;  %v2048_v2 = vrot.slane %v4395_v42, 1 }
 0x10d   : > { %1903 = vmatmul.bf16.gmra.mxu2 %v1593_v26 }
 0x10e   : > { %1936 = vmatmul.bf16.gmra.mxu3 %v1596_v53 }
 0x110   : > { %v1224_v8 = vpop.f32.mrf.mxu2  ;;  %v1160_v25 = vpop.f32.mrf.mxu0 }
 0x111   : > { %v1257_v22 = vpop.f32.mrf.mxu3  ;;  %v1225_v28 = vadd.f32 %v1224_v8, %v1192_v21  ;;  %v1193_v0 = vpop.f32.mrf.mxu1  ;;  %v1161_v7 = vadd.f32 %v1160_v25, %v4331_v29  ;;  %v2032_v29 = vrot.slane %v4284_v37, 1  ;;  %v2044_v8 = vrot.slane %v4351_v36, 1 }
 0x113   : > { %v4507_v16 = vadd.f32 %v1257_v22, %v1225_v28  ;;  %v1194_v23 = vadd.f32 %v1193_v0, %v1161_v7  ;;  %v2033_v37 = vsel %vm2027_vm1, %v2031_v59, %v2032_v29  ;;  %v2046_v22 = vrot.slane %v4353_v41, 1  ;;  %v2433_v41 = vld [vmem:[%s4729_s3 + $0x18] sm:$0xff] }
 0x114   : > { %v2043_v7 = vsel %vm2027_vm1, %v2032_v29, %v2042_v35  ;;  %v2045_v11 = vsel %vm2027_vm1, %v2035_v54, %v2044_v8  ;;  %2456 = vperm.xlu1 %3700, %v2433_v41   ;;  %v2050_v54 = vrot.slane %v4397_v47, 1 }
 0x115   : > { %v2047_v38 = vsel %vm2027_vm1, %v2038_v10, %v2046_v22  ;;  %v2054_v10 = vrot.slane %v4404_v49, 1  ;;  %v2436_v49 = vld [vmem:[%s4729_s3 + $0x30] sm:$0xff] }
 0x116   : > { %2471 = vperm.xlu0 %3699, %v2436_v49  }
 0x117   : > { %v2055_v42 = vsel %vm2027_vm1, %v2046_v22, %v2054_v10 }
 0x118   : > { %v1226_v17 = vpop.f32.mrf.mxu2  ;;  %v1163_v14 = vpop.f32.mrf.mxu0 }
 0x119   : > { %v1259_v5 = vpop.f32.mrf.mxu3  ;;  %v1227_v30 = vadd.f32 %v1226_v17, %v1194_v23  ;;  %v1196_v43 = vpop.f32.mrf.mxu1  ;;  %v1164_v19 = vadd.f32 %v1163_v14, %v4363_v61 }
 0x11b   : > { %v4521_v48 = vadd.f32 %v1259_v5, %v1227_v30  ;;  %v1197_v33 = vadd.f32 %v1196_v43, %v1164_v19  ;;  %2284 = vmatmul.bf16.vlgmr.msrb.gmra.mxu0 %v2030_v32  ;;  %v2049_v32 = vsel %vm2027_vm1, %v2040_v44, %v2048_v2  ;;  %v2053_v19 = vsel %vm2027_vm1, %v2044_v8, %v2052_v6 }
 0x11c   : > { %2317 = vmatmul.bf16.vlgmr.msrb.gmra.mxu1 %v2033_v37 }
 0x11d   : > { %2350 = vmatmul.bf16.vlgmr.msrb.gmra.mxu2 %v2036_v46 }
 0x11e   : > { %2383 = vmatmul.bf16.vlgmr.msrb.gmra.mxu3 %v2039_v45 }
 0x120   : > { %v1229_v26 = vpop.f32.mrf.mxu2  ;;  %v1165_v61 = vpop.f32.mrf.mxu0 }
 0x121   : > { %v1262_v53 = vpop.f32.mrf.mxu3  ;;  %v1230_v58 = vadd.f32 %v1229_v26, %v1197_v33  ;;  %v1198_v62 = vpop.f32.mrf.mxu1  ;;  %v1166_v63 = vadd.f32 %v1165_v61, %v4390_v50  ;;  %v2058_v61 = vrot.slane %v4447_v57, 1 }
 0x123   : > { %v4527_v21 = vadd.f32 %v1262_v53, %v1230_v58  ;;  %v1199_v18 = vadd.f32 %v1198_v62, %v1166_v63  ;;  %v2437_v53 = vld [vmem:[%s4729_s3 + $0x38] sm:$0xff]  ;;  %v2056_v58 = vrot.slane %v4445_v55, 1  ;;  %v2060_v62 = vrot.slane %v4455_v1, 1  ;;  %v2434_v55 = vld [vmem:[%s4729_s3 + $0x20] sm:$0xff] }
 0x124   : > { %2476 = vperm.xlu1 %3700, %v2437_v53   ;;  %v2062_v63 = vrot.slane %v4457_v13, 1  ;;  %v2059_v22 = vsel %vm2027_vm1, %v2050_v54, %v2058_v61  ;;  %2461 = vperm.xlu2 %3701, %v2434_v55  }
 0x125   : > { %v2057_v8 = vsel %vm2027_vm1, %v2048_v2, %v2056_v58 }
 0x128   : > { %v1231_v52 = vpop.f32.mrf.mxu2  ;;  %v1168_v50 = vpop.f32.mrf.mxu0 }
 0x129   : > { %v1264_v28 = vpop.f32.mrf.mxu3  ;;  %v1232_v25 = vadd.f32 %v1231_v52, %v1199_v18  ;;  %v1201_v0 = vpop.f32.mrf.mxu1  ;;  %v1169_v9 = vadd.f32 %v1168_v50, %v4414_v15 }
 0x12b   : > { %v4541_v39 = vadd.f32 %v1264_v28, %v1232_v25  ;;  %v1202_v36 = vadd.f32 %v1201_v0, %v1169_v9  ;;  %2289 = vmatmul.bf16.gmra.mxu0 %v2041_v20  ;;  %v2061_v28 = vsel %vm2027_vm1, %v2052_v6, %v2060_v62  ;;  %v2063_v25 = vsel %vm2027_vm1, %v2054_v10, %v2062_v63 }
 0x12c   : > { %2322 = vmatmul.bf16.gmra.mxu1 %v2043_v7 }
 0x12d   : > { %2355 = vmatmul.bf16.gmra.mxu2 %v2045_v11  ;;  %v2435_v11 = vld [vmem:[%s4729_s3 + $0x28] sm:$0xff] }
 0x12e   : > { %2388 = vmatmul.bf16.gmra.mxu3 %v2047_v38  ;;  %2466 = vperm.xlu2 %3701, %v2435_v11  }
 0x130   : > { %v1234_v23 = vpop.f32.mrf.mxu2  ;;  %v1170_v15 = vpop.f32.mrf.mxu0 }
 0x131   : > { %v1267_v56 = vpop.f32.mrf.mxu3  ;;  %v1235_v60 = vadd.f32 %v1234_v23, %v1202_v36  ;;  %v1203_v51 = vpop.f32.mrf.mxu1  ;;  %v1171_v59 = vadd.f32 %v1170_v15, %v4435_v27  ;;  %v2051_v27 = vsel %vm2027_vm1, %v2042_v35, %v2050_v54 }
 0x133   : > { %v4547_v29 = vadd.f32 %v1267_v56, %v1235_v60  ;;  %v1204_v34 = vadd.f32 %v1203_v51, %v1171_v59 }
 0x138   : > { %v1236_v17 = vpop.f32.mrf.mxu2  ;;  %v1173_v14 = vpop.f32.mrf.mxu0 }
 0x139   : > { %v1269_v5 = vpop.f32.mrf.mxu3  ;;  %v1237_v30 = vadd.f32 %v1236_v17, %v1204_v34  ;;  %v1206_v43 = vpop.f32.mrf.mxu1  ;;  %v1174_v37 = vadd.f32 %v1173_v14, %v4467_v12 }
 0x13b   : > { %v4558_v47 = vadd.f32 %v1269_v5, %v1237_v30  ;;  %v1207_v24 = vadd.f32 %v1206_v43, %v1174_v37  ;;  %2294 = vmatmul.bf16.gmra.mxu0 %v2049_v32 }
 0x13c   : > { %2327 = vmatmul.bf16.gmra.mxu1 %v2051_v27 }
 0x13d   : > { %2360 = vmatmul.bf16.gmra.mxu2 %v2053_v19 }
 0x13e   : > { %2393 = vmatmul.bf16.gmra.mxu3 %v2055_v42 }
 0x140   : > { %v1239_v46 = vpop.f32.mrf.mxu2  ;;  %v1175_v12 = vpop.f32.mrf.mxu0 }
 0x141   : > { %v1272_v45 = vpop.f32.mrf.mxu3  ;;  %v1240_v33 = vadd.f32 %v1239_v46, %v1207_v24  ;;  %v1208_v40 = vpop.f32.mrf.mxu1 }
 0x143   : > { %v4563_v26 = vadd.f32 %v1272_v45, %v1240_v33 }
 0x148   : > { %v1241_v3 = vpop.f32.mrf.mxu2  ;;  %v1818_v44 = vpop.f32.mrf.mxu0 }
 0x149   : > { %v1274_v18 = vpop.f32.mrf.mxu3  ;;  %v1851_v35 = vpop.f32.mrf.mxu1 }
 0x14a   : > { %v1852_v52 = vadd.f32 %v1851_v35, %v1818_v44 }
 0x14b   : > { %2299 = vmatmul.bf16.gmra.mxu0 %v2057_v8 }
 0x14c   : > { %2332 = vmatmul.bf16.gmra.mxu1 %v2059_v22 }
 0x14d   : > { %2365 = vmatmul.bf16.gmra.mxu2 %v2061_v28 }
 0x14e   : > { %2398 = vmatmul.bf16.gmra.mxu3 %v2063_v25 }
 0x150   : > { %v1884_v57 = vpop.f32.mrf.mxu2  ;;  %v1820_v50 = vpop.f32.mrf.mxu0 }
 0x151   : > { %v1917_v1 = vpop.f32.mrf.mxu3  ;;  %v1885_v13 = vadd.f32 %v1884_v57, %v1852_v52  ;;  %v1853_v0 = vpop.f32.mrf.mxu1 }
 0x152   : > { %v1854_v20 = vadd.f32 %v1853_v0, %v1820_v50 }
 0x153   : > { %v1918_v7 = vadd.f32 %v1917_v1, %v1885_v13 }
 0x155   : > { %v4580_v9 = vadd.f32 %v1918_v7, %v4487_v31  ;;  %v2438_v31 = vld [vmem:[%s4729_s3 + $0x40] sm:$0xff] }
 0x156   : > { %2481 = vperm.xlu2 %3701, %v2438_v31  }
 0x158   : > { %v1886_v38 = vpop.f32.mrf.mxu2  ;;  %v1823_v23 = vpop.f32.mrf.mxu0 }
 0x159   : > { %v1919_v36 = vpop.f32.mrf.mxu3  ;;  %v1887_v41 = vadd.f32 %v1886_v38, %v1854_v20  ;;  %v1856_v56 = vpop.f32.mrf.mxu1 }
 0x15a   : > { %v1857_v60 = vadd.f32 %v1856_v56, %v1823_v23 }
 0x15b   : > { %v1920_v15 = vadd.f32 %v1919_v36, %v1887_v41  ;;  %2304 = vmatmul.bf16.gmra.mxu0 %v2056_v58 }
 0x15c   : > { %2337 = vmatmul.bf16.gmra.mxu1 %v2058_v61 }
 0x15d   : > { %v4586_v51 = vadd.f32 %v1920_v15, %v4495_v4  ;;  %2370 = vmatmul.bf16.gmra.mxu2 %v2060_v62 }
 0x15e   : > { %2403 = vmatmul.bf16.gmra.mxu3 %v2062_v63 }
 0x160   : > { %v1889_v59 = vpop.f32.mrf.mxu2  ;;  %v1825_v54 = vpop.f32.mrf.mxu0 }
 0x161   : > { %v1922_v34 = vpop.f32.mrf.mxu3  ;;  %v1890_v2 = vadd.f32 %v1889_v59, %v1857_v60  ;;  %v1858_v6 = vpop.f32.mrf.mxu1 }
 0x162   : > { %v1859_v10 = vadd.f32 %v1858_v6, %v1825_v54 }
 0x163   : > { %v1923_v17 = vadd.f32 %v1922_v34, %v1890_v2 }
 0x165   : > { %v4592_v5 = vadd.f32 %v1923_v17, %v4507_v16 }
 0x168   : > { %v1891_v30 = vpop.f32.mrf.mxu2  ;;  %v1828_v43 = vpop.f32.mrf.mxu0 }
 0x169   : > { %v1924_v4 = vpop.f32.mrf.mxu3  ;;  %v1892_v14 = vadd.f32 %v1891_v30, %v1859_v10  ;;  %v1861_v32 = vpop.f32.mrf.mxu1 }
 0x16a   : > { %v1862_v27 = vadd.f32 %v1861_v32, %v1828_v43 }
 0x16b   : > { %v1925_v37 = vadd.f32 %v1924_v4, %v1892_v14 }
 0x16d   : > { %v4595_v19 = vadd.f32 %v1925_v37, %v4521_v48 }
 0x170   : > { %v1894_v42 = vpop.f32.mrf.mxu2  ;;  %v1830_v46 = vpop.f32.mrf.mxu0 }
 0x171   : > { %v1927_v24 = vpop.f32.mrf.mxu3  ;;  %v1895_v49 = vadd.f32 %v1894_v42, %v1862_v27  ;;  %v1863_v45 = vpop.f32.mrf.mxu1 }
 0x172   : > { %v1864_v33 = vadd.f32 %v1863_v45, %v1830_v46  ;;  %v4612_v10 = vpop.permute.xlu0 %2441 }
 0x173   : > { %v1928_v12 = vadd.f32 %v1927_v24, %v1895_v49 }
 0x175   : > { %v4598_v16 = vadd.f32 %v1928_v12, %v4527_v21 }
 0x178   : > { %v1896_v40 = vpop.f32.mrf.mxu2  ;;  %v1833_v61 = vpop.f32.mrf.mxu0 }
 0x179   : > { %v1929_v53 = vpop.f32.mrf.mxu3  ;;  %v1897_v58 = vadd.f32 %v1896_v40, %v1864_v33  ;;  %v1866_v62 = vpop.f32.mrf.mxu1 }
 0x17a   : > { %v1867_v63 = vadd.f32 %v1866_v62, %v1833_v61 }
 0x17b   : > { %v1930_v3 = vadd.f32 %v1929_v53, %v1897_v58 }
 0x17d   : > { %v4601_v48 = vadd.f32 %v1930_v3, %v4541_v39 }
 0x17e   : > { %v4622_v46 = vpop.permute.xlu0 %2446 }
 0x180   : > { %v1899_v18 = vpop.f32.mrf.mxu2  ;;  %v1835_v8 = vpop.f32.mrf.mxu0 }
 0x181   : > { %v1932_v44 = vpop.f32.mrf.mxu3  ;;  %v1900_v35 = vadd.f32 %v1899_v18, %v1867_v63  ;;  %v1868_v22 = vpop.f32.mrf.mxu1 }
 0x182   : > { %v1869_v52 = vadd.f32 %v1868_v22, %v1835_v8  ;;  %v4637_v18 = vpop.permute.xlu1 %2451 }
 0x183   : > { %v1933_v28 = vadd.f32 %v1932_v44, %v1900_v35 }
 0x185   : > { %v4604_v21 = vadd.f32 %v1933_v28, %v4547_v29 }
 0x188   : > { %v1901_v25 = vpop.f32.mrf.mxu2  ;;  %v1838_v1 = vpop.f32.mrf.mxu0 }
 0x189   : > { %v1934_v55 = vpop.f32.mrf.mxu3  ;;  %v1902_v57 = vadd.f32 %v1901_v25, %v1869_v52  ;;  %v1871_v13 = vpop.f32.mrf.mxu1 }
 0x18a   : > { %v1872_v50 = vadd.f32 %v1871_v13, %v1838_v1 }
 0x18b   : > { %v1935_v0 = vadd.f32 %v1934_v55, %v1902_v57 }
 0x18d   : > { %v4607_v39 = vadd.f32 %v1935_v0, %v4558_v47 }
 0x190   : > { %v1904_v20 = vpop.f32.mrf.mxu2  ;;  %v1840_v38 = vpop.f32.mrf.mxu0 }
 0x191   : > { %v1937_v7 = vpop.f32.mrf.mxu3  ;;  %v1905_v11 = vadd.f32 %v1904_v20, %v1872_v50  ;;  %v1873_v36 = vpop.f32.mrf.mxu1 }
 0x193   : > { %v1938_v41 = vadd.f32 %v1937_v7, %v1905_v11  ;;  %v4648_v11 = vpop.permute.xlu1 %2456 }
 0x195   : > { %v4610_v23 = vadd.f32 %v1938_v41, %v4563_v26  ;;  %v4618_v26 = vld [vmem:[%s4728_s2] ss:$0 sm:$0xff] }
 0x198   : > { %v1906_v29 = vpop.f32.mrf.mxu2  ;;  %v2285_v60 = vpop.f32.mrf.mxu0 }
 0x199   : > { %v1939_v56 = vpop.f32.mrf.mxu3  ;;  %v2318_v15 = vpop.f32.mrf.mxu1 }
 0x19a   : > { %v2319_v31 = vadd.f32 %v2318_v15, %v2285_v60 }
 0x1a0   : > { %v2351_v59 = vpop.f32.mrf.mxu2  ;;  %v2287_v54 = vpop.f32.mrf.mxu0 }
 0x1a1   : > { %v2384_v34 = vpop.f32.mrf.mxu3  ;;  %v2352_v2 = vadd.f32 %v2351_v59, %v2319_v31  ;;  %v2320_v47 = vpop.f32.mrf.mxu1 }
 0x1a2   : > { %v2321_v30 = vadd.f32 %v2320_v47, %v2287_v54 }
 0x1a3   : > { %v2385_v6 = vadd.f32 %v2384_v34, %v2352_v2 }
 0x1a5   : > { %v2408_v17 = vadd.f32 %v2385_v6, %v4580_v9 }
 0x1a7   : > { %v2421_v37 = vadd.f32 %v4618_v26, %v2408_v17 }
 0x1a8   : > { %v2353_v4 = vpop.f32.mrf.mxu2  ;;  %v2290_v32 = vpop.f32.mrf.mxu0 }
 0x1a9   : > { %v2386_v14 = vpop.f32.mrf.mxu3  ;;  %v2354_v43 = vadd.f32 %v2353_v4, %v2321_v30  ;;  %v2323_v27 = vpop.f32.mrf.mxu1  ;;  %v4625_v9 = vmul.f32 %v4612_v10, %v2421_v37 }
 0x1aa   : > { %v2324_v49 = vadd.f32 %v2323_v27, %v2290_v32 }
 0x1ab   : > { %v2387_v42 = vadd.f32 %v2386_v14, %v2354_v43  ;;  %v2507_v62 = vmul.f32 %v4625_v9, %v4625_v9 }
 0x1ad   : > { %v2409_v24 = vadd.f32 %v2387_v42, %v4586_v51 }
 0x1af   : > { %v2422_v45 = vadd.f32 %v4618_v26, %v2409_v24 }
 0x1b0   : > { %v2356_v33 = vpop.f32.mrf.mxu2  ;;  %v2292_v58 = vpop.f32.mrf.mxu0 }
 0x1b1   : > { %v2389_v12 = vpop.f32.mrf.mxu3  ;;  %v4629_v40 = vmul.f32 %v4622_v46, %v2422_v45  ;;  %v2357_v53 = vadd.f32 %v2356_v33, %v2324_v49  ;;  %v2325_v61 = vpop.f32.mrf.mxu1 }
 0x1b2   : > { %v2326_v8 = vadd.f32 %v2325_v61, %v2292_v58 }
 0x1b3   : > { %v2493_v51 = vadd.f32 %v4629_v40, %v4625_v9  ;;  %v2508_v63 = vmul.f32 %v4629_v40, %v4629_v40  ;;  %v2390_v3 = vadd.f32 %v2389_v12, %v2357_v53 }
 0x1b5   : > { %v2516_v44 = vadd.f32 %v2508_v63, %v2507_v62  ;;  %v2410_v35 = vadd.f32 %v2390_v3, %v4592_v5 }
 0x1b7   : > { %v2423_v22 = vadd.f32 %v4618_v26, %v2410_v35 }
 0x1b8   : > { %v2358_v52 = vpop.f32.mrf.mxu2  ;;  %v2295_v57 = vpop.f32.mrf.mxu0 }
 0x1b9   : > { %v2391_v28 = vpop.f32.mrf.mxu3  ;;  %v4642_v25 = vmul.f32 %v4637_v18, %v2423_v22  ;;  %v2359_v55 = vadd.f32 %v2358_v52, %v2326_v8  ;;  %v2328_v1 = vpop.f32.mrf.mxu1 }
 0x1ba   : > { %v2329_v7 = vadd.f32 %v2328_v1, %v2295_v57  ;;  %v4678_v8 = vpop.permute.xlu0 %2471 }
 0x1bb   : > { %v2494_v13 = vadd.f32 %v2493_v51, %v4642_v25  ;;  %v2509_v50 = vmul.f32 %v4642_v25, %v4642_v25  ;;  %v2392_v0 = vadd.f32 %v2391_v28, %v2359_v55 }
 0x1bd   : > { %v2517_v20 = vadd.f32 %v2516_v44, %v2509_v50  ;;  %v2411_v5 = vadd.f32 %v2392_v0, %v4595_v19  ;;  %v4657_v19 = vpop.permute.xlu2 %2461 }
 0x1bf   : > { %v2424_v38 = vadd.f32 %v4618_v26, %v2411_v5 }
 0x1c0   : > { %v2361_v36 = vpop.f32.mrf.mxu2  ;;  %v2297_v60 = vpop.f32.mrf.mxu0 }
 0x1c1   : > { %v2394_v41 = vpop.f32.mrf.mxu3  ;;  %v4652_v29 = vmul.f32 %v4648_v11, %v2424_v38  ;;  %v2362_v56 = vadd.f32 %v2361_v36, %v2329_v7  ;;  %v2330_v15 = vpop.f32.mrf.mxu1 }
 0x1c2   : > { %v2331_v47 = vadd.f32 %v2330_v15, %v2297_v60  ;;  %v4688_v36 = vpop.permute.xlu1 %2476 }
 0x1c3   : > { %v2495_v31 = vadd.f32 %v2494_v13, %v4652_v29  ;;  %v2510_v59 = vmul.f32 %v4652_v29, %v4652_v29  ;;  %v2395_v34 = vadd.f32 %v2394_v41, %v2362_v56 }
 0x1c5   : > { %v2518_v2 = vadd.f32 %v2517_v20, %v2510_v59  ;;  %v2412_v54 = vadd.f32 %v2395_v34, %v4598_v16  ;;  %v4668_v45 = vpop.permute.xlu2 %2466 }
 0x1c7   : > { %v2425_v6 = vadd.f32 %v4618_v26, %v2412_v54 }
 0x1c8   : > { %v2363_v17 = vpop.f32.mrf.mxu2  ;;  %v2300_v43 = vpop.f32.mrf.mxu0 }
 0x1c9   : > { %v2396_v30 = vpop.f32.mrf.mxu3  ;;  %v4662_v4 = vmul.f32 %v4657_v19, %v2425_v6  ;;  %v2364_v14 = vadd.f32 %v2363_v17, %v2331_v47  ;;  %v2333_v32 = vpop.f32.mrf.mxu1 }
 0x1ca   : > { %v2334_v49 = vadd.f32 %v2333_v32, %v2300_v43 }
 0x1cb   : > { %v2496_v27 = vadd.f32 %v2495_v31, %v4662_v4  ;;  %v2511_v37 = vmul.f32 %v4662_v4, %v4662_v4  ;;  %v2397_v42 = vadd.f32 %v2396_v30, %v2364_v14 }
 0x1cd   : > { %v2519_v24 = vadd.f32 %v2518_v2, %v2511_v37  ;;  %v2413_v16 = vadd.f32 %v2397_v42, %v4601_v48  ;;  %v4698_v17 = vpop.permute.xlu2 %2481 }
 0x1cf   : > { %v2426_v33 = vadd.f32 %v4618_v26, %v2413_v16 }
 0x1d0   : > { %v2366_v12 = vpop.f32.mrf.mxu2  ;;  %v2302_v62 = vpop.f32.mrf.mxu0 }
 0x1d1   : > { %v2399_v53 = vpop.f32.mrf.mxu3  ;;  %v4672_v58 = vmul.f32 %v4668_v45, %v2426_v33  ;;  %v2367_v61 = vadd.f32 %v2366_v12, %v2334_v49  ;;  %v2335_v51 = vpop.f32.mrf.mxu1 }
 0x1d2   : > { %v2336_v52 = vadd.f32 %v2335_v51, %v2302_v62 }
 0x1d3   : > { %v2497_v63 = vadd.f32 %v2496_v27, %v4672_v58  ;;  %v2512_v3 = vmul.f32 %v4672_v58, %v4672_v58  ;;  %v2400_v44 = vadd.f32 %v2399_v53, %v2367_v61 }
 0x1d5   : > { %v2520_v48 = vadd.f32 %v2519_v24, %v2512_v3  ;;  %v2414_v35 = vadd.f32 %v2400_v44, %v4604_v21 }
 0x1d7   : > { %v2427_v22 = vadd.f32 %v4618_v26, %v2414_v35 }
 0x1d8   : > { %v2368_v28 = vpop.f32.mrf.mxu2  ;;  %v2305_v13 = vpop.f32.mrf.mxu0 }
 0x1d9   : > { %v2401_v55 = vpop.f32.mrf.mxu3  ;;  %v4682_v57 = vmul.f32 %v4678_v8, %v2427_v22  ;;  %v2369_v1 = vadd.f32 %v2368_v28, %v2336_v52  ;;  %v2338_v50 = vpop.f32.mrf.mxu1 }
 0x1da   : > { %v2339_v38 = vadd.f32 %v2338_v50, %v2305_v13 }
 0x1db   : > { %v2498_v0 = vadd.f32 %v2497_v63, %v4682_v57  ;;  %v2513_v20 = vmul.f32 %v4682_v57, %v4682_v57  ;;  %v2402_v5 = vadd.f32 %v2401_v55, %v2369_v1 }
 0x1dd   : > { %v2521_v21 = vadd.f32 %v2520_v48, %v2513_v20  ;;  %v2415_v7 = vadd.f32 %v2402_v5, %v4607_v39 }
 0x1df   : > { %v2428_v41 = vadd.f32 %v4618_v26, %v2415_v7 }
 0x1e0   : > { %v2371_v56 = vpop.f32.mrf.mxu2  ;;  %v2307_v59 = vpop.f32.mrf.mxu0 }
 0x1e1   : > { %v2404_v60 = vpop.f32.mrf.mxu3  ;;  %v4692_v15 = vmul.f32 %v4688_v36, %v2428_v41  ;;  %v2372_v31 = vadd.f32 %v2371_v56, %v2339_v38  ;;  %v2340_v34 = vpop.f32.mrf.mxu1 }
 0x1e3   : > { %v2499_v2 = vadd.f32 %v2498_v0, %v4692_v15  ;;  %v2514_v54 = vmul.f32 %v4692_v15, %v4692_v15  ;;  %v2405_v47 = vadd.f32 %v2404_v60, %v2372_v31 }
 0x1e5   : > { %v2522_v39 = vadd.f32 %v2521_v21, %v2514_v54  ;;  %v2416_v6 = vadd.f32 %v2405_v47, %v4610_v23 }
 0x1e7   : > { %v2429_v30 = vadd.f32 %v4618_v26, %v2416_v6 }
 0x1e8   : > { %v2373_v14 = vpop.f32.mrf.mxu2 }
 0x1e9   : > { %v2406_v43 = vpop.f32.mrf.mxu3  ;;  %v2492_v32 = vmul.f32 %v4698_v17, %v2429_v30 }
 0x1eb   : > { %v2500_v27 = vadd.f32 %v2499_v2, %v2492_v32  ;;  %v2515_v37 = vmul.f32 %v2492_v32, %v2492_v32 }
 0x1ed   : > { %v2501_v42 = vrot.slane %v2500_v27, 4  ;;  %v2523_v24 = vadd.f32 %v2522_v39, %v2515_v37 }
 0x1ef   : > { %v2502_v16 = vadd.f32 %v2501_v42, %v2500_v27  ;;  %v2524_v49 = vrot.slane %v2523_v24, 4 }
 0x1f1   : > { %v2503_v33 = vrot.slane %v2502_v16, 2  ;;  %v2525_v12 = vadd.f32 %v2524_v49, %v2523_v24 }
 0x1f3   : > { %v2504_v53 = vadd.f32 %v2503_v33, %v2502_v16  ;;  %v2526_v61 = vrot.slane %v2525_v12, 2 }
 0x1f5   : > { %v2505_v62 = vrot.slane %v2504_v53, 1  ;;  %v2527_v23 = vadd.f32 %v2526_v61, %v2525_v12 }
 0x1f7   : > { %v2506_v51 = vadd.f32 %v2505_v62, %v2504_v53  ;;  %v2528_v63 = vrot.slane %v2527_v23, 1 }
 0x1f9   : > { %v2529_v3 = vadd.f32 %v2528_v63, %v2527_v23  ;;  %v2530_v26 = vmul.f32 0.015625, %v2506_v51 }
 0x1fb   : > { %v2531_v44 = vmul.f32 0.015625, %v2529_v3  ;;  %v2532_v48 = vmul.f32 %v2530_v26, %v2530_v26  ;;  %v2535_v35 = vsub.f32 %v4625_v9, %v2530_v26  ;;  %v2536_v22 = vsub.f32 %v4629_v40, %v2530_v26 }
 0x1fc   : > { %v2537_v52 = vsub.f32 %v4642_v25, %v2530_v26  ;;  %v2538_v28 = vsub.f32 %v4652_v29, %v2530_v26  ;;  %v2539_v55 = vsub.f32 %v4662_v4, %v2530_v26  ;;  %v2540_v1 = vsub.f32 %v4672_v58, %v2530_v26 }
 0x1fd   : > { %v2533_v13 = vsub.f32 %v2531_v44, %v2532_v48  ;;  %v2541_v50 = vsub.f32 %v4682_v57, %v2530_v26  ;;  %v2542_v0 = vsub.f32 %v4692_v15, %v2530_v26  ;;  %v2543_v20 = vsub.f32 %v2492_v32, %v2530_v26 }
 0x1ff   : > { %v2534_v5 = vmax.f32 %v2533_v13, 0.0 }
 0x201   : > { %v2544_v21 = vadd.f32 1e-05, %v2534_v5 }
 0x203   : > { %3703 = vrsqrt.f32 %v2544_v21  ;;  %vm2551_vm3 = vweird.f32 %v2544_v21 }
 0x209   : > { %v3704_v9 = vpop.eup %3703 }
 0x20a   : > { %v2546_v40 = vmul.f32 %v3704_v9, %v2544_v21  ;;  %vm2552_vm2 = vweird.f32 %v3704_v9 }
 0x20b   : > { %vm2553_vm4 = vmor %vm2551_vm3, %vm2552_vm2 }
 0x20c   : > { %v2547_v7 = vmul.f32 %v3704_v9, %v2546_v40 }
 0x20e   : > { %v2548_v25 = vmul.f32 0.5, %v2547_v7 }
 0x210   : > { %v2549_v38 = vsub.f32 1.5, %v2548_v25 }
 0x212   : > { %v2550_v29 = vmul.f32 %v3704_v9, %v2549_v38 }
 0x214   : > { %v2554_v4 = vsel %vm2553_vm4, %v3704_v9, %v2550_v29 }
 0x215   : > { %v2555_v58 = vmul.f32 %v2554_v4, %v2535_v35  ;;  %v2556_v41 = vmul.f32 %v2554_v4, %v2536_v22  ;;  %v2557_v57 = vmul.f32 %v2554_v4, %v2537_v52  ;;  %v2558_v56 = vmul.f32 %v2554_v4, %v2538_v28 }
 0x216   : > { %v2559_v60 = vmul.f32 %v2554_v4, %v2539_v55  ;;  %v2560_v15 = vmul.f32 %v2554_v4, %v2540_v1  ;;  %v2561_v31 = vmul.f32 %v2554_v4, %v2541_v50  ;;  %v2562_v59 = vmul.f32 %v2554_v4, %v2542_v0 }
 0x217   : > { %v2563_v34 = vmul.f32 %v2554_v4, %v2543_v20  ;;  %v2564_v2 = vmul.f32 0.2, %v2555_v58  ;;  %v2565_v54 = vmul.f32 0.2, %v2556_v41  ;;  %v2566_v47 = vmul.f32 0.2, %v2557_v57 }
 0x218   : > { %v2567_v39 = vmul.f32 0.2, %v2558_v56  ;;  %v2568_v6 = vmul.f32 0.2, %v2559_v60  ;;  %v2569_v30 = vmul.f32 0.2, %v2560_v15 }
 0x219   : > { %v2570_v14 = vmul.f32 0.2, %v2561_v31  ;;  %v2571_v43 = vmul.f32 0.2, %v2562_v59  ;;  %v2572_v32 = vmul.f32 0.2, %v2563_v34  ;;  %v2573_v27 = vmax.f32 %v2555_v58, %v2564_v2 }
 0x21a   : > { %v2574_v37 = vmax.f32 %v2556_v41, %v2565_v54  ;;  %v2575_v42 = vmax.f32 %v2557_v57, %v2566_v47  ;;  %v2576_v24 = vmax.f32 %v2558_v56, %v2567_v39  ;;  %v2577_v16 = vmax.f32 %v2559_v60, %v2568_v6 }
 0x21b   : > { %v2578_v49 = vmax.f32 %v2560_v15, %v2569_v30  ;;  %v2579_v33 = vmax.f32 %v2561_v31, %v2570_v14  ;;  %v2580_v12 = vmax.f32 %v2562_v59, %v2571_v43  ;;  %v2581_v53 = vmax.f32 %v2563_v34, %v2572_v32 }
 0x21c   : > { %v2582_v61 = vmul.f32 %v2573_v27, %v4612_v10  ;;  %v2583_v62 = vmul.f32 %v2574_v37, %v4622_v46  ;;  %v2584_v23 = vmul.f32 %v2575_v42, %v4637_v18  ;;  %v2585_v51 = vmul.f32 %v2576_v24, %v4648_v11 }
 0x21d   : > { %v2586_v63 = vmul.f32 %v2577_v16, %v4657_v19  ;;  %v2587_v3 = vmul.f32 %v2578_v49, %v4668_v45  ;;  %v2588_v26 = vmul.f32 %v2579_v33, %v4678_v8  ;;  %v2589_v44 = vmul.f32 %v2580_v12, %v4688_v36 }
 0x21e   : > { %v2590_v10 = vmul.f32 %v2581_v53, %v4698_v17  ;;  %v3668_v48 = vpack.c.bf16 %v2583_v62, %v2582_v61  ;;  %v3673_v46 = vpack.c.bf16 %v2585_v51, %v2584_v23 }
 0x21f   : > { %v3678_v35 = vpack.c.bf16 %v2587_v3, %v2586_v63  ;;  %v3683_v18 = vpack.c.bf16 %v2589_v44, %v2588_v26 }
 0x220   : > { %v2599_v22 = vpack.c.bf16 %v2590_v10, %v2590_v10  ;;  %3669 = vst [vmem:[%s197_s21] sm:$0xff] %v3668_v48  }
 0x221   : > { %3685 = vst [vmem:[%s197_s21 + $0x8] sm:$0xff] %v3673_v46  }
 0x222   : > { %3686 = vst [vmem:[%s197_s21 + $0x10] sm:$0xff] %v3678_v35  }
 0x223   : > { %3687 = vst [vmem:[%s197_s21 + $0x18] sm:$0xff] %v3683_v18  }
 0x224   : > { %2608 = vst [vmem:[%s197_s21 + $0x20] sm:$0xf] %v2599_v22 }
 0x225 PF: > { %s14_s15 = sadd.s32 1, %s3711_s15  }
 0x226   : > { %p11_p4 = scmp.ge.s32.totalorder %s14_s15, 4  }
 0x228   :  { %13 = sbr.rel (!%p11_p4) target bundleno = 1 (0x1), region = 69 }

// kernel: discriminator_forward.9
= control target key start
LH: loop header
LB: loop body
LE: loop exit
PB: predicated region body
PF: predicated region fallthrough
CT: control target
= control target key end

     0   :  { %vm22_vm0 = vcmask 1045504   ;;  %vm70_vm1 = vcmask 1041409   ;;  %vm76_vm2 = vcmask 1041408   ;;  %vm87_vm3 = vcmask 1024   ;;  %s129_s0 = inlined_call_operand.vmem [shape: bf16[2,6,256], index: 0, kind: input, shape index: {}]   ;;  %s130_s2 = inlined_call_operand.<no memory space> [shape: f32[1,1], index: 2, kind: input, shape index: {}]   ;;  %s131_s1 = inlined_call_operand.vmem [shape: f32[1,256], index: 1, kind: input, shape index: {}]   ;;  %s132_s3 = inlined_call_operand.vmem [shape: f32[2,1], index: 3, kind: output, shape index: {}]  }
   0x1   :  { %v16_v0 = vld [vmem:[%s129_s0] sm:$0x77]  ;;  %v17_v1 = vld [vmem:[%s129_s0 + $0x8] sm:$0x77]  ;;  %v8_v2 = vstv %s130_s2 }
   0x2   :  { %v18_v3 = vunpack.c.l.bf16 %v16_v0  ;;  %v19_v4 = vunpack.c.h.bf16 %v16_v0  ;;  %v20_v5 = vunpack.c.l.bf16 %v17_v1  ;;  %v21_v6 = vunpack.c.h.bf16 %v17_v1  ;;  %9 = vst [vmem:[#allocation2] sm:$0x1] %v8_v2  ;;  %v55_v27 = vld [vmem:[%s131_s1] sm:$0x3] }
   0x3   :  { %v57_v32 = vperm.slane %v55_v27, 0  ;;  %v58_v33 = vperm.slane %v55_v27, 1 }
   0x4   :  { %v23_v7 = vsel %vm22_vm0, %v18_v3, 0.0  ;;  %v30_v8 = vsel %vm22_vm0, %v19_v4, 0.0  ;;  %v37_v9 = vsel %vm22_vm0, %v20_v5, 0.0  ;;  %v44_v10 = vsel %vm22_vm0, %v21_v6, 0.0 }
   0x5   :  { %v24_v11 = vrot.slane %v23_v7, 4  ;;  %v31_v12 = vrot.slane %v30_v8, 4  ;;  %v38_v13 = vrot.slane %v37_v9, 4  ;;  %v45_v14 = vrot.slane %v44_v10, 4 }
   0x7   :  { %v25_v15 = vadd.f32 %v24_v11, %v23_v7  ;;  %v32_v16 = vadd.f32 %v31_v12, %v30_v8  ;;  %v39_v17 = vadd.f32 %v38_v13, %v37_v9  ;;  %v46_v18 = vadd.f32 %v45_v14, %v44_v10 }
   0x9   :  { %v26_v19 = vrot.slane %v25_v15, 2  ;;  %v33_v20 = vrot.slane %v32_v16, 2  ;;  %v40_v21 = vrot.slane %v39_v17, 2  ;;  %v47_v22 = vrot.slane %v46_v18, 2  ;;  %v93_v53 = vld [vmem:[#allocation2] ss:$0 sm:$0xff] }
   0xb   :  { %v27_v23 = vadd.f32 %v26_v19, %v25_v15  ;;  %v34_v24 = vadd.f32 %v33_v20, %v32_v16  ;;  %v41_v25 = vadd.f32 %v40_v21, %v39_v17  ;;  %v48_v26 = vadd.f32 %v47_v22, %v46_v18 }
   0xd   :  { %v28_v28 = vrot.slane %v27_v23, 1  ;;  %v35_v29 = vrot.slane %v34_v24, 1  ;;  %v42_v30 = vrot.slane %v41_v25, 1  ;;  %v49_v31 = vrot.slane %v48_v26, 1 }
   0xf   :  { %v29_v34 = vadd.f32 %v28_v28, %v27_v23  ;;  %v36_v35 = vadd.f32 %v35_v29, %v34_v24  ;;  %v43_v36 = vadd.f32 %v42_v30, %v41_v25  ;;  %v50_v37 = vadd.f32 %v49_v31, %v48_v26 }
  0x11   :  { %v51_v38 = vmul.f32 0.25, %v29_v34  ;;  %v52_v39 = vmul.f32 0.25, %v36_v35  ;;  %v53_v40 = vmul.f32 0.25, %v43_v36  ;;  %v54_v41 = vmul.f32 0.25, %v50_v37 }
  0x13   :  { %v61_v42 = vmul.f32 %v57_v32, %v51_v38  ;;  %v62_v43 = vmul.f32 %v58_v33, %v52_v39  ;;  %v63_v44 = vmul.f32 %v57_v32, %v53_v40  ;;  %v64_v45 = vmul.f32 %v58_v33, %v54_v41 }
  0x15   :  { %v69_v46 = vrot.slane %v63_v44, 7  ;;  %v72_v47 = vrot.slane %v64_v45, 7 }
  0x17   :  { %v71_v48 = vsel %vm70_vm1, %v69_v46, %v61_v42  ;;  %v73_v49 = vsel %vm70_vm1, %v72_v47, %v62_v43 }
  0x18   :  { %v77_v50 = vsel %vm76_vm2, %v71_v48, 0.0  ;;  %v78_v51 = vsel %vm76_vm2, %v73_v49, 0.0 }
  0x19   :  { %v79_v52 = vadd.f32 %v78_v51, %v77_v50 }
  0x1b   :  { %80 = vadd.xlane.f32.xlu0 %v79_v52 }
  0x8e   :  { %v81_v54 = vpop.xlane.xlu0 %80 }
  0x8f   :  { %v86_v55 = vadd.f32 %v93_v53, %v81_v54 }
  0x91   :  { %88 = vst.msk [vmem:[%s132_s3] sm:$0x3] %vm87_vm3, %v86_v55 }

// kernel: discriminator_forward.7
= control target key start
LH: loop header
LB: loop body
LE: loop exit
PB: predicated region body
PF: predicated region fallthrough
CT: control target
= control target key end

     0   :  { %s2869_s15 = smov 0   ;;  %s3410_s0 = inlined_call_operand.vmem [shape: bf16[2,30,512], index: 0, kind: input, shape index: {}]   ;;  %s3411_s1 = inlined_call_operand.vmem [shape: bf16[4,512,128], index: 1, kind: input, shape index: {}]   ;;  %s3412_s2 = inlined_call_operand.vmem [shape: f32[1,128], index: 2, kind: input, shape index: {}]   ;;  %s3413_s3 = inlined_call_operand.vmem [shape: f32[20,1], index: 3, kind: input, shape index: {}]   ;;  %s3414_s4 = inlined_call_operand.vmem [shape: bf16[2,20,128], index: 4, kind: output, shape index: {}]  }
   0x1 LB: > { %s1932_s16 = sadd.s32 4294967295, %s2841_s15   ;;  %p1936_p0 = scmp.ge.s32.totalorder %s2841_s15, 1  ;;  %s2841_s15 = sphi %s2869_s15, %s14_s15  }
   0x2   : > { %p162_p1 = scmp.lt.s32.totalorder %s2841_s15, 3 }
   0x4   : > { %p163_p2 = pnand %p1936_p0, %p162_p1 }
   0x5   : > { %p188_p3 = scmp.lt.s32.totalorder (!%p163_p2), %s1932_s16, 1 }
   0x6   : > { %166 = sbr.rel (%p163_p2) target bundleno = 354 (0x162), region = 36 }
   0xb   : > { %v2722_v0 = vld [vmem:[%s3411_s1 + $0x138] sm:$0xff]  ;;  %v2721_v4 = vld [vmem:[%s3411_s1 + $0x130] sm:$0xff]  ;;  %s3416_s16 = smov (!%p188_p3, %s1932_s16), 1  ;;  %v2720_v8 = vld [vmem:[%s3411_s1 + $0x128] sm:$0xff]  ;;  %vm361_vm0 = vsmask.f32 7424 }
   0xc   : > { %v2730_v1 = vld [vmem:[%s3411_s1 + $0x178] sm:$0xff]  ;;  %622 = vmatpush.bf16.msra.mxu0 %v2722_v0  ;;  %v2729_v5 = vld [vmem:[%s3411_s1 + $0x170] sm:$0xff]  ;;  %s2678_s7 = sshll.u32 %s3416_s16, 6  ;;  %v2728_v9 = vld [vmem:[%s3411_s1 + $0x168] sm:$0xff]  ;;  %vm1081_vm1 = vsmask.f32 5376 }
   0xd   : > { %v2738_v2 = vld [vmem:[%s3411_s1 + $0x1b8] sm:$0xff]  ;;  %640 = vmatpush.bf16.msra.mxu1 %v2730_v1  ;;  %v2737_v6 = vld [vmem:[%s3411_s1 + $0x1b0] sm:$0xff]  ;;  %v2736_v10 = vld [vmem:[%s3411_s1 + $0x1a8] sm:$0xff]  ;;  %s2919_s20 = scalar_lea.vmem %s3410_s0, %s2678_s7  ;;  %vm1502_vm2 = vcmask 1044480   ;;  %vm1819_vm3 = vcmask 1043456   ;;  %s2820_s30 = smul.u32 12, %s3416_s16 }
   0xe   : > { %v2746_v3 = vld [vmem:[%s3411_s1 + $0x1f8] sm:$0xff]  ;;  %658 = vmatpush.bf16.msra.mxu2 %v2738_v2  ;;  %v2745_v7 = vld [vmem:[%s3411_s1 + $0x1f0] sm:$0xff]  ;;  %v2744_v11 = vld [vmem:[%s3411_s1 + $0x1e8] sm:$0xff] }
   0xf   : > { %676 = vmatpush.bf16.msra.mxu3 %v2746_v3  ;;  %v2719_v12 = vld [vmem:[%s3411_s1 + $0x120] sm:$0xff]  ;;  %v2681_v17 = vld [vmem:[%s2919_s20 + $0xc] sm:$0xf0]  ;;  %v2008_v20 = vld [vmem:[%s2919_s20 + $0x10] sm:$0xf0]  ;;  %s197_s7 = scalar_lea.vmem %s3414_s4, %s2820_s30 }
  0x10   : > { %623 = vmatpush.bf16.msra.mxu0 %v2721_v4  ;;  %v2727_v13 = vld [vmem:[%s3411_s1 + $0x160] sm:$0xff]  ;;  %v2014_v21 = vld [vmem:[%s2919_s20 + $0x8] sm:$0xf]  ;;  %v2682_v22 = vld [vmem:[%s2919_s20 + $0x14] sm:$0xf0] }
  0x11   : > { %641 = vmatpush.bf16.msra.mxu1 %v2729_v5  ;;  %v2735_v14 = vld [vmem:[%s3411_s1 + $0x1a0] sm:$0xff]  ;;  %v2718_v23 = vld [vmem:[%s3411_s1 + $0x118] sm:$0xff]  ;;  %v269_v25 = vld [vmem:[%s2919_s20 + $0x28] sm:$0x77]  ;;  %v2951_v30 = vor.u32 %v2682_v22, %v2014_v21 }
  0x12   : > { %659 = vmatpush.bf16.msra.mxu2 %v2737_v6  ;;  %v2743_v15 = vld [vmem:[%s3411_s1 + $0x1e0] sm:$0xff]  ;;  %v2726_v26 = vld [vmem:[%s3411_s1 + $0x158] sm:$0xff]  ;;  %v2680_v31 = vld [vmem:[%s2919_s20 + $0xc] sm:$0xf]  ;;  %v351_v35 = vunpack.c.l.b16 %v269_v25  ;;  %v352_v37 = vunpack.c.h.b16 %v269_v25 }
  0x13   : > { %677 = vmatpush.bf16.msra.mxu3 %v2745_v7  ;;  %v2006_v16 = vld [vmem:[%s2919_s20] sm:$0xf]  ;;  %v2679_v19 = vld [vmem:[%s2919_s20 + $0x4] sm:$0xf]  ;;  %v2016_v32 = vld [vmem:[%s2919_s20 + $0x18] sm:$0xf0] }
  0x14   : > { %624 = vmatpush.bf16.msra.mxu0 %v2720_v8  ;;  %v268_v18 = vld [vmem:[%s2919_s20 + $0x20] sm:$0x77]  ;;  %v2943_v24 = vor.u32 %v2681_v17, %v2006_v16  ;;  %v2949_v29 = vor.u32 %v2679_v19, %v2008_v20  ;;  %v2734_v33 = vld [vmem:[%s3411_s1 + $0x198] sm:$0xff]  ;;  %v2962_v38 = vor.u32 %v2680_v31, %v2016_v32  ;;  %v2717_v39 = vld [vmem:[%s3411_s1 + $0x110] sm:$0xff]  ;;  %v389_v44 = vshll.u32 %v2951_v30, 16 }
  0x15   : > { %642 = vmatpush.bf16.msra.mxu1 %v2728_v9  ;;  %v349_v27 = vunpack.c.l.b16 %v268_v18  ;;  %v350_v28 = vunpack.c.h.b16 %v268_v18  ;;  %v2742_v34 = vld [vmem:[%s3411_s1 + $0x1d8] sm:$0xff]  ;;  %v2725_v40 = vld [vmem:[%s3411_s1 + $0x150] sm:$0xff]  ;;  %v2982_v47 = vpack.c.b16 %v351_v35, %v351_v35  ;;  %v2984_v48 = vpack.c.b16 %v352_v37, %v352_v37  ;;  %v2716_v50 = vld [vmem:[%s3411_s1 + $0x108] sm:$0xff] }
  0x16   : > { %660 = vmatpush.bf16.msra.mxu2 %v2736_v10  ;;  %v365_v36 = vshll.u32 %v2943_v24, 16  ;;  %v377_v43 = vshll.u32 %v2949_v29, 16  ;;  %v2733_v45 = vld [vmem:[%s3411_s1 + $0x190] sm:$0xff]  ;;  %v401_v49 = vshll.u32 %v2962_v38, 16  ;;  %v2724_v51 = vld [vmem:[%s3411_s1 + $0x148] sm:$0xff]  ;;  %v363_v52 = vshrl.u32 %v2943_v24, 16 }
  0x17   : > { %678 = vmatpush.bf16.msra.mxu3 %v2744_v11  ;;  %v2970_v41 = vpack.c.b16 %v349_v27, %v349_v27  ;;  %v2972_v42 = vpack.c.b16 %v350_v28, %v350_v28  ;;  %v2741_v46 = vld [vmem:[%s3411_s1 + $0x1d0] sm:$0xff]  ;;  %v375_v54 = vshrl.u32 %v2949_v29, 16  ;;  %v387_v55 = vshrl.u32 %v2951_v30, 16  ;;  %v2732_v60 = vld [vmem:[%s3411_s1 + $0x188] sm:$0xff]  ;;  %v2715_v2 = vld [vmem:[%s3411_s1 + $0x100] sm:$0xff] }
  0x18   : > { %625 = vmatpush.bf16.msra.mxu0 %v2719_v12  ;;  %v367_v53 = vrot.slane %v365_v36, 1  ;;  %v379_v57 = vrot.slane %v377_v43, 1  ;;  %v391_v59 = vrot.slane %v389_v44, 1  ;;  %v2740_v61 = vld [vmem:[%s3411_s1 + $0x1c8] sm:$0xff]  ;;  %v394_v62 = vshll.u32 %v2982_v47, 16  ;;  %v2723_v3 = vld [vmem:[%s3411_s1 + $0x140] sm:$0xff] }
  0x19   : > { %643 = vmatpush.bf16.msra.mxu1 %v2727_v13  ;;  %v370_v56 = vshll.u32 %v2970_v41, 16  ;;  %v382_v58 = vshll.u32 %v2972_v42, 16  ;;  %v399_v63 = vshrl.u32 %v2962_v38, 16  ;;  %v403_v0 = vrot.slane %v401_v49, 1  ;;  %v2731_v8 = vld [vmem:[%s3411_s1 + $0x180] sm:$0xff]  ;;  %v2698_v20 = vld [vmem:[%s3411_s1 + $0x78] sm:$0xff] }
  0x1a   : > { %661 = vmatpush.bf16.msra.mxu2 %v2735_v14  ;;  %v406_v1 = vshll.u32 %v2984_v48, 16  ;;  %v368_v4 = vor.u32 %v367_v53, %v363_v52  ;;  %v380_v6 = vor.u32 %v379_v57, %v375_v54  ;;  %v2739_v9 = vld [vmem:[%s3411_s1 + $0x1c0] sm:$0xff]  ;;  %v392_v10 = vor.u32 %v391_v59, %v387_v55  ;;  %v2706_v14 = vld [vmem:[%s3411_s1 + $0xb8] sm:$0xff]  ;;  %v2705_v22 = vld [vmem:[%s3411_s1 + $0xb0] sm:$0xff] }
  0x1b   : > { %679 = vmatpush.bf16.msra.mxu3 %v2743_v15  ;;  %v372_v5 = vrot.slane %v370_v56, 1  ;;  %v384_v7 = vrot.slane %v382_v58, 1  ;;  %v396_v11 = vrot.slane %v394_v62, 1  ;;  %v404_v12 = vor.u32 %v403_v0, %v399_v63  ;;  %v2690_v15 = vld [vmem:[%s3411_s1 + $0x38] sm:$0xff]  ;;  %v2697_v25 = vld [vmem:[%s3411_s1 + $0x70] sm:$0xff]  ;;  %v2704_v27 = vld [vmem:[%s3411_s1 + $0xa8] sm:$0xff] }
  0x1c   : > { %626 = vmatpush.bf16.msra.mxu0 %v2718_v23  ;;  %v408_v13 = vrot.slane %v406_v1, 1  ;;  %v2714_v21 = vld [vmem:[%s3411_s1 + $0xf8] sm:$0xff]  ;;  %v2689_v23 = vld [vmem:[%s3411_s1 + $0x30] sm:$0xff]  ;;  %v2688_v28 = vld [vmem:[%s3411_s1 + $0x28] sm:$0xff]  ;;  %v410_v35 = vshrl.u32 %v2970_v41, 16  ;;  %v413_v36 = vshrl.u32 %v2972_v42, 16 }
  0x1d   : > { %644 = vmatpush.bf16.msra.mxu1 %v2726_v26  ;;  %v373_v16 = vsel %vm361_vm0, %v368_v4, %v372_v5  ;;  %v385_v17 = vsel %vm361_vm0, %v380_v6, %v384_v7  ;;  %v397_v18 = vsel %vm361_vm0, %v392_v10, %v396_v11  ;;  %v2713_v26 = vld [vmem:[%s3411_s1 + $0xf0] sm:$0xff]  ;;  %v2696_v31 = vld [vmem:[%s3411_s1 + $0x68] sm:$0xff]  ;;  %v416_v37 = vshrl.u32 %v2982_v47, 16  ;;  %v2711_v43 = vld [vmem:[%s3411_s1 + $0xe0] sm:$0xff] }
  0x1e   : > { %662 = vmatpush.bf16.msra.mxu2 %v2734_v33  ;;  %v409_v19 = vsel %vm361_vm0, %v404_v12, %v408_v13  ;;  %v2712_v32 = vld [vmem:[%s3411_s1 + $0xe8] sm:$0xff]  ;;  %v2703_v33 = vld [vmem:[%s3411_s1 + $0xa0] sm:$0xff]  ;;  %v2702_v41 = vld [vmem:[%s3411_s1 + $0x98] sm:$0xff]  ;;  %v412_v44 = vor.u32 %v410_v35, %v372_v5 }
  0x1f   : > { %680 = vmatpush.bf16.msra.mxu3 %v2742_v34  ;;  %v2687_v34 = vld [vmem:[%s3411_s1 + $0x20] sm:$0xff]  ;;  %v2686_v42 = vld [vmem:[%s3411_s1 + $0x18] sm:$0xff]  ;;  %v2693_v52 = vld [vmem:[%s3411_s1 + $0x50] sm:$0xff] }
  0x20   : > { %627 = vmatpush.bf16.msra.mxu0 %v2717_v39  ;;  %v419_v39 = vshrl.u32 %v2984_v48, 16  ;;  %v2694_v48 = vld [vmem:[%s3411_s1 + $0x58] sm:$0xff]  ;;  %v2709_v53 = vld [vmem:[%s3411_s1 + $0xd0] sm:$0xff]  ;;  %v2700_v54 = vld [vmem:[%s3411_s1 + $0x88] sm:$0xff] }
  0x21   : > { %645 = vmatpush.bf16.msra.mxu1 %v2725_v40  ;;  %v2695_v40 = vld [vmem:[%s3411_s1 + $0x60] sm:$0xff]  ;;  %v2710_v49 = vld [vmem:[%s3411_s1 + $0xd8] sm:$0xff]  ;;  %v2684_v55 = vld [vmem:[%s3411_s1 + $0x8] sm:$0xff] }
  0x22   : > { %663 = vmatpush.bf16.msra.mxu2 %v2733_v45  ;;  %v415_v45 = vor.u32 %v413_v36, %v384_v7  ;;  %v421_v47 = vor.u32 %v419_v39, %v408_v13  ;;  %v2692_v56 = vld [vmem:[%s3411_s1 + $0x48] sm:$0xff]  ;;  %v2699_v58 = vld [vmem:[%s3411_s1 + $0x80] sm:$0xff]  ;;  %v2766_v0 = vld [vmem:[%s3411_s1 + $0x278] sm:$0xff] }
  0x23   : > { %681 = vmatpush.bf16.msra.mxu3 %v2741_v46  ;;  %v418_v46 = vor.u32 %v416_v37, %v396_v11  ;;  %v2708_v57 = vld [vmem:[%s3411_s1 + $0xc8] sm:$0xff]  ;;  %v2683_v59 = vld [vmem:[%s3411_s1] sm:$0xff]  ;;  %v2782_v1 = vld [vmem:[%s3411_s1 + $0x2f8] sm:$0xff] }
  0x24   : > { %628 = vmatpush.bf16.msra.mxu0 %v2716_v50  ;;  %v2701_v50 = vld [vmem:[%s3411_s1 + $0x90] sm:$0xff]  ;;  %v2691_v62 = vld [vmem:[%s3411_s1 + $0x40] sm:$0xff]  ;;  %v2772_v6 = vld [vmem:[%s3411_s1 + $0x2a8] sm:$0xff] }
  0x25   : > { %646 = vmatpush.bf16.msra.mxu1 %v2724_v51  ;;  %v2685_v51 = vld [vmem:[%s3411_s1 + $0x10] sm:$0xff]  ;;  %v2707_v63 = vld [vmem:[%s3411_s1 + $0xc0] sm:$0xff]  ;;  %v2756_v7 = vld [vmem:[%s3411_s1 + $0x228] sm:$0xff] }
  0x26   : > { %664 = vmatpush.bf16.msra.mxu2 %v2732_v60  ;;  %v2774_v60 = vld [vmem:[%s3411_s1 + $0x2b8] sm:$0xff]  ;;  %v2765_v4 = vld [vmem:[%s3411_s1 + $0x270] sm:$0xff]  ;;  %v2755_v10 = vld [vmem:[%s3411_s1 + $0x220] sm:$0xff] }
  0x27   : > { %682 = vmatpush.bf16.msra.mxu3 %v2740_v61  ;;  %v2758_v61 = vld [vmem:[%s3411_s1 + $0x238] sm:$0xff]  ;;  %v2781_v5 = vld [vmem:[%s3411_s1 + $0x2f0] sm:$0xff]  ;;  %v2763_v11 = vld [vmem:[%s3411_s1 + $0x260] sm:$0xff] }
  0x28   : > { %629 = vmatpush.bf16.msra.mxu0 %v2715_v2  ;;  %v2773_v2 = vld [vmem:[%s3411_s1 + $0x2b0] sm:$0xff]  ;;  %v203_v12 = vld [vmem:[%s2919_s20 + $0x28] sm:$0x33]  ;;  %v2779_v13 = vld [vmem:[%s3411_s1 + $0x2e0] sm:$0xff] }
  0x29   : > { %647 = vmatpush.bf16.msra.mxu1 %v2723_v3  ;;  %v2757_v3 = vld [vmem:[%s3411_s1 + $0x230] sm:$0xff]  ;;  %v2778_v36 = vld [vmem:[%s3411_s1 + $0x2d8] sm:$0xff]  ;;  %v2350_v37 = vld [vmem:[%s2919_s20 + $0x28] sm:$0xf] }
  0x2a   : > { %665 = vmatpush.bf16.msra.mxu2 %v2731_v8  ;;  %v976_v8 = vld [vmem:[%s2919_s20] sm:$0xcc]  ;;  %v2750_v39 = vld [vmem:[%s2919_s20 + $0x34] sm:$0x10] }
  0x2b   : > { %683 = vmatpush.bf16.msra.mxu3 %v2739_v9  ;;  %630 = vmatmul.bf16.vlgmr.msra.gmra.mxu0 %v373_v16  ;;  %v3169_v9 = vld [vmem:[%s2919_s20 + $0x10] sm:$0xff] }
  0x2c   : > { %904 = vmatpush.bf16.msrb.mxu0 %v2690_v15  ;;  %648 = vmatmul.bf16.vlgmr.msra.gmra.mxu1 %v385_v17  ;;  %v3183_v15 = vld [vmem:[%s2919_s20 + $0x18] sm:$0xff] }
  0x2d   : > { %666 = vmatmul.bf16.vlgmr.msra.gmra.mxu2 %v397_v18  ;;  %922 = vmatpush.bf16.msrb.mxu1 %v2698_v20  ;;  %v2770_v17 = vld [vmem:[%s3411_s1 + $0x298] sm:$0xff]  ;;  %v1057_v18 = vunpack.c.l.b16 %v976_v8  ;;  %v1063_v35 = vunpack.c.l.b16 %v3183_v15 }
  0x2e   : > { %940 = vmatpush.bf16.msrb.mxu2 %v2706_v14  ;;  %684 = vmatmul.bf16.vlgmr.msra.gmra.mxu3 %v409_v19  ;;  %v977_v14 = vld [vmem:[%s2919_s20 + $0x8] sm:$0xcc]  ;;  %v1061_v19 = vunpack.c.l.b16 %v3169_v9 }
  0x2f   : > { %958 = vmatpush.bf16.msrb.mxu3 %v2714_v21  ;;  %v698_v21 = vunpack.c.l.b16 %v203_v12 }
  0x30   : > { %905 = vmatpush.bf16.msrb.mxu0 %v2689_v23  ;;  %v2342_v23 = vld [vmem:[%s2919_s20 + $0x20] sm:$0xf] }
  0x31   : > { %923 = vmatpush.bf16.msrb.mxu1 %v2697_v25  ;;  %v2749_v25 = vld [vmem:[%s2919_s20 + $0x2c] sm:$0x10] }
  0x32   : > { %941 = vmatpush.bf16.msrb.mxu2 %v2705_v22  ;;  %v2754_v22 = vld [vmem:[%s3411_s1 + $0x218] sm:$0xff] }
  0x33   : > { %959 = vmatpush.bf16.msrb.mxu3 %v2713_v26  ;;  %v1058_v26 = vunpack.c.h.b16 %v976_v8 }
  0x34   : > { %906 = vmatpush.bf16.msrb.mxu0 %v2688_v28  ;;  %v699_v28 = vunpack.c.h.b16 %v203_v12 }
  0x35   : > { %924 = vmatpush.bf16.msrb.mxu1 %v2696_v31  ;;  %v2762_v31 = vld [vmem:[%s3411_s1 + $0x258] sm:$0xff] }
  0x36   : > { %942 = vmatpush.bf16.msrb.mxu2 %v2704_v27  ;;  %v1062_v27 = vunpack.c.h.b16 %v3169_v9 }
  0x37   : > { %960 = vmatpush.bf16.msrb.mxu3 %v2712_v32  ;;  %v2747_v32 = vld [vmem:[%s2919_s20 + $0x24] sm:$0xf] }
  0x38   : > { %907 = vmatpush.bf16.msrb.mxu0 %v2687_v34  ;;  %v1059_v34 = vunpack.c.l.b16 %v977_v14 }
  0x39   : > { %925 = vmatpush.bf16.msrb.mxu1 %v2695_v40  ;;  %v1060_v40 = vunpack.c.h.b16 %v977_v14 }
  0x3a   : > { %943 = vmatpush.bf16.msrb.mxu2 %v2703_v33  ;;  %v2344_v33 = vld [vmem:[%s2919_s20 + $0x30] sm:$0x10] }
  0x3b   : > { %961 = vmatpush.bf16.msrb.mxu3 %v2711_v43  ;;  %635 = vmatmul.bf16.gmra.mxu0 %v412_v44  ;;  %v1064_v43 = vunpack.c.h.b16 %v3183_v15  ;;  %v1073_v44 = vpack.c.b16 %v1061_v19, %v1057_v18 }
  0x3c   : > { %908 = vmatpush.bf16.msrb.mxu0 %v2686_v42  ;;  %653 = vmatmul.bf16.gmra.mxu1 %v415_v45  ;;  %v2769_v42 = vld [vmem:[%s3411_s1 + $0x290] sm:$0xff]  ;;  %v3212_v45 = vor.u32 %v2749_v25, %v2342_v23  ;;  %v2806_v25 = vld [vmem:[%s3411_s1 + $0x3b8] sm:$0xff] }
  0x3d   : > { %671 = vmatmul.bf16.gmra.mxu2 %v418_v46  ;;  %926 = vmatpush.bf16.msrb.mxu1 %v2694_v48  ;;  %v2748_v46 = vld [vmem:[%s2919_s20 + $0x2c] sm:$0xf] }
  0x3e   : > { %944 = vmatpush.bf16.msrb.mxu2 %v2702_v41  ;;  %689 = vmatmul.bf16.gmra.mxu3 %v421_v47  ;;  %v2352_v47 = vld [vmem:[%s2919_s20 + $0x38] sm:$0x10] }
  0x3f   : > { %962 = vmatpush.bf16.msrb.mxu3 %v2710_v49  ;;  %v702_v49 = vpack.c.b16 %v698_v21, %v698_v21 }
  0x40   : > { %909 = vmatpush.bf16.msrb.mxu0 %v2685_v51  ;;  %v3218_v51 = vor.u32 %v2747_v32, %v2344_v33 }
  0x41   : > { %927 = vmatpush.bf16.msrb.mxu1 %v2693_v52  ;;  %v703_v52 = vpack.c.b16 %v699_v28, %v699_v28 }
  0x42   : > { %945 = vmatpush.bf16.msrb.mxu2 %v2701_v50  ;;  %v1074_v50 = vpack.c.b16 %v1062_v27, %v1058_v26  ;;  %v2751_v26 = vld [vmem:[%s3411_s1 + $0x200] sm:$0xff] }
  0x43   : > { %963 = vmatpush.bf16.msrb.mxu3 %v2709_v53  ;;  %v2753_v53 = vld [vmem:[%s3411_s1 + $0x210] sm:$0xff] }
  0x44   : > { %910 = vmatpush.bf16.msrb.mxu0 %v2684_v55  ;;  %v3225_v55 = vor.u32 %v2750_v39, %v2350_v37 }
  0x45   : > { %928 = vmatpush.bf16.msrb.mxu1 %v2692_v56  ;;  %v2761_v56 = vld [vmem:[%s3411_s1 + $0x250] sm:$0xff] }
  0x46   : > { %946 = vmatpush.bf16.msrb.mxu2 %v2700_v54  ;;  %v1075_v54 = vpack.c.b16 %v1063_v35, %v1059_v34  ;;  %v2759_v34 = vld [vmem:[%s3411_s1 + $0x240] sm:$0xff] }
  0x47   : > { %964 = vmatpush.bf16.msrb.mxu3 %v2708_v57  ;;  %v2777_v57 = vld [vmem:[%s3411_s1 + $0x2d0] sm:$0xff] }
  0x48   : > { %911 = vmatpush.bf16.msrb.mxu0 %v2683_v59  ;;  %v3235_v59 = vor.u32 %v2748_v46, %v2352_v47 }
  0x49   : > { %929 = vmatpush.bf16.msrb.mxu1 %v2691_v62  ;;  %v1086_v62 = vshll.u32 %v1073_v44, 16 }
  0x4a   : > { %947 = vmatpush.bf16.msrb.mxu2 %v2699_v58  ;;  %v1076_v58 = vpack.c.b16 %v1064_v43, %v1060_v40  ;;  %v1145_v12 = vshll.u32 %v3235_v59, 16 }
  0x4b   : > { %965 = vmatpush.bf16.msrb.mxu3 %v2707_v63  ;;  %912 = vmatmul.bf16.vlgmr.msrb.gmra.mxu0 %v2943_v24  ;;  %v2764_v24 = vld [vmem:[%s3411_s1 + $0x268] sm:$0xff]  ;;  %v1091_v63 = vshrl.u32 %v3212_v45, 16 }
  0x4c   : > { %1350 = vmatpush.bf16.msra.mxu0 %v2758_v61  ;;  %930 = vmatmul.bf16.vlgmr.msrb.gmra.mxu1 %v2949_v29  ;;  %v2780_v29 = vld [vmem:[%s3411_s1 + $0x2e8] sm:$0xff]  ;;  %v1083_v61 = vshrl.u32 %v1073_v44, 16  ;;  %v1134_v8 = vshrl.u32 %v1076_v58, 16  ;;  %v2798_v44 = vld [vmem:[%s3411_s1 + $0x378] sm:$0xff] }
  0x4d   : > { %1368 = vmatpush.bf16.msra.mxu1 %v2766_v0  ;;  %948 = vmatmul.bf16.vlgmr.msrb.gmra.mxu2 %v2951_v30  ;;  %v2771_v30 = vld [vmem:[%s3411_s1 + $0x2a0] sm:$0xff]  ;;  %v1094_v0 = vshll.u32 %v3212_v45, 16 }
  0x4e   : > { %1386 = vmatpush.bf16.msra.mxu2 %v2774_v60  ;;  %966 = vmatmul.bf16.vlgmr.msrb.gmra.mxu3 %v2962_v38  ;;  %v202_v38 = vld [vmem:[%s2919_s20 + $0x20] sm:$0x33]  ;;  %v2768_v60 = vld [vmem:[%s3411_s1 + $0x288] sm:$0xff]  ;;  %v1085_v14 = vrot.slane %v1083_v61, 2  ;;  %v1136_v37 = vrot.slane %v1134_v8, 2  ;;  %v2786_v8 = vld [vmem:[%s3411_s1 + $0x318] sm:$0xff] }
  0x4f   : > { %1404 = vmatpush.bf16.msra.mxu3 %v2782_v1  ;;  %v696_v16 = vunpack.c.l.b16 %v202_v38  ;;  %v697_v20 = vunpack.c.h.b16 %v202_v38  ;;  %v1100_v1 = vshrl.u32 %v1074_v50, 16  ;;  %v2776_v38 = vld [vmem:[%s3411_s1 + $0x2c8] sm:$0xff]  ;;  %v1096_v18 = vrot.slane %v1094_v0, 3 }
  0x50   : > { %1351 = vmatpush.bf16.msra.mxu0 %v2757_v3  ;;  %v1108_v3 = vshrl.u32 %v3218_v51, 16 }
  0x51   : > { %1369 = vmatpush.bf16.msra.mxu1 %v2765_v4  ;;  %v700_v41 = vpack.c.b16 %v696_v16, %v696_v16  ;;  %v701_v48 = vpack.c.b16 %v697_v20, %v697_v20  ;;  %v1111_v4 = vshll.u32 %v3218_v51, 16  ;;  %v1088_v16 = vrot.slane %v1086_v62, 3 }
  0x52   : > { %1387 = vmatpush.bf16.msra.mxu2 %v2773_v2  ;;  %v1103_v2 = vshll.u32 %v1074_v50, 16  ;;  %v1102_v20 = vrot.slane %v1100_v1, 2  ;;  %v2813_v1 = vld [vmem:[%s3411_s1 + $0x3f0] sm:$0xff] }
  0x53   : > { %1405 = vmatpush.bf16.msra.mxu3 %v2781_v5  ;;  %v2752_v5 = vld [vmem:[%s3411_s1 + $0x208] sm:$0xff]  ;;  %v1113_v23 = vrot.slane %v1111_v4, 3  ;;  %v1089_v46 = vor.u32 %v1088_v16, %v1085_v14  ;;  %v1425_v14 = vld [vmem:[%s2919_s20] sm:$0x88]  ;;  %v2809_v16 = vld [vmem:[%s3411_s1 + $0x3d0] sm:$0xff] }
  0x54   : > { %1352 = vmatpush.bf16.msra.mxu0 %v2756_v7  ;;  %v1120_v7 = vshll.u32 %v1075_v54, 16  ;;  %v1105_v21 = vrot.slane %v1103_v2, 3  ;;  %v2804_v2 = vld [vmem:[%s3411_s1 + $0x3a8] sm:$0xff] }
  0x55   : > { %1370 = vmatpush.bf16.msra.mxu1 %v2764_v24  ;;  %v1125_v24 = vshrl.u32 %v3225_v55, 16  ;;  %v2788_v4 = vld [vmem:[%s3411_s1 + $0x328] sm:$0xff] }
  0x56   : > { %1388 = vmatpush.bf16.msra.mxu2 %v2772_v6  ;;  %v1117_v6 = vshrl.u32 %v1075_v54, 16  ;;  %v1106_v50 = vor.u32 %v1105_v21, %v1102_v20  ;;  %v2792_v20 = vld [vmem:[%s3411_s1 + $0x348] sm:$0xff]  ;;  %v1494_v21 = vunpack.c.l.b16 %v1425_v14 }
  0x57   : > { %1406 = vmatpush.bf16.msra.mxu3 %v2780_v29  ;;  %v1128_v29 = vshll.u32 %v3225_v55, 16  ;;  %v1127_v32 = vrot.slane %v1125_v24, 2  ;;  %v2787_v24 = vld [vmem:[%s3411_s1 + $0x320] sm:$0xff] }
  0x58   : > { %1353 = vmatpush.bf16.msra.mxu0 %v2755_v10  ;;  %v1137_v10 = vshll.u32 %v1076_v58, 16  ;;  %v1119_v28 = vrot.slane %v1117_v6, 2  ;;  %v2797_v58 = vld [vmem:[%s3411_s1 + $0x370] sm:$0xff]  ;;  %v2803_v6 = vld [vmem:[%s3411_s1 + $0x3a0] sm:$0xff] }
  0x59   : > { %1371 = vmatpush.bf16.msra.mxu1 %v2763_v11  ;;  %v1142_v11 = vshrl.u32 %v3235_v59, 16  ;;  %v1130_v33 = vrot.slane %v1128_v29, 3  ;;  %v2811_v29 = vld [vmem:[%s3411_s1 + $0x3e0] sm:$0xff] }
  0x5a   : > { %1389 = vmatpush.bf16.msra.mxu2 %v2771_v30  ;;  %v2760_v30 = vld [vmem:[%s3411_s1 + $0x248] sm:$0xff]  ;;  %v1139_v39 = vrot.slane %v1137_v10, 3  ;;  %v2810_v10 = vld [vmem:[%s3411_s1 + $0x3d8] sm:$0xff] }
  0x5b   : > { %1407 = vmatpush.bf16.msra.mxu3 %v2779_v13  ;;  %917 = vmatmul.bf16.gmra.mxu0 %v700_v41  ;;  %v2767_v13 = vld [vmem:[%s3411_s1 + $0x280] sm:$0xff]  ;;  %v1144_v40 = vrot.slane %v1142_v11, 2  ;;  %v1147_v41 = vrot.slane %v1145_v12, 3  ;;  %v1131_v54 = vor.u32 %v1130_v33, %v1127_v32  ;;  %v2801_v11 = vld [vmem:[%s3411_s1 + $0x390] sm:$0xff] }
  0x5c   : > { %1354 = vmatpush.bf16.msra.mxu0 %v2754_v22  ;;  %935 = vmatmul.bf16.gmra.mxu1 %v701_v48  ;;  %v1110_v22 = vrot.slane %v1108_v3, 2  ;;  %v2814_v48 = vld [vmem:[%s3411_s1 + $0x3f8] sm:$0xff]  ;;  %v2796_v3 = vld [vmem:[%s3411_s1 + $0x368] sm:$0xff]  ;;  %v2793_v12 = vld [vmem:[%s3411_s1 + $0x350] sm:$0xff] }
  0x5d   : > { %1372 = vmatpush.bf16.msra.mxu1 %v2762_v31  ;;  %953 = vmatmul.bf16.gmra.mxu2 %v702_v49  ;;  %v1122_v31 = vrot.slane %v1120_v7, 3  ;;  %v2805_v49 = vld [vmem:[%s3411_s1 + $0x3b0] sm:$0xff]  ;;  %v2795_v7 = vld [vmem:[%s3411_s1 + $0x360] sm:$0xff] }
  0x5e   : > { %1390 = vmatpush.bf16.msra.mxu2 %v2770_v17  ;;  %971 = vmatmul.bf16.gmra.mxu3 %v703_v52  ;;  %v1093_v17 = vrot.slane %v1091_v63, 2  ;;  %v1114_v52 = vor.u32 %v1113_v23, %v1110_v22  ;;  %v2789_v63 = vld [vmem:[%s3411_s1 + $0x330] sm:$0xff]  ;;  %v2784_v22 = vld [vmem:[%s3411_s1 + $0x308] sm:$0xff]  ;;  %v1495_v23 = vunpack.c.h.b16 %v1425_v14  ;;  %v2791_v33 = vld [vmem:[%s3411_s1 + $0x340] sm:$0xff] }
  0x5f   : > { %1408 = vmatpush.bf16.msra.mxu3 %v2778_v36  ;;  %v2775_v36 = vld [vmem:[%s3411_s1 + $0x2c0] sm:$0xff] }
  0x60   : > { %1355 = vmatpush.bf16.msra.mxu0 %v2753_v53  ;;  %v1097_v47 = vor.u32 %v1096_v18, %v1093_v17  ;;  %v1123_v53 = vor.u32 %v1122_v31, %v1119_v28  ;;  %v1115_v61 = vsel %vm1081_vm1, %v1106_v50, %v1114_v52  ;;  %v2800_v17 = vld [vmem:[%s3411_s1 + $0x388] sm:$0xff]  ;;  %v2799_v31 = vld [vmem:[%s3411_s1 + $0x380] sm:$0xff] }
  0x61   : > { %1373 = vmatpush.bf16.msra.mxu1 %v2761_v56  ;;  %v1140_v56 = vor.u32 %v1139_v39, %v1136_v37  ;;  %v1426_v18 = vld [vmem:[%s2919_s20 + $0x8] sm:$0x88]  ;;  %v2783_v37 = vld [vmem:[%s3411_s1 + $0x300] sm:$0xff]  ;;  %v1499_v39 = vpack.c.b16 %v1062_v27, %v1495_v23  ;;  %v1507_v27 = vrot.slane %v3218_v51, 3 }
  0x62   : > { %1391 = vmatpush.bf16.msra.mxu2 %v2769_v42  ;;  %v2790_v42 = vld [vmem:[%s3411_s1 + $0x338] sm:$0xff]  ;;  %v1132_v62 = vsel %vm1081_vm1, %v1123_v53, %v1131_v54  ;;  %v2808_v28 = vld [vmem:[%s3411_s1 + $0x3c8] sm:$0xff]  ;;  %v1497_v32 = vunpack.c.h.b16 %v1426_v18 }
  0x63   : > { %1409 = vmatpush.bf16.msra.mxu3 %v2777_v57  ;;  %v1148_v57 = vor.u32 %v1147_v41, %v1144_v40  ;;  %v2807_v41 = vld [vmem:[%s3411_s1 + $0x3c0] sm:$0xff]  ;;  %v1506_v9 = vrot.slane %v1499_v39, 3 }
  0x64   : > { %1356 = vmatpush.bf16.msra.mxu0 %v2752_v5  ;;  %v2812_v5 = vld [vmem:[%s3411_s1 + $0x3e8] sm:$0xff] }
  0x65   : > { %1374 = vmatpush.bf16.msra.mxu1 %v2760_v30  ;;  %v1149_v0 = vsel %vm1081_vm1, %v1140_v56, %v1148_v57  ;;  %v2802_v30 = vld [vmem:[%s3411_s1 + $0x398] sm:$0xff]  ;;  %v1508_v50 = vsel %vm1502_vm2, %v1506_v9, %v1507_v27 }
  0x66   : > { %1392 = vmatpush.bf16.msra.mxu2 %v2768_v60  ;;  %v1098_v60 = vsel %vm1081_vm1, %v1089_v46, %v1097_v47 }
  0x67   : > { %1410 = vmatpush.bf16.msra.mxu3 %v2776_v38  ;;  %v2794_v38 = vld [vmem:[%s3411_s1 + $0x358] sm:$0xff] }
  0x68   : > { %1357 = vmatpush.bf16.msra.mxu0 %v2751_v26  ;;  %v1797_v26 = vld [vmem:[%s3413_s3] sm:$0xff] }
  0x69   : > { %1375 = vmatpush.bf16.msra.mxu1 %v2759_v34  ;;  %v2843_v34 = vmov 0  }
  0x6a   : > { %1393 = vmatpush.bf16.msra.mxu2 %v2767_v13  ;;  %v2785_v13 = vld [vmem:[%s3411_s1 + $0x310] sm:$0xff]  ;;  %2830 = vset.pattern.permute.xlu0 %v2843_v34 }
  0x6b   : > { %1411 = vmatpush.bf16.msra.mxu3 %v2775_v36  ;;  %1358 = vmatmul.bf16.vlgmr.msra.gmra.mxu0 %v1098_v60  ;;  %v1498_v36 = vpack.c.b16 %v1061_v19, %v1494_v21  ;;  %v1501_v19 = vpack.c.b16 %v1064_v43, %v1497_v32  ;;  %v1798_v43 = vld [vmem:[%s3413_s3 + $0x8] sm:$0xff] }
  0x6c   : > { %1715 = vmatpush.bf16.msrb.mxu0 %v2790_v42  ;;  %1376 = vmatmul.bf16.vlgmr.msra.gmra.mxu1 %v1115_v61 }
  0x6d   : > { %1733 = vmatpush.bf16.msrb.mxu1 %v2798_v44  ;;  %1394 = vmatmul.bf16.vlgmr.msra.gmra.mxu2 %v1132_v62  ;;  %v1503_v42 = vrot.slane %v1498_v36, 3  ;;  %v1504_v44 = vrot.slane %v3212_v45, 3  ;;  %v1799_v45 = vld [vmem:[%s3413_s3 + $0x10] sm:$0xf] }
  0x6e   : > { %1751 = vmatpush.bf16.msrb.mxu2 %v2806_v25  ;;  %1412 = vmatmul.bf16.vlgmr.msra.gmra.mxu3 %v1149_v0  ;;  %v1496_v25 = vunpack.c.l.b16 %v1426_v18 }
  0x6f   : > { %1769 = vmatpush.bf16.msrb.mxu3 %v2814_v48  ;;  %1802 = vperm.xlu0 %2830, %v1797_v26   ;;  %v1513_v48 = vrot.slane %v3235_v59, 3 }
  0x70   : > { %1716 = vmatpush.bf16.msrb.mxu0 %v2789_v63  ;;  %2831 = vset.pattern.permute.xlu1 %v2843_v34  ;;  %v1500_v40 = vpack.c.b16 %v1063_v35, %v1496_v25  ;;  %v1510_v35 = vrot.slane %v3225_v55, 3 }
  0x71   : > { %1734 = vmatpush.bf16.msrb.mxu1 %v2797_v58  ;;  %1812 = vperm.xlu1 %2831, %v1799_v45  }
  0x72   : > { %1752 = vmatpush.bf16.msrb.mxu2 %v2805_v49  ;;  %v1509_v46 = vrot.slane %v1500_v40, 3  ;;  %v1505_v49 = vsel %vm1502_vm2, %v1503_v42, %v1504_v44 }
  0x73   : > { %1770 = vmatpush.bf16.msrb.mxu3 %v2813_v1 }
  0x74   : > { %1717 = vmatpush.bf16.msrb.mxu0 %v2788_v4  ;;  %v1511_v15 = vsel %vm1502_vm2, %v1509_v46, %v1510_v35 }
  0x75   : > { %1735 = vmatpush.bf16.msrb.mxu1 %v2796_v3 }
  0x76   : > { %1753 = vmatpush.bf16.msrb.mxu2 %v2804_v2 }
  0x77   : > { %1771 = vmatpush.bf16.msrb.mxu3 %v2812_v5  ;;  %1807 = vperm.xlu0 %2830, %v1798_v43  }
  0x78   : > { %1718 = vmatpush.bf16.msrb.mxu0 %v2787_v24 }
  0x79   : > { %1736 = vmatpush.bf16.msrb.mxu1 %v2795_v7 }
  0x7a   : > { %1754 = vmatpush.bf16.msrb.mxu2 %v2803_v6 }
  0x7b   : > { %1772 = vmatpush.bf16.msrb.mxu3 %v2811_v29  ;;  %1363 = vmatmul.bf16.gmra.mxu0 %v1097_v47  ;;  %v1512_v47 = vrot.slane %v1501_v19, 3 }
  0x7c   : > { %1719 = vmatpush.bf16.msrb.mxu0 %v2786_v8  ;;  %1381 = vmatmul.bf16.gmra.mxu1 %v1114_v52 }
  0x7d   : > { %1737 = vmatpush.bf16.msrb.mxu1 %v2794_v38  ;;  %1399 = vmatmul.bf16.gmra.mxu2 %v1131_v54  ;;  %v1514_v52 = vsel %vm1502_vm2, %v1512_v47, %v1513_v48 }
  0x7e   : > { %1755 = vmatpush.bf16.msrb.mxu2 %v2802_v30  ;;  %1417 = vmatmul.bf16.gmra.mxu3 %v1148_v57 }
  0x7f   : > { %1773 = vmatpush.bf16.msrb.mxu3 %v2810_v10 }
  0x80   : > { %1720 = vmatpush.bf16.msrb.mxu0 %v2785_v13 }
  0x81   : > { %1738 = vmatpush.bf16.msrb.mxu1 %v2793_v12 }
  0x82   : > { %1756 = vmatpush.bf16.msrb.mxu2 %v2801_v11 }
  0x83   : > { %1774 = vmatpush.bf16.msrb.mxu3 %v2809_v16 }
  0x84   : > { %1721 = vmatpush.bf16.msrb.mxu0 %v2784_v22 }
  0x85   : > { %1739 = vmatpush.bf16.msrb.mxu1 %v2792_v20 }
  0x86   : > { %1757 = vmatpush.bf16.msrb.mxu2 %v2800_v17 }
  0x87   : > { %1775 = vmatpush.bf16.msrb.mxu3 %v2808_v28 }
  0x88   : > { %1722 = vmatpush.bf16.msrb.mxu0 %v2783_v37 }
  0x89   : > { %1740 = vmatpush.bf16.msrb.mxu1 %v2791_v33 }
  0x8a   : > { %1758 = vmatpush.bf16.msrb.mxu2 %v2799_v31 }
  0x8b   : > { %1776 = vmatpush.bf16.msrb.mxu3 %v2807_v41  ;;  %1723 = vmatmul.bf16.vlgmr.msrb.gmra.mxu0 %v1505_v49 }
  0x8c   : > { %1741 = vmatmul.bf16.vlgmr.msrb.gmra.mxu1 %v1508_v50 }
  0x8d   : > { %1759 = vmatmul.bf16.vlgmr.msrb.gmra.mxu2 %v1511_v15 }
  0x8e   : > { %1777 = vmatmul.bf16.vlgmr.msrb.gmra.mxu3 %v1514_v52 }
  0x9b   : > { %1728 = vmatmul.bf16.gmra.mxu0 %v1504_v44 }
  0x9c   : > { %1746 = vmatmul.bf16.gmra.mxu1 %v1507_v27 }
  0x9d   : > { %1764 = vmatmul.bf16.gmra.mxu2 %v1510_v35 }
  0x9e   : > { %1782 = vmatmul.bf16.gmra.mxu3 %v1513_v48 }
  0xa8   : > { %v631_v51 = vpop.f32.mrf.mxu0 }
  0xa9   : > { %v649_v55 = vpop.f32.mrf.mxu1 }
  0xaa   : > { %v650_v59 = vadd.f32 %v649_v55, %v631_v51 }
  0xb0   : > { %v667_v53 = vpop.f32.mrf.mxu2  ;;  %v633_v57 = vpop.f32.mrf.mxu0 }
  0xb1   : > { %v685_v54 = vpop.f32.mrf.mxu3  ;;  %v668_v56 = vadd.f32 %v667_v53, %v650_v59  ;;  %v651_v58 = vpop.f32.mrf.mxu1 }
  0xb2   : > { %v652_v60 = vadd.f32 %v651_v58, %v633_v57 }
  0xb3   : > { %v686_v61 = vadd.f32 %v685_v54, %v668_v56 }
  0xb8   : > { %v669_v62 = vpop.f32.mrf.mxu2  ;;  %v636_v1 = vpop.f32.mrf.mxu0 }
  0xb9   : > { %v687_v63 = vpop.f32.mrf.mxu3  ;;  %v670_v0 = vadd.f32 %v669_v62, %v652_v60  ;;  %v654_v2 = vpop.f32.mrf.mxu1 }
  0xba   : > { %v655_v3 = vadd.f32 %v654_v2, %v636_v1 }
  0xbb   : > { %v688_v4 = vadd.f32 %v687_v63, %v670_v0 }
  0xc0   : > { %v672_v5 = vpop.f32.mrf.mxu2  ;;  %v638_v24 = vpop.f32.mrf.mxu0 }
  0xc1   : > { %v690_v6 = vpop.f32.mrf.mxu3  ;;  %v673_v7 = vadd.f32 %v672_v5, %v655_v3  ;;  %v656_v29 = vpop.f32.mrf.mxu1 }
  0xc3   : > { %v691_v30 = vadd.f32 %v690_v6, %v673_v7 }
  0xc8   : > { %v674_v38 = vpop.f32.mrf.mxu2  ;;  %v913_v10 = vpop.f32.mrf.mxu0 }
  0xc9   : > { %v692_v8 = vpop.f32.mrf.mxu3  ;;  %v914_v11 = vadd.f32 %v913_v10, %v686_v61  ;;  %v931_v12 = vpop.f32.mrf.mxu1  ;;  %v2832_v38 = vld [vmem:[%s3412_s2] ss:$0 sm:$0xff] }
  0xcb   : > { %v932_v13 = vadd.f32 %v931_v12, %v914_v11 }
  0xd0   : > { %v949_v14 = vpop.f32.mrf.mxu2  ;;  %v915_v18 = vpop.f32.mrf.mxu0 }
  0xd1   : > { %v950_v16 = vadd.f32 %v949_v14, %v932_v13  ;;  %v967_v17 = vpop.f32.mrf.mxu3  ;;  %v916_v20 = vadd.f32 %v915_v18, %v688_v4  ;;  %v933_v21 = vpop.f32.mrf.mxu1 }
  0xd3   : > { %v968_v22 = vadd.f32 %v967_v17, %v950_v16  ;;  %v934_v23 = vadd.f32 %v933_v21, %v916_v20 }
  0xd8   : > { %v951_v25 = vpop.f32.mrf.mxu2  ;;  %v918_v31 = vpop.f32.mrf.mxu0 }
  0xd9   : > { %v952_v26 = vadd.f32 %v951_v25, %v934_v23  ;;  %v969_v28 = vpop.f32.mrf.mxu3  ;;  %v919_v32 = vadd.f32 %v918_v31, %v691_v30  ;;  %v936_v33 = vpop.f32.mrf.mxu1 }
  0xdb   : > { %v970_v34 = vadd.f32 %v969_v28, %v952_v26  ;;  %v937_v36 = vadd.f32 %v936_v33, %v919_v32 }
  0xe0   : > { %v954_v37 = vpop.f32.mrf.mxu2  ;;  %v920_v40 = vpop.f32.mrf.mxu0 }
  0xe1   : > { %v972_v39 = vpop.f32.mrf.mxu3  ;;  %v938_v41 = vpop.f32.mrf.mxu1  ;;  %v955_v20 = vadd.f32 %v954_v37, %v937_v36 }
  0xe2   : > { %v3392_v5 = vpop.permute.xlu0 %1802 }
  0xe3   : > { %v973_v31 = vadd.f32 %v972_v39, %v955_v20 }
  0xe8   : > { %v956_v19 = vpop.f32.mrf.mxu2  ;;  %v1359_v44 = vpop.f32.mrf.mxu0 }
  0xe9   : > { %v974_v42 = vpop.f32.mrf.mxu3  ;;  %v1377_v9 = vpop.f32.mrf.mxu1 }
  0xea   : > { %v1378_v59 = vadd.f32 %v1377_v9, %v1359_v44  ;;  %v3397_v25 = vpop.permute.xlu0 %1807 }
  0xf0   : > { %v1395_v27 = vpop.f32.mrf.mxu2  ;;  %v1361_v35 = vpop.f32.mrf.mxu0 }
  0xf1   : > { %v1413_v46 = vpop.f32.mrf.mxu3  ;;  %v1379_v47 = vpop.f32.mrf.mxu1  ;;  %v1396_v57 = vadd.f32 %v1395_v27, %v1378_v59 }
  0xf2   : > { %v1380_v62 = vadd.f32 %v1379_v47, %v1361_v35  ;;  %v1813_v35 = vpop.permute.xlu1 %1812 }
  0xf3   : > { %v1414_v61 = vadd.f32 %v1413_v46, %v1396_v57 }
  0xf5   : > { %v1422_v6 = vadd.f32 %v1414_v61, %v968_v22 }
  0xf8   : > { %v1397_v48 = vpop.f32.mrf.mxu2  ;;  %v1364_v50 = vpop.f32.mrf.mxu0 }
  0xf9   : > { %v1415_v49 = vpop.f32.mrf.mxu3  ;;  %v1382_v15 = vpop.f32.mrf.mxu1  ;;  %v1398_v3 = vadd.f32 %v1397_v48, %v1380_v62 }
  0xfa   : > { %v1383_v7 = vadd.f32 %v1382_v15, %v1364_v50 }
  0xfb   : > { %v1416_v24 = vadd.f32 %v1415_v49, %v1398_v3 }
  0xfd   : > { %v1423_v16 = vadd.f32 %v1416_v24, %v970_v34 }
 0x100   : > { %v1400_v43 = vpop.f32.mrf.mxu2  ;;  %v1366_v45 = vpop.f32.mrf.mxu0 }
 0x101   : > { %v1418_v52 = vpop.f32.mrf.mxu3  ;;  %v1384_v51 = vpop.f32.mrf.mxu1  ;;  %v1401_v13 = vadd.f32 %v1400_v43, %v1383_v7 }
 0x103   : > { %v1419_v23 = vadd.f32 %v1418_v52, %v1401_v13 }
 0x105   : > { %v1424_v42 = vadd.f32 %v1419_v23, %v973_v31 }
 0x108   : > { %v1402_v55 = vpop.f32.mrf.mxu2  ;;  %v1724_v54 = vpop.f32.mrf.mxu0 }
 0x109   : > { %v1420_v53 = vpop.f32.mrf.mxu3  ;;  %v1742_v56 = vpop.f32.mrf.mxu1 }
 0x10a   : > { %v1743_v58 = vadd.f32 %v1742_v56, %v1724_v54 }
 0x110   : > { %v1760_v60 = vpop.f32.mrf.mxu2  ;;  %v1726_v1 = vpop.f32.mrf.mxu0 }
 0x111   : > { %v1761_v63 = vadd.f32 %v1760_v60, %v1743_v58  ;;  %v1778_v0 = vpop.f32.mrf.mxu3  ;;  %v1744_v2 = vpop.f32.mrf.mxu1 }
 0x112   : > { %v1745_v30 = vadd.f32 %v1744_v2, %v1726_v1 }
 0x113   : > { %v1779_v4 = vadd.f32 %v1778_v0, %v1761_v63 }
 0x115   : > { %v1787_v29 = vadd.f32 %v1779_v4, %v1422_v6 }
 0x117   : > { %v1794_v17 = vadd.f32 %v2832_v38, %v1787_v29 }
 0x118   : > { %v1762_v8 = vpop.f32.mrf.mxu2  ;;  %v1729_v12 = vpop.f32.mrf.mxu0 }
 0x119   : > { %v1763_v10 = vadd.f32 %v1762_v8, %v1745_v30  ;;  %v1780_v11 = vpop.f32.mrf.mxu3  ;;  %v1747_v14 = vpop.f32.mrf.mxu1  ;;  %v1815_v26 = vmul.f32 %v3392_v5, %v1794_v17 }
 0x11a   : > { %v1748_v22 = vadd.f32 %v1747_v14, %v1729_v12 }
 0x11b   : > { %v1781_v18 = vadd.f32 %v1780_v11, %v1763_v10  ;;  %v1828_v44 = vmul.f32 %v1815_v26, %v1815_v26 }
 0x11d   : > { %v1788_v21 = vadd.f32 %v1781_v18, %v1423_v16 }
 0x11f   : > { %v1795_v28 = vadd.f32 %v2832_v38, %v1788_v21 }
 0x120   : > { %v1765_v32 = vpop.f32.mrf.mxu2  ;;  %v1731_v19 = vpop.f32.mrf.mxu0 }
 0x121   : > { %v1816_v33 = vmul.f32 %v3397_v25, %v1795_v28  ;;  %v1766_v40 = vadd.f32 %v1765_v32, %v1748_v22  ;;  %v1783_v41 = vpop.f32.mrf.mxu3  ;;  %v1749_v34 = vpop.f32.mrf.mxu1 }
 0x123   : > { %v1818_v9 = vadd.f32 %v1816_v33, %v1815_v26  ;;  %v1829_v36 = vmul.f32 %v1816_v33, %v1816_v33  ;;  %v1784_v37 = vadd.f32 %v1783_v41, %v1766_v40 }
 0x125   : > { %v1831_v27 = vadd.f32 %v1829_v36, %v1828_v44  ;;  %v1789_v46 = vadd.f32 %v1784_v37, %v1424_v42 }
 0x127   : > { %v1796_v47 = vadd.f32 %v2832_v38, %v1789_v46 }
 0x128   : > { %v1767_v48 = vpop.f32.mrf.mxu2 }
 0x129   : > { %v1817_v49 = vmul.f32 %v1813_v35, %v1796_v47  ;;  %v1785_v39 = vpop.f32.mrf.mxu3 }
 0x12b   : > { %v1820_v50 = vsel %vm1819_vm3, %v1817_v49, 0.0  ;;  %v1830_v15 = vmul.f32 %v1817_v49, %v1817_v49 }
 0x12c   : > { %v1821_v43 = vadd.f32 %v1820_v50, %v1818_v9 }
 0x12d   : > { %v1832_v52 = vsel %vm1819_vm3, %v1830_v15, 0.0 }
 0x12e   : > { %v1822_v45 = vrot.slane %v1821_v43, 4  ;;  %v1833_v51 = vadd.f32 %v1832_v52, %v1831_v27 }
 0x130   : > { %v1823_v55 = vadd.f32 %v1822_v45, %v1821_v43  ;;  %v1834_v59 = vrot.slane %v1833_v51, 4 }
 0x132   : > { %v1824_v53 = vrot.slane %v1823_v55, 2  ;;  %v1835_v54 = vadd.f32 %v1834_v59, %v1833_v51 }
 0x134   : > { %v1825_v56 = vadd.f32 %v1824_v53, %v1823_v55  ;;  %v1836_v57 = vrot.slane %v1835_v54, 2 }
 0x136   : > { %v1826_v58 = vrot.slane %v1825_v56, 1  ;;  %v1837_v60 = vadd.f32 %v1836_v57, %v1835_v54 }
 0x138   : > { %v1827_v61 = vadd.f32 %v1826_v58, %v1825_v56  ;;  %v1838_v62 = vrot.slane %v1837_v60, 1 }
 0x13a   : > { %v1839_v63 = vadd.f32 %v1838_v62, %v1837_v60  ;;  %v1840_v0 = vmul.f32 0.0625, %v1827_v61 }
 0x13c   : > { %v1841_v1 = vmul.f32 0.0625, %v1839_v63  ;;  %v1842_v2 = vmul.f32 %v1840_v0, %v1840_v0  ;;  %v1845_v3 = vsub.f32 %v1815_v26, %v1840_v0  ;;  %v1846_v4 = vsub.f32 %v1816_v33, %v1840_v0 }
 0x13d   : > { %v1847_v6 = vsub.f32 %v1817_v49, %v1840_v0 }
 0x13e   : > { %v1843_v7 = vsub.f32 %v1841_v1, %v1842_v2 }
 0x140   : > { %v1844_v24 = vmax.f32 %v1843_v7, 0.0 }
 0x142   : > { %v1848_v29 = vadd.f32 1e-05, %v1844_v24 }
 0x144   : > { %2833 = vrsqrt.f32 %v1848_v29  ;;  %vm1855_vm5 = vweird.f32 %v1848_v29 }
 0x14a   : > { %v2834_v30 = vpop.eup %2833 }
 0x14b   : > { %v1850_v38 = vmul.f32 %v2834_v30, %v1848_v29  ;;  %vm1856_vm4 = vweird.f32 %v2834_v30 }
 0x14c   : > { %vm1857_vm6 = vmor %vm1855_vm5, %vm1856_vm4 }
 0x14d   : > { %v1851_v8 = vmul.f32 %v2834_v30, %v1850_v38 }
 0x14f   : > { %v1852_v10 = vmul.f32 0.5, %v1851_v8 }
 0x151   : > { %v1853_v11 = vsub.f32 1.5, %v1852_v10 }
 0x153   : > { %v1854_v12 = vmul.f32 %v2834_v30, %v1853_v11 }
 0x155   : > { %v1858_v13 = vsel %vm1857_vm6, %v2834_v30, %v1854_v12 }
 0x156   : > { %v1859_v14 = vmul.f32 %v1858_v13, %v1845_v3  ;;  %v1860_v16 = vmul.f32 %v1858_v13, %v1846_v4  ;;  %v1861_v17 = vmul.f32 %v1858_v13, %v1847_v6 }
 0x158   : > { %v1862_v18 = vmul.f32 0.2, %v1859_v14  ;;  %v1863_v20 = vmul.f32 0.2, %v1860_v16  ;;  %v1864_v21 = vmul.f32 0.2, %v1861_v17 }
 0x15a   : > { %v1865_v22 = vmax.f32 %v1859_v14, %v1862_v18  ;;  %v1866_v23 = vmax.f32 %v1860_v16, %v1863_v20  ;;  %v1867_v26 = vmax.f32 %v1861_v17, %v1864_v21 }
 0x15c   : > { %v1868_v28 = vmul.f32 %v1865_v22, %v3392_v5  ;;  %v1869_v31 = vmul.f32 %v1866_v23, %v3397_v25  ;;  %v1870_v32 = vmul.f32 %v1867_v26, %v1813_v35 }
 0x15e   : > { %v1873_v33 = vpack.c.bf16 %v1870_v32, %v1870_v32  ;;  %v2818_v40 = vpack.c.bf16 %v1869_v31, %v1868_v28 }
 0x160   : > { %2819 = vst [vmem:[%s197_s7] sm:$0xff] %v2818_v40  }
 0x161   : > { %1876 = vst [vmem:[%s197_s7 + $0x8] sm:$0x3] %v1873_v33 }
 0x162 PF: > { %s14_s15 = sadd.s32 1, %s2841_s15  }
 0x163   : > { %p11_p4 = scmp.ge.s32.totalorder %s14_s15, 4  }
 0x165   :  { %13 = sbr.rel (!%p11_p4) target bundleno = 1 (0x1), region = 69 }

// kernel: discriminator_forward.8
= control target key start
LH: loop header
LB: loop body
LE: loop exit
PB: predicated region body
PF: predicated region fallthrough
CT: control target
= control target key end

     0   :  { %s3972_s15 = smov 0   ;;  %s5679_s0 = inlined_call_operand.vmem [shape: bf16[2,12,512], index: 0, kind: input, shape index: {}]   ;;  %s5680_s1 = inlined_call_operand.vmem [shape: bf16[4,512,256], index: 1, kind: input, shape index: {}]   ;;  %s5681_s2 = inlined_call_operand.vmem [shape: f32[1,256], index: 2, kind: input, shape index: {}]   ;;  %s5682_s3 = inlined_call_operand.vmem [shape: f32[6,1], index: 3, kind: input, shape index: {}]   ;;  %s5683_s4 = inlined_call_operand.vmem [shape: bf16[2,6,256], index: 4, kind: output, shape index: {}]  }
   0x1 LB: > { %s2439_s16 = sadd.s32 4294967295, %s3944_s15   ;;  %p2443_p0 = scmp.ge.s32.totalorder %s3944_s15, 1  ;;  %s3944_s15 = sphi %s3972_s15, %s14_s15  }
   0x2   : > { %p162_p1 = scmp.lt.s32.totalorder %s3944_s15, 3 }
   0x4   : > { %p163_p2 = pnand %p2443_p0, %p162_p1 }
   0x5   : > { %p188_p3 = scmp.lt.s32.totalorder (!%p163_p2), %s2439_s16, 1 }
   0x6   : > { %166 = sbr.rel (%p163_p2) target bundleno = 465 (0x1d1), region = 36 }
   0xb   : > { %v2570_v0 = vld [vmem:[%s5680_s1 + $0x270] sm:$0xf]  ;;  %v3747_v1 = vld [vmem:[%s5680_s1 + $0x274] sm:$0xf0]  ;;  %v2562_v11 = vld [vmem:[%s5680_s1 + $0x260] sm:$0xf] }
   0xc   : > { %v2634_v2 = vld [vmem:[%s5680_s1 + $0x2f0] sm:$0xf]  ;;  %v2571_v3 = vor.u32 %v3747_v1, %v2570_v0  ;;  %v3763_v4 = vld [vmem:[%s5680_s1 + $0x2f4] sm:$0xf0]  ;;  %v3745_v13 = vld [vmem:[%s5680_s1 + $0x264] sm:$0xf0] }
   0xd   : > { %v2698_v5 = vld [vmem:[%s5680_s1 + $0x370] sm:$0xf]  ;;  %v3779_v6 = vld [vmem:[%s5680_s1 + $0x374] sm:$0xf0]  ;;  %v2635_v7 = vor.u32 %v3763_v4, %v2634_v2  ;;  %v2626_v14 = vld [vmem:[%s5680_s1 + $0x2e0] sm:$0xf]  ;;  %v2563_v16 = vor.u32 %v3745_v13, %v2562_v11 }
   0xe   : > { %v2699_v8 = vor.u32 %v3779_v6, %v2698_v5  ;;  %v2762_v9 = vld [vmem:[%s5680_s1 + $0x3f0] sm:$0xf]  ;;  %v3795_v10 = vld [vmem:[%s5680_s1 + $0x3f4] sm:$0xf0]  ;;  %693 = vmatpush.bf16.msra.mxu0 %v2571_v3  ;;  %v3761_v15 = vld [vmem:[%s5680_s1 + $0x2e4] sm:$0xf0] }
   0xf   : > { %v2763_v12 = vor.u32 %v3795_v10, %v2762_v9  ;;  %706 = vmatpush.bf16.msra.mxu1 %v2635_v7  ;;  %v2627_v17 = vor.u32 %v3761_v15, %v2626_v14  ;;  %v2690_v18 = vld [vmem:[%s5680_s1 + $0x360] sm:$0xf]  ;;  %v3777_v19 = vld [vmem:[%s5680_s1 + $0x364] sm:$0xf0]  ;;  %v2554_v23 = vld [vmem:[%s5680_s1 + $0x250] sm:$0xf] }
  0x10   : > { %719 = vmatpush.bf16.msra.mxu2 %v2699_v8  ;;  %v2754_v20 = vld [vmem:[%s5680_s1 + $0x3e0] sm:$0xf]  ;;  %v2691_v21 = vor.u32 %v3777_v19, %v2690_v18  ;;  %v3793_v22 = vld [vmem:[%s5680_s1 + $0x3e4] sm:$0xf0]  ;;  %v3743_v24 = vld [vmem:[%s5680_s1 + $0x254] sm:$0xf0] }
  0x11   : > { %732 = vmatpush.bf16.msra.mxu3 %v2763_v12  ;;  %v2755_v25 = vor.u32 %v3793_v22, %v2754_v20  ;;  %v2618_v26 = vld [vmem:[%s5680_s1 + $0x2d0] sm:$0xf]  ;;  %v3759_v27 = vld [vmem:[%s5680_s1 + $0x2d4] sm:$0xf0]  ;;  %v2555_v29 = vor.u32 %v3743_v24, %v2554_v23  ;;  %v2546_v35 = vld [vmem:[%s5680_s1 + $0x240] sm:$0xf] }
  0x12   : > { %v2682_v28 = vld [vmem:[%s5680_s1 + $0x350] sm:$0xf]  ;;  %694 = vmatpush.bf16.msra.mxu0 %v2563_v16  ;;  %v3775_v30 = vld [vmem:[%s5680_s1 + $0x354] sm:$0xf0]  ;;  %v2619_v33 = vor.u32 %v3759_v27, %v2618_v26  ;;  %v3741_v36 = vld [vmem:[%s5680_s1 + $0x244] sm:$0xf0] }
  0x13   : > { %v2746_v31 = vld [vmem:[%s5680_s1 + $0x3d0] sm:$0xf]  ;;  %v3791_v32 = vld [vmem:[%s5680_s1 + $0x3d4] sm:$0xf0]  ;;  %707 = vmatpush.bf16.msra.mxu1 %v2627_v17  ;;  %v2683_v34 = vor.u32 %v3775_v30, %v2682_v28  ;;  %v2610_v37 = vld [vmem:[%s5680_s1 + $0x2c0] sm:$0xf]  ;;  %v2547_v44 = vor.u32 %v3741_v36, %v2546_v35 }
  0x14   : > { %720 = vmatpush.bf16.msra.mxu2 %v2691_v21  ;;  %v2747_v38 = vor.u32 %v3791_v32, %v2746_v31  ;;  %v3757_v39 = vld [vmem:[%s5680_s1 + $0x2c4] sm:$0xf0]  ;;  %v2674_v40 = vld [vmem:[%s5680_s1 + $0x340] sm:$0xf]  ;;  %v2538_v47 = vld [vmem:[%s5680_s1 + $0x230] sm:$0xf] }
  0x15   : > { %733 = vmatpush.bf16.msra.mxu3 %v2755_v25  ;;  %v3773_v41 = vld [vmem:[%s5680_s1 + $0x344] sm:$0xf0]  ;;  %v2738_v42 = vld [vmem:[%s5680_s1 + $0x3c0] sm:$0xf]  ;;  %v2611_v45 = vor.u32 %v3757_v39, %v2610_v37  ;;  %v3739_v48 = vld [vmem:[%s5680_s1 + $0x234] sm:$0xf0] }
  0x16   : > { %v3789_v43 = vld [vmem:[%s5680_s1 + $0x3c4] sm:$0xf0]  ;;  %695 = vmatpush.bf16.msra.mxu0 %v2555_v29  ;;  %v2675_v46 = vor.u32 %v3773_v41, %v2674_v40  ;;  %v2602_v49 = vld [vmem:[%s5680_s1 + $0x2b0] sm:$0xf]  ;;  %v3755_v51 = vld [vmem:[%s5680_s1 + $0x2b4] sm:$0xf0]  ;;  %v2539_v56 = vor.u32 %v3739_v48, %v2538_v47 }
  0x17   : > { %708 = vmatpush.bf16.msra.mxu1 %v2619_v33  ;;  %v2739_v50 = vor.u32 %v3789_v43, %v2738_v42  ;;  %v2666_v52 = vld [vmem:[%s5680_s1 + $0x330] sm:$0xf]  ;;  %v3771_v53 = vld [vmem:[%s5680_s1 + $0x334] sm:$0xf0]  ;;  %v2603_v57 = vor.u32 %v3755_v51, %v2602_v49  ;;  %v2530_v59 = vld [vmem:[%s5680_s1 + $0x220] sm:$0xf] }
  0x18   : > { %721 = vmatpush.bf16.msra.mxu2 %v2683_v34  ;;  %v2730_v54 = vld [vmem:[%s5680_s1 + $0x3b0] sm:$0xf]  ;;  %v3787_v55 = vld [vmem:[%s5680_s1 + $0x3b4] sm:$0xf0]  ;;  %v2667_v58 = vor.u32 %v3771_v53, %v2666_v52  ;;  %v3737_v60 = vld [vmem:[%s5680_s1 + $0x224] sm:$0xf0] }
  0x19   : > { %734 = vmatpush.bf16.msra.mxu3 %v2747_v38  ;;  %v2594_v61 = vld [vmem:[%s5680_s1 + $0x2a0] sm:$0xf]  ;;  %v2731_v62 = vor.u32 %v3787_v55, %v2730_v54  ;;  %v3753_v63 = vld [vmem:[%s5680_s1 + $0x2a4] sm:$0xf0]  ;;  %v2531_v4 = vor.u32 %v3737_v60, %v2530_v59  ;;  %v2522_v7 = vld [vmem:[%s5680_s1 + $0x210] sm:$0xf] }
  0x1a   : > { %696 = vmatpush.bf16.msra.mxu0 %v2547_v44  ;;  %v2658_v0 = vld [vmem:[%s5680_s1 + $0x320] sm:$0xf]  ;;  %v3769_v1 = vld [vmem:[%s5680_s1 + $0x324] sm:$0xf0]  ;;  %v2595_v5 = vor.u32 %v3753_v63, %v2594_v61  ;;  %v3735_v8 = vld [vmem:[%s5680_s1 + $0x214] sm:$0xf0] }
  0x1b   : > { %709 = vmatpush.bf16.msra.mxu1 %v2611_v45  ;;  %v2722_v2 = vld [vmem:[%s5680_s1 + $0x3a0] sm:$0xf]  ;;  %v3785_v3 = vld [vmem:[%s5680_s1 + $0x3a4] sm:$0xf0]  ;;  %v2659_v6 = vor.u32 %v3769_v1, %v2658_v0  ;;  %v2586_v9 = vld [vmem:[%s5680_s1 + $0x290] sm:$0xf]  ;;  %v2523_v16 = vor.u32 %v3735_v8, %v2522_v7 }
  0x1c   : > { %722 = vmatpush.bf16.msra.mxu2 %v2675_v46  ;;  %v2723_v10 = vor.u32 %v3785_v3, %v2722_v2  ;;  %v3751_v11 = vld [vmem:[%s5680_s1 + $0x294] sm:$0xf0]  ;;  %v2650_v12 = vld [vmem:[%s5680_s1 + $0x310] sm:$0xf]  ;;  %v2514_v17 = vld [vmem:[%s5680_s1 + $0x200] sm:$0xf] }
  0x1d   : > { %735 = vmatpush.bf16.msra.mxu3 %v2739_v50  ;;  %v3767_v13 = vld [vmem:[%s5680_s1 + $0x314] sm:$0xf0]  ;;  %v2714_v14 = vld [vmem:[%s5680_s1 + $0x390] sm:$0xf]  ;;  %v3733_v18 = vld [vmem:[%s5680_s1 + $0x204] sm:$0xf0]  ;;  %v2587_v19 = vor.u32 %v3751_v11, %v2586_v9 }
  0x1e   : > { %697 = vmatpush.bf16.msra.mxu0 %v2539_v56  ;;  %v3783_v15 = vld [vmem:[%s5680_s1 + $0x394] sm:$0xf0]  ;;  %v2651_v20 = vor.u32 %v3767_v13, %v2650_v12  ;;  %v2578_v21 = vld [vmem:[%s5680_s1 + $0x280] sm:$0xf]  ;;  %v3749_v22 = vld [vmem:[%s5680_s1 + $0x284] sm:$0xf0]  ;;  %v2515_v31 = vor.u32 %v3733_v18, %v2514_v17 }
  0x1f   : > { %710 = vmatpush.bf16.msra.mxu1 %v2603_v57  ;;  %v2642_v23 = vld [vmem:[%s5680_s1 + $0x300] sm:$0xf]  ;;  %v2715_v24 = vor.u32 %v3783_v15, %v2714_v14  ;;  %v3765_v25 = vld [vmem:[%s5680_s1 + $0x304] sm:$0xf0]  ;;  %v3746_v28 = vld [vmem:[%s5680_s1 + $0x274] sm:$0xf]  ;;  %v2579_v35 = vor.u32 %v3749_v22, %v2578_v21 }
  0x20   : > { %723 = vmatpush.bf16.msra.mxu2 %v2667_v58  ;;  %v2706_v26 = vld [vmem:[%s5680_s1 + $0x380] sm:$0xf]  ;;  %v3781_v27 = vld [vmem:[%s5680_s1 + $0x384] sm:$0xf0]  ;;  %v2572_v29 = vld [vmem:[%s5680_s1 + $0x278] sm:$0xf0]  ;;  %v2643_v36 = vor.u32 %v3765_v25, %v2642_v23 }
  0x21   : > { %736 = vmatpush.bf16.msra.mxu3 %v2731_v62  ;;  %v3762_v30 = vld [vmem:[%s5680_s1 + $0x2f4] sm:$0xf]  ;;  %v2636_v32 = vld [vmem:[%s5680_s1 + $0x2f8] sm:$0xf0]  ;;  %v2707_v39 = vor.u32 %v3781_v27, %v2706_v26  ;;  %v2575_v40 = vor.u32 %v3746_v28, %v2572_v29  ;;  %v3744_v43 = vld [vmem:[%s5680_s1 + $0x264] sm:$0xf] }
  0x22   : > { %698 = vmatpush.bf16.msra.mxu0 %v2531_v4  ;;  %v3778_v33 = vld [vmem:[%s5680_s1 + $0x374] sm:$0xf]  ;;  %v2700_v34 = vld [vmem:[%s5680_s1 + $0x378] sm:$0xf0]  ;;  %v2639_v41 = vor.u32 %v3762_v30, %v2636_v32  ;;  %v2564_v44 = vld [vmem:[%s5680_s1 + $0x268] sm:$0xf0] }
  0x23   : > { %711 = vmatpush.bf16.msra.mxu1 %v2595_v5  ;;  %v3794_v37 = vld [vmem:[%s5680_s1 + $0x3f4] sm:$0xf]  ;;  %v2764_v38 = vld [vmem:[%s5680_s1 + $0x3f8] sm:$0xf0]  ;;  %v2703_v42 = vor.u32 %v3778_v33, %v2700_v34  ;;  %v3760_v45 = vld [vmem:[%s5680_s1 + $0x2e4] sm:$0xf]  ;;  %v2567_v52 = vor.u32 %v3744_v43, %v2564_v44 }
  0x24   : > { %724 = vmatpush.bf16.msra.mxu2 %v2659_v6  ;;  %v2767_v46 = vor.u32 %v3794_v37, %v2764_v38  ;;  %v2628_v47 = vld [vmem:[%s5680_s1 + $0x2e8] sm:$0xf0]  ;;  %v3776_v48 = vld [vmem:[%s5680_s1 + $0x364] sm:$0xf]  ;;  %v3742_v55 = vld [vmem:[%s5680_s1 + $0x254] sm:$0xf] }
  0x25   : > { %737 = vmatpush.bf16.msra.mxu3 %v2723_v10  ;;  %v2692_v49 = vld [vmem:[%s5680_s1 + $0x368] sm:$0xf0]  ;;  %v3792_v50 = vld [vmem:[%s5680_s1 + $0x3e4] sm:$0xf]  ;;  %v2631_v53 = vor.u32 %v3760_v45, %v2628_v47  ;;  %v2556_v56 = vld [vmem:[%s5680_s1 + $0x258] sm:$0xf0] }
  0x26   : > { %699 = vmatpush.bf16.msra.mxu0 %v2523_v16  ;;  %v2756_v51 = vld [vmem:[%s5680_s1 + $0x3e8] sm:$0xf0]  ;;  %v2695_v54 = vor.u32 %v3776_v48, %v2692_v49  ;;  %v3758_v57 = vld [vmem:[%s5680_s1 + $0x2d4] sm:$0xf]  ;;  %v2620_v59 = vld [vmem:[%s5680_s1 + $0x2d8] sm:$0xf0]  ;;  %v2559_v0 = vor.u32 %v3742_v55, %v2556_v56 }
  0x27   : > { %712 = vmatpush.bf16.msra.mxu1 %v2587_v19  ;;  %v2759_v58 = vor.u32 %v3792_v50, %v2756_v51  ;;  %v3774_v60 = vld [vmem:[%s5680_s1 + $0x354] sm:$0xf]  ;;  %v2684_v61 = vld [vmem:[%s5680_s1 + $0x358] sm:$0xf0]  ;;  %v3740_v1 = vld [vmem:[%s5680_s1 + $0x244] sm:$0xf]  ;;  %v2623_v2 = vor.u32 %v3758_v57, %v2620_v59 }
  0x28   : > { %725 = vmatpush.bf16.msra.mxu2 %v2651_v20  ;;  %v3790_v62 = vld [vmem:[%s5680_s1 + $0x3d4] sm:$0xf]  ;;  %v2748_v63 = vld [vmem:[%s5680_s1 + $0x3d8] sm:$0xf0]  ;;  %v2687_v3 = vor.u32 %v3774_v60, %v2684_v61  ;;  %v2548_v4 = vld [vmem:[%s5680_s1 + $0x248] sm:$0xf0] }
  0x29   : > { %738 = vmatpush.bf16.msra.mxu3 %v2715_v24  ;;  %v3756_v5 = vld [vmem:[%s5680_s1 + $0x2c4] sm:$0xf]  ;;  %v2612_v6 = vld [vmem:[%s5680_s1 + $0x2c8] sm:$0xf0]  ;;  %v2751_v7 = vor.u32 %v3790_v62, %v2748_v63  ;;  %s5685_s16 = smov (!%p188_p3, %s2439_s16), 1  ;;  %v2551_v13 = vor.u32 %v3740_v1, %v2548_v4  ;;  %vm2309_vm0 = vcmask 1045504  }
  0x2a   : > { %700 = vmatpush.bf16.msra.mxu0 %v2515_v31  ;;  %v3772_v8 = vld [vmem:[%s5680_s1 + $0x344] sm:$0xf]  ;;  %v2676_v9 = vld [vmem:[%s5680_s1 + $0x348] sm:$0xf0]  ;;  %v3738_v12 = vld [vmem:[%s5680_s1 + $0x234] sm:$0xf]  ;;  %v2615_v16 = vor.u32 %v3756_v5, %v2612_v6 }
  0x2b   : > { %713 = vmatpush.bf16.msra.mxu1 %v2579_v35  ;;  %v3788_v10 = vld [vmem:[%s5680_s1 + $0x3c4] sm:$0xf]  ;;  %v2740_v11 = vld [vmem:[%s5680_s1 + $0x3c8] sm:$0xf0]  ;;  %v2540_v14 = vld [vmem:[%s5680_s1 + $0x238] sm:$0xf0]  ;;  %v2679_v17 = vor.u32 %v3772_v8, %v2676_v9 }
  0x2c   : > { %726 = vmatpush.bf16.msra.mxu2 %v2643_v36  ;;  %v3754_v15 = vld [vmem:[%s5680_s1 + $0x2b4] sm:$0xf]  ;;  %s3666_s23 = sshll.u32 %s5685_s16, 5  ;;  %v2604_v18 = vld [vmem:[%s5680_s1 + $0x2b8] sm:$0xf0]  ;;  %v2743_v21 = vor.u32 %v3788_v10, %v2740_v11  ;;  %v2543_v32 = vor.u32 %v3738_v12, %v2540_v14 }
  0x2d   : > { %739 = vmatpush.bf16.msra.mxu3 %v2707_v39  ;;  %v3770_v19 = vld [vmem:[%s5680_s1 + $0x334] sm:$0xf]  ;;  %v2668_v20 = vld [vmem:[%s5680_s1 + $0x338] sm:$0xf0]  ;;  %s4296_s6 = scalar_lea.vmem %s5679_s0, %s3666_s23  ;;  %v3736_v26 = vld [vmem:[%s5680_s1 + $0x224] sm:$0xf]  ;;  %v2607_v33 = vor.u32 %v3754_v15, %v2604_v18 }
  0x2e   : > { %745 = vmatpush.bf16.msrb.mxu0 %v2575_v40  ;;  %v3786_v22 = vld [vmem:[%s5680_s1 + $0x3b4] sm:$0xf]  ;;  %v265_v23 = vld [vmem:[%s4296_s6 + $0x8] sm:$0xff]  ;;  %v264_v24 = vld [vmem:[%s4296_s6] sm:$0xff]  ;;  %v2671_v34 = vor.u32 %v3770_v19, %v2668_v20 }
  0x2f   : > { %758 = vmatpush.bf16.msrb.mxu1 %v2639_v41  ;;  %v2732_v25 = vld [vmem:[%s5680_s1 + $0x3b8] sm:$0xf0]  ;;  %v2532_v27 = vld [vmem:[%s5680_s1 + $0x228] sm:$0xf0]  ;;  %v335_v28 = vunpack.c.l.b16 %v265_v23  ;;  %v336_v29 = vunpack.c.h.b16 %v265_v23  ;;  %v333_v30 = vunpack.c.l.b16 %v264_v24  ;;  %v334_v31 = vunpack.c.h.b16 %v264_v24  ;;  %v3752_v35 = vld [vmem:[%s5680_s1 + $0x2a4] sm:$0xf] }
  0x30   : > { %771 = vmatpush.bf16.msrb.mxu2 %v2703_v42  ;;  %v2596_v36 = vld [vmem:[%s5680_s1 + $0x2a8] sm:$0xf0]  ;;  %v3768_v37 = vld [vmem:[%s5680_s1 + $0x324] sm:$0xf]  ;;  %v2735_v41 = vor.u32 %v3786_v22, %v2732_v25  ;;  %v2535_v42 = vor.u32 %v3736_v26, %v2532_v27  ;;  %v3734_v51 = vld [vmem:[%s5680_s1 + $0x214] sm:$0xf] }
  0x31   : > { %784 = vmatpush.bf16.msrb.mxu3 %v2767_v46  ;;  %v339_v38 = vpack.c.b16 %v335_v28, %v335_v28  ;;  %v340_v39 = vpack.c.b16 %v336_v29, %v336_v29  ;;  %v337_v40 = vpack.c.b16 %v333_v30, %v333_v30  ;;  %v2660_v43 = vld [vmem:[%s5680_s1 + $0x328] sm:$0xf0]  ;;  %v3784_v44 = vld [vmem:[%s5680_s1 + $0x3a4] sm:$0xf]  ;;  %v338_v46 = vpack.c.b16 %v334_v31, %v334_v31  ;;  %v3750_v61 = vld [vmem:[%s5680_s1 + $0x294] sm:$0xf] }
  0x32   : > { %746 = vmatpush.bf16.msrb.mxu0 %v2567_v52  ;;  %v2724_v45 = vld [vmem:[%s5680_s1 + $0x3a8] sm:$0xf0]  ;;  %v2524_v52 = vld [vmem:[%s5680_s1 + $0x218] sm:$0xf0]  ;;  %v2599_v57 = vor.u32 %v3752_v35, %v2596_v36  ;;  %v3782_v6 = vld [vmem:[%s5680_s1 + $0x394] sm:$0xf] }
  0x33   : > { %759 = vmatpush.bf16.msrb.mxu1 %v2631_v53  ;;  %v356_v47 = vshrl.u32 %v339_v38, 16  ;;  %v358_v48 = vshll.u32 %v339_v38, 16  ;;  %v363_v49 = vshrl.u32 %v340_v39, 16  ;;  %v365_v50 = vshll.u32 %v340_v39, 16  ;;  %v2588_v62 = vld [vmem:[%s5680_s1 + $0x298] sm:$0xf0] }
  0x34   : > { %772 = vmatpush.bf16.msrb.mxu2 %v2695_v54  ;;  %v342_v53 = vshrl.u32 %v337_v40, 16  ;;  %v344_v54 = vshll.u32 %v337_v40, 16  ;;  %v349_v55 = vshrl.u32 %v338_v46, 16  ;;  %v351_v56 = vshll.u32 %v338_v46, 16  ;;  %v2652_v1 = vld [vmem:[%s5680_s1 + $0x318] sm:$0xf0] }
  0x35   : > { %785 = vmatpush.bf16.msrb.mxu3 %v2759_v58  ;;  %v2663_v58 = vor.u32 %v3768_v37, %v2660_v43  ;;  %v360_v59 = vrot.slane %v358_v48, 1  ;;  %v367_v60 = vrot.slane %v365_v50, 1  ;;  %v2727_v63 = vor.u32 %v3784_v44, %v2724_v45  ;;  %v3732_v11 = vld [vmem:[%s5680_s1 + $0x204] sm:$0xf]  ;;  %v2516_v12 = vld [vmem:[%s5680_s1 + $0x208] sm:$0xf0] }
  0x36   : > { %747 = vmatpush.bf16.msrb.mxu0 %v2559_v0  ;;  %v3766_v0 = vld [vmem:[%s5680_s1 + $0x314] sm:$0xf]  ;;  %v2527_v8 = vor.u32 %v3734_v51, %v2524_v52  ;;  %v3748_v15 = vld [vmem:[%s5680_s1 + $0x284] sm:$0xf]  ;;  %v2644_v19 = vld [vmem:[%s5680_s1 + $0x308] sm:$0xf0]  ;;  %v2519_v25 = vor.u32 %v3732_v11, %v2516_v12 }
  0x37   : > { %760 = vmatpush.bf16.msrb.mxu1 %v2623_v2  ;;  %v346_v2 = vrot.slane %v344_v54, 1  ;;  %v4348_v4 = vor.u32 %v360_v59, %v356_v47  ;;  %v4350_v5 = vor.u32 %v367_v60, %v363_v49  ;;  %v2655_v14 = vor.u32 %v3766_v0, %v2652_v1  ;;  %v3780_v20 = vld [vmem:[%s5680_s1 + $0x384] sm:$0xf]  ;;  %v2826_v22 = vld [vmem:[%s5680_s1 + $0x70] sm:$0xf] }
  0x38   : > { %773 = vmatpush.bf16.msrb.mxu2 %v2687_v3  ;;  %v353_v3 = vrot.slane %v351_v56, 1  ;;  %v3683_v23 = vld [vmem:[%s5680_s1 + $0x74] sm:$0xf0]  ;;  %v2890_v24 = vld [vmem:[%s5680_s1 + $0xf0] sm:$0xf] }
  0x39   : > { %786 = vmatpush.bf16.msrb.mxu3 %v2751_v7  ;;  %v2716_v7 = vld [vmem:[%s5680_s1 + $0x398] sm:$0xf0]  ;;  %v4358_v9 = vor.u32 %v346_v2, %v342_v53  ;;  %727 = vmatmul.bf16.vlgmr.msra.gmra.mxu2 %v4348_v4  ;;  %v3699_v26 = vld [vmem:[%s5680_s1 + $0xf4] sm:$0xf0]  ;;  %v2954_v27 = vld [vmem:[%s5680_s1 + $0x170] sm:$0xf] }
  0x3a   : > { %748 = vmatpush.bf16.msrb.mxu0 %v2551_v13  ;;  %v4360_v10 = vor.u32 %v353_v3, %v349_v55  ;;  %v2591_v13 = vor.u32 %v3750_v61, %v2588_v62  ;;  %v2719_v18 = vor.u32 %v3782_v6, %v2716_v7  ;;  %740 = vmatmul.bf16.vlgmr.msra.gmra.mxu3 %v4350_v5  ;;  %v3715_v28 = vld [vmem:[%s5680_s1 + $0x174] sm:$0xf0]  ;;  %v3018_v31 = vld [vmem:[%s5680_s1 + $0x1f0] sm:$0xf]  ;;  %v2818_v37 = vld [vmem:[%s5680_s1 + $0x60] sm:$0xf] }
  0x3b   : > { %761 = vmatpush.bf16.msrb.mxu1 %v2615_v16  ;;  %v2580_v16 = vld [vmem:[%s5680_s1 + $0x288] sm:$0xf0]  ;;  %701 = vmatmul.bf16.vlgmr.msra.gmra.mxu0 %v4358_v9  ;;  %v2891_v35 = vor.u32 %v3699_v26, %v2890_v24  ;;  %v2955_v36 = vor.u32 %v3715_v28, %v2954_v27  ;;  %v3681_v38 = vld [vmem:[%s5680_s1 + $0x64] sm:$0xf0]  ;;  %v2882_v39 = vld [vmem:[%s5680_s1 + $0xe0] sm:$0xf] }
  0x3c   : > { %774 = vmatpush.bf16.msrb.mxu2 %v2679_v17  ;;  %v3764_v17 = vld [vmem:[%s5680_s1 + $0x304] sm:$0xf]  ;;  %714 = vmatmul.bf16.vlgmr.msra.gmra.mxu1 %v4360_v10  ;;  %v2583_v29 = vor.u32 %v3748_v15, %v2580_v16  ;;  %v3713_v43 = vld [vmem:[%s5680_s1 + $0x164] sm:$0xf0]  ;;  %v3010_v44 = vld [vmem:[%s5680_s1 + $0x1e0] sm:$0xf]  ;;  %v2819_v46 = vor.u32 %v3681_v38, %v2818_v37 }
  0x3d   : > { %787 = vmatpush.bf16.msrb.mxu3 %v2743_v21  ;;  %v2708_v21 = vld [vmem:[%s5680_s1 + $0x388] sm:$0xf0]  ;;  %v2647_v30 = vor.u32 %v3764_v17, %v2644_v19  ;;  %v3729_v45 = vld [vmem:[%s5680_s1 + $0x1e4] sm:$0xf0]  ;;  %v2810_v49 = vld [vmem:[%s5680_s1 + $0x50] sm:$0xf] }
  0x3e   : > { %749 = vmatpush.bf16.msrb.mxu0 %v2543_v32  ;;  %v3731_v32 = vld [vmem:[%s5680_s1 + $0x1f4] sm:$0xf0]  ;;  %v2874_v51 = vld [vmem:[%s5680_s1 + $0xd0] sm:$0xf]  ;;  %v3011_v52 = vor.u32 %v3729_v45, %v3010_v44  ;;  %v2802_v61 = vld [vmem:[%s5680_s1 + $0x40] sm:$0xf] }
  0x3f   : > { %762 = vmatpush.bf16.msrb.mxu1 %v2607_v33  ;;  %v2711_v33 = vor.u32 %v3780_v20, %v2708_v21  ;;  %v3019_v40 = vor.u32 %v3731_v32, %v3018_v31  ;;  %v3679_v50 = vld [vmem:[%s5680_s1 + $0x54] sm:$0xf0]  ;;  %v2938_v54 = vld [vmem:[%s5680_s1 + $0x150] sm:$0xf]  ;;  %v3677_v62 = vld [vmem:[%s5680_s1 + $0x44] sm:$0xf0] }
  0x40   : > { %775 = vmatpush.bf16.msrb.mxu2 %v2671_v34  ;;  %v2827_v34 = vor.u32 %v3683_v23, %v2826_v22  ;;  %v3695_v53 = vld [vmem:[%s5680_s1 + $0xd4] sm:$0xf0]  ;;  %v3002_v56 = vld [vmem:[%s5680_s1 + $0x1d0] sm:$0xf]  ;;  %v3693_v1 = vld [vmem:[%s5680_s1 + $0xc4] sm:$0xf0] }
  0x41   : > { %788 = vmatpush.bf16.msrb.mxu3 %v2735_v41  ;;  %v3697_v41 = vld [vmem:[%s5680_s1 + $0xe4] sm:$0xf0]  ;;  %v3711_v55 = vld [vmem:[%s5680_s1 + $0x154] sm:$0xf0]  ;;  %v2875_v59 = vor.u32 %v3695_v53, %v2874_v51  ;;  %v2930_v2 = vld [vmem:[%s5680_s1 + $0x140] sm:$0xf] }
  0x42   : > { %750 = vmatpush.bf16.msrb.mxu0 %v2535_v42  ;;  %v2946_v42 = vld [vmem:[%s5680_s1 + $0x160] sm:$0xf]  ;;  %v2883_v47 = vor.u32 %v3697_v41, %v2882_v39  ;;  %v2939_v60 = vor.u32 %v3711_v55, %v2938_v54  ;;  %v3709_v3 = vld [vmem:[%s5680_s1 + $0x144] sm:$0xf0]  ;;  %v2858_v15 = vld [vmem:[%s5680_s1 + $0xb0] sm:$0xf] }
  0x43   : > { %763 = vmatpush.bf16.msrb.mxu1 %v2599_v57  ;;  %v2947_v48 = vor.u32 %v3713_v43, %v2946_v42  ;;  %v3727_v57 = vld [vmem:[%s5680_s1 + $0x1d4] sm:$0xf0]  ;;  %v2994_v6 = vld [vmem:[%s5680_s1 + $0x1c0] sm:$0xf]  ;;  %v3725_v7 = vld [vmem:[%s5680_s1 + $0x1c4] sm:$0xf0]  ;;  %v2931_v12 = vor.u32 %v3709_v3, %v2930_v2 }
  0x44   : > { %776 = vmatpush.bf16.msrb.mxu2 %v2663_v58  ;;  %v2811_v58 = vor.u32 %v3679_v50, %v2810_v49  ;;  %v3003_v0 = vor.u32 %v3727_v57, %v3002_v56  ;;  %v2995_v16 = vor.u32 %v3725_v7, %v2994_v6  ;;  %v2922_v17 = vld [vmem:[%s5680_s1 + $0x130] sm:$0xf]  ;;  %v2786_v23 = vld [vmem:[%s5680_s1 + $0x20] sm:$0xf]  ;;  %v3673_v24 = vld [vmem:[%s5680_s1 + $0x24] sm:$0xf0] }
  0x45   : > { %789 = vmatpush.bf16.msrb.mxu3 %v2727_v63  ;;  %v2866_v63 = vld [vmem:[%s5680_s1 + $0xc0] sm:$0xf]  ;;  %v2986_v19 = vld [vmem:[%s5680_s1 + $0x1b0] sm:$0xf]  ;;  %v3705_v27 = vld [vmem:[%s5680_s1 + $0x124] sm:$0xf0] }
  0x46   : > { %751 = vmatpush.bf16.msrb.mxu0 %v2527_v8  ;;  %v2803_v8 = vor.u32 %v3677_v62, %v2802_v61  ;;  %v2867_v11 = vor.u32 %v3693_v1, %v2866_v63  ;;  %v2914_v26 = vld [vmem:[%s5680_s1 + $0x120] sm:$0xf]  ;;  %v3687_v37 = vld [vmem:[%s5680_s1 + $0x94] sm:$0xf0]  ;;  %v2906_v38 = vld [vmem:[%s5680_s1 + $0x110] sm:$0xf] }
  0x47   : > { %764 = vmatpush.bf16.msrb.mxu1 %v2591_v13  ;;  %v2794_v13 = vld [vmem:[%s5680_s1 + $0x30] sm:$0xf]  ;;  %v2978_v28 = vld [vmem:[%s5680_s1 + $0x1a0] sm:$0xf]  ;;  %v2915_v32 = vor.u32 %v3705_v27, %v2914_v26  ;;  %v3703_v39 = vld [vmem:[%s5680_s1 + $0x114] sm:$0xf0] }
  0x48   : > { %777 = vmatpush.bf16.msrb.mxu2 %v2655_v14  ;;  %v3675_v14 = vld [vmem:[%s5680_s1 + $0x34] sm:$0xf0]  ;;  %v2770_v42 = vld [vmem:[%s5680_s1] sm:$0xf]  ;;  %v3669_v44 = vld [vmem:[%s5680_s1 + $0x4] sm:$0xf0] }
  0x49   : > { %790 = vmatpush.bf16.msrb.mxu3 %v2719_v18  ;;  %v3707_v18 = vld [vmem:[%s5680_s1 + $0x134] sm:$0xf0]  ;;  %v2795_v20 = vor.u32 %v3675_v14, %v2794_v13  ;;  %v2834_v45 = vld [vmem:[%s5680_s1 + $0x80] sm:$0xf]  ;;  %v3701_v50 = vld [vmem:[%s5680_s1 + $0x104] sm:$0xf0] }
  0x4a   : > { %752 = vmatpush.bf16.msrb.mxu0 %v2519_v25  ;;  %v2923_v22 = vor.u32 %v3707_v18, %v2922_v17  ;;  %v3689_v25 = vld [vmem:[%s5680_s1 + $0xa4] sm:$0xf0]  ;;  %v3719_v41 = vld [vmem:[%s5680_s1 + $0x194] sm:$0xf0]  ;;  %v2898_v49 = vld [vmem:[%s5680_s1 + $0x100] sm:$0xf] }
  0x4b   : > { %765 = vmatpush.bf16.msrb.mxu1 %v2583_v29  ;;  %v3721_v29 = vld [vmem:[%s5680_s1 + $0x1a4] sm:$0xf0]  ;;  %v198_v51 = vld [vmem:[%s4296_s6] sm:$0x77]  ;;  %v3682_v56 = vld [vmem:[%s5680_s1 + $0x74] sm:$0xf]  ;;  %v2899_v1 = vor.u32 %v3701_v50, %v2898_v49 }
  0x4c   : > { %778 = vmatpush.bf16.msrb.mxu2 %v2647_v30  ;;  %v2787_v30 = vor.u32 %v3673_v24, %v2786_v23  ;;  %v2962_v53 = vld [vmem:[%s5680_s1 + $0x180] sm:$0xf]  ;;  %v3717_v54 = vld [vmem:[%s5680_s1 + $0x184] sm:$0xf0]  ;;  %v2828_v57 = vld [vmem:[%s5680_s1 + $0x78] sm:$0xf0]  ;;  %v799_v63 = vunpack.c.l.b16 %v198_v51  ;;  %v800_v7 = vunpack.c.h.b16 %v198_v51 }
  0x4d   : > { %791 = vmatpush.bf16.msrb.mxu3 %v2711_v33  ;;  %753 = vmatmul.bf16.vlgmr.msrb.gmra.mxu0 %v4358_v9  ;;  %v3723_v9 = vld [vmem:[%s5680_s1 + $0x1b4] sm:$0xf0]  ;;  %v2778_v33 = vld [vmem:[%s5680_s1 + $0x10] sm:$0xf]  ;;  %v199_v55 = vld [vmem:[%s4296_s6 + $0x8] sm:$0x77] }
  0x4e   : > { %1131 = vmatpush.bf16.msra.mxu0 %v2827_v34  ;;  %766 = vmatmul.bf16.vlgmr.msrb.gmra.mxu1 %v4360_v10  ;;  %v2850_v10 = vld [vmem:[%s5680_s1 + $0xa0] sm:$0xf]  ;;  %v3671_v34 = vld [vmem:[%s5680_s1 + $0x14] sm:$0xf0]  ;;  %v3714_v61 = vld [vmem:[%s5680_s1 + $0x174] sm:$0xf]  ;;  %v801_v6 = vunpack.c.l.b16 %v199_v55  ;;  %v4621_v18 = vpack.c.b16 %v799_v63, %v799_v63 }
  0x4f   : > { %1144 = vmatpush.bf16.msra.mxu1 %v2891_v35  ;;  %779 = vmatmul.bf16.vlgmr.msrb.gmra.mxu2 %v4348_v4  ;;  %v3691_v4 = vld [vmem:[%s5680_s1 + $0xb4] sm:$0xf0]  ;;  %v2851_v31 = vor.u32 %v3689_v25, %v2850_v10  ;;  %v2842_v35 = vld [vmem:[%s5680_s1 + $0x90] sm:$0xf]  ;;  %v2779_v43 = vor.u32 %v3671_v34, %v2778_v33  ;;  %v2956_v62 = vld [vmem:[%s5680_s1 + $0x178] sm:$0xf0] }
  0x50   : > { %1157 = vmatpush.bf16.msra.mxu2 %v2955_v36  ;;  %792 = vmatmul.bf16.vlgmr.msrb.gmra.mxu3 %v4350_v5  ;;  %v2859_v21 = vor.u32 %v3691_v4, %v2858_v15  ;;  %v2987_v5 = vor.u32 %v3723_v9, %v2986_v19  ;;  %v2979_v36 = vor.u32 %v3721_v29, %v2978_v28  ;;  %v3730_v2 = vld [vmem:[%s5680_s1 + $0x1f4] sm:$0xf]  ;;  %v3020_v3 = vld [vmem:[%s5680_s1 + $0x1f8] sm:$0xf0]  ;;  %v3680_v15 = vld [vmem:[%s5680_s1 + $0x64] sm:$0xf] }
  0x51   : > { %1170 = vmatpush.bf16.msra.mxu3 %v3019_v40  ;;  %v2970_v40 = vld [vmem:[%s5680_s1 + $0x190] sm:$0xf]  ;;  %v2959_v14 = vor.u32 %v3714_v61, %v2956_v62  ;;  %v3696_v4 = vld [vmem:[%s5680_s1 + $0xe4] sm:$0xf]  ;;  %v3023_v17 = vor.u32 %v3730_v2, %v3020_v3  ;;  %v2884_v19 = vld [vmem:[%s5680_s1 + $0xe8] sm:$0xf0] }
  0x52   : > { %1132 = vmatpush.bf16.msra.mxu0 %v2819_v46  ;;  %v3685_v46 = vld [vmem:[%s5680_s1 + $0x84] sm:$0xf0]  ;;  %v3712_v9 = vld [vmem:[%s5680_s1 + $0x164] sm:$0xf]  ;;  %v3012_v24 = vld [vmem:[%s5680_s1 + $0x1e8] sm:$0xf0]  ;;  %v2887_v25 = vor.u32 %v3696_v4, %v2884_v19 }
  0x53   : > { %1145 = vmatpush.bf16.msra.mxu1 %v2883_v47  ;;  %v2843_v47 = vor.u32 %v3687_v37, %v2842_v35  ;;  %v3728_v23 = vld [vmem:[%s5680_s1 + $0x1e4] sm:$0xf]  ;;  %v3678_v27 = vld [vmem:[%s5680_s1 + $0x54] sm:$0xf]  ;;  %v2812_v28 = vld [vmem:[%s5680_s1 + $0x58] sm:$0xf0] }
  0x54   : > { %1158 = vmatpush.bf16.msra.mxu2 %v2947_v48  ;;  %v2907_v48 = vor.u32 %v3703_v39, %v2906_v38  ;;  %v3694_v29 = vld [vmem:[%s5680_s1 + $0xd4] sm:$0xf]  ;;  %v2940_v33 = vld [vmem:[%s5680_s1 + $0x158] sm:$0xf0]  ;;  %v3676_v39 = vld [vmem:[%s5680_s1 + $0x44] sm:$0xf] }
  0x55   : > { %1171 = vmatpush.bf16.msra.mxu3 %v3011_v52  ;;  %v2971_v52 = vor.u32 %v3719_v41, %v2970_v40  ;;  %v3726_v34 = vld [vmem:[%s5680_s1 + $0x1d4] sm:$0xf]  ;;  %v3004_v35 = vld [vmem:[%s5680_s1 + $0x1d8] sm:$0xf0]  ;;  %v2804_v40 = vld [vmem:[%s5680_s1 + $0x48] sm:$0xf0] }
  0x56   : > { %1133 = vmatpush.bf16.msra.mxu0 %v2811_v58  ;;  %v3698_v58 = vld [vmem:[%s5680_s1 + $0xf4] sm:$0xf]  ;;  %v3692_v41 = vld [vmem:[%s5680_s1 + $0xc4] sm:$0xf]  ;;  %v2852_v3 = vld [vmem:[%s5680_s1 + $0xa8] sm:$0xf0] }
  0x57   : > { %1146 = vmatpush.bf16.msra.mxu1 %v2875_v59  ;;  %v2771_v59 = vor.u32 %v3669_v44, %v2770_v42  ;;  %v3007_v42 = vor.u32 %v3726_v34, %v3004_v35  ;;  %v3708_v44 = vld [vmem:[%s5680_s1 + $0x144] sm:$0xf]  ;;  %v3674_v51 = vld [vmem:[%s5680_s1 + $0x34] sm:$0xf]  ;;  %v2844_v19 = vld [vmem:[%s5680_s1 + $0x98] sm:$0xf0] }
  0x58   : > { %1159 = vmatpush.bf16.msra.mxu2 %v2939_v60  ;;  %v2892_v60 = vld [vmem:[%s5680_s1 + $0xf8] sm:$0xf0]  ;;  %v3672_v63 = vld [vmem:[%s5680_s1 + $0x24] sm:$0xf]  ;;  %v3686_v4 = vld [vmem:[%s5680_s1 + $0x94] sm:$0xf] }
  0x59   : > { %1172 = vmatpush.bf16.msra.mxu3 %v3003_v0  ;;  %v2835_v0 = vor.u32 %v3685_v46, %v2834_v45  ;;  %v2895_v13 = vor.u32 %v3698_v58, %v2892_v60  ;;  %v2932_v45 = vld [vmem:[%s5680_s1 + $0x148] sm:$0xf0]  ;;  %v3724_v46 = vld [vmem:[%s5680_s1 + $0x1c4] sm:$0xf]  ;;  %v3722_v58 = vld [vmem:[%s5680_s1 + $0x1b4] sm:$0xf] }
  0x5a   : > { %1134 = vmatpush.bf16.msra.mxu0 %v2803_v8  ;;  %v2963_v8 = vor.u32 %v3717_v54, %v2962_v53  ;;  %v2935_v50 = vor.u32 %v3708_v44, %v2932_v45  ;;  %v3690_v53 = vld [vmem:[%s5680_s1 + $0xb4] sm:$0xf]  ;;  %v3716_v34 = vld [vmem:[%s5680_s1 + $0x184] sm:$0xf]  ;;  %v2964_v35 = vld [vmem:[%s5680_s1 + $0x188] sm:$0xf0] }
  0x5b   : > { %1147 = vmatpush.bf16.msra.mxu1 %v2867_v11  ;;  %v2831_v11 = vor.u32 %v3682_v56, %v2828_v57  ;;  %v3706_v56 = vld [vmem:[%s5680_s1 + $0x134] sm:$0xf]  ;;  %v2924_v57 = vld [vmem:[%s5680_s1 + $0x138] sm:$0xf0]  ;;  %v3338_v45 = vld [vmem:[%s5680_s1 + $0x5f0] sm:$0xf] }
  0x5c   : > { %1160 = vmatpush.bf16.msra.mxu2 %v2931_v12  ;;  %v802_v12 = vunpack.c.h.b16 %v199_v55  ;;  %v2860_v55 = vld [vmem:[%s5680_s1 + $0xb8] sm:$0xf0]  ;;  %v2927_v62 = vor.u32 %v3706_v56, %v2924_v57  ;;  %v3266_v56 = vld [vmem:[%s5680_s1 + $0x560] sm:$0xf]  ;;  %v3841_v57 = vld [vmem:[%s5680_s1 + $0x564] sm:$0xf0] }
  0x5d   : > { %1173 = vmatpush.bf16.msra.mxu3 %v2995_v16  ;;  %v2820_v16 = vld [vmem:[%s5680_s1 + $0x68] sm:$0xf0]  ;;  %v2863_v61 = vor.u32 %v3690_v53, %v2860_v55  ;;  %v3202_v53 = vld [vmem:[%s5680_s1 + $0x4e0] sm:$0xf]  ;;  %v3825_v55 = vld [vmem:[%s5680_s1 + $0x4e4] sm:$0xf0] }
  0x5e   : > { %1135 = vmatpush.bf16.msra.mxu0 %v2795_v20  ;;  %v2948_v20 = vld [vmem:[%s5680_s1 + $0x168] sm:$0xf0]  ;;  %v4642_v10 = vpack.c.b16 %v802_v12, %v802_v12 }
  0x5f   : > { %1148 = vmatpush.bf16.msra.mxu1 %v2859_v21  ;;  %v4632_v21 = vpack.c.b16 %v801_v6, %v801_v6  ;;  %v2951_v26 = vor.u32 %v3712_v9, %v2948_v20  ;;  %v3704_v6 = vld [vmem:[%s5680_s1 + $0x124] sm:$0xf]  ;;  %v3702_v9 = vld [vmem:[%s5680_s1 + $0x114] sm:$0xf]  ;;  %v2908_v20 = vld [vmem:[%s5680_s1 + $0x118] sm:$0xf0] }
  0x60   : > { %1161 = vmatpush.bf16.msra.mxu2 %v2923_v22  ;;  %v4634_v22 = vpack.c.b16 %v800_v7, %v800_v7  ;;  %v2916_v7 = vld [vmem:[%s5680_s1 + $0x128] sm:$0xf0] }
  0x61   : > { %1174 = vmatpush.bf16.msra.mxu3 %v2987_v5  ;;  %v2823_v5 = vor.u32 %v3680_v15, %v2820_v16  ;;  %v3670_v15 = vld [vmem:[%s5680_s1 + $0x14] sm:$0xf]  ;;  %v2780_v16 = vld [vmem:[%s5680_s1 + $0x18] sm:$0xf0] }
  0x62   : > { %1136 = vmatpush.bf16.msra.mxu0 %v2787_v30  ;;  %v3015_v30 = vor.u32 %v3728_v23, %v3012_v24  ;;  %v3718_v23 = vld [vmem:[%s5680_s1 + $0x194] sm:$0xf]  ;;  %v2972_v24 = vld [vmem:[%s5680_s1 + $0x198] sm:$0xf0] }
  0x63   : > { %1149 = vmatpush.bf16.msra.mxu1 %v2851_v31  ;;  %v2876_v31 = vld [vmem:[%s5680_s1 + $0xd8] sm:$0xf0] }
  0x64   : > { %1162 = vmatpush.bf16.msra.mxu2 %v2915_v32  ;;  %v3710_v32 = vld [vmem:[%s5680_s1 + $0x154] sm:$0xf]  ;;  %v2879_v37 = vor.u32 %v3694_v29, %v2876_v31  ;;  %v3684_v29 = vld [vmem:[%s5680_s1 + $0x84] sm:$0xf] }
  0x65   : > { %1175 = vmatpush.bf16.msra.mxu3 %v2979_v36  ;;  %v2815_v36 = vor.u32 %v3678_v27, %v2812_v28  ;;  %v2943_v38 = vor.u32 %v3710_v32, %v2940_v33  ;;  %v2847_v27 = vor.u32 %v3686_v4, %v2844_v19  ;;  %v2911_v28 = vor.u32 %v3702_v9, %v2908_v20  ;;  %v3700_v31 = vld [vmem:[%s5680_s1 + $0x104] sm:$0xf]  ;;  %v2900_v33 = vld [vmem:[%s5680_s1 + $0x108] sm:$0xf0]  ;;  %v3837_v4 = vld [vmem:[%s5680_s1 + $0x544] sm:$0xf0] }
  0x66   : > { %1137 = vmatpush.bf16.msra.mxu0 %v2779_v43  ;;  %v2868_v43 = vld [vmem:[%s5680_s1 + $0xc8] sm:$0xf0]  ;;  %v2975_v32 = vor.u32 %v3718_v23, %v2972_v24  ;;  %v2903_v44 = vor.u32 %v3700_v31, %v2900_v33  ;;  %v3853_v19 = vld [vmem:[%s5680_s1 + $0x5c4] sm:$0xf0]  ;;  %v3114_v9 = vld [vmem:[%s5680_s1 + $0x430] sm:$0xf] }
  0x67   : > { %1150 = vmatpush.bf16.msra.mxu1 %v2843_v47  ;;  %v2996_v47 = vld [vmem:[%s5680_s1 + $0x1c8] sm:$0xf0]  ;;  %v2871_v49 = vor.u32 %v3692_v41, %v2868_v43  ;;  %v3274_v41 = vld [vmem:[%s5680_s1 + $0x570] sm:$0xf]  ;;  %v3803_v20 = vld [vmem:[%s5680_s1 + $0x434] sm:$0xf0] }
  0x68   : > { %1163 = vmatpush.bf16.msra.mxu2 %v2907_v48  ;;  %v2807_v48 = vor.u32 %v3676_v39, %v2804_v40  ;;  %v2999_v54 = vor.u32 %v3724_v46, %v2996_v47  ;;  %v3827_v40 = vld [vmem:[%s5680_s1 + $0x4f4] sm:$0xf0]  ;;  %v2967_v47 = vor.u32 %v3716_v34, %v2964_v35  ;;  %v3178_v24 = vld [vmem:[%s5680_s1 + $0x4b0] sm:$0xf]  ;;  %v3115_v34 = vor.u32 %v3803_v20, %v3114_v9  ;;  %v3845_v9 = vld [vmem:[%s5680_s1 + $0x584] sm:$0xf0] }
  0x69   : > { %1176 = vmatpush.bf16.msra.mxu3 %v2971_v52  ;;  %v2796_v52 = vld [vmem:[%s5680_s1 + $0x38] sm:$0xf0]  ;;  %v3859_v46 = vld [vmem:[%s5680_s1 + $0x5f4] sm:$0xf0]  ;;  %v4916_v33 = vld [vmem:[%s4296_s6 + $0x10] sm:$0x11] }
  0x6a   : > { %1138 = vmatpush.bf16.msra.mxu0 %v2771_v59  ;;  %v2988_v59 = vld [vmem:[%s5680_s1 + $0x1b8] sm:$0xf0]  ;;  %v2799_v60 = vor.u32 %v3674_v51, %v2796_v52  ;;  %v3138_v51 = vld [vmem:[%s5680_s1 + $0x460] sm:$0xf]  ;;  %v3809_v52 = vld [vmem:[%s5680_s1 + $0x464] sm:$0xf0] }
  0x6b   : > { %1151 = vmatpush.bf16.msra.mxu1 %v2835_v0  ;;  %v2788_v0 = vld [vmem:[%s5680_s1 + $0x28] sm:$0xf0]  ;;  %v2991_v2 = vor.u32 %v3722_v58, %v2988_v59  ;;  %v3330_v58 = vld [vmem:[%s5680_s1 + $0x5e0] sm:$0xf]  ;;  %v3857_v59 = vld [vmem:[%s5680_s1 + $0x5e4] sm:$0xf0] }
  0x6c   : > { %1164 = vmatpush.bf16.msra.mxu2 %v2899_v1  ;;  %v3688_v1 = vld [vmem:[%s5680_s1 + $0xa4] sm:$0xf]  ;;  %v2791_v12 = vor.u32 %v3672_v63, %v2788_v0  ;;  %v3130_v63 = vld [vmem:[%s5680_s1 + $0x450] sm:$0xf]  ;;  %v3807_v0 = vld [vmem:[%s5680_s1 + $0x454] sm:$0xf0] }
  0x6d   : > { %1177 = vmatpush.bf16.msra.mxu3 %v2963_v8  ;;  %1139 = vmatmul.bf16.vlgmr.msra.gmra.mxu0 %v4621_v18  ;;  %v3720_v8 = vld [vmem:[%s5680_s1 + $0x1a4] sm:$0xf]  ;;  %v3306_v35 = vld [vmem:[%s5680_s1 + $0x5b0] sm:$0xf] }
  0x6e   : > { %1183 = vmatpush.bf16.msrb.mxu0 %v2831_v11  ;;  %1152 = vmatmul.bf16.vlgmr.msra.gmra.mxu1 %v4634_v22  ;;  %v2980_v11 = vld [vmem:[%s5680_s1 + $0x1a8] sm:$0xf0] }
  0x6f   : > { %1196 = vmatpush.bf16.msrb.mxu1 %v2895_v13  ;;  %1165 = vmatmul.bf16.vlgmr.msra.gmra.mxu2 %v4632_v21  ;;  %v2855_v13 = vor.u32 %v3688_v1, %v2852_v3  ;;  %v3194_v1 = vld [vmem:[%s5680_s1 + $0x4d0] sm:$0xf]  ;;  %v3823_v3 = vld [vmem:[%s5680_s1 + $0x4d4] sm:$0xf0] }
  0x70   : > { %1209 = vmatpush.bf16.msrb.mxu2 %v2959_v14  ;;  %1178 = vmatmul.bf16.vlgmr.msra.gmra.mxu3 %v4642_v10  ;;  %v2919_v14 = vor.u32 %v3704_v6, %v2916_v7  ;;  %v3258_v6 = vld [vmem:[%s5680_s1 + $0x550] sm:$0xf]  ;;  %v3839_v7 = vld [vmem:[%s5680_s1 + $0x554] sm:$0xf0] }
  0x71   : > { %1222 = vmatpush.bf16.msrb.mxu3 %v3023_v17  ;;  %v2983_v17 = vor.u32 %v3720_v8, %v2980_v11  ;;  %v3855_v8 = vld [vmem:[%s5680_s1 + $0x5d4] sm:$0xf0]  ;;  %v3131_v11 = vor.u32 %v3807_v0, %v3130_v63  ;;  %v3226_v0 = vld [vmem:[%s5680_s1 + $0x510] sm:$0xf] }
  0x72   : > { %1184 = vmatpush.bf16.msrb.mxu0 %v2823_v5  ;;  %v2783_v5 = vor.u32 %v3670_v15, %v2780_v16  ;;  %v3250_v16 = vld [vmem:[%s5680_s1 + $0x540] sm:$0xf]  ;;  %v3815_v63 = vld [vmem:[%s5680_s1 + $0x494] sm:$0xf0] }
  0x73   : > { %1197 = vmatpush.bf16.msrb.mxu1 %v2887_v25  ;;  %v3668_v25 = vld [vmem:[%s5680_s1 + $0x4] sm:$0xf] }
  0x74   : > { %1210 = vmatpush.bf16.msrb.mxu2 %v2951_v26  ;;  %v2772_v26 = vld [vmem:[%s5680_s1 + $0x8] sm:$0xf0] }
  0x75   : > { %1223 = vmatpush.bf16.msrb.mxu3 %v3015_v30  ;;  %v2836_v30 = vld [vmem:[%s5680_s1 + $0x88] sm:$0xf0]  ;;  %v2775_v39 = vor.u32 %v3668_v25, %v2772_v26  ;;  %v3242_v25 = vld [vmem:[%s5680_s1 + $0x530] sm:$0xf] }
  0x76   : > { %1185 = vmatpush.bf16.msrb.mxu0 %v2815_v36  ;;  %v3146_v36 = vld [vmem:[%s5680_s1 + $0x470] sm:$0xf]  ;;  %v2839_v43 = vor.u32 %v3684_v29, %v2836_v30  ;;  %v1236_v29 = vld [vmem:[%s4296_s6 + $0x8] sm:$0xee]  ;;  %v4912_v30 = vld [vmem:[%s4296_s6 + $0x18] sm:$0x11] }
  0x77   : > { %1198 = vmatpush.bf16.msrb.mxu1 %v2879_v37  ;;  %v3811_v37 = vld [vmem:[%s5680_s1 + $0x474] sm:$0xf0] }
  0x78   : > { %1211 = vmatpush.bf16.msrb.mxu2 %v2943_v38  ;;  %v3210_v38 = vld [vmem:[%s5680_s1 + $0x4f0] sm:$0xf] }
  0x79   : > { %1224 = vmatpush.bf16.msrb.mxu3 %v3007_v42  ;;  %v3843_v42 = vld [vmem:[%s5680_s1 + $0x574] sm:$0xf0] }
  0x7a   : > { %1186 = vmatpush.bf16.msrb.mxu0 %v2807_v48  ;;  %v3147_v48 = vor.u32 %v3811_v37, %v3146_v36  ;;  %v3851_v36 = vld [vmem:[%s5680_s1 + $0x5b4] sm:$0xf0] }
  0x7b   : > { %1199 = vmatpush.bf16.msrb.mxu1 %v2871_v49  ;;  %v3211_v49 = vor.u32 %v3827_v40, %v3210_v38  ;;  %v1310_v40 = vunpack.c.l.b16 %v1236_v29 }
  0x7c   : > { %1212 = vmatpush.bf16.msrb.mxu2 %v2935_v50  ;;  %v3275_v50 = vor.u32 %v3843_v42, %v3274_v41  ;;  %v1314_v41 = vunpack.c.l.b16 %v4912_v30  ;;  %v3801_v42 = vld [vmem:[%s5680_s1 + $0x424] sm:$0xf0] }
  0x7d   : > { %1225 = vmatpush.bf16.msrb.mxu3 %v2999_v54  ;;  %v3339_v54 = vor.u32 %v3859_v46, %v3338_v45  ;;  %v1311_v45 = vunpack.c.h.b16 %v1236_v29  ;;  %v1315_v46 = vunpack.c.h.b16 %v4912_v30 }
  0x7e   : > { %1187 = vmatpush.bf16.msrb.mxu0 %v2799_v60  ;;  %v3139_v60 = vor.u32 %v3809_v52, %v3138_v51  ;;  %v3833_v51 = vld [vmem:[%s5680_s1 + $0x524] sm:$0xf0] }
  0x7f   : > { %1200 = vmatpush.bf16.msrb.mxu1 %v2863_v61  ;;  %v3203_v61 = vor.u32 %v3825_v55, %v3202_v53  ;;  %v1313_v53 = vunpack.c.h.b16 %v4916_v33  ;;  %v3849_v55 = vld [vmem:[%s5680_s1 + $0x5a4] sm:$0xf0] }
  0x80   : > { %1213 = vmatpush.bf16.msrb.mxu2 %v2927_v62  ;;  %v3267_v62 = vor.u32 %v3841_v57, %v3266_v56 }
  0x81   : > { %1226 = vmatpush.bf16.msrb.mxu3 %v2991_v2  ;;  %v3331_v2 = vor.u32 %v3857_v59, %v3330_v58  ;;  %v3098_v58 = vld [vmem:[%s5680_s1 + $0x410] sm:$0xf]  ;;  %v3799_v59 = vld [vmem:[%s5680_s1 + $0x414] sm:$0xf0] }
  0x82   : > { %1188 = vmatpush.bf16.msrb.mxu0 %v2791_v12  ;;  %v3122_v12 = vld [vmem:[%s5680_s1 + $0x440] sm:$0xf] }
  0x83   : > { %1201 = vmatpush.bf16.msrb.mxu1 %v2855_v13  ;;  %v3805_v13 = vld [vmem:[%s5680_s1 + $0x444] sm:$0xf0] }
  0x84   : > { %1214 = vmatpush.bf16.msrb.mxu2 %v2919_v14  ;;  %v3186_v14 = vld [vmem:[%s5680_s1 + $0x4c0] sm:$0xf]  ;;  %v3123_v23 = vor.u32 %v3805_v13, %v3122_v12  ;;  %v3099_v12 = vor.u32 %v3799_v59, %v3098_v58  ;;  %v3813_v13 = vld [vmem:[%s5680_s1 + $0x484] sm:$0xf0]  ;;  %v3140_v58 = vld [vmem:[%s5680_s1 + $0x468] sm:$0xf0] }
  0x85   : > { %1227 = vmatpush.bf16.msrb.mxu3 %v2983_v17  ;;  %v3314_v17 = vld [vmem:[%s5680_s1 + $0x5c0] sm:$0xf]  ;;  %v3824_v59 = vld [vmem:[%s5680_s1 + $0x4e4] sm:$0xf] }
  0x86   : > { %1189 = vmatpush.bf16.msrb.mxu0 %v2783_v5  ;;  %v3819_v5 = vld [vmem:[%s5680_s1 + $0x4b4] sm:$0xf0]  ;;  %v3315_v31 = vor.u32 %v3853_v19, %v3314_v17  ;;  %v3282_v19 = vld [vmem:[%s5680_s1 + $0x580] sm:$0xf] }
  0x87   : > { %1202 = vmatpush.bf16.msrb.mxu1 %v2847_v27  ;;  %v3251_v27 = vor.u32 %v3837_v4, %v3250_v16  ;;  %v3179_v37 = vor.u32 %v3819_v5, %v3178_v24  ;;  %v3829_v16 = vld [vmem:[%s5680_s1 + $0x504] sm:$0xf0] }
  0x88   : > { %1215 = vmatpush.bf16.msrb.mxu2 %v2911_v28  ;;  %v3835_v28 = vld [vmem:[%s5680_s1 + $0x534] sm:$0xf0] }
  0x89   : > { %1228 = vmatpush.bf16.msrb.mxu3 %v2975_v32  ;;  %v1235_v32 = vld [vmem:[%s4296_s6] sm:$0xee]  ;;  %v3243_v38 = vor.u32 %v3835_v28, %v3242_v25 }
  0x8a   : > { %1190 = vmatpush.bf16.msrb.mxu0 %v2775_v39  ;;  %v3106_v39 = vld [vmem:[%s5680_s1 + $0x420] sm:$0xf]  ;;  %v1309_v52 = vunpack.c.h.b16 %v1235_v32 }
  0x8b   : > { %1203 = vmatpush.bf16.msrb.mxu1 %v2839_v43  ;;  %v3170_v43 = vld [vmem:[%s5680_s1 + $0x4a0] sm:$0xf]  ;;  %v3107_v56 = vor.u32 %v3801_v42, %v3106_v39  ;;  %v3858_v39 = vld [vmem:[%s5680_s1 + $0x5f4] sm:$0xf] }
  0x8c   : > { %1216 = vmatpush.bf16.msrb.mxu2 %v2903_v44  ;;  %v3817_v44 = vld [vmem:[%s5680_s1 + $0x4a4] sm:$0xf0] }
  0x8d   : > { %1229 = vmatpush.bf16.msrb.mxu3 %v2967_v47  ;;  %1191 = vmatmul.bf16.vlgmr.msrb.gmra.mxu0 %v4621_v18  ;;  %v3322_v18 = vld [vmem:[%s5680_s1 + $0x5d0] sm:$0xf]  ;;  %v1308_v47 = vunpack.c.l.b16 %v1235_v32  ;;  %v3171_v57 = vor.u32 %v3817_v44, %v3170_v43  ;;  %v3826_v32 = vld [vmem:[%s5680_s1 + $0x4f4] sm:$0xf]  ;;  %v3340_v43 = vld [vmem:[%s5680_s1 + $0x5f8] sm:$0xf0] }
  0x8e   : > { %1676 = vmatpush.bf16.msra.mxu0 %v3147_v48  ;;  %1204 = vmatmul.bf16.vlgmr.msrb.gmra.mxu1 %v4634_v22  ;;  %v3259_v22 = vor.u32 %v3839_v7, %v3258_v6  ;;  %v3323_v15 = vor.u32 %v3855_v8, %v3322_v18  ;;  %v1312_v48 = vunpack.c.l.b16 %v4916_v33  ;;  %v3290_v7 = vld [vmem:[%s5680_s1 + $0x590] sm:$0xf]  ;;  %v3847_v18 = vld [vmem:[%s5680_s1 + $0x594] sm:$0xf0]  ;;  %v3090_v8 = vld [vmem:[%s5680_s1 + $0x400] sm:$0xf] }
  0x8f   : > { %1689 = vmatpush.bf16.msra.mxu1 %v3211_v49  ;;  %1217 = vmatmul.bf16.vlgmr.msrb.gmra.mxu2 %v4632_v21  ;;  %v3195_v21 = vor.u32 %v3823_v3, %v3194_v1  ;;  %v3307_v49 = vor.u32 %v3851_v36, %v3306_v35  ;;  %v3831_v1 = vld [vmem:[%s5680_s1 + $0x514] sm:$0xf0]  ;;  %v3291_v25 = vor.u32 %v3847_v18, %v3290_v7  ;;  %v3842_v35 = vld [vmem:[%s5680_s1 + $0x574] sm:$0xf] }
  0x90   : > { %1702 = vmatpush.bf16.msra.mxu2 %v3275_v50  ;;  %1230 = vmatmul.bf16.vlgmr.msrb.gmra.mxu3 %v4642_v10  ;;  %v3821_v10 = vld [vmem:[%s5680_s1 + $0x4c4] sm:$0xf0]  ;;  %v3234_v50 = vld [vmem:[%s5680_s1 + $0x520] sm:$0xf]  ;;  %v1316_v3 = vpack.c.b16 %v1312_v48, %v1308_v47 }
  0x91   : > { %1715 = vmatpush.bf16.msra.mxu3 %v3339_v54  ;;  %v3187_v26 = vor.u32 %v3821_v10, %v3186_v14  ;;  %v3298_v54 = vld [vmem:[%s5680_s1 + $0x5a0] sm:$0xf]  ;;  %v3227_v10 = vor.u32 %v3831_v1, %v3226_v0  ;;  %v3268_v0 = vld [vmem:[%s5680_s1 + $0x568] sm:$0xf0] }
  0x92   : > { %1677 = vmatpush.bf16.msra.mxu0 %v3139_v60  ;;  %v3162_v60 = vld [vmem:[%s5680_s1 + $0x490] sm:$0xf]  ;;  %v3299_v6 = vor.u32 %v3849_v55, %v3298_v54  ;;  %v1321_v24 = vshrl.u32 %v1316_v3, 16  ;;  %v1324_v5 = vshll.u32 %v1316_v3, 16  ;;  %v3332_v3 = vld [vmem:[%s5680_s1 + $0x5e8] sm:$0xf0] }
  0x93   : > { %1690 = vmatpush.bf16.msra.mxu1 %v3203_v61  ;;  %v1318_v61 = vpack.c.b16 %v1314_v41, %v1310_v40  ;;  %v3163_v14 = vor.u32 %v3815_v63, %v3162_v60  ;;  %v3343_v60 = vor.u32 %v3858_v39, %v3340_v43  ;;  %v3840_v63 = vld [vmem:[%s5680_s1 + $0x564] sm:$0xf]  ;;  %v3180_v39 = vld [vmem:[%s5680_s1 + $0x4b8] sm:$0xf0]  ;;  %v3850_v43 = vld [vmem:[%s5680_s1 + $0x5b4] sm:$0xf] }
  0x94   : > { %1703 = vmatpush.bf16.msra.mxu2 %v3267_v62  ;;  %v3235_v62 = vor.u32 %v3833_v51, %v3234_v50  ;;  %v1323_v47 = vrot.slane %v1321_v24, 1  ;;  %v3283_v50 = vor.u32 %v3845_v9, %v3282_v19  ;;  %v3820_v24 = vld [vmem:[%s5680_s1 + $0x4c4] sm:$0xf] }
  0x95   : > { %1716 = vmatpush.bf16.msra.mxu3 %v3331_v2  ;;  %v1319_v2 = vpack.c.b16 %v1315_v46, %v1311_v45  ;;  %v1337_v4 = vshrl.u32 %v1318_v61, 16  ;;  %v1340_v17 = vshll.u32 %v1318_v61, 16 }
  0x96   : > { %1678 = vmatpush.bf16.msra.mxu0 %v3131_v11  ;;  %v1317_v11 = vpack.c.b16 %v1313_v53, %v1309_v52 }
  0x97   : > { %1691 = vmatpush.bf16.msra.mxu1 %v3195_v21  ;;  %v3797_v21 = vld [vmem:[%s5680_s1 + $0x404] sm:$0xf0]  ;;  %v1345_v20 = vshrl.u32 %v1319_v2, 16  ;;  %v1339_v40 = vrot.slane %v1337_v4, 1  ;;  %v1342_v42 = vrot.slane %v1340_v17, 2 }
  0x98   : > { %1704 = vmatpush.bf16.msra.mxu2 %v3259_v22  ;;  %v3154_v22 = vld [vmem:[%s5680_s1 + $0x480] sm:$0xf]  ;;  %v1329_v28 = vshrl.u32 %v1317_v11, 16  ;;  %v1332_v29 = vshll.u32 %v1317_v11, 16  ;;  %v3271_v11 = vor.u32 %v3840_v63, %v3268_v0  ;;  %v3324_v4 = vld [vmem:[%s5680_s1 + $0x5d8] sm:$0xf0] }
  0x99   : > { %1717 = vmatpush.bf16.msra.mxu3 %v3323_v15  ;;  %v3218_v15 = vld [vmem:[%s5680_s1 + $0x500] sm:$0xf]  ;;  %v3155_v36 = vor.u32 %v3813_v13, %v3154_v22  ;;  %v1347_v44 = vrot.slane %v1345_v20, 1  ;;  %v5041_v61 = vor.u32 %v1342_v42, %v1339_v40  ;;  %v3822_v22 = vld [vmem:[%s5680_s1 + $0x4d4] sm:$0xf] }
  0x9a   : > { %1679 = vmatpush.bf16.msra.mxu0 %v3123_v23  ;;  %v1348_v23 = vshll.u32 %v1319_v2, 16  ;;  %v1331_v52 = vrot.slane %v1329_v28, 1  ;;  %v1334_v54 = vrot.slane %v1332_v29, 2  ;;  %v3856_v2 = vld [vmem:[%s5680_s1 + $0x5e4] sm:$0xf] }
  0x9b   : > { %1692 = vmatpush.bf16.msra.mxu1 %v3187_v26  ;;  %v3810_v26 = vld [vmem:[%s5680_s1 + $0x474] sm:$0xf]  ;;  %v3335_v13 = vor.u32 %v3856_v2, %v3332_v3  ;;  %v3804_v20 = vld [vmem:[%s5680_s1 + $0x444] sm:$0xf]  ;;  %v3316_v29 = vld [vmem:[%s5680_s1 + $0x5c8] sm:$0xf0] }
  0x9c   : > { %1705 = vmatpush.bf16.msra.mxu2 %v3251_v27  ;;  %v3148_v27 = vld [vmem:[%s5680_s1 + $0x478] sm:$0xf0]  ;;  %v1350_v45 = vrot.slane %v1348_v23, 2  ;;  %v5062_v18 = vor.u32 %v1334_v54, %v1331_v52  ;;  %v3124_v23 = vld [vmem:[%s5680_s1 + $0x448] sm:$0xf0] }
  0x9d   : > { %1718 = vmatpush.bf16.msra.mxu3 %v3315_v31  ;;  %v3091_v31 = vor.u32 %v3797_v21, %v3090_v8  ;;  %v3151_v51 = vor.u32 %v3810_v26, %v3148_v27  ;;  %v3132_v21 = vld [vmem:[%s5680_s1 + $0x458] sm:$0xf0]  ;;  %v3836_v26 = vld [vmem:[%s5680_s1 + $0x544] sm:$0xf]  ;;  %v3252_v27 = vld [vmem:[%s5680_s1 + $0x548] sm:$0xf0] }
  0x9e   : > { %1680 = vmatpush.bf16.msra.mxu0 %v3115_v34  ;;  %v3212_v34 = vld [vmem:[%s5680_s1 + $0x4f8] sm:$0xf0]  ;;  %v5052_v1 = vor.u32 %v1350_v45, %v1347_v44  ;;  %v3852_v28 = vld [vmem:[%s5680_s1 + $0x5c4] sm:$0xf]  ;;  %v3834_v40 = vld [vmem:[%s5680_s1 + $0x534] sm:$0xf] }
  0x9f   : > { %1693 = vmatpush.bf16.msra.mxu1 %v3179_v37  ;;  %v3219_v37 = vor.u32 %v3829_v16, %v3218_v15  ;;  %v3215_v55 = vor.u32 %v3826_v32, %v3212_v34  ;;  %v3260_v15 = vld [vmem:[%s5680_s1 + $0x558] sm:$0xf0]  ;;  %v3854_v16 = vld [vmem:[%s5680_s1 + $0x5d4] sm:$0xf]  ;;  %v3255_v34 = vor.u32 %v3836_v26, %v3252_v27  ;;  %v3816_v52 = vld [vmem:[%s5680_s1 + $0x4a4] sm:$0xf] }
  0xa0   : > { %1706 = vmatpush.bf16.msra.mxu2 %v3243_v38  ;;  %v3276_v38 = vld [vmem:[%s5680_s1 + $0x578] sm:$0xf0]  ;;  %v3798_v0 = vld [vmem:[%s5680_s1 + $0x414] sm:$0xf]  ;;  %v3530_v26 = vld [vmem:[%s5680_s1 + $0x6f0] sm:$0xf] }
  0xa1   : > { %1719 = vmatpush.bf16.msra.mxu3 %v3307_v49  ;;  %v1326_v49 = vrot.slane %v1324_v5, 2  ;;  %v3327_v5 = vor.u32 %v3854_v16, %v3324_v4  ;;  %v3244_v42 = vld [vmem:[%s5680_s1 + $0x538] sm:$0xf0]  ;;  %v3814_v3 = vld [vmem:[%s5680_s1 + $0x494] sm:$0xf] }
  0xa2   : > { %1681 = vmatpush.bf16.msra.mxu0 %v3107_v56  ;;  %v3279_v56 = vor.u32 %v3842_v35, %v3276_v38  ;;  %v3802_v35 = vld [vmem:[%s5680_s1 + $0x434] sm:$0xf]  ;;  %v3319_v38 = vor.u32 %v3852_v28, %v3316_v29  ;;  %v3308_v44 = vld [vmem:[%s5680_s1 + $0x5b8] sm:$0xf0]  ;;  %v3812_v4 = vld [vmem:[%s5680_s1 + $0x484] sm:$0xf] }
  0xa3   : > { %1694 = vmatpush.bf16.msra.mxu1 %v3171_v57  ;;  %v3808_v57 = vld [vmem:[%s5680_s1 + $0x464] sm:$0xf]  ;;  %v3311_v54 = vor.u32 %v3850_v43, %v3308_v44  ;;  %v3100_v2 = vld [vmem:[%s5680_s1 + $0x418] sm:$0xf0]  ;;  %v3891_v28 = vld [vmem:[%s5680_s1 + $0x6f4] sm:$0xf0] }
  0xa4   : > { %1707 = vmatpush.bf16.msra.mxu2 %v3235_v62  ;;  %v3204_v62 = vld [vmem:[%s5680_s1 + $0x4e8] sm:$0xf0]  ;;  %v3143_v7 = vor.u32 %v3808_v57, %v3140_v58  ;;  %v3848_v58 = vld [vmem:[%s5680_s1 + $0x5a4] sm:$0xf]  ;;  %v3594_v29 = vld [vmem:[%s5680_s1 + $0x770] sm:$0xf] }
  0xa5   : > { %1720 = vmatpush.bf16.msra.mxu3 %v3299_v6  ;;  %v5060_v6 = vor.u32 %v1326_v49, %v1323_v47  ;;  %v3207_v8 = vor.u32 %v3824_v59, %v3204_v62  ;;  %v3247_v49 = vor.u32 %v3834_v40, %v3244_v42  ;;  %v3236_v57 = vld [vmem:[%s5680_s1 + $0x528] sm:$0xf0]  ;;  %v3458_v42 = vld [vmem:[%s5680_s1 + $0x660] sm:$0xf]  ;;  %v3873_v43 = vld [vmem:[%s5680_s1 + $0x664] sm:$0xf0] }
  0xa6   : > { %1682 = vmatpush.bf16.msra.mxu0 %v3099_v12  ;;  %v3806_v12 = vld [vmem:[%s5680_s1 + $0x454] sm:$0xf]  ;;  %v3300_v59 = vld [vmem:[%s5680_s1 + $0x5a8] sm:$0xf0]  ;;  %v3522_v44 = vld [vmem:[%s5680_s1 + $0x6e0] sm:$0xf] }
  0xa7   : > { %1695 = vmatpush.bf16.msra.mxu1 %v3163_v14  ;;  %v3196_v14 = vld [vmem:[%s5680_s1 + $0x4d8] sm:$0xf0]  ;;  %v3135_v17 = vor.u32 %v3806_v12, %v3132_v21  ;;  %v3846_v21 = vld [vmem:[%s5680_s1 + $0x594] sm:$0xf] }
  0xa8   : > { %1708 = vmatpush.bf16.msra.mxu2 %v3227_v10  ;;  %v3838_v10 = vld [vmem:[%s5680_s1 + $0x554] sm:$0xf]  ;;  %v3199_v19 = vor.u32 %v3822_v22, %v3196_v14  ;;  %v3228_v12 = vld [vmem:[%s5680_s1 + $0x518] sm:$0xf0]  ;;  %v3796_v14 = vld [vmem:[%s5680_s1 + $0x404] sm:$0xf] }
  0xa9   : > { %1721 = vmatpush.bf16.msra.mxu3 %v3291_v25  ;;  %v3263_v9 = vor.u32 %v3838_v10, %v3260_v15  ;;  %v3188_v25 = vld [vmem:[%s5680_s1 + $0x4c8] sm:$0xf0]  ;;  %v3292_v22 = vld [vmem:[%s5680_s1 + $0x598] sm:$0xf0] }
  0xaa   : > { %1683 = vmatpush.bf16.msra.mxu0 %v3091_v31  ;;  %v3127_v31 = vor.u32 %v3804_v20, %v3124_v23  ;;  %v3191_v32 = vor.u32 %v3820_v24, %v3188_v25  ;;  %v3092_v10 = vld [vmem:[%s5680_s1 + $0x408] sm:$0xf0]  ;;  %v3844_v23 = vld [vmem:[%s5680_s1 + $0x584] sm:$0xf]  ;;  %v3875_v25 = vld [vmem:[%s5680_s1 + $0x674] sm:$0xf0] }
  0xab   : > { %1696 = vmatpush.bf16.msra.mxu1 %v3155_v36  ;;  %v3116_v36 = vld [vmem:[%s5680_s1 + $0x438] sm:$0xf0]  ;;  %v3220_v20 = vld [vmem:[%s5680_s1 + $0x508] sm:$0xf0]  ;;  %v3095_v27 = vor.u32 %v3796_v14, %v3092_v10  ;;  %v3869_v14 = vld [vmem:[%s5680_s1 + $0x644] sm:$0xf0] }
  0xac   : > { %1709 = vmatpush.bf16.msra.mxu2 %v3219_v37  ;;  %v3818_v37 = vld [vmem:[%s5680_s1 + $0x4b4] sm:$0xf]  ;;  %v3119_v45 = vor.u32 %v3802_v35, %v3116_v36  ;;  %v3284_v24 = vld [vmem:[%s5680_s1 + $0x588] sm:$0xf0]  ;;  %v3658_v35 = vld [vmem:[%s5680_s1 + $0x7f0] sm:$0xf] }
  0xad   : > { %1722 = vmatpush.bf16.msra.mxu3 %v3283_v50  ;;  %1684 = vmatmul.bf16.vlgmr.msra.gmra.mxu0 %v5060_v6  ;;  %v3183_v47 = vor.u32 %v3818_v37, %v3180_v39  ;;  %v3800_v50 = vld [vmem:[%s5680_s1 + $0x424] sm:$0xf]  ;;  %v3923_v36 = vld [vmem:[%s5680_s1 + $0x7f4] sm:$0xf0]  ;;  %v3287_v37 = vor.u32 %v3844_v23, %v3284_v24  ;;  %v3531_v39 = vor.u32 %v3891_v28, %v3530_v26  ;;  %v3506_v10 = vld [vmem:[%s5680_s1 + $0x6c0] sm:$0xf] }
  0xae   : > { %1728 = vmatpush.bf16.msrb.mxu0 %v3151_v51  ;;  %1697 = vmatmul.bf16.vlgmr.msra.gmra.mxu1 %v5062_v18  ;;  %v3108_v51 = vld [vmem:[%s5680_s1 + $0x428] sm:$0xf0]  ;;  %v3434_v26 = vld [vmem:[%s5680_s1 + $0x630] sm:$0xf] }
  0xaf   : > { %1741 = vmatpush.bf16.msrb.mxu1 %v3215_v55  ;;  %1710 = vmatmul.bf16.vlgmr.msra.gmra.mxu2 %v5041_v61  ;;  %v3172_v55 = vld [vmem:[%s5680_s1 + $0x4a8] sm:$0xf0]  ;;  %v3498_v28 = vld [vmem:[%s5680_s1 + $0x6b0] sm:$0xf] }
  0xb0   : > { %1754 = vmatpush.bf16.msrb.mxu2 %v3279_v56  ;;  %1723 = vmatmul.bf16.vlgmr.msra.gmra.mxu3 %v5052_v1  ;;  %v3832_v56 = vld [vmem:[%s5680_s1 + $0x524] sm:$0xf]  ;;  %v3175_v62 = vor.u32 %v3816_v52, %v3172_v55  ;;  %v3650_v52 = vld [vmem:[%s5680_s1 + $0x7e0] sm:$0xf] }
  0xb1   : > { %1767 = vmatpush.bf16.msrb.mxu3 %v3343_v60  ;;  %v3111_v60 = vor.u32 %v3800_v50, %v3108_v51  ;;  %v3239_v63 = vor.u32 %v3832_v56, %v3236_v57  ;;  %v3905_v50 = vld [vmem:[%s5680_s1 + $0x764] sm:$0xf0]  ;;  %v3459_v56 = vor.u32 %v3873_v43, %v3458_v42  ;;  %v3426_v43 = vld [vmem:[%s5680_s1 + $0x620] sm:$0xf] }
  0xb2   : > { %1729 = vmatpush.bf16.msrb.mxu0 %v3143_v7  ;;  %v3303_v7 = vor.u32 %v3848_v58, %v3300_v59 }
  0xb3   : > { %1742 = vmatpush.bf16.msrb.mxu1 %v3207_v8  ;;  %v3164_v8 = vld [vmem:[%s5680_s1 + $0x498] sm:$0xf0] }
  0xb4   : > { %1755 = vmatpush.bf16.msrb.mxu2 %v3271_v11  ;;  %v3830_v11 = vld [vmem:[%s5680_s1 + $0x514] sm:$0xf]  ;;  %v3167_v15 = vor.u32 %v3814_v3, %v3164_v8  ;;  %v3578_v3 = vld [vmem:[%s5680_s1 + $0x750] sm:$0xf] }
  0xb5   : > { %1768 = vmatpush.bf16.msrb.mxu3 %v3335_v13  ;;  %v3103_v13 = vor.u32 %v3798_v0, %v3100_v2  ;;  %v3231_v16 = vor.u32 %v3830_v11, %v3228_v12  ;;  %v3887_v2 = vld [vmem:[%s5680_s1 + $0x6d4] sm:$0xf0] }
  0xb6   : > { %1730 = vmatpush.bf16.msrb.mxu0 %v3135_v17  ;;  %v3156_v17 = vld [vmem:[%s5680_s1 + $0x488] sm:$0xf0]  ;;  %v3919_v11 = vld [vmem:[%s5680_s1 + $0x7d4] sm:$0xf0] }
  0xb7   : > { %1743 = vmatpush.bf16.msrb.mxu1 %v3199_v19  ;;  %v3828_v19 = vld [vmem:[%s5680_s1 + $0x504] sm:$0xf] }
  0xb8   : > { %1756 = vmatpush.bf16.msrb.mxu2 %v3263_v9  ;;  %v3295_v9 = vor.u32 %v3846_v21, %v3292_v22  ;;  %v702_v51 = vpop.f32.mrf.mxu0 }
  0xb9   : > { %1769 = vmatpush.bf16.msrb.mxu3 %v3327_v5  ;;  %v3466_v5 = vld [vmem:[%s5680_s1 + $0x670] sm:$0xf]  ;;  %v715_v55 = vpop.f32.mrf.mxu1 }
  0xba   : > { %1731 = vmatpush.bf16.msrb.mxu0 %v3127_v31  ;;  %v3907_v31 = vld [vmem:[%s5680_s1 + $0x774] sm:$0xf0]  ;;  %v716_v57 = vadd.f32 %v715_v55, %v702_v51  ;;  %v3897_v51 = vld [vmem:[%s5680_s1 + $0x724] sm:$0xf0] }
  0xbb   : > { %1744 = vmatpush.bf16.msrb.mxu1 %v3191_v32  ;;  %v3159_v32 = vor.u32 %v3812_v4, %v3156_v17  ;;  %v3595_v40 = vor.u32 %v3907_v31, %v3594_v29  ;;  %v3570_v4 = vld [vmem:[%s5680_s1 + $0x740] sm:$0xf]  ;;  %v3901_v17 = vld [vmem:[%s5680_s1 + $0x744] sm:$0xf0]  ;;  %v3883_v31 = vld [vmem:[%s5680_s1 + $0x6b4] sm:$0xf0] }
  0xbc   : > { %1757 = vmatpush.bf16.msrb.mxu2 %v3255_v34  ;;  %v3223_v34 = vor.u32 %v3828_v19, %v3220_v20  ;;  %v728_v8 = vpop.f32.mrf.mxu2  ;;  %v3917_v20 = vld [vmem:[%s5680_s1 + $0x7c4] sm:$0xf0] }
  0xbd   : > { %1770 = vmatpush.bf16.msrb.mxu3 %v3319_v38  ;;  %v3467_v38 = vor.u32 %v3875_v25, %v3466_v5  ;;  %v729_v12 = vadd.f32 %v728_v8, %v716_v57  ;;  %v741_v22 = vpop.f32.mrf.mxu3  ;;  %v3571_v25 = vor.u32 %v3901_v17, %v3570_v4  ;;  %v3418_v57 = vld [vmem:[%s5680_s1 + $0x610] sm:$0xf] }
  0xbe   : > { %1732 = vmatpush.bf16.msrb.mxu0 %v3119_v45  ;;  %v3659_v45 = vor.u32 %v3923_v36, %v3658_v35  ;;  %v3626_v36 = vld [vmem:[%s5680_s1 + $0x7b0] sm:$0xf] }
  0xbf   : > { %1745 = vmatpush.bf16.msrb.mxu1 %v3183_v47  ;;  %v3889_v47 = vld [vmem:[%s5680_s1 + $0x6e4] sm:$0xf0]  ;;  %v3546_v8 = vld [vmem:[%s5680_s1 + $0x710] sm:$0xf] }
  0xc0   : > { %1758 = vmatpush.bf16.msrb.mxu2 %v3247_v49  ;;  %v3586_v49 = vld [vmem:[%s5680_s1 + $0x760] sm:$0xf]  ;;  %v3523_v58 = vor.u32 %v3889_v47, %v3522_v44  ;;  %v704_v19 = vpop.f32.mrf.mxu0  ;;  %v3865_v44 = vld [vmem:[%s5680_s1 + $0x624] sm:$0xf0] }
  0xc1   : > { %1771 = vmatpush.bf16.msrb.mxu3 %v3311_v54  ;;  %v3921_v54 = vld [vmem:[%s5680_s1 + $0x7e4] sm:$0xf0]  ;;  %v3587_v59 = vor.u32 %v3905_v50, %v3586_v49  ;;  %v717_v23 = vpop.f32.mrf.mxu1  ;;  %v3554_v50 = vld [vmem:[%s5680_s1 + $0x720] sm:$0xf] }
  0xc2   : > { %1733 = vmatpush.bf16.msrb.mxu0 %v3111_v60  ;;  %v3450_v60 = vld [vmem:[%s5680_s1 + $0x650] sm:$0xf]  ;;  %v3651_v0 = vor.u32 %v3921_v54, %v3650_v52  ;;  %v3881_v49 = vld [vmem:[%s5680_s1 + $0x6a4] sm:$0xf0]  ;;  %v3618_v52 = vld [vmem:[%s5680_s1 + $0x7a0] sm:$0xf] }
  0xc3   : > { %1746 = vmatpush.bf16.msrb.mxu1 %v3175_v62  ;;  %v3871_v62 = vld [vmem:[%s5680_s1 + $0x654] sm:$0xf0]  ;;  %v3913_v54 = vld [vmem:[%s5680_s1 + $0x7a4] sm:$0xf0]  ;;  %v3538_v19 = vld [vmem:[%s5680_s1 + $0x700] sm:$0xf] }
  0xc4   : > { %1759 = vmatpush.bf16.msrb.mxu2 %v3239_v63  ;;  %v3514_v63 = vld [vmem:[%s5680_s1 + $0x6d0] sm:$0xf]  ;;  %v3451_v21 = vor.u32 %v3871_v62, %v3450_v60  ;;  %v730_v35 = vpop.f32.mrf.mxu2  ;;  %v3555_v62 = vor.u32 %v3897_v51, %v3554_v50 }
  0xc5   : > { %1772 = vmatpush.bf16.msrb.mxu3 %v3303_v7  ;;  %v3903_v7 = vld [vmem:[%s5680_s1 + $0x754] sm:$0xf0] }
  0xc6   : > { %1734 = vmatpush.bf16.msrb.mxu0 %v3103_v13  ;;  %v3579_v13 = vor.u32 %v3903_v7, %v3578_v3  ;;  %v1783_v3 = vld [vmem:[%s4296_s6 + $0x8] sm:$0xcc]  ;;  %v3619_v7 = vor.u32 %v3913_v54, %v3618_v52  ;;  %v3872_v52 = vld [vmem:[%s5680_s1 + $0x664] sm:$0xf] }
  0xc7   : > { %1747 = vmatpush.bf16.msrb.mxu1 %v3167_v15  ;;  %v5297_v15 = vadd.f32 %v741_v22, %v729_v12  ;;  %v3610_v12 = vld [vmem:[%s5680_s1 + $0x790] sm:$0xf]  ;;  %v3410_v22 = vld [vmem:[%s5680_s1 + $0x600] sm:$0xf]  ;;  %v1854_v23 = vunpack.c.h.b16 %v1783_v3 }
  0xc8   : > { %1760 = vmatpush.bf16.msrb.mxu2 %v3231_v16  ;;  %v3885_v16 = vld [vmem:[%s5680_s1 + $0x6c4] sm:$0xf0] }
  0xc9   : > { %1773 = vmatpush.bf16.msrb.mxu3 %v3295_v9  ;;  %v3634_v9 = vld [vmem:[%s5680_s1 + $0x7c0] sm:$0xf]  ;;  %v3507_v5 = vor.u32 %v3885_v16, %v3506_v10  ;;  %v3877_v10 = vld [vmem:[%s5680_s1 + $0x684] sm:$0xf0]  ;;  %v1853_v16 = vunpack.c.l.b16 %v1783_v3 }
  0xca   : > { %1735 = vmatpush.bf16.msrb.mxu0 %v3095_v27  ;;  %v3867_v27 = vld [vmem:[%s5680_s1 + $0x634] sm:$0xf0]  ;;  %v3635_v29 = vor.u32 %v3917_v20, %v3634_v9  ;;  %v754_v55 = vpop.f32.mrf.mxu0  ;;  %v3893_v9 = vld [vmem:[%s5680_s1 + $0x704] sm:$0xf0]  ;;  %v3602_v20 = vld [vmem:[%s5680_s1 + $0x780] sm:$0xf] }
  0xcb   : > { %1748 = vmatpush.bf16.msrb.mxu1 %v3159_v32  ;;  %v3562_v32 = vld [vmem:[%s5680_s1 + $0x730] sm:$0xf] }
  0xcc   : > { %1761 = vmatpush.bf16.msrb.mxu2 %v3223_v34  ;;  %v3899_v34 = vld [vmem:[%s5680_s1 + $0x734] sm:$0xf0] }
  0xcd   : > { %1774 = vmatpush.bf16.msrb.mxu3 %v3287_v37  ;;  %1736 = vmatmul.bf16.vlgmr.msrb.gmra.mxu0 %v5060_v6  ;;  %v3442_v6 = vld [vmem:[%s5680_s1 + $0x640] sm:$0xf]  ;;  %v3915_v37 = vld [vmem:[%s5680_s1 + $0x7b4] sm:$0xf0]  ;;  %v3563_v42 = vor.u32 %v3899_v34, %v3562_v32  ;;  %v3532_v32 = vld [vmem:[%s5680_s1 + $0x6f8] sm:$0xf0] }
  0xce   : > { %2187 = vmatpush.bf16.msra.mxu0 %v3467_v38  ;;  %1749 = vmatmul.bf16.vlgmr.msrb.gmra.mxu1 %v5062_v18  ;;  %v3443_v24 = vor.u32 %v3869_v14, %v3442_v6  ;;  %v3435_v38 = vor.u32 %v3867_v27, %v3434_v26  ;;  %v3627_v47 = vor.u32 %v3915_v37, %v3626_v36  ;;  %v3861_v6 = vld [vmem:[%s5680_s1 + $0x604] sm:$0xf0]  ;;  %v3474_v14 = vld [vmem:[%s5680_s1 + $0x680] sm:$0xf]  ;;  %v3874_v26 = vld [vmem:[%s5680_s1 + $0x674] sm:$0xf] }
  0xcf   : > { %2200 = vmatpush.bf16.msra.mxu1 %v3531_v39  ;;  %1762 = vmatmul.bf16.vlgmr.msrb.gmra.mxu2 %v5041_v61  ;;  %v3642_v61 = vld [vmem:[%s5680_s1 + $0x7d0] sm:$0xf]  ;;  %v743_v39 = vpop.f32.mrf.mxu3  ;;  %v3468_v27 = vld [vmem:[%s5680_s1 + $0x678] sm:$0xf0]  ;;  %v3906_v34 = vld [vmem:[%s5680_s1 + $0x774] sm:$0xf]  ;;  %v3411_v37 = vor.u32 %v3861_v6, %v3410_v22 }
  0xd0   : > { %2213 = vmatpush.bf16.msra.mxu2 %v3595_v40  ;;  %1775 = vmatmul.bf16.vlgmr.msrb.gmra.mxu3 %v5052_v1  ;;  %v3515_v1 = vor.u32 %v3887_v2, %v3514_v63  ;;  %v3643_v18 = vor.u32 %v3919_v11, %v3642_v61  ;;  %v3499_v40 = vor.u32 %v3883_v31, %v3498_v28  ;;  %v3482_v63 = vld [vmem:[%s5680_s1 + $0x690] sm:$0xf]  ;;  %v3895_v61 = vld [vmem:[%s5680_s1 + $0x714] sm:$0xf0]  ;;  %v1782_v11 = vld [vmem:[%s4296_s6] sm:$0xcc] }
  0xd1   : > { %2226 = vmatpush.bf16.msra.mxu3 %v3659_v45  ;;  %v3490_v45 = vld [vmem:[%s5680_s1 + $0x6a0] sm:$0xf]  ;;  %v3547_v17 = vor.u32 %v3895_v61, %v3546_v8  ;;  %v3890_v31 = vld [vmem:[%s5680_s1 + $0x6f4] sm:$0xf]  ;;  %v3596_v39 = vld [vmem:[%s5680_s1 + $0x778] sm:$0xf0]  ;;  %v3471_v51 = vor.u32 %v3874_v26, %v3468_v27 }
  0xd2   : > { %2188 = vmatpush.bf16.msra.mxu0 %v3459_v56  ;;  %v3427_v56 = vor.u32 %v3865_v44, %v3426_v43  ;;  %v3491_v60 = vor.u32 %v3881_v49, %v3490_v45  ;;  %v756_v35 = vpop.f32.mrf.mxu0  ;;  %v2301_v43 = vld [vmem:[%s5682_s3] sm:$0x3f]  ;;  %v3539_v44 = vor.u32 %v3893_v9, %v3538_v19  ;;  %v3922_v45 = vld [vmem:[%s5680_s1 + $0x7f4] sm:$0xf]  ;;  %v3535_v30 = vor.u32 %v3890_v31, %v3532_v32  ;;  %v3444_v9 = vld [vmem:[%s5680_s1 + $0x648] sm:$0xf0] }
  0xd3   : > { %2201 = vmatpush.bf16.msra.mxu1 %v3523_v58  ;;  %v3863_v58 = vld [vmem:[%s5680_s1 + $0x614] sm:$0xf0]  ;;  %v3886_v22 = vld [vmem:[%s5680_s1 + $0x6d4] sm:$0xf]  ;;  %v3868_v19 = vld [vmem:[%s5680_s1 + $0x644] sm:$0xf] }
  0xd4   : > { %2214 = vmatpush.bf16.msra.mxu2 %v3587_v59  ;;  %v767_v59 = vpop.f32.mrf.mxu1  ;;  %v3902_v6 = vld [vmem:[%s5680_s1 + $0x754] sm:$0xf]  ;;  %v3916_v27 = vld [vmem:[%s5680_s1 + $0x7c4] sm:$0xf]  ;;  %v3447_v31 = vor.u32 %v3868_v19, %v3444_v9  ;;  %s3667_s6 = sshll.u32 %s5685_s16, 3 }
  0xd5   : > { %2227 = vmatpush.bf16.msra.mxu3 %v3651_v0  ;;  %v3879_v0 = vld [vmem:[%s5680_s1 + $0x694] sm:$0xf0]  ;;  %v768_v2 = vadd.f32 %v767_v59, %v754_v55  ;;  %v3946_v55 = vmov 0   ;;  %v3904_v59 = vld [vmem:[%s5680_s1 + $0x764] sm:$0xf]  ;;  %s197_s24 = scalar_lea.vmem %s5683_s4, %s3667_s6 }
  0xd6   : > { %2189 = vmatpush.bf16.msra.mxu0 %v3451_v21  ;;  %v3911_v21 = vld [vmem:[%s5680_s1 + $0x794] sm:$0xf0]  ;;  %v3483_v4 = vor.u32 %v3879_v0, %v3482_v63  ;;  %3933 = vset.pattern.permute.xlu0 %v3946_v55  ;;  %v3920_v63 = vld [vmem:[%s5680_s1 + $0x7e4] sm:$0xf]  ;;  %v3652_v0 = vld [vmem:[%s5680_s1 + $0x7e8] sm:$0xf0] }
  0xd7   : > { %2202 = vmatpush.bf16.msra.mxu1 %v3515_v1  ;;  %v780_v1 = vpop.f32.mrf.mxu2  ;;  %v793_v28 = vpop.f32.mrf.mxu3  ;;  %2304 = vperm.xlu0 %3933, %v2301_v43   ;;  %v3500_v43 = vld [vmem:[%s5680_s1 + $0x6b8] sm:$0xf0] }
  0xd8   : > { %2215 = vmatpush.bf16.msra.mxu2 %v3579_v13  ;;  %v3419_v13 = vor.u32 %v3863_v58, %v3418_v57  ;;  %v3524_v57 = vld [vmem:[%s5680_s1 + $0x6e8] sm:$0xf0] }
  0xd9   : > { %2228 = vmatpush.bf16.msra.mxu3 %v3643_v18  ;;  %v781_v18 = vadd.f32 %v780_v1, %v768_v2  ;;  %v3655_v1 = vor.u32 %v3920_v63, %v3652_v0  ;;  %v3912_v0 = vld [vmem:[%s5680_s1 + $0x7a4] sm:$0xf] }
  0xda   : > { %2190 = vmatpush.bf16.msra.mxu0 %v3443_v24  ;;  %v1851_v24 = vunpack.c.l.b16 %v1782_v11 }
  0xdb   : > { %2203 = vmatpush.bf16.msra.mxu1 %v3507_v5  ;;  %v3611_v5 = vor.u32 %v3911_v21, %v3610_v12  ;;  %v5427_v36 = vadd.f32 %v793_v28, %v781_v18  ;;  %v3870_v12 = vld [vmem:[%s5680_s1 + $0x654] sm:$0xf]  ;;  %v3452_v21 = vld [vmem:[%s5680_s1 + $0x658] sm:$0xf0]  ;;  %v3636_v28 = vld [vmem:[%s5680_s1 + $0x7c8] sm:$0xf0] }
  0xdc   : > { %2216 = vmatpush.bf16.msra.mxu2 %v3571_v25  ;;  %v3909_v25 = vld [vmem:[%s5680_s1 + $0x784] sm:$0xf0]  ;;  %v5451_v49 = vpack.c.b16 %v1312_v48, %v1851_v24  ;;  %v3460_v48 = vld [vmem:[%s5680_s1 + $0x668] sm:$0xf0]  ;;  %v3644_v18 = vld [vmem:[%s5680_s1 + $0x7d8] sm:$0xf0] }
  0xdd   : > { %2229 = vmatpush.bf16.msra.mxu3 %v3635_v29  ;;  %v1852_v29 = vunpack.c.h.b16 %v1782_v11  ;;  %v3603_v50 = vor.u32 %v3909_v25, %v3602_v20  ;;  %v3463_v3 = vor.u32 %v3872_v52, %v3460_v48  ;;  %v3884_v20 = vld [vmem:[%s5680_s1 + $0x6c4] sm:$0xf]  ;;  %v3508_v24 = vld [vmem:[%s5680_s1 + $0x6c8] sm:$0xf0] }
  0xde   : > { %2191 = vmatpush.bf16.msra.mxu0 %v3435_v38  ;;  %v3475_v38 = vor.u32 %v3877_v10, %v3474_v14  ;;  %v1859_v2 = vrot.slane %v5451_v49, 2  ;;  %v3580_v14 = vld [vmem:[%s5680_s1 + $0x758] sm:$0xf0]  ;;  %v3918_v10 = vld [vmem:[%s5680_s1 + $0x7d4] sm:$0xf] }
  0xdf   : > { %2204 = vmatpush.bf16.msra.mxu1 %v3499_v40  ;;  %v5434_v40 = vpack.c.b16 %v1314_v41, %v1853_v16  ;;  %v5447_v41 = vpack.c.b16 %v1315_v46, %v1854_v23  ;;  %v5458_v54 = vpack.c.b16 %v1313_v53, %v1852_v29  ;;  %v3599_v46 = vor.u32 %v3906_v34, %v3596_v39  ;;  %v782_v58 = vpop.f32.mrf.mxu2  ;;  %v795_v8 = vpop.f32.mrf.mxu3  ;;  %v3572_v25 = vld [vmem:[%s5680_s1 + $0x748] sm:$0xf0]  ;;  %v3882_v39 = vld [vmem:[%s5680_s1 + $0x6b4] sm:$0xf]  ;;  %v3880_v48 = vld [vmem:[%s5680_s1 + $0x6a4] sm:$0xf] }
  0xe0   : > { %2217 = vmatpush.bf16.msra.mxu2 %v3563_v42  ;;  %v769_v42 = vpop.f32.mrf.mxu1  ;;  %v3455_v16 = vor.u32 %v3870_v12, %v3452_v21  ;;  %v3647_v23 = vor.u32 %v3918_v10, %v3644_v18  ;;  %v3511_v34 = vor.u32 %v3884_v20, %v3508_v24  ;;  %v3503_v52 = vor.u32 %v3882_v39, %v3500_v43  ;;  %v3492_v58 = vld [vmem:[%s5680_s1 + $0x6a8] sm:$0xf0]  ;;  %v3484_v10 = vld [vmem:[%s5680_s1 + $0x698] sm:$0xf0]  ;;  %v3894_v18 = vld [vmem:[%s5680_s1 + $0x714] sm:$0xf] }
  0xe1   : > { %2230 = vmatpush.bf16.msra.mxu3 %v3627_v47  ;;  %v3660_v47 = vld [vmem:[%s5680_s1 + $0x7f8] sm:$0xf0]  ;;  %v1861_v53 = vrot.slane %v5434_v40, 2  ;;  %v3495_v21 = vor.u32 %v3880_v48, %v3492_v58  ;;  %v3412_v24 = vld [vmem:[%s5680_s1 + $0x608] sm:$0xf0] }
  0xe2   : > { %2192 = vmatpush.bf16.msra.mxu0 %v3427_v56  ;;  %v3888_v56 = vld [vmem:[%s5680_s1 + $0x6e4] sm:$0xf]  ;;  %v3663_v33 = vor.u32 %v3922_v45, %v3660_v47  ;;  %v3564_v45 = vld [vmem:[%s5680_s1 + $0x738] sm:$0xf0]  ;;  %v3914_v47 = vld [vmem:[%s5680_s1 + $0x7b4] sm:$0xf] }
  0xe3   : > { %2205 = vmatpush.bf16.msra.mxu1 %v3491_v60  ;;  %v3588_v60 = vld [vmem:[%s5680_s1 + $0x768] sm:$0xf0]  ;;  %v3527_v61 = vor.u32 %v3888_v56, %v3524_v57 }
  0xe4   : > { %2218 = vmatpush.bf16.msra.mxu2 %v3555_v62  ;;  %v1862_v62 = vrot.slane %v5447_v41, 2  ;;  %v3591_v11 = vor.u32 %v3904_v59, %v3588_v60  ;;  %v3556_v59 = vld [vmem:[%s5680_s1 + $0x728] sm:$0xf0] }
  0xe5   : > { %2231 = vmatpush.bf16.msra.mxu3 %v3619_v7  ;;  %v1860_v7 = vrot.slane %v5458_v54, 2 }
  0xe6   : > { %2193 = vmatpush.bf16.msra.mxu0 %v3419_v13  ;;  %v3516_v13 = vld [vmem:[%s5680_s1 + $0x6d8] sm:$0xf0] }
  0xe7   : > { %2206 = vmatpush.bf16.msra.mxu1 %v3483_v4  ;;  %v3519_v4 = vor.u32 %v3886_v22, %v3516_v13  ;;  %v3420_v13 = vld [vmem:[%s5680_s1 + $0x618] sm:$0xf0] }
  0xe8   : > { %2219 = vmatpush.bf16.msra.mxu2 %v3547_v17  ;;  %v3583_v17 = vor.u32 %v3902_v6, %v3580_v14  ;;  %v3878_v6 = vld [vmem:[%s5680_s1 + $0x694] sm:$0xf] }
  0xe9   : > { %2232 = vmatpush.bf16.msra.mxu3 %v3611_v5  ;;  %v3900_v5 = vld [vmem:[%s5680_s1 + $0x744] sm:$0xf]  ;;  %v3487_v9 = vor.u32 %v3878_v6, %v3484_v10 }
  0xea   : > { %2194 = vmatpush.bf16.msra.mxu0 %v3411_v37  ;;  %v1140_v26 = vpop.f32.mrf.mxu0  ;;  %v3575_v35 = vor.u32 %v3900_v5, %v3572_v25  ;;  %v3866_v37 = vld [vmem:[%s5680_s1 + $0x634] sm:$0xf]  ;;  %v3876_v5 = vld [vmem:[%s5680_s1 + $0x684] sm:$0xf] }
  0xeb   : > { %2207 = vmatpush.bf16.msra.mxu1 %v3475_v38  ;;  %v1141_v29 = vadd.f32 %v1140_v26, %v5297_v15  ;;  %v1153_v32 = vpop.f32.mrf.mxu1  ;;  %v3436_v38 = vld [vmem:[%s5680_s1 + $0x638] sm:$0xf0]  ;;  %v3639_v15 = vor.u32 %v3916_v27, %v3636_v28  ;;  %v3476_v26 = vld [vmem:[%s5680_s1 + $0x688] sm:$0xf0]  ;;  %v3892_v27 = vld [vmem:[%s5680_s1 + $0x704] sm:$0xf] }
  0xec   : > { %2220 = vmatpush.bf16.msra.mxu2 %v3539_v44  ;;  %v3898_v44 = vld [vmem:[%s5680_s1 + $0x734] sm:$0xf]  ;;  %v3540_v28 = vld [vmem:[%s5680_s1 + $0x708] sm:$0xf0] }
  0xed   : > { %2233 = vmatpush.bf16.msra.mxu3 %v3603_v50  ;;  %2195 = vmatmul.bf16.vlgmr.msra.gmra.mxu0 %v1859_v2  ;;  %v1154_v42 = vadd.f32 %v1153_v32, %v1141_v29  ;;  %v3628_v50 = vld [vmem:[%s5680_s1 + $0x7b8] sm:$0xf0]  ;;  %v3567_v55 = vor.u32 %v3898_v44, %v3564_v45  ;;  %v3604_v32 = vld [vmem:[%s5680_s1 + $0x788] sm:$0xf0] }
  0xee   : > { %2239 = vmatpush.bf16.msrb.mxu0 %v3471_v51  ;;  %2208 = vmatmul.bf16.vlgmr.msra.gmra.mxu1 %v1860_v7  ;;  %v3439_v51 = vor.u32 %v3866_v37, %v3436_v38  ;;  %v3631_v56 = vor.u32 %v3914_v47, %v3628_v50  ;;  %v3479_v37 = vor.u32 %v3876_v5, %v3476_v26 }
  0xef   : > { %2252 = vmatpush.bf16.msrb.mxu1 %v3535_v30  ;;  %2221 = vmatmul.bf16.vlgmr.msra.gmra.mxu2 %v1861_v53  ;;  %v3864_v30 = vld [vmem:[%s5680_s1 + $0x624] sm:$0xf]  ;;  %v3543_v38 = vor.u32 %v3892_v27, %v3540_v28 }
  0xf0   : > { %2265 = vmatpush.bf16.msrb.mxu2 %v3599_v46  ;;  %2234 = vmatmul.bf16.vlgmr.msra.gmra.mxu3 %v1862_v62  ;;  %v3428_v46 = vld [vmem:[%s5680_s1 + $0x628] sm:$0xf0] }
  0xf1   : > { %2278 = vmatpush.bf16.msrb.mxu3 %v3663_v33  ;;  %v3896_v33 = vld [vmem:[%s5680_s1 + $0x724] sm:$0xf] }
  0xf2   : > { %2240 = vmatpush.bf16.msrb.mxu0 %v3463_v3  ;;  %v1166_v57 = vpop.f32.mrf.mxu2  ;;  %v3620_v3 = vld [vmem:[%s5680_s1 + $0x7a8] sm:$0xf0]  ;;  %v1142_v8 = vpop.f32.mrf.mxu0  ;;  %v3559_v22 = vor.u32 %v3896_v33, %v3556_v59 }
  0xf3   : > { %2253 = vmatpush.bf16.msrb.mxu1 %v3527_v61  ;;  %v1167_v60 = vadd.f32 %v1166_v57, %v1154_v42  ;;  %v1179_v63 = vpop.f32.mrf.mxu3  ;;  %v3431_v61 = vor.u32 %v3864_v30, %v3428_v46  ;;  %v3623_v14 = vor.u32 %v3912_v0, %v3620_v3 }
  0xf4   : > { %2266 = vmatpush.bf16.msrb.mxu2 %v3591_v11  ;;  %v1155_v11 = vpop.f32.mrf.mxu1 }
  0xf5   : > { %2279 = vmatpush.bf16.msrb.mxu3 %v3655_v1  ;;  %v5590_v12 = vadd.f32 %v1179_v63, %v1167_v60  ;;  %v3862_v1 = vld [vmem:[%s5680_s1 + $0x614] sm:$0xf] }
  0xf6   : > { %2241 = vmatpush.bf16.msrb.mxu0 %v3455_v16  ;;  %v3548_v16 = vld [vmem:[%s5680_s1 + $0x718] sm:$0xf0]  ;;  %v3423_v19 = vor.u32 %v3862_v1, %v3420_v13  ;;  %v2293_v1 = vld [vmem:[%s5681_s2] sm:$0x3] }
  0xf7   : > { %2254 = vmatpush.bf16.msrb.mxu1 %v3519_v4  ;;  %v3910_v4 = vld [vmem:[%s5680_s1 + $0x794] sm:$0xf]  ;;  %v3551_v20 = vor.u32 %v3894_v18, %v3548_v16 }
  0xf8   : > { %2267 = vmatpush.bf16.msrb.mxu2 %v3583_v17  ;;  %v3612_v17 = vld [vmem:[%s5680_s1 + $0x798] sm:$0xf0] }
  0xf9   : > { %2280 = vmatpush.bf16.msrb.mxu3 %v3647_v23  ;;  %v3860_v23 = vld [vmem:[%s5680_s1 + $0x604] sm:$0xf]  ;;  %v3615_v25 = vor.u32 %v3910_v4, %v3612_v17 }
  0xfa   : > { %2242 = vmatpush.bf16.msrb.mxu0 %v3447_v31  ;;  %v1168_v29 = vpop.f32.mrf.mxu2  ;;  %v3908_v31 = vld [vmem:[%s5680_s1 + $0x784] sm:$0xf] }
  0xfb   : > { %2255 = vmatpush.bf16.msrb.mxu1 %v3511_v34  ;;  %v1181_v34 = vpop.f32.mrf.mxu3  ;;  %v3607_v39 = vor.u32 %v3908_v31, %v3604_v32 }
  0xfc   : > { %2268 = vmatpush.bf16.msrb.mxu2 %v3575_v35  ;;  %v3415_v35 = vor.u32 %v3860_v23, %v3412_v24 }
  0xfd   : > { %2281 = vmatpush.bf16.msrb.mxu3 %v3639_v15 }
  0xfe   : > { %2243 = vmatpush.bf16.msrb.mxu0 %v3439_v51 }
  0xff   : > { %2256 = vmatpush.bf16.msrb.mxu1 %v3503_v52 }
 0x100   : > { %2269 = vmatpush.bf16.msrb.mxu2 %v3567_v55 }
 0x101   : > { %2282 = vmatpush.bf16.msrb.mxu3 %v3631_v56 }
 0x102   : > { %2244 = vmatpush.bf16.msrb.mxu0 %v3431_v61 }
 0x103   : > { %2257 = vmatpush.bf16.msrb.mxu1 %v3495_v21 }
 0x104   : > { %2270 = vmatpush.bf16.msrb.mxu2 %v3559_v22 }
 0x105   : > { %2283 = vmatpush.bf16.msrb.mxu3 %v3623_v14  ;;  %v2295_v14 = vperm.slane %v2293_v1, 0 }
 0x106   : > { %2245 = vmatpush.bf16.msrb.mxu0 %v3423_v19 }
 0x107   : > { %2258 = vmatpush.bf16.msrb.mxu1 %v3487_v9 }
 0x108   : > { %2271 = vmatpush.bf16.msrb.mxu2 %v3551_v20 }
 0x109   : > { %2284 = vmatpush.bf16.msrb.mxu3 %v3615_v25 }
 0x10a   : > { %2246 = vmatpush.bf16.msrb.mxu0 %v3415_v35  ;;  %v1192_v15 = vpop.f32.mrf.mxu0 }
 0x10b   : > { %2259 = vmatpush.bf16.msrb.mxu1 %v3479_v37  ;;  %v1193_v42 = vadd.f32 %v1192_v15, %v5427_v36  ;;  %v1205_v43 = vpop.f32.mrf.mxu1 }
 0x10c   : > { %2272 = vmatpush.bf16.msrb.mxu2 %v3543_v38 }
 0x10d   : > { %2285 = vmatpush.bf16.msrb.mxu3 %v3607_v39  ;;  %2247 = vmatmul.bf16.vlgmr.msrb.gmra.mxu0 %v1859_v2  ;;  %v1206_v44 = vadd.f32 %v1205_v43, %v1193_v42 }
 0x10e   : > { %2260 = vmatmul.bf16.vlgmr.msrb.gmra.mxu1 %v1860_v7 }
 0x10f   : > { %2273 = vmatmul.bf16.vlgmr.msrb.gmra.mxu2 %v1861_v53 }
 0x110   : > { %2286 = vmatmul.bf16.vlgmr.msrb.gmra.mxu3 %v1862_v62 }
 0x112   : > { %v1218_v45 = vpop.f32.mrf.mxu2  ;;  %v1194_v51 = vpop.f32.mrf.mxu0 }
 0x113   : > { %v1219_v47 = vadd.f32 %v1218_v45, %v1206_v44  ;;  %v1231_v50 = vpop.f32.mrf.mxu3  ;;  %v1207_v49 = vpop.f32.mrf.mxu1 }
 0x115   : > { %v5649_v2 = vadd.f32 %v1231_v50, %v1219_v47 }
 0x11a   : > { %v1220_v54 = vpop.f32.mrf.mxu2 }
 0x11b   : > { %v1233_v7 = vpop.f32.mrf.mxu3 }
 0x12a   : > { %v1685_v52 = vpop.f32.mrf.mxu0 }
 0x12b   : > { %v1698_v40 = vpop.f32.mrf.mxu1 }
 0x12c   : > { %v1699_v53 = vadd.f32 %v1698_v40, %v1685_v52 }
 0x132   : > { %v1711_v55 = vpop.f32.mrf.mxu2  ;;  %v1687_v46 = vpop.f32.mrf.mxu0 }
 0x133   : > { %v1712_v41 = vadd.f32 %v1711_v55, %v1699_v53  ;;  %v1724_v62 = vpop.f32.mrf.mxu3  ;;  %v1700_v36 = vpop.f32.mrf.mxu1 }
 0x135   : > { %v1725_v30 = vadd.f32 %v1724_v62, %v1712_v41 }
 0x137   : > { %v1780_v48 = vadd.f32 %v1725_v30, %v5590_v12  ;;  %v2296_v30 = vperm.slane %v2293_v1, 1 }
 0x13a   : > { %v1713_v56 = vpop.f32.mrf.mxu2 }
 0x13b   : > { %v1726_v57 = vpop.f32.mrf.mxu3 }
 0x149   : > { %v5655_v4 = vpop.permute.xlu0 %2304 }
 0x14a   : > { %v1737_v58 = vpop.f32.mrf.mxu0 }
 0x14b   : > { %v1750_v33 = vpop.f32.mrf.mxu1 }
 0x14c   : > { %v1751_v37 = vadd.f32 %v1750_v33, %v1737_v58 }
 0x152   : > { %v1763_v59 = vpop.f32.mrf.mxu2  ;;  %v1739_v63 = vpop.f32.mrf.mxu0 }
 0x153   : > { %v1776_v60 = vpop.f32.mrf.mxu3  ;;  %v1752_v0 = vpop.f32.mrf.mxu1  ;;  %v1764_v45 = vadd.f32 %v1763_v59, %v1751_v37 }
 0x155   : > { %v1777_v49 = vadd.f32 %v1776_v60, %v1764_v45 }
 0x157   : > { %v1781_v41 = vadd.f32 %v1777_v49, %v5649_v2 }
 0x15a   : > { %v1765_v3 = vpop.f32.mrf.mxu2 }
 0x15b   : > { %v1778_v8 = vpop.f32.mrf.mxu3 }
 0x16a   : > { %v2196_v61 = vpop.f32.mrf.mxu0 }
 0x16b   : > { %v2209_v11 = vpop.f32.mrf.mxu1 }
 0x16c   : > { %v2210_v21 = vadd.f32 %v2209_v11, %v2196_v61 }
 0x172   : > { %v2222_v22 = vpop.f32.mrf.mxu2  ;;  %v2198_v10 = vpop.f32.mrf.mxu0 }
 0x173   : > { %v2223_v13 = vadd.f32 %v2222_v22, %v2210_v21  ;;  %v2235_v12 = vpop.f32.mrf.mxu3  ;;  %v2211_v18 = vpop.f32.mrf.mxu1 }
 0x175   : > { %v2236_v6 = vadd.f32 %v2235_v12, %v2223_v13 }
 0x177   : > { %v2291_v16 = vadd.f32 %v2236_v6, %v1780_v48 }
 0x179   : > { %v2299_v17 = vadd.f32 %v2295_v14, %v2291_v16 }
 0x17a   : > { %v2224_v19 = vpop.f32.mrf.mxu2 }
 0x17b   : > { %v5658_v9 = vmul.f32 %v5655_v4, %v2299_v17  ;;  %v2237_v20 = vpop.f32.mrf.mxu3 }
 0x17d   : > { %v2310_v23 = vsel %vm2309_vm0, %v5658_v9, 0.0  ;;  %v2324_v24 = vmul.f32 %v5658_v9, %v5658_v9 }
 0x17e   : > { %v2311_v5 = vrot.slane %v2310_v23, 4 }
 0x17f   : > { %v2326_v25 = vsel %vm2309_vm0, %v2324_v24, 0.0 }
 0x180   : > { %v2312_v26 = vadd.f32 %v2311_v5, %v2310_v23  ;;  %v2327_v27 = vrot.slane %v2326_v25, 4 }
 0x182   : > { %v2313_v28 = vrot.slane %v2312_v26, 2  ;;  %v2328_v29 = vadd.f32 %v2327_v27, %v2326_v25 }
 0x184   : > { %v2314_v31 = vadd.f32 %v2313_v28, %v2312_v26  ;;  %v2329_v32 = vrot.slane %v2328_v29, 2 }
 0x186   : > { %v2315_v34 = vrot.slane %v2314_v31, 1  ;;  %v2330_v35 = vadd.f32 %v2329_v32, %v2328_v29 }
 0x188   : > { %v2316_v38 = vadd.f32 %v2315_v34, %v2314_v31  ;;  %v2331_v39 = vrot.slane %v2330_v35, 1 }
 0x18a   : > { %v2248_v15 = vpop.f32.mrf.mxu0  ;;  %v2332_v42 = vadd.f32 %v2331_v39, %v2330_v35  ;;  %v2340_v43 = vmul.f32 0.25, %v2316_v38 }
 0x18b   : > { %v2261_v44 = vpop.f32.mrf.mxu1 }
 0x18c   : > { %v2262_v47 = vadd.f32 %v2261_v44, %v2248_v15  ;;  %v2342_v50 = vmul.f32 0.25, %v2332_v42  ;;  %v2344_v51 = vmul.f32 %v2340_v43, %v2340_v43  ;;  %v2350_v32 = vsub.f32 %v5658_v9, %v2340_v43 }
 0x18e   : > { %v2346_v53 = vsub.f32 %v2342_v50, %v2344_v51 }
 0x190   : > { %v2348_v36 = vmax.f32 %v2346_v53, 0.0 }
 0x192   : > { %v2274_v54 = vpop.f32.mrf.mxu2  ;;  %v2250_v40 = vpop.f32.mrf.mxu0  ;;  %v2352_v33 = vadd.f32 1e-05, %v2348_v36 }
 0x193   : > { %v2275_v7 = vadd.f32 %v2274_v54, %v2262_v47  ;;  %v2287_v52 = vpop.f32.mrf.mxu3  ;;  %v2263_v55 = vpop.f32.mrf.mxu1 }
 0x194   : > { %3934 = vrsqrt.f32 %v2352_v33  ;;  %vm2360_vm2 = vweird.f32 %v2352_v33 }
 0x195   : > { %v2288_v62 = vadd.f32 %v2287_v52, %v2275_v7 }
 0x197   : > { %v2292_v46 = vadd.f32 %v2288_v62, %v1781_v41 }
 0x199   : > { %v2300_v48 = vadd.f32 %v2296_v30, %v2292_v46 }
 0x19a   : > { %v2276_v56 = vpop.f32.mrf.mxu2  ;;  %v3935_v22 = vpop.eup %3934 }
 0x19b   : > { %v2308_v57 = vmul.f32 %v5655_v4, %v2300_v48  ;;  %v2289_v58 = vpop.f32.mrf.mxu3  ;;  %v2355_v14 = vmul.f32 %v3935_v22, %v2352_v33  ;;  %vm2361_vm1 = vweird.f32 %v3935_v22 }
 0x19c   : > { %vm2362_vm3 = vmor %vm2360_vm2, %vm2361_vm1 }
 0x19d   : > { %v2317_v59 = vsel %vm2309_vm0, %v2308_v57, 0.0  ;;  %v2325_v60 = vmul.f32 %v2308_v57, %v2308_v57  ;;  %v2356_v19 = vmul.f32 %v3935_v22, %v2355_v14 }
 0x19e   : > { %v2318_v63 = vrot.slane %v2317_v59, 4 }
 0x19f   : > { %v2333_v0 = vsel %vm2309_vm0, %v2325_v60, 0.0  ;;  %v2357_v24 = vmul.f32 0.5, %v2356_v19 }
 0x1a0   : > { %v2319_v3 = vadd.f32 %v2318_v63, %v2317_v59  ;;  %v2334_v8 = vrot.slane %v2333_v0, 4 }
 0x1a1   : > { %v2358_v25 = vsub.f32 1.5, %v2357_v24 }
 0x1a2   : > { %v2320_v2 = vrot.slane %v2319_v3, 2  ;;  %v2335_v61 = vadd.f32 %v2334_v8, %v2333_v0 }
 0x1a3   : > { %v2359_v26 = vmul.f32 %v3935_v22, %v2358_v25 }
 0x1a4   : > { %v2321_v11 = vadd.f32 %v2320_v2, %v2319_v3  ;;  %v2336_v21 = vrot.slane %v2335_v61, 2 }
 0x1a5   : > { %v2363_v29 = vsel %vm2362_vm3, %v3935_v22, %v2359_v26 }
 0x1a6   : > { %v2322_v1 = vrot.slane %v2321_v11, 1  ;;  %v2337_v13 = vadd.f32 %v2336_v21, %v2335_v61  ;;  %v2374_v35 = vmul.f32 %v2363_v29, %v2350_v32 }
 0x1a8   : > { %v2323_v12 = vadd.f32 %v2322_v1, %v2321_v11  ;;  %v2338_v6 = vrot.slane %v2337_v13, 1  ;;  %v2376_v39 = vmul.f32 0.2, %v2374_v35 }
 0x1aa   : > { %v2339_v10 = vadd.f32 %v2338_v6, %v2337_v13  ;;  %v2341_v18 = vmul.f32 0.25, %v2323_v12  ;;  %v2378_v45 = vmax.f32 %v2374_v35, %v2376_v39 }
 0x1ac   : > { %v2343_v16 = vmul.f32 0.25, %v2339_v10  ;;  %v2345_v17 = vmul.f32 %v2341_v18, %v2341_v18  ;;  %v2351_v15 = vsub.f32 %v2308_v57, %v2341_v18  ;;  %v2380_v51 = vmul.f32 %v2378_v45, %v5655_v4 }
 0x1ae   : > { %v2347_v20 = vsub.f32 %v2343_v16, %v2345_v17 }
 0x1b0   : > { %v2349_v23 = vmax.f32 %v2347_v20, 0.0 }
 0x1b2   : > { %v2353_v5 = vadd.f32 1e-05, %v2349_v23 }
 0x1b4   : > { %3936 = vrsqrt.f32 %v2353_v5  ;;  %vm2370_vm5 = vweird.f32 %v2353_v5 }
 0x1ba   : > { %v3937_v27 = vpop.eup %3936 }
 0x1bb   : > { %v2365_v28 = vmul.f32 %v3937_v27, %v2353_v5  ;;  %vm2371_vm4 = vweird.f32 %v3937_v27 }
 0x1bc   : > { %vm2372_vm6 = vmor %vm2370_vm5, %vm2371_vm4 }
 0x1bd   : > { %v2366_v31 = vmul.f32 %v3937_v27, %v2365_v28 }
 0x1bf   : > { %v2367_v34 = vmul.f32 0.5, %v2366_v31 }
 0x1c1   : > { %v2368_v37 = vsub.f32 1.5, %v2367_v34 }
 0x1c3   : > { %v2369_v38 = vmul.f32 %v3937_v27, %v2368_v37 }
 0x1c5   : > { %v2373_v42 = vsel %vm2372_vm6, %v3937_v27, %v2369_v38 }
 0x1c6   : > { %v2375_v44 = vmul.f32 %v2373_v42, %v2351_v15 }
 0x1c8   : > { %v2377_v47 = vmul.f32 0.2, %v2375_v44 }
 0x1ca   : > { %v2379_v50 = vmax.f32 %v2375_v44, %v2377_v47 }
 0x1cc   : > { %v2381_v49 = vmul.f32 %v2379_v50, %v5655_v4 }
 0x1ce   : > { %v2382_v9 = vpack.c.bf16 %v2381_v49, %v2380_v51 }
 0x1d0   : > { %2383 = vst [vmem:[%s197_s24] sm:$0x77] %v2382_v9 }
 0x1d1 PF: > { %s14_s15 = sadd.s32 1, %s3944_s15  }
 0x1d2   : > { %p11_p4 = scmp.ge.s32.totalorder %s14_s15, 4  }
 0x1d4   :  { %13 = sbr.rel (!%p11_p4) target bundleno = 1 (0x1), region = 69 }

</bundles_post_ra>
